<compile_context>
chip_gen: v7x
topology: tpu7x:2x2x1
jax: 0.10.0
libtpu: 0.0.40
codegen_flags: <defaults>
</compile_context>

<pallas_src>
import functools

import jax
import jax.numpy as jnp
from jax.experimental import pallas as pl
from jax.experimental.pallas import tpu as pltpu

_LPAD = 8     # left margin of the padded conv scratch (sublane-tile aligned interior write)
_LANE = 128   # all channel axes are zero-padded to a multiple of the TPU lane width


def _round_up(x, m):
    return ((x + m - 1) // m) * m


# ----------------------------------------------------------------------------
# In-kernel math helpers
# ----------------------------------------------------------------------------
def _erf(x):
    # erfc rational approximation (|err| < 1.2e-7): matches torch's exact
    # (erf-based) GELU to f32 precision using only VPU/EUP ops.
    z = jnp.abs(x)
    t = 1.0 / (1.0 + 0.5 * z)
    poly = (-z * z - 1.26551223 + t * (1.00002368 + t * (0.37409196 + t * (0.09678418 +
            t * (-0.18628806 + t * (0.27886807 + t * (-1.13520398 + t * (1.48851587 +
            t * (-0.82215223 + t * 0.17087277)))))))))
    erfc = t * jnp.exp(poly)
    return jnp.where(x >= 0.0, 1.0 - erfc, erfc - 1.0)


def _gelu_exact(x):
    return 0.5 * x * (1.0 + _erf(x * 0.7071067811865476))


# ----------------------------------------------------------------------------
# Fused Down kernel: one grid step == NB samples, everything resident in VMEM
# ----------------------------------------------------------------------------
def _down_fused_kernel(
    x_ref,                        # (NB, 4, HW, Cin_p)   pool-window-major, channel-minor
    emb_ref,                      # (NB, Cout_p)         Linear(SiLU(t)) precomputed in wrapper
    w1a_ref, g1a_ref, b1a_ref,    # DC1 conv1: (9*Cin_p, Cin_p), (1, Cin_p), (1, Cin_p)
    w1b_ref, g1b_ref, b1b_ref,    # DC1 conv2
    w2a_ref, g2a_ref, b2a_ref,    # DC2 conv1: (9*Cin_p, Cmid_p), ...
    w2b_ref, g2b_ref, b2b_ref,    # DC2 conv2: (9*Cmid_p, Cout_p), ...
    o_ref,                        # (NB, HW, Cout_p)
    pad_ref,                      # scratch (H2+2, W2+16, Cact) f32, zero margins
    col_ref,                      # scratch (NB*HW, 9*Cact)  im2col, matmul dtype
    *, NB, H2, W2, HW, cin_p, cmid_p, cout_p, cin_r, cmid_r, cout_r,
):
    f32 = jnp.float32

    # Zero margins provide padding=1 for every conv.  Re-zeroed every step:
    # scratch is per-core & uninitialized and under "parallel" megacore
    # partitioning not every core sees program_id 0 (small cost vs. matmuls).
    pad_ref[...] = jnp.zeros(pad_ref.shape, pad_ref.dtype)

    # ---- MaxPool2d(2): 3 VPU maxes on the resident tile --------------------
    xv = x_ref[...].astype(f32)                                   # (NB, 4, HW, Cin_p)
    pooled = jnp.maximum(jnp.maximum(xv[:, 0], xv[:, 1]),
                         jnp.maximum(xv[:, 2], xv[:, 3]))         # (NB, HW, Cin_p)

    def conv3x3_gn(act, c_in_p, w_ref_, g_ref_, b_ref_, c_out_p, c_out_r, gelu):
        """Conv2d(3x3, pad=1, bias=False) -> GroupNorm(1, c_out) [-> GELU].

        Build an im2col slab (9 lane-aligned (HW, c_in_p) column-block writes
        per sample), then ONE (NB*HW, 9*c_in_p) x (9*c_in_p, c_out_p) MXU
        matmul with f32 accumulation; GN/GELU epilogues on the accumulator."""
        for s in range(NB):
            # interior write at sublane offset _LPAD (tile-aligned)
            pad_ref[pl.ds(1, H2), pl.ds(_LPAD, W2), pl.ds(0, c_in_p)] = (
                act[s].reshape(H2, W2, c_in_p))
            k = 0
            for dy in range(3):
                for dx in range(3):
                    tap = pad_ref[pl.ds(dy, H2),
                                  pl.ds(_LPAD - 1 + dx, W2),
                                  pl.ds(0, c_in_p)].reshape(HW, c_in_p)
                    col_ref[pl.ds(s * HW, HW), pl.ds(k * c_in_p, c_in_p)] = (
                        tap.astype(col_ref.dtype))
                    k += 1

        a = col_ref[:, pl.ds(0, 9 * c_in_p)]                       # (NB*HW, 9*c_in_p)
        acc = jnp.dot(a, w_ref_[...], preferred_element_type=f32)  # (NB*HW, c_out_p)
        acc = acc.reshape(NB, HW, c_out_p)

        # GroupNorm(num_groups=1): per-sample stats over the REAL channels.
        # Padded output channels are exactly zero (zero weight columns), so
        # the raw sums only see real channels; the mean-subtracted sum of
        # squares gets an exact correction for those zero columns.
        inv_n = 1.0 / float(HW * c_out_r)
        s1 = jnp.sum(jnp.sum(acc, axis=2, keepdims=True), axis=1, keepdims=True)
        mean = s1 * inv_n
        d = acc - mean
        ss = jnp.sum(jnp.sum(d * d, axis=2, keepdims=True), axis=1, keepdims=True)
        if c_out_p > c_out_r:
            ss = ss - float(HW * (c_out_p - c_out_r)) * mean * mean
        var = jnp.maximum(ss * inv_n, 0.0)                         # biased, like torch
        y = d * jax.lax.rsqrt(var + 1e-5)
        y = y * g_ref_[...].reshape(1, 1, c_out_p) + b_ref_[...].reshape(1, 1, c_out_p)
        if gelu:
            y = _gelu_exact(y)
        return y   # (NB, HW, c_out_p); padded channels stay exactly zero

    # ---- DoubleConv(Cin, Cin, residual=True) -------------------------------
    h = conv3x3_gn(pooled, cin_p, w1a_ref, g1a_ref, b1a_ref, cin_p, cin_r, True)
    h = conv3x3_gn(h, cin_p, w1b_ref, g1b_ref, b1b_ref, cin_p, cin_r, False)
    r = _gelu_exact(pooled + h)                       # F.gelu(x + double_conv(x))

    # ---- DoubleConv(Cin, Cout)  (mid_channels == Cout) ----------------------
    h = conv3x3_gn(r, cin_p, w2a_ref, g2a_ref, b2a_ref, cmid_p, cmid_r, True)
    h = conv3x3_gn(h, cmid_p, w2b_ref, g2b_ref, b2b_ref, cout_p, cout_r, False)

    # ---- + emb_layer(t) (hoisted; just a broadcast add here) ----------------
    o_ref[...] = (h + emb_ref[...][:, None, :]).astype(o_ref.dtype)


# ----------------------------------------------------------------------------
# Down.forward wrapper
# ----------------------------------------------------------------------------
def down_forward(x_nchw, t, params, *, matmul_dtype=jnp.bfloat16,
                 samples_per_step=1, out_nchw=True):
    """Conv weights are HWIO (3,3,Cin,Cout); emb weight is (EMB, Cout).
    (PyTorch OIHW conv weights map via w.transpose(2,3,1,0), nn.Linear via .T.)"""
    N, Cin, H, W = x_nchw.shape
    assert H % 2 == 0 and W % 2 == 0, "MaxPool2d(2) path requires even H, W"
    H2, W2 = H // 2, W // 2
    HW = H2 * W2
    Cmid = params["dc2_w1"].shape[-1]
    Cout = params["dc2_w2"].shape[-1]

    NB = samples_per_step
    assert N % NB == 0, "samples_per_step must divide the batch"
    G = N // NB

    mm_dt = jnp.float32 if matmul_dtype is None else matmul_dtype
    Cin_p, Cmid_p, Cout_p = (_round_up(c, _LANE) for c in (Cin, Cmid, Cout))
    Cact = max(Cin_p, Cmid_p)                  # widest conv *input* channel count

    # -- input: NCHW -> pool-window-major / channel-minor (one XLA transpose),
    #    channels zero-padded to lane width:  x6[n, 2a+b, i*W2+j, c] = x[n,c,2i+a,2j+b]
    x6 = jnp.transpose(x_nchw.reshape(N, Cin, H2, 2, W2, 2), (0, 3, 5, 2, 4, 1))
    x6 = x6.reshape(N, 4, HW, Cin).astype(jnp.float32)
    x6 = jnp.pad(x6, ((0, 0), (0, 0), (0, 0), (0, Cin_p - Cin)))
    x6 = x6.reshape(G, NB, 4, HW, Cin_p)

    # -- emb_layer(t) hoisted out of the kernel: one batched XLA matmul -------
    emb = jnp.dot(jax.nn.silu(t.astype(jnp.float32)),
                  params["emb_w"].astype(jnp.float32),
                  precision=jax.lax.Precision.HIGHEST) + params["emb_b"]
    emb = jnp.pad(emb, ((0, 0), (0, Cout_p - Cout)))
    emb = emb.reshape(G, NB, Cout_p).astype(jnp.float32)

    def prep_w(w, ci_p, co_p):
        # (3,3,ci,co) -> (9*ci_p, co_p); padded rows/cols are zero so padded
        # channels stay exactly zero through the whole block.  Cast ONCE here.
        ci, co = w.shape[2], w.shape[3]
        w9 = jnp.pad(w.astype(jnp.float32).reshape(9, ci, co),
                     ((0, 0), (0, ci_p - ci), (0, co_p - co)))
        return w9.reshape(9 * ci_p, co_p).astype(mm_dt)

    def prep_gb(v, c_p):
        return jnp.pad(v.astype(jnp.float32), (0, c_p - v.shape[0])).reshape(1, c_p)

    args = (
        x6, emb,
        prep_w(params["dc1_w1"], Cin_p, Cin_p),
        prep_gb(params["dc1_g1"], Cin_p), prep_gb(params["dc1_b1"], Cin_p),
        prep_w(params["dc1_w2"], Cin_p, Cin_p),
        prep_gb(params["dc1_g2"], Cin_p), prep_gb(params["dc1_b2"], Cin_p),
        prep_w(params["dc2_w1"], Cin_p, Cmid_p),
        prep_gb(params["dc2_g1"], Cmid_p), prep_gb(params["dc2_b1"], Cmid_p),
        prep_w(params["dc2_w2"], Cmid_p, Cout_p),
        prep_gb(params["dc2_g2"], Cout_p), prep_gb(params["dc2_b2"], Cout_p),
    )

    def const_spec(a):   # whole array, same block every step => DMA'd once
        return pl.BlockSpec(a.shape, lambda n, _z=(0,) * a.ndim: _z)

    in_specs = [
        pl.BlockSpec((None, NB, 4, HW, Cin_p), lambda n: (n, 0, 0, 0, 0)),
        pl.BlockSpec((None, NB, Cout_p), lambda n: (n, 0, 0)),
    ] + [const_spec(a) for a in args[2:]]

    # VMEM budget: double-buffered I/O blocks + resident weights + scratch.
    w_bytes = sum(int(a.size) * a.dtype.itemsize for a in args[2:])
    io_bytes = (int(x6.size) // G + int(emb.size) // G + NB * HW * Cout_p) * 4
    scr_bytes = ((H2 + 2) * (W2 + 16) * Cact * 4
                 + NB * HW * 9 * Cact * jnp.dtype(mm_dt).itemsize)
    est = 2 * (w_bytes + io_bytes) + scr_bytes + (2 << 20)
    vmem_limit = int(min(max(2 * est, 32 * 1024 * 1024), 64 * 1024 * 1024))

    kernel = functools.partial(
        _down_fused_kernel, NB=NB, H2=H2, W2=W2, HW=HW,
        cin_p=Cin_p, cmid_p=Cmid_p, cout_p=Cout_p,
        cin_r=Cin, cmid_r=Cmid, cout_r=Cout)

    out = pl.pallas_call(
        kernel,
        grid=(G,),
        in_specs=in_specs,
        out_specs=pl.BlockSpec((None, NB, HW, Cout_p), lambda n: (n, 0, 0, 0)),
        out_shape=jax.ShapeDtypeStruct((G, NB, HW, Cout_p), jnp.float32),
        scratch_shapes=[
            pltpu.VMEM((H2 + 2, W2 + 16, Cact), jnp.float32),   # zero-padded conv tile
            pltpu.VMEM((NB * HW, 9 * Cact), mm_dt),             # im2col (128-aligned blocks)
        ],
        compiler_params=pltpu.CompilerParams(
            dimension_semantics=("parallel",),     # batch blocks -> both TCs on v7x
            vmem_limit_bytes=vmem_limit,
        ),
    )(*args)

    out = out.reshape(N, H2, W2, Cout_p)[..., :Cout]   # drop channel padding (NHWC)
    if out_nchw:
        out = jnp.transpose(out, (0, 3, 1, 2))          # NCHW for PyTorch parity
    return out


# ----------------------------------------------------------------------------
# Pure-JAX reference (no Pallas) for correctness checking
# ----------------------------------------------------------------------------
def _reference_down(x_nchw, t, params):
    x = jnp.transpose(x_nchw, (0, 2, 3, 1)).astype(jnp.float32)      # NHWC
    N, H, W, C = x.shape
    p = x.reshape(N, H // 2, 2, W // 2, 2, C).max(axis=(2, 4))

    def conv_gn(h, w, g, b, gelu):
        y = jax.lax.conv_general_dilated(
            h, w, (1, 1), "SAME",
            dimension_numbers=("NHWC", "HWIO", "NHWC"),
            precision=jax.lax.Precision.HIGHEST)
        mean = y.mean(axis=(1, 2, 3), keepdims=True)
        var = jnp.mean((y - mean) ** 2, axis=(1, 2, 3), keepdims=True)
        y = (y - mean) / jnp.sqrt(var + 1e-5) * g + b
        return jax.nn.gelu(y, approximate=False) if gelu else y

    h = conv_gn(p, params["dc1_w1"], params["dc1_g1"], params["dc1_b1"], True)
    h = conv_gn(h, params["dc1_w2"], params["dc1_g2"], params["dc1_b2"], False)
    r = jax.nn.gelu(p + h, approximate=False)
    h = conv_gn(r, params["dc2_w1"], params["dc2_g1"], params["dc2_b1"], True)
    h = conv_gn(h, params["dc2_w2"], params["dc2_g2"], params["dc2_b2"], False)
    emb = jnp.dot(jax.nn.silu(t), params["emb_w"],
                  precision=jax.lax.Precision.HIGHEST) + params["emb_b"]
    return jnp.transpose(h + emb[:, None, None, :], (0, 3, 1, 2))


# ----------------------------------------------------------------------------
if __name__ == "__main__":
    key = jax.random.PRNGKey(0)
    N, C_in, C_out, H, W, EMB = 2, 4, 8, 16, 16, 32
    ks = jax.random.split(key, 8)

    params = {
        # DoubleConv(C_in, C_in, residual=True)
        "dc1_w1": 0.1 * jax.random.normal(ks[0], (3, 3, C_in, C_in), jnp.float32),
        "dc1_g1": jnp.ones((C_in,), jnp.float32),
        "dc1_b1": jnp.zeros((C_in,), jnp.float32),
        "dc1_w2": 0.1 * jax.random.normal(ks[1], (3, 3, C_in, C_in), jnp.float32),
        "dc1_g2": jnp.ones((C_in,), jnp.float32),
        "dc1_b2": jnp.zeros((C_in,), jnp.float32),
        # DoubleConv(C_in, C_out)   (mid = C_out)
        "dc2_w1": 0.1 * jax.random.normal(ks[2], (3, 3, C_in, C_out), jnp.float32),
        "dc2_g1": jnp.ones((C_out,), jnp.float32),
        "dc2_b1": jnp.zeros((C_out,), jnp.float32),
        "dc2_w2": 0.1 * jax.random.normal(ks[3], (3, 3, C_out, C_out), jnp.float32),
        "dc2_g2": jnp.ones((C_out,), jnp.float32),
        "dc2_b2": jnp.zeros((C_out,), jnp.float32),
        # emb_layer: Linear(EMB, C_out), stored transposed (EMB, C_out)
        "emb_w": 0.1 * jax.random.normal(ks[4], (EMB, C_out), jnp.float32),
        "emb_b": 0.01 * jax.random.normal(ks[5], (C_out,), jnp.float32),
    }

    x = jax.random.normal(ks[6], (N, C_in, H, W), jnp.float32)   # NCHW, like PyTorch
    t = jax.random.normal(ks[7], (N, EMB), jnp.float32)

    fwd = jax.jit(down_forward,
                  static_argnames=("matmul_dtype", "samples_per_step", "out_nchw"))

    ref = _reference_down(x, t, params)

    # f32 matmul path: tight(ish) check of the fused kernel's semantics.
    out_f32 = jax.block_until_ready(fwd(x, t, params, matmul_dtype=None))
    assert out_f32.shape == (N, C_out, H // 2, W // 2), out_f32.shape
    assert bool(jnp.all(jnp.isfinite(out_f32)))
    err_f32 = float(jnp.max(jnp.abs(out_f32 - ref)))
    assert err_f32 < 2e-2, f"f32 path: max |pallas - reference| = {err_f32}"

    # Default bf16-MXU path (f32 accumulation): looser tolerance.
    out_bf16 = jax.block_until_ready(fwd(x, t, params))
    assert bool(jnp.all(jnp.isfinite(out_bf16)))
    err_bf16 = float(jnp.max(jnp.abs(out_bf16 - ref)))
    assert err_bf16 < 1.5e-1, f"bf16 path: max |pallas - reference| = {err_bf16}"

    # Batched grid steps (2 samples per step) must agree as well.
    out_nb2 = jax.block_until_ready(fwd(x, t, params, samples_per_step=2))
    err_nb2 = float(jnp.max(jnp.abs(out_nb2 - ref)))
    assert err_nb2 < 1.5e-1, f"NB=2 path: max |pallas - reference| = {err_nb2}"

    print("KERNEL_OK")
</pallas_src>

<mosaic_0001>
module attributes {stable_mosaic.version = 11 : i64} {
  func.func @_down_fused_kernel(%arg0: i32, %arg1: memref<1x1x4x64x128xf32, #tpu.memory_space<vmem>>, %arg2: memref<1x1x128xf32, #tpu.memory_space<vmem>>, %arg3: memref<1152x128xf32, #tpu.memory_space<vmem>>, %arg4: memref<1x128xf32, #tpu.memory_space<vmem>>, %arg5: memref<1x128xf32, #tpu.memory_space<vmem>>, %arg6: memref<1152x128xf32, #tpu.memory_space<vmem>>, %arg7: memref<1x128xf32, #tpu.memory_space<vmem>>, %arg8: memref<1x128xf32, #tpu.memory_space<vmem>>, %arg9: memref<1152x128xf32, #tpu.memory_space<vmem>>, %arg10: memref<1x128xf32, #tpu.memory_space<vmem>>, %arg11: memref<1x128xf32, #tpu.memory_space<vmem>>, %arg12: memref<1152x128xf32, #tpu.memory_space<vmem>>, %arg13: memref<1x128xf32, #tpu.memory_space<vmem>>, %arg14: memref<1x128xf32, #tpu.memory_space<vmem>>, %arg15: memref<1x1x64x128xf32, #tpu.memory_space<vmem>>, %arg16: memref<10x24x128xf32, #tpu.memory_space<vmem>>, %arg17: memref<64x1152xf32, #tpu.memory_space<vmem>>) attributes {dimension_semantics = [#tpu.dimension_semantics<parallel>], iteration_bounds = array<i64: 2>, scalar_prefetch = 0 : i64, scratch_operands = 2 : i64, tpu.core_type = #tpu.core_type<tc>, window_params = [{transform_indices = @transform_0, window_bounds = array<i64: 1, 1, 4, 64, 128>}, {transform_indices = @transform_1, window_bounds = array<i64: 1, 1, 128>}, {pipeline_mode = #tpu.pipeline_mode<synchronous>, transform_indices = @transform_2, window_bounds = array<i64: 1152, 128>}, {pipeline_mode = #tpu.pipeline_mode<synchronous>, transform_indices = @transform_3, window_bounds = array<i64: 1, 128>}, {pipeline_mode = #tpu.pipeline_mode<synchronous>, transform_indices = @transform_4, window_bounds = array<i64: 1, 128>}, {pipeline_mode = #tpu.pipeline_mode<synchronous>, transform_indices = @transform_5, window_bounds = array<i64: 1152, 128>}, {pipeline_mode = #tpu.pipeline_mode<synchronous>, transform_indices = @transform_6, window_bounds = array<i64: 1, 128>}, {pipeline_mode = #tpu.pipeline_mode<synchronous>, transform_indices = @transform_7, window_bounds = array<i64: 1, 128>}, {pipeline_mode = #tpu.pipeline_mode<synchronous>, transform_indices = @transform_8, window_bounds = array<i64: 1152, 128>}, {pipeline_mode = #tpu.pipeline_mode<synchronous>, transform_indices = @transform_9, window_bounds = array<i64: 1, 128>}, {pipeline_mode = #tpu.pipeline_mode<synchronous>, transform_indices = @transform_10, window_bounds = array<i64: 1, 128>}, {pipeline_mode = #tpu.pipeline_mode<synchronous>, transform_indices = @transform_11, window_bounds = array<i64: 1152, 128>}, {pipeline_mode = #tpu.pipeline_mode<synchronous>, transform_indices = @transform_12, window_bounds = array<i64: 1, 128>}, {pipeline_mode = #tpu.pipeline_mode<synchronous>, transform_indices = @transform_13, window_bounds = array<i64: 1, 128>}, {transform_indices = @transform_14, window_bounds = array<i64: 1, 1, 64, 128>}]} {
    %cst = arith.constant 0.000000e+00 : f32
    %0 = vector.broadcast %cst : f32 to vector<10x24x128xf32>
    %c0 = arith.constant 0 : index
    %c0_0 = arith.constant 0 : index
    %c0_1 = arith.constant 0 : index
    %1 = vector.load %arg16[%c0, %c0_0, %c0_1] : memref<10x24x128xf32, #tpu.memory_space<vmem>>, vector<10x24x128xf32>
    tpu.vector_store %arg16[%c0, %c0_0, %c0_1], %0 {strides = array<i32>} : memref<10x24x128xf32, #tpu.memory_space<vmem>>, vector<10x24x128xf32>,
    %c0_2 = arith.constant 0 : index
    %c0_3 = arith.constant 0 : index
    %c0_4 = arith.constant 0 : index
    %c0_5 = arith.constant 0 : index
    %c0_6 = arith.constant 0 : index
    %2 = vector.load %arg1[%c0_2, %c0_3, %c0_4, %c0_5, %c0_6] : memref<1x1x4x64x128xf32, #tpu.memory_space<vmem>>, vector<1x1x4x64x128xf32>
    %3 = vector.shape_cast %2 : vector<1x1x4x64x128xf32> to vector<1x4x64x128xf32>
    %4 = vector.extract_strided_slice %3 {offsets = [0, 0, 0, 0], sizes = [1, 1, 64, 128], strides = [1, 1, 1, 1]} : vector<1x4x64x128xf32> to vector<1x1x64x128xf32>
    %5 = vector.shape_cast %4 : vector<1x1x64x128xf32> to vector<1x64x128xf32>
    %6 = vector.extract_strided_slice %3 {offsets = [0, 1, 0, 0], sizes = [1, 1, 64, 128], strides = [1, 1, 1, 1]} : vector<1x4x64x128xf32> to vector<1x1x64x128xf32>
    %7 = vector.shape_cast %6 : vector<1x1x64x128xf32> to vector<1x64x128xf32>
    %8 = arith.maximumf %5, %7 : vector<1x64x128xf32>
    %9 = vector.extract_strided_slice %3 {offsets = [0, 2, 0, 0], sizes = [1, 1, 64, 128], strides = [1, 1, 1, 1]} : vector<1x4x64x128xf32> to vector<1x1x64x128xf32>
    %10 = vector.shape_cast %9 : vector<1x1x64x128xf32> to vector<1x64x128xf32>
    %11 = vector.extract_strided_slice %3 {offsets = [0, 3, 0, 0], sizes = [1, 1, 64, 128], strides = [1, 1, 1, 1]} : vector<1x4x64x128xf32> to vector<1x1x64x128xf32>
    %12 = vector.shape_cast %11 : vector<1x1x64x128xf32> to vector<1x64x128xf32>
    %13 = arith.maximumf %10, %12 : vector<1x64x128xf32>
    %14 = arith.maximumf %8, %13 : vector<1x64x128xf32>
    %15 = vector.shape_cast %14 : vector<1x64x128xf32> to vector<64x128xf32>
    %16 = vector.shape_cast %15 : vector<64x128xf32> to vector<8x8x128xf32>
    %c1 = arith.constant 1 : index
    %c8 = arith.constant 8 : index
    %c0_7 = arith.constant 0 : index
    %17 = vector.load %arg16[%c1, %c8, %c0_7] : memref<10x24x128xf32, #tpu.memory_space<vmem>>, vector<8x8x128xf32>
    tpu.vector_store %arg16[%c1, %c8, %c0_7], %16 {strides = array<i32>} : memref<10x24x128xf32, #tpu.memory_space<vmem>>, vector<8x8x128xf32>,
    %c0_8 = arith.constant 0 : index
    %c7 = arith.constant 7 : index
    %c0_9 = arith.constant 0 : index
    %18 = vector.load %arg16[%c0_8, %c7, %c0_9] : memref<10x24x128xf32, #tpu.memory_space<vmem>>, vector<8x8x128xf32>
    %19 = vector.shape_cast %18 : vector<8x8x128xf32> to vector<64x128xf32>
    %c0_10 = arith.constant 0 : index
    %c0_11 = arith.constant 0 : index
    %20 = vector.load %arg17[%c0_10, %c0_11] : memref<64x1152xf32, #tpu.memory_space<vmem>>, vector<64x128xf32>
    tpu.vector_store %arg17[%c0_10, %c0_11], %19 {strides = array<i32>} : memref<64x1152xf32, #tpu.memory_space<vmem>>, vector<64x128xf32>,
    %c0_12 = arith.constant 0 : index
    %c8_13 = arith.constant 8 : index
    %c0_14 = arith.constant 0 : index
    %21 = vector.load %arg16[%c0_12, %c8_13, %c0_14] : memref<10x24x128xf32, #tpu.memory_space<vmem>>, vector<8x8x128xf32>
    %22 = vector.shape_cast %21 : vector<8x8x128xf32> to vector<64x128xf32>
    %c0_15 = arith.constant 0 : index
    %c128 = arith.constant 128 : index
    %23 = vector.load %arg17[%c0_15, %c128] : memref<64x1152xf32, #tpu.memory_space<vmem>>, vector<64x128xf32>
    tpu.vector_store %arg17[%c0_15, %c128], %22 {strides = array<i32>} : memref<64x1152xf32, #tpu.memory_space<vmem>>, vector<64x128xf32>,
    %c0_16 = arith.constant 0 : index
    %c9 = arith.constant 9 : index
    %c0_17 = arith.constant 0 : index
    %24 = vector.load %arg16[%c0_16, %c9, %c0_17] : memref<10x24x128xf32, #tpu.memory_space<vmem>>, vector<8x8x128xf32>
    %25 = vector.shape_cast %24 : vector<8x8x128xf32> to vector<64x128xf32>
    %c0_18 = arith.constant 0 : index
    %c256 = arith.constant 256 : index
    %26 = vector.load %arg17[%c0_18, %c256] : memref<64x1152xf32, #tpu.memory_space<vmem>>, vector<64x128xf32>
    tpu.vector_store %arg17[%c0_18, %c256], %25 {strides = array<i32>} : memref<64x1152xf32, #tpu.memory_space<vmem>>, vector<64x128xf32>,
    %c1_19 = arith.constant 1 : index
    %c7_20 = arith.constant 7 : index
    %c0_21 = arith.constant 0 : index
    %27 = vector.load %arg16[%c1_19, %c7_20, %c0_21] : memref<10x24x128xf32, #tpu.memory_space<vmem>>, vector<8x8x128xf32>
    %28 = vector.shape_cast %27 : vector<8x8x128xf32> to vector<64x128xf32>
    %c0_22 = arith.constant 0 : index
    %c384 = arith.constant 384 : index
    %29 = vector.load %arg17[%c0_22, %c384] : memref<64x1152xf32, #tpu.memory_space<vmem>>, vector<64x128xf32>
    tpu.vector_store %arg17[%c0_22, %c384], %28 {strides = array<i32>} : memref<64x1152xf32, #tpu.memory_space<vmem>>, vector<64x128xf32>,
    %c1_23 = arith.constant 1 : index
    %c8_24 = arith.constant 8 : index
    %c0_25 = arith.constant 0 : index
    %30 = vector.load %arg16[%c1_23, %c8_24, %c0_25] : memref<10x24x128xf32, #tpu.memory_space<vmem>>, vector<8x8x128xf32>
    %31 = vector.shape_cast %30 : vector<8x8x128xf32> to vector<64x128xf32>
    %c0_26 = arith.constant 0 : index
    %c512 = arith.constant 512 : index
    %32 = vector.load %arg17[%c0_26, %c512] : memref<64x1152xf32, #tpu.memory_space<vmem>>, vector<64x128xf32>
    tpu.vector_store %arg17[%c0_26, %c512], %31 {strides = array<i32>} : memref<64x1152xf32, #tpu.memory_space<vmem>>, vector<64x128xf32>,
    %c1_27 = arith.constant 1 : index
    %c9_28 = arith.constant 9 : index
    %c0_29 = arith.constant 0 : index
    %33 = vector.load %arg16[%c1_27, %c9_28, %c0_29] : memref<10x24x128xf32, #tpu.memory_space<vmem>>, vector<8x8x128xf32>
    %34 = vector.shape_cast %33 : vector<8x8x128xf32> to vector<64x128xf32>
    %c0_30 = arith.constant 0 : index
    %c640 = arith.constant 640 : index
    %35 = vector.load %arg17[%c0_30, %c640] : memref<64x1152xf32, #tpu.memory_space<vmem>>, vector<64x128xf32>
    tpu.vector_store %arg17[%c0_30, %c640], %34 {strides = array<i32>} : memref<64x1152xf32, #tpu.memory_space<vmem>>, vector<64x128xf32>,
    %c2 = arith.constant 2 : index
    %c7_31 = arith.constant 7 : index
    %c0_32 = arith.constant 0 : index
    %36 = vector.load %arg16[%c2, %c7_31, %c0_32] : memref<10x24x128xf32, #tpu.memory_space<vmem>>, vector<8x8x128xf32>
    %37 = vector.shape_cast %36 : vector<8x8x128xf32> to vector<64x128xf32>
    %c0_33 = arith.constant 0 : index
    %c768 = arith.constant 768 : index
    %38 = vector.load %arg17[%c0_33, %c768] : memref<64x1152xf32, #tpu.memory_space<vmem>>, vector<64x128xf32>
    tpu.vector_store %arg17[%c0_33, %c768], %37 {strides = array<i32>} : memref<64x1152xf32, #tpu.memory_space<vmem>>, vector<64x128xf32>,
    %c2_34 = arith.constant 2 : index
    %c8_35 = arith.constant 8 : index
    %c0_36 = arith.constant 0 : index
    %39 = vector.load %arg16[%c2_34, %c8_35, %c0_36] : memref<10x24x128xf32, #tpu.memory_space<vmem>>, vector<8x8x128xf32>
    %40 = vector.shape_cast %39 : vector<8x8x128xf32> to vector<64x128xf32>
    %c0_37 = arith.constant 0 : index
    %c896 = arith.constant 896 : index
    %41 = vector.load %arg17[%c0_37, %c896] : memref<64x1152xf32, #tpu.memory_space<vmem>>, vector<64x128xf32>
    tpu.vector_store %arg17[%c0_37, %c896], %40 {strides = array<i32>} : memref<64x1152xf32, #tpu.memory_space<vmem>>, vector<64x128xf32>,
    %c2_38 = arith.constant 2 : index
    %c9_39 = arith.constant 9 : index
    %c0_40 = arith.constant 0 : index
    %42 = vector.load %arg16[%c2_38, %c9_39, %c0_40] : memref<10x24x128xf32, #tpu.memory_space<vmem>>, vector<8x8x128xf32>
    %43 = vector.shape_cast %42 : vector<8x8x128xf32> to vector<64x128xf32>
    %c0_41 = arith.constant 0 : index
    %c1024 = arith.constant 1024 : index
    %44 = vector.load %arg17[%c0_41, %c1024] : memref<64x1152xf32, #tpu.memory_space<vmem>>, vector<64x128xf32>
    tpu.vector_store %arg17[%c0_41, %c1024], %43 {strides = array<i32>} : memref<64x1152xf32, #tpu.memory_space<vmem>>, vector<64x128xf32>,
    %c0_42 = arith.constant 0 : index
    %c0_43 = arith.constant 0 : index
    %45 = vector.load %arg17[%c0_42, %c0_43] : memref<64x1152xf32, #tpu.memory_space<vmem>>, vector<64x1152xf32>
    %c0_44 = arith.constant 0 : index
    %c0_45 = arith.constant 0 : index
    %46 = vector.load %arg3[%c0_44, %c0_45] : memref<1152x128xf32, #tpu.memory_space<vmem>>, vector<1152x128xf32>
    %cst_46 = arith.constant dense<0.000000e+00> : vector<64x128xf32>
    %47 = tpu.matmul %45, %46, %cst_46 {dimension_numbers = #tpu.dot_dimension_numbers<[1], [0], [0], [1], [0, 0, 1, 1], [], []>} : vector<64x1152xf32>, vector<1152x128xf32>, vector<64x128xf32> -> vector<64x128xf32>
    %48 = vector.shape_cast %47 : vector<64x128xf32> to vector<1x64x128xf32>
    %cst_47 = arith.constant dense<0.000000e+00> : vector<1x64xf32>
    %49 = vector.multi_reduction <add>, %48, %cst_47 [2] : vector<1x64x128xf32> to vector<1x64xf32>
    %50 = vector.shape_cast %49 : vector<1x64xf32> to vector<1x64x1xf32>
    %cst_48 = arith.constant dense<0.000000e+00> : vector<1x1xf32>
    %51 = vector.multi_reduction <add>, %50, %cst_48 [1] : vector<1x64x1xf32> to vector<1x1xf32>
    %52 = vector.shape_cast %51 : vector<1x1xf32> to vector<1x1x1xf32>
    %cst_49 = arith.constant 3.906250e-03 : f32
    %53 = vector.broadcast %cst_49 : f32 to vector<1x1x1xf32>
    %54 = arith.mulf %52, %53 : vector<1x1x1xf32>
    %55 = vector.broadcast %54 : vector<1x1x1xf32> to vector<1x64x128xf32>
    %56 = arith.subf %48, %55 : vector<1x64x128xf32>
    %57 = arith.mulf %56, %56 : vector<1x64x128xf32>
    %cst_50 = arith.constant dense<0.000000e+00> : vector<1x64xf32>
    %58 = vector.multi_reduction <add>, %57, %cst_50 [2] : vector<1x64x128xf32> to vector<1x64xf32>
    %59 = vector.shape_cast %58 : vector<1x64xf32> to vector<1x64x1xf32>
    %cst_51 = arith.constant dense<0.000000e+00> : vector<1x1xf32>
    %60 = vector.multi_reduction <add>, %59, %cst_51 [1] : vector<1x64x1xf32> to vector<1x1xf32>
    %61 = vector.shape_cast %60 : vector<1x1xf32> to vector<1x1x1xf32>
    %cst_52 = arith.constant 7.936000e+03 : f32
    %62 = vector.broadcast %cst_52 : f32 to vector<1x1x1xf32>
    %63 = arith.mulf %62, %54 : vector<1x1x1xf32>
    %64 = arith.mulf %63, %54 : vector<1x1x1xf32>
    %65 = arith.subf %61, %64 : vector<1x1x1xf32>
    %cst_53 = arith.constant 3.906250e-03 : f32
    %66 = vector.broadcast %cst_53 : f32 to vector<1x1x1xf32>
    %67 = arith.mulf %65, %66 : vector<1x1x1xf32>
    %cst_54 = arith.constant 0.000000e+00 : f32
    %68 = vector.broadcast %cst_54 : f32 to vector<1x1x1xf32>
    %69 = arith.maximumf %67, %68 : vector<1x1x1xf32>
    %cst_55 = arith.constant 9.99999974E-6 : f32
    %70 = vector.broadcast %cst_55 : f32 to vector<1x1x1xf32>
    %71 = arith.addf %69, %70 : vector<1x1x1xf32>
    %72 = math.rsqrt %71 : vector<1x1x1xf32>
    %73 = vector.broadcast %72 : vector<1x1x1xf32> to vector<1x64x128xf32>
    %74 = arith.mulf %56, %73 : vector<1x64x128xf32>
    %c0_56 = arith.constant 0 : index
    %c0_57 = arith.constant 0 : index
    %75 = vector.load %arg4[%c0_56, %c0_57] : memref<1x128xf32, #tpu.memory_space<vmem>>, vector<1x128xf32>
    %76 = vector.shape_cast %75 : vector<1x128xf32> to vector<1x1x128xf32>
    %77 = vector.broadcast %76 : vector<1x1x128xf32> to vector<1x64x128xf32>
    %78 = arith.mulf %74, %77 : vector<1x64x128xf32>
    %c0_58 = arith.constant 0 : index
    %c0_59 = arith.constant 0 : index
    %79 = vector.load %arg5[%c0_58, %c0_59] : memref<1x128xf32, #tpu.memory_space<vmem>>, vector<1x128xf32>
    %80 = vector.shape_cast %79 : vector<1x128xf32> to vector<1x1x128xf32>
    %81 = vector.broadcast %80 : vector<1x1x128xf32> to vector<1x64x128xf32>
    %82 = arith.addf %78, %81 : vector<1x64x128xf32>
    %cst_60 = arith.constant 5.000000e-01 : f32
    %83 = vector.broadcast %cst_60 : f32 to vector<1x64x128xf32>
    %84 = arith.mulf %83, %82 : vector<1x64x128xf32>
    %cst_61 = arith.constant 0.707106769 : f32
    %85 = vector.broadcast %cst_61 : f32 to vector<1x64x128xf32>
    %86 = arith.mulf %82, %85 : vector<1x64x128xf32>
    %87 = math.absf %86 : vector<1x64x128xf32>
    %cst_62 = arith.constant 5.000000e-01 : f32
    %88 = vector.broadcast %cst_62 : f32 to vector<1x64x128xf32>
    %89 = arith.mulf %88, %87 : vector<1x64x128xf32>
    %cst_63 = arith.constant 1.000000e+00 : f32
    %90 = vector.broadcast %cst_63 : f32 to vector<1x64x128xf32>
    %91 = arith.addf %90, %89 : vector<1x64x128xf32>
    %cst_64 = arith.constant 1.000000e+00 : f32
    %92 = vector.broadcast %cst_64 : f32 to vector<1x64x128xf32>
    %93 = arith.divf %92, %91 : vector<1x64x128xf32>
    %cst_65 = arith.constant 0.000000e+00 : f32
    %94 = vector.broadcast %cst_65 : f32 to vector<1x64x128xf32>
    %95 = arith.subf %94, %87 : vector<1x64x128xf32>
    %96 = arith.mulf %95, %87 : vector<1x64x128xf32>
    %cst_66 = arith.constant 1.26551223 : f32
    %97 = vector.broadcast %cst_66 : f32 to vector<1x64x128xf32>
    %98 = arith.subf %96, %97 : vector<1x64x128xf32>
    %cst_67 = arith.constant 0.170872763 : f32
    %99 = vector.broadcast %cst_67 : f32 to vector<1x64x128xf32>
    %100 = arith.mulf %93, %99 : vector<1x64x128xf32>
    %cst_68 = arith.constant -0.822152256 : f32
    %101 = vector.broadcast %cst_68 : f32 to vector<1x64x128xf32>
    %102 = arith.addf %101, %100 : vector<1x64x128xf32>
    %103 = arith.mulf %93, %102 : vector<1x64x128xf32>
    %cst_69 = arith.constant 1.48851585 : f32
    %104 = vector.broadcast %cst_69 : f32 to vector<1x64x128xf32>
    %105 = arith.addf %104, %103 : vector<1x64x128xf32>
    %106 = arith.mulf %93, %105 : vector<1x64x128xf32>
    %cst_70 = arith.constant -1.13520396 : f32
    %107 = vector.broadcast %cst_70 : f32 to vector<1x64x128xf32>
    %108 = arith.addf %107, %106 : vector<1x64x128xf32>
    %109 = arith.mulf %93, %108 : vector<1x64x128xf32>
    %cst_71 = arith.constant 0.278868079 : f32
    %110 = vector.broadcast %cst_71 : f32 to vector<1x64x128xf32>
    %111 = arith.addf %110, %109 : vector<1x64x128xf32>
    %112 = arith.mulf %93, %111 : vector<1x64x128xf32>
    %cst_72 = arith.constant -0.186288059 : f32
    %113 = vector.broadcast %cst_72 : f32 to vector<1x64x128xf32>
    %114 = arith.addf %113, %112 : vector<1x64x128xf32>
    %115 = arith.mulf %93, %114 : vector<1x64x128xf32>
    %cst_73 = arith.constant 0.0967841818 : f32
    %116 = vector.broadcast %cst_73 : f32 to vector<1x64x128xf32>
    %117 = arith.addf %116, %115 : vector<1x64x128xf32>
    %118 = arith.mulf %93, %117 : vector<1x64x128xf32>
    %cst_74 = arith.constant 0.374091953 : f32
    %119 = vector.broadcast %cst_74 : f32 to vector<1x64x128xf32>
    %120 = arith.addf %119, %118 : vector<1x64x128xf32>
    %121 = arith.mulf %93, %120 : vector<1x64x128xf32>
    %cst_75 = arith.constant 1.00002372 : f32
    %122 = vector.broadcast %cst_75 : f32 to vector<1x64x128xf32>
    %123 = arith.addf %122, %121 : vector<1x64x128xf32>
    %124 = arith.mulf %93, %123 : vector<1x64x128xf32>
    %125 = arith.addf %98, %124 : vector<1x64x128xf32>
    %126 = math.exp %125 : vector<1x64x128xf32>
    %127 = arith.mulf %93, %126 : vector<1x64x128xf32>
    %cst_76 = arith.constant 0.000000e+00 : f32
    %128 = vector.broadcast %cst_76 : f32 to vector<1x64x128xf32>
    %129 = arith.cmpf oge, %86, %128 : vector<1x64x128xf32>
    %cst_77 = arith.constant 1.000000e+00 : f32
    %130 = vector.broadcast %cst_77 : f32 to vector<1x64x128xf32>
    %131 = arith.subf %130, %127 : vector<1x64x128xf32>
    %cst_78 = arith.constant 1.000000e+00 : f32
    %132 = vector.broadcast %cst_78 : f32 to vector<1x64x128xf32>
    %133 = arith.subf %127, %132 : vector<1x64x128xf32>
    %134 = arith.select %129, %131, %133 : vector<1x64x128xi1>, vector<1x64x128xf32>
    %cst_79 = arith.constant 1.000000e+00 : f32
    %135 = vector.broadcast %cst_79 : f32 to vector<1x64x128xf32>
    %136 = arith.addf %135, %134 : vector<1x64x128xf32>
    %137 = arith.mulf %84, %136 : vector<1x64x128xf32>
    %138 = vector.shape_cast %137 : vector<1x64x128xf32> to vector<64x128xf32>
    %139 = vector.shape_cast %138 : vector<64x128xf32> to vector<8x8x128xf32>
    %c1_80 = arith.constant 1 : index
    %c8_81 = arith.constant 8 : index
    %c0_82 = arith.constant 0 : index
    %140 = vector.load %arg16[%c1_80, %c8_81, %c0_82] : memref<10x24x128xf32, #tpu.memory_space<vmem>>, vector<8x8x128xf32>
    tpu.vector_store %arg16[%c1_80, %c8_81, %c0_82], %139 {strides = array<i32>} : memref<10x24x128xf32, #tpu.memory_space<vmem>>, vector<8x8x128xf32>,
    %c0_83 = arith.constant 0 : index
    %c7_84 = arith.constant 7 : index
    %c0_85 = arith.constant 0 : index
    %141 = vector.load %arg16[%c0_83, %c7_84, %c0_85] : memref<10x24x128xf32, #tpu.memory_space<vmem>>, vector<8x8x128xf32>
    %142 = vector.shape_cast %141 : vector<8x8x128xf32> to vector<64x128xf32>
    %c0_86 = arith.constant 0 : index
    %c0_87 = arith.constant 0 : index
    %143 = vector.load %arg17[%c0_86, %c0_87] : memref<64x1152xf32, #tpu.memory_space<vmem>>, vector<64x128xf32>
    tpu.vector_store %arg17[%c0_86, %c0_87], %142 {strides = array<i32>} : memref<64x1152xf32, #tpu.memory_space<vmem>>, vector<64x128xf32>,
    %c0_88 = arith.constant 0 : index
    %c8_89 = arith.constant 8 : index
    %c0_90 = arith.constant 0 : index
    %144 = vector.load %arg16[%c0_88, %c8_89, %c0_90] : memref<10x24x128xf32, #tpu.memory_space<vmem>>, vector<8x8x128xf32>
    %145 = vector.shape_cast %144 : vector<8x8x128xf32> to vector<64x128xf32>
    %c0_91 = arith.constant 0 : index
    %c128_92 = arith.constant 128 : index
    %146 = vector.load %arg17[%c0_91, %c128_92] : memref<64x1152xf32, #tpu.memory_space<vmem>>, vector<64x128xf32>
    tpu.vector_store %arg17[%c0_91, %c128_92], %145 {strides = array<i32>} : memref<64x1152xf32, #tpu.memory_space<vmem>>, vector<64x128xf32>,
    %c0_93 = arith.constant 0 : index
    %c9_94 = arith.constant 9 : index
    %c0_95 = arith.constant 0 : index
    %147 = vector.load %arg16[%c0_93, %c9_94, %c0_95] : memref<10x24x128xf32, #tpu.memory_space<vmem>>, vector<8x8x128xf32>
    %148 = vector.shape_cast %147 : vector<8x8x128xf32> to vector<64x128xf32>
    %c0_96 = arith.constant 0 : index
    %c256_97 = arith.constant 256 : index
    %149 = vector.load %arg17[%c0_96, %c256_97] : memref<64x1152xf32, #tpu.memory_space<vmem>>, vector<64x128xf32>
    tpu.vector_store %arg17[%c0_96, %c256_97], %148 {strides = array<i32>} : memref<64x1152xf32, #tpu.memory_space<vmem>>, vector<64x128xf32>,
    %c1_98 = arith.constant 1 : index
    %c7_99 = arith.constant 7 : index
    %c0_100 = arith.constant 0 : index
    %150 = vector.load %arg16[%c1_98, %c7_99, %c0_100] : memref<10x24x128xf32, #tpu.memory_space<vmem>>, vector<8x8x128xf32>
    %151 = vector.shape_cast %150 : vector<8x8x128xf32> to vector<64x128xf32>
    %c0_101 = arith.constant 0 : index
    %c384_102 = arith.constant 384 : index
    %152 = vector.load %arg17[%c0_101, %c384_102] : memref<64x1152xf32, #tpu.memory_space<vmem>>, vector<64x128xf32>
    tpu.vector_store %arg17[%c0_101, %c384_102], %151 {strides = array<i32>} : memref<64x1152xf32, #tpu.memory_space<vmem>>, vector<64x128xf32>,
    %c1_103 = arith.constant 1 : index
    %c8_104 = arith.constant 8 : index
    %c0_105 = arith.constant 0 : index
    %153 = vector.load %arg16[%c1_103, %c8_104, %c0_105] : memref<10x24x128xf32, #tpu.memory_space<vmem>>, vector<8x8x128xf32>
    %154 = vector.shape_cast %153 : vector<8x8x128xf32> to vector<64x128xf32>
    %c0_106 = arith.constant 0 : index
    %c512_107 = arith.constant 512 : index
    %155 = vector.load %arg17[%c0_106, %c512_107] : memref<64x1152xf32, #tpu.memory_space<vmem>>, vector<64x128xf32>
    tpu.vector_store %arg17[%c0_106, %c512_107], %154 {strides = array<i32>} : memref<64x1152xf32, #tpu.memory_space<vmem>>, vector<64x128xf32>,
    %c1_108 = arith.constant 1 : index
    %c9_109 = arith.constant 9 : index
    %c0_110 = arith.constant 0 : index
    %156 = vector.load %arg16[%c1_108, %c9_109, %c0_110] : memref<10x24x128xf32, #tpu.memory_space<vmem>>, vector<8x8x128xf32>
    %157 = vector.shape_cast %156 : vector<8x8x128xf32> to vector<64x128xf32>
    %c0_111 = arith.constant 0 : index
    %c640_112 = arith.constant 640 : index
    %158 = vector.load %arg17[%c0_111, %c640_112] : memref<64x1152xf32, #tpu.memory_space<vmem>>, vector<64x128xf32>
    tpu.vector_store %arg17[%c0_111, %c640_112], %157 {strides = array<i32>} : memref<64x1152xf32, #tpu.memory_space<vmem>>, vector<64x128xf32>,
    %c2_113 = arith.constant 2 : index
    %c7_114 = arith.constant 7 : index
    %c0_115 = arith.constant 0 : index
    %159 = vector.load %arg16[%c2_113, %c7_114, %c0_115] : memref<10x24x128xf32, #tpu.memory_space<vmem>>, vector<8x8x128xf32>
    %160 = vector.shape_cast %159 : vector<8x8x128xf32> to vector<64x128xf32>
    %c0_116 = arith.constant 0 : index
    %c768_117 = arith.constant 768 : index
    %161 = vector.load %arg17[%c0_116, %c768_117] : memref<64x1152xf32, #tpu.memory_space<vmem>>, vector<64x128xf32>
    tpu.vector_store %arg17[%c0_116, %c768_117], %160 {strides = array<i32>} : memref<64x1152xf32, #tpu.memory_space<vmem>>, vector<64x128xf32>,
    %c2_118 = arith.constant 2 : index
    %c8_119 = arith.constant 8 : index
    %c0_120 = arith.constant 0 : index
    %162 = vector.load %arg16[%c2_118, %c8_119, %c0_120] : memref<10x24x128xf32, #tpu.memory_space<vmem>>, vector<8x8x128xf32>
    %163 = vector.shape_cast %162 : vector<8x8x128xf32> to vector<64x128xf32>
    %c0_121 = arith.constant 0 : index
    %c896_122 = arith.constant 896 : index
    %164 = vector.load %arg17[%c0_121, %c896_122] : memref<64x1152xf32, #tpu.memory_space<vmem>>, vector<64x128xf32>
    tpu.vector_store %arg17[%c0_121, %c896_122], %163 {strides = array<i32>} : memref<64x1152xf32, #tpu.memory_space<vmem>>, vector<64x128xf32>,
    %c2_123 = arith.constant 2 : index
    %c9_124 = arith.constant 9 : index
    %c0_125 = arith.constant 0 : index
    %165 = vector.load %arg16[%c2_123, %c9_124, %c0_125] : memref<10x24x128xf32, #tpu.memory_space<vmem>>, vector<8x8x128xf32>
    %166 = vector.shape_cast %165 : vector<8x8x128xf32> to vector<64x128xf32>
    %c0_126 = arith.constant 0 : index
    %c1024_127 = arith.constant 1024 : index
    %167 = vector.load %arg17[%c0_126, %c1024_127] : memref<64x1152xf32, #tpu.memory_space<vmem>>, vector<64x128xf32>
    tpu.vector_store %arg17[%c0_126, %c1024_127], %166 {strides = array<i32>} : memref<64x1152xf32, #tpu.memory_space<vmem>>, vector<64x128xf32>,
    %c0_128 = arith.constant 0 : index
    %c0_129 = arith.constant 0 : index
    %168 = vector.load %arg17[%c0_128, %c0_129] : memref<64x1152xf32, #tpu.memory_space<vmem>>, vector<64x1152xf32>
    %c0_130 = arith.constant 0 : index
    %c0_131 = arith.constant 0 : index
    %169 = vector.load %arg6[%c0_130, %c0_131] : memref<1152x128xf32, #tpu.memory_space<vmem>>, vector<1152x128xf32>
    %cst_132 = arith.constant dense<0.000000e+00> : vector<64x128xf32>
    %170 = tpu.matmul %168, %169, %cst_132 {dimension_numbers = #tpu.dot_dimension_numbers<[1], [0], [0], [1], [0, 0, 1, 1], [], []>} : vector<64x1152xf32>, vector<1152x128xf32>, vector<64x128xf32> -> vector<64x128xf32>
    %171 = vector.shape_cast %170 : vector<64x128xf32> to vector<1x64x128xf32>
    %cst_133 = arith.constant dense<0.000000e+00> : vector<1x64xf32>
    %172 = vector.multi_reduction <add>, %171, %cst_133 [2] : vector<1x64x128xf32> to vector<1x64xf32>
    %173 = vector.shape_cast %172 : vector<1x64xf32> to vector<1x64x1xf32>
    %cst_134 = arith.constant dense<0.000000e+00> : vector<1x1xf32>
    %174 = vector.multi_reduction <add>, %173, %cst_134 [1] : vector<1x64x1xf32> to vector<1x1xf32>
    %175 = vector.shape_cast %174 : vector<1x1xf32> to vector<1x1x1xf32>
    %cst_135 = arith.constant 3.906250e-03 : f32
    %176 = vector.broadcast %cst_135 : f32 to vector<1x1x1xf32>
    %177 = arith.mulf %175, %176 : vector<1x1x1xf32>
    %178 = vector.broadcast %177 : vector<1x1x1xf32> to vector<1x64x128xf32>
    %179 = arith.subf %171, %178 : vector<1x64x128xf32>
    %180 = arith.mulf %179, %179 : vector<1x64x128xf32>
    %cst_136 = arith.constant dense<0.000000e+00> : vector<1x64xf32>
    %181 = vector.multi_reduction <add>, %180, %cst_136 [2] : vector<1x64x128xf32> to vector<1x64xf32>
    %182 = vector.shape_cast %181 : vector<1x64xf32> to vector<1x64x1xf32>
    %cst_137 = arith.constant dense<0.000000e+00> : vector<1x1xf32>
    %183 = vector.multi_reduction <add>, %182, %cst_137 [1] : vector<1x64x1xf32> to vector<1x1xf32>
    %184 = vector.shape_cast %183 : vector<1x1xf32> to vector<1x1x1xf32>
    %cst_138 = arith.constant 7.936000e+03 : f32
    %185 = vector.broadcast %cst_138 : f32 to vector<1x1x1xf32>
    %186 = arith.mulf %185, %177 : vector<1x1x1xf32>
    %187 = arith.mulf %186, %177 : vector<1x1x1xf32>
    %188 = arith.subf %184, %187 : vector<1x1x1xf32>
    %cst_139 = arith.constant 3.906250e-03 : f32
    %189 = vector.broadcast %cst_139 : f32 to vector<1x1x1xf32>
    %190 = arith.mulf %188, %189 : vector<1x1x1xf32>
    %cst_140 = arith.constant 0.000000e+00 : f32
    %191 = vector.broadcast %cst_140 : f32 to vector<1x1x1xf32>
    %192 = arith.maximumf %190, %191 : vector<1x1x1xf32>
    %cst_141 = arith.constant 9.99999974E-6 : f32
    %193 = vector.broadcast %cst_141 : f32 to vector<1x1x1xf32>
    %194 = arith.addf %192, %193 : vector<1x1x1xf32>
    %195 = math.rsqrt %194 : vector<1x1x1xf32>
    %196 = vector.broadcast %195 : vector<1x1x1xf32> to vector<1x64x128xf32>
    %197 = arith.mulf %179, %196 : vector<1x64x128xf32>
    %c0_142 = arith.constant 0 : index
    %c0_143 = arith.constant 0 : index
    %198 = vector.load %arg7[%c0_142, %c0_143] : memref<1x128xf32, #tpu.memory_space<vmem>>, vector<1x128xf32>
    %199 = vector.shape_cast %198 : vector<1x128xf32> to vector<1x1x128xf32>
    %200 = vector.broadcast %199 : vector<1x1x128xf32> to vector<1x64x128xf32>
    %201 = arith.mulf %197, %200 : vector<1x64x128xf32>
    %c0_144 = arith.constant 0 : index
    %c0_145 = arith.constant 0 : index
    %202 = vector.load %arg8[%c0_144, %c0_145] : memref<1x128xf32, #tpu.memory_space<vmem>>, vector<1x128xf32>
    %203 = vector.shape_cast %202 : vector<1x128xf32> to vector<1x1x128xf32>
    %204 = vector.broadcast %203 : vector<1x1x128xf32> to vector<1x64x128xf32>
    %205 = arith.addf %201, %204 : vector<1x64x128xf32>
    %206 = arith.addf %14, %205 : vector<1x64x128xf32>
    %cst_146 = arith.constant 5.000000e-01 : f32
    %207 = vector.broadcast %cst_146 : f32 to vector<1x64x128xf32>
    %208 = arith.mulf %207, %206 : vector<1x64x128xf32>
    %cst_147 = arith.constant 0.707106769 : f32
    %209 = vector.broadcast %cst_147 : f32 to vector<1x64x128xf32>
    %210 = arith.mulf %206, %209 : vector<1x64x128xf32>
    %211 = math.absf %210 : vector<1x64x128xf32>
    %cst_148 = arith.constant 5.000000e-01 : f32
    %212 = vector.broadcast %cst_148 : f32 to vector<1x64x128xf32>
    %213 = arith.mulf %212, %211 : vector<1x64x128xf32>
    %cst_149 = arith.constant 1.000000e+00 : f32
    %214 = vector.broadcast %cst_149 : f32 to vector<1x64x128xf32>
    %215 = arith.addf %214, %213 : vector<1x64x128xf32>
    %cst_150 = arith.constant 1.000000e+00 : f32
    %216 = vector.broadcast %cst_150 : f32 to vector<1x64x128xf32>
    %217 = arith.divf %216, %215 : vector<1x64x128xf32>
    %cst_151 = arith.constant 0.000000e+00 : f32
    %218 = vector.broadcast %cst_151 : f32 to vector<1x64x128xf32>
    %219 = arith.subf %218, %211 : vector<1x64x128xf32>
    %220 = arith.mulf %219, %211 : vector<1x64x128xf32>
    %cst_152 = arith.constant 1.26551223 : f32
    %221 = vector.broadcast %cst_152 : f32 to vector<1x64x128xf32>
    %222 = arith.subf %220, %221 : vector<1x64x128xf32>
    %cst_153 = arith.constant 0.170872763 : f32
    %223 = vector.broadcast %cst_153 : f32 to vector<1x64x128xf32>
    %224 = arith.mulf %217, %223 : vector<1x64x128xf32>
    %cst_154 = arith.constant -0.822152256 : f32
    %225 = vector.broadcast %cst_154 : f32 to vector<1x64x128xf32>
    %226 = arith.addf %225, %224 : vector<1x64x128xf32>
    %227 = arith.mulf %217, %226 : vector<1x64x128xf32>
    %cst_155 = arith.constant 1.48851585 : f32
    %228 = vector.broadcast %cst_155 : f32 to vector<1x64x128xf32>
    %229 = arith.addf %228, %227 : vector<1x64x128xf32>
    %230 = arith.mulf %217, %229 : vector<1x64x128xf32>
    %cst_156 = arith.constant -1.13520396 : f32
    %231 = vector.broadcast %cst_156 : f32 to vector<1x64x128xf32>
    %232 = arith.addf %231, %230 : vector<1x64x128xf32>
    %233 = arith.mulf %217, %232 : vector<1x64x128xf32>
    %cst_157 = arith.constant 0.278868079 : f32
    %234 = vector.broadcast %cst_157 : f32 to vector<1x64x128xf32>
    %235 = arith.addf %234, %233 : vector<1x64x128xf32>
    %236 = arith.mulf %217, %235 : vector<1x64x128xf32>
    %cst_158 = arith.constant -0.186288059 : f32
    %237 = vector.broadcast %cst_158 : f32 to vector<1x64x128xf32>
    %238 = arith.addf %237, %236 : vector<1x64x128xf32>
    %239 = arith.mulf %217, %238 : vector<1x64x128xf32>
    %cst_159 = arith.constant 0.0967841818 : f32
    %240 = vector.broadcast %cst_159 : f32 to vector<1x64x128xf32>
    %241 = arith.addf %240, %239 : vector<1x64x128xf32>
    %242 = arith.mulf %217, %241 : vector<1x64x128xf32>
    %cst_160 = arith.constant 0.374091953 : f32
    %243 = vector.broadcast %cst_160 : f32 to vector<1x64x128xf32>
    %244 = arith.addf %243, %242 : vector<1x64x128xf32>
    %245 = arith.mulf %217, %244 : vector<1x64x128xf32>
    %cst_161 = arith.constant 1.00002372 : f32
    %246 = vector.broadcast %cst_161 : f32 to vector<1x64x128xf32>
    %247 = arith.addf %246, %245 : vector<1x64x128xf32>
    %248 = arith.mulf %217, %247 : vector<1x64x128xf32>
    %249 = arith.addf %222, %248 : vector<1x64x128xf32>
    %250 = math.exp %249 : vector<1x64x128xf32>
    %251 = arith.mulf %217, %250 : vector<1x64x128xf32>
    %cst_162 = arith.constant 0.000000e+00 : f32
    %252 = vector.broadcast %cst_162 : f32 to vector<1x64x128xf32>
    %253 = arith.cmpf oge, %210, %252 : vector<1x64x128xf32>
    %cst_163 = arith.constant 1.000000e+00 : f32
    %254 = vector.broadcast %cst_163 : f32 to vector<1x64x128xf32>
    %255 = arith.subf %254, %251 : vector<1x64x128xf32>
    %cst_164 = arith.constant 1.000000e+00 : f32
    %256 = vector.broadcast %cst_164 : f32 to vector<1x64x128xf32>
    %257 = arith.subf %251, %256 : vector<1x64x128xf32>
    %258 = arith.select %253, %255, %257 : vector<1x64x128xi1>, vector<1x64x128xf32>
    %cst_165 = arith.constant 1.000000e+00 : f32
    %259 = vector.broadcast %cst_165 : f32 to vector<1x64x128xf32>
    %260 = arith.addf %259, %258 : vector<1x64x128xf32>
    %261 = arith.mulf %208, %260 : vector<1x64x128xf32>
    %262 = vector.shape_cast %261 : vector<1x64x128xf32> to vector<64x128xf32>
    %263 = vector.shape_cast %262 : vector<64x128xf32> to vector<8x8x128xf32>
    %c1_166 = arith.constant 1 : index
    %c8_167 = arith.constant 8 : index
    %c0_168 = arith.constant 0 : index
    %264 = vector.load %arg16[%c1_166, %c8_167, %c0_168] : memref<10x24x128xf32, #tpu.memory_space<vmem>>, vector<8x8x128xf32>
    tpu.vector_store %arg16[%c1_166, %c8_167, %c0_168], %263 {strides = array<i32>} : memref<10x24x128xf32, #tpu.memory_space<vmem>>, vector<8x8x128xf32>,
    %c0_169 = arith.constant 0 : index
    %c7_170 = arith.constant 7 : index
    %c0_171 = arith.constant 0 : index
    %265 = vector.load %arg16[%c0_169, %c7_170, %c0_171] : memref<10x24x128xf32, #tpu.memory_space<vmem>>, vector<8x8x128xf32>
    %266 = vector.shape_cast %265 : vector<8x8x128xf32> to vector<64x128xf32>
    %c0_172 = arith.constant 0 : index
    %c0_173 = arith.constant 0 : index
    %267 = vector.load %arg17[%c0_172, %c0_173] : memref<64x1152xf32, #tpu.memory_space<vmem>>, vector<64x128xf32>
    tpu.vector_store %arg17[%c0_172, %c0_173], %266 {strides = array<i32>} : memref<64x1152xf32, #tpu.memory_space<vmem>>, vector<64x128xf32>,
    %c0_174 = arith.constant 0 : index
    %c8_175 = arith.constant 8 : index
    %c0_176 = arith.constant 0 : index
    %268 = vector.load %arg16[%c0_174, %c8_175, %c0_176] : memref<10x24x128xf32, #tpu.memory_space<vmem>>, vector<8x8x128xf32>
    %269 = vector.shape_cast %268 : vector<8x8x128xf32> to vector<64x128xf32>
    %c0_177 = arith.constant 0 : index
    %c128_178 = arith.constant 128 : index
    %270 = vector.load %arg17[%c0_177, %c128_178] : memref<64x1152xf32, #tpu.memory_space<vmem>>, vector<64x128xf32>
    tpu.vector_store %arg17[%c0_177, %c128_178], %269 {strides = array<i32>} : memref<64x1152xf32, #tpu.memory_space<vmem>>, vector<64x128xf32>,
    %c0_179 = arith.constant 0 : index
    %c9_180 = arith.constant 9 : index
    %c0_181 = arith.constant 0 : index
    %271 = vector.load %arg16[%c0_179, %c9_180, %c0_181] : memref<10x24x128xf32, #tpu.memory_space<vmem>>, vector<8x8x128xf32>
    %272 = vector.shape_cast %271 : vector<8x8x128xf32> to vector<64x128xf32>
    %c0_182 = arith.constant 0 : index
    %c256_183 = arith.constant 256 : index
    %273 = vector.load %arg17[%c0_182, %c256_183] : memref<64x1152xf32, #tpu.memory_space<vmem>>, vector<64x128xf32>
    tpu.vector_store %arg17[%c0_182, %c256_183], %272 {strides = array<i32>} : memref<64x1152xf32, #tpu.memory_space<vmem>>, vector<64x128xf32>,
    %c1_184 = arith.constant 1 : index
    %c7_185 = arith.constant 7 : index
    %c0_186 = arith.constant 0 : index
    %274 = vector.load %arg16[%c1_184, %c7_185, %c0_186] : memref<10x24x128xf32, #tpu.memory_space<vmem>>, vector<8x8x128xf32>
    %275 = vector.shape_cast %274 : vector<8x8x128xf32> to vector<64x128xf32>
    %c0_187 = arith.constant 0 : index
    %c384_188 = arith.constant 384 : index
    %276 = vector.load %arg17[%c0_187, %c384_188] : memref<64x1152xf32, #tpu.memory_space<vmem>>, vector<64x128xf32>
    tpu.vector_store %arg17[%c0_187, %c384_188], %275 {strides = array<i32>} : memref<64x1152xf32, #tpu.memory_space<vmem>>, vector<64x128xf32>,
    %c1_189 = arith.constant 1 : index
    %c8_190 = arith.constant 8 : index
    %c0_191 = arith.constant 0 : index
    %277 = vector.load %arg16[%c1_189, %c8_190, %c0_191] : memref<10x24x128xf32, #tpu.memory_space<vmem>>, vector<8x8x128xf32>
    %278 = vector.shape_cast %277 : vector<8x8x128xf32> to vector<64x128xf32>
    %c0_192 = arith.constant 0 : index
    %c512_193 = arith.constant 512 : index
    %279 = vector.load %arg17[%c0_192, %c512_193] : memref<64x1152xf32, #tpu.memory_space<vmem>>, vector<64x128xf32>
    tpu.vector_store %arg17[%c0_192, %c512_193], %278 {strides = array<i32>} : memref<64x1152xf32, #tpu.memory_space<vmem>>, vector<64x128xf32>,
    %c1_194 = arith.constant 1 : index
    %c9_195 = arith.constant 9 : index
    %c0_196 = arith.constant 0 : index
    %280 = vector.load %arg16[%c1_194, %c9_195, %c0_196] : memref<10x24x128xf32, #tpu.memory_space<vmem>>, vector<8x8x128xf32>
    %281 = vector.shape_cast %280 : vector<8x8x128xf32> to vector<64x128xf32>
    %c0_197 = arith.constant 0 : index
    %c640_198 = arith.constant 640 : index
    %282 = vector.load %arg17[%c0_197, %c640_198] : memref<64x1152xf32, #tpu.memory_space<vmem>>, vector<64x128xf32>
    tpu.vector_store %arg17[%c0_197, %c640_198], %281 {strides = array<i32>} : memref<64x1152xf32, #tpu.memory_space<vmem>>, vector<64x128xf32>,
    %c2_199 = arith.constant 2 : index
    %c7_200 = arith.constant 7 : index
    %c0_201 = arith.constant 0 : index
    %283 = vector.load %arg16[%c2_199, %c7_200, %c0_201] : memref<10x24x128xf32, #tpu.memory_space<vmem>>, vector<8x8x128xf32>
    %284 = vector.shape_cast %283 : vector<8x8x128xf32> to vector<64x128xf32>
    %c0_202 = arith.constant 0 : index
    %c768_203 = arith.constant 768 : index
    %285 = vector.load %arg17[%c0_202, %c768_203] : memref<64x1152xf32, #tpu.memory_space<vmem>>, vector<64x128xf32>
    tpu.vector_store %arg17[%c0_202, %c768_203], %284 {strides = array<i32>} : memref<64x1152xf32, #tpu.memory_space<vmem>>, vector<64x128xf32>,
    %c2_204 = arith.constant 2 : index
    %c8_205 = arith.constant 8 : index
    %c0_206 = arith.constant 0 : index
    %286 = vector.load %arg16[%c2_204, %c8_205, %c0_206] : memref<10x24x128xf32, #tpu.memory_space<vmem>>, vector<8x8x128xf32>
    %287 = vector.shape_cast %286 : vector<8x8x128xf32> to vector<64x128xf32>
    %c0_207 = arith.constant 0 : index
    %c896_208 = arith.constant 896 : index
    %288 = vector.load %arg17[%c0_207, %c896_208] : memref<64x1152xf32, #tpu.memory_space<vmem>>, vector<64x128xf32>
    tpu.vector_store %arg17[%c0_207, %c896_208], %287 {strides = array<i32>} : memref<64x1152xf32, #tpu.memory_space<vmem>>, vector<64x128xf32>,
    %c2_209 = arith.constant 2 : index
    %c9_210 = arith.constant 9 : index
    %c0_211 = arith.constant 0 : index
    %289 = vector.load %arg16[%c2_209, %c9_210, %c0_211] : memref<10x24x128xf32, #tpu.memory_space<vmem>>, vector<8x8x128xf32>
    %290 = vector.shape_cast %289 : vector<8x8x128xf32> to vector<64x128xf32>
    %c0_212 = arith.constant 0 : index
    %c1024_213 = arith.constant 1024 : index
    %291 = vector.load %arg17[%c0_212, %c1024_213] : memref<64x1152xf32, #tpu.memory_space<vmem>>, vector<64x128xf32>
    tpu.vector_store %arg17[%c0_212, %c1024_213], %290 {strides = array<i32>} : memref<64x1152xf32, #tpu.memory_space<vmem>>, vector<64x128xf32>,
    %c0_214 = arith.constant 0 : index
    %c0_215 = arith.constant 0 : index
    %292 = vector.load %arg17[%c0_214, %c0_215] : memref<64x1152xf32, #tpu.memory_space<vmem>>, vector<64x1152xf32>
    %c0_216 = arith.constant 0 : index
    %c0_217 = arith.constant 0 : index
    %293 = vector.load %arg9[%c0_216, %c0_217] : memref<1152x128xf32, #tpu.memory_space<vmem>>, vector<1152x128xf32>
    %cst_218 = arith.constant dense<0.000000e+00> : vector<64x128xf32>
    %294 = tpu.matmul %292, %293, %cst_218 {dimension_numbers = #tpu.dot_dimension_numbers<[1], [0], [0], [1], [0, 0, 1, 1], [], []>} : vector<64x1152xf32>, vector<1152x128xf32>, vector<64x128xf32> -> vector<64x128xf32>
    %295 = vector.shape_cast %294 : vector<64x128xf32> to vector<1x64x128xf32>
    %cst_219 = arith.constant dense<0.000000e+00> : vector<1x64xf32>
    %296 = vector.multi_reduction <add>, %295, %cst_219 [2] : vector<1x64x128xf32> to vector<1x64xf32>
    %297 = vector.shape_cast %296 : vector<1x64xf32> to vector<1x64x1xf32>
    %cst_220 = arith.constant dense<0.000000e+00> : vector<1x1xf32>
    %298 = vector.multi_reduction <add>, %297, %cst_220 [1] : vector<1x64x1xf32> to vector<1x1xf32>
    %299 = vector.shape_cast %298 : vector<1x1xf32> to vector<1x1x1xf32>
    %cst_221 = arith.constant 0.001953125 : f32
    %300 = vector.broadcast %cst_221 : f32 to vector<1x1x1xf32>
    %301 = arith.mulf %299, %300 : vector<1x1x1xf32>
    %302 = vector.broadcast %301 : vector<1x1x1xf32> to vector<1x64x128xf32>
    %303 = arith.subf %295, %302 : vector<1x64x128xf32>
    %304 = arith.mulf %303, %303 : vector<1x64x128xf32>
    %cst_222 = arith.constant dense<0.000000e+00> : vector<1x64xf32>
    %305 = vector.multi_reduction <add>, %304, %cst_222 [2] : vector<1x64x128xf32> to vector<1x64xf32>
    %306 = vector.shape_cast %305 : vector<1x64xf32> to vector<1x64x1xf32>
    %cst_223 = arith.constant dense<0.000000e+00> : vector<1x1xf32>
    %307 = vector.multi_reduction <add>, %306, %cst_223 [1] : vector<1x64x1xf32> to vector<1x1xf32>
    %308 = vector.shape_cast %307 : vector<1x1xf32> to vector<1x1x1xf32>
    %cst_224 = arith.constant 7.680000e+03 : f32
    %309 = vector.broadcast %cst_224 : f32 to vector<1x1x1xf32>
    %310 = arith.mulf %309, %301 : vector<1x1x1xf32>
    %311 = arith.mulf %310, %301 : vector<1x1x1xf32>
    %312 = arith.subf %308, %311 : vector<1x1x1xf32>
    %cst_225 = arith.constant 0.001953125 : f32
    %313 = vector.broadcast %cst_225 : f32 to vector<1x1x1xf32>
    %314 = arith.mulf %312, %313 : vector<1x1x1xf32>
    %cst_226 = arith.constant 0.000000e+00 : f32
    %315 = vector.broadcast %cst_226 : f32 to vector<1x1x1xf32>
    %316 = arith.maximumf %314, %315 : vector<1x1x1xf32>
    %cst_227 = arith.constant 9.99999974E-6 : f32
    %317 = vector.broadcast %cst_227 : f32 to vector<1x1x1xf32>
    %318 = arith.addf %316, %317 : vector<1x1x1xf32>
    %319 = math.rsqrt %318 : vector<1x1x1xf32>
    %320 = vector.broadcast %319 : vector<1x1x1xf32> to vector<1x64x128xf32>
    %321 = arith.mulf %303, %320 : vector<1x64x128xf32>
    %c0_228 = arith.constant 0 : index
    %c0_229 = arith.constant 0 : index
    %322 = vector.load %arg10[%c0_228, %c0_229] : memref<1x128xf32, #tpu.memory_space<vmem>>, vector<1x128xf32>
    %323 = vector.shape_cast %322 : vector<1x128xf32> to vector<1x1x128xf32>
    %324 = vector.broadcast %323 : vector<1x1x128xf32> to vector<1x64x128xf32>
    %325 = arith.mulf %321, %324 : vector<1x64x128xf32>
    %c0_230 = arith.constant 0 : index
    %c0_231 = arith.constant 0 : index
    %326 = vector.load %arg11[%c0_230, %c0_231] : memref<1x128xf32, #tpu.memory_space<vmem>>, vector<1x128xf32>
    %327 = vector.shape_cast %326 : vector<1x128xf32> to vector<1x1x128xf32>
    %328 = vector.broadcast %327 : vector<1x1x128xf32> to vector<1x64x128xf32>
    %329 = arith.addf %325, %328 : vector<1x64x128xf32>
    %cst_232 = arith.constant 5.000000e-01 : f32
    %330 = vector.broadcast %cst_232 : f32 to vector<1x64x128xf32>
    %331 = arith.mulf %330, %329 : vector<1x64x128xf32>
    %cst_233 = arith.constant 0.707106769 : f32
    %332 = vector.broadcast %cst_233 : f32 to vector<1x64x128xf32>
    %333 = arith.mulf %329, %332 : vector<1x64x128xf32>
    %334 = math.absf %333 : vector<1x64x128xf32>
    %cst_234 = arith.constant 5.000000e-01 : f32
    %335 = vector.broadcast %cst_234 : f32 to vector<1x64x128xf32>
    %336 = arith.mulf %335, %334 : vector<1x64x128xf32>
    %cst_235 = arith.constant 1.000000e+00 : f32
    %337 = vector.broadcast %cst_235 : f32 to vector<1x64x128xf32>
    %338 = arith.addf %337, %336 : vector<1x64x128xf32>
    %cst_236 = arith.constant 1.000000e+00 : f32
    %339 = vector.broadcast %cst_236 : f32 to vector<1x64x128xf32>
    %340 = arith.divf %339, %338 : vector<1x64x128xf32>
    %cst_237 = arith.constant 0.000000e+00 : f32
    %341 = vector.broadcast %cst_237 : f32 to vector<1x64x128xf32>
    %342 = arith.subf %341, %334 : vector<1x64x128xf32>
    %343 = arith.mulf %342, %334 : vector<1x64x128xf32>
    %cst_238 = arith.constant 1.26551223 : f32
    %344 = vector.broadcast %cst_238 : f32 to vector<1x64x128xf32>
    %345 = arith.subf %343, %344 : vector<1x64x128xf32>
    %cst_239 = arith.constant 0.170872763 : f32
    %346 = vector.broadcast %cst_239 : f32 to vector<1x64x128xf32>
    %347 = arith.mulf %340, %346 : vector<1x64x128xf32>
    %cst_240 = arith.constant -0.822152256 : f32
    %348 = vector.broadcast %cst_240 : f32 to vector<1x64x128xf32>
    %349 = arith.addf %348, %347 : vector<1x64x128xf32>
    %350 = arith.mulf %340, %349 : vector<1x64x128xf32>
    %cst_241 = arith.constant 1.48851585 : f32
    %351 = vector.broadcast %cst_241 : f32 to vector<1x64x128xf32>
    %352 = arith.addf %351, %350 : vector<1x64x128xf32>
    %353 = arith.mulf %340, %352 : vector<1x64x128xf32>
    %cst_242 = arith.constant -1.13520396 : f32
    %354 = vector.broadcast %cst_242 : f32 to vector<1x64x128xf32>
    %355 = arith.addf %354, %353 : vector<1x64x128xf32>
    %356 = arith.mulf %340, %355 : vector<1x64x128xf32>
    %cst_243 = arith.constant 0.278868079 : f32
    %357 = vector.broadcast %cst_243 : f32 to vector<1x64x128xf32>
    %358 = arith.addf %357, %356 : vector<1x64x128xf32>
    %359 = arith.mulf %340, %358 : vector<1x64x128xf32>
    %cst_244 = arith.constant -0.186288059 : f32
    %360 = vector.broadcast %cst_244 : f32 to vector<1x64x128xf32>
    %361 = arith.addf %360, %359 : vector<1x64x128xf32>
    %362 = arith.mulf %340, %361 : vector<1x64x128xf32>
    %cst_245 = arith.constant 0.0967841818 : f32
    %363 = vector.broadcast %cst_245 : f32 to vector<1x64x128xf32>
    %364 = arith.addf %363, %362 : vector<1x64x128xf32>
    %365 = arith.mulf %340, %364 : vector<1x64x128xf32>
    %cst_246 = arith.constant 0.374091953 : f32
    %366 = vector.broadcast %cst_246 : f32 to vector<1x64x128xf32>
    %367 = arith.addf %366, %365 : vector<1x64x128xf32>
    %368 = arith.mulf %340, %367 : vector<1x64x128xf32>
    %cst_247 = arith.constant 1.00002372 : f32
    %369 = vector.broadcast %cst_247 : f32 to vector<1x64x128xf32>
    %370 = arith.addf %369, %368 : vector<1x64x128xf32>
    %371 = arith.mulf %340, %370 : vector<1x64x128xf32>
    %372 = arith.addf %345, %371 : vector<1x64x128xf32>
    %373 = math.exp %372 : vector<1x64x128xf32>
    %374 = arith.mulf %340, %373 : vector<1x64x128xf32>
    %cst_248 = arith.constant 0.000000e+00 : f32
    %375 = vector.broadcast %cst_248 : f32 to vector<1x64x128xf32>
    %376 = arith.cmpf oge, %333, %375 : vector<1x64x128xf32>
    %cst_249 = arith.constant 1.000000e+00 : f32
    %377 = vector.broadcast %cst_249 : f32 to vector<1x64x128xf32>
    %378 = arith.subf %377, %374 : vector<1x64x128xf32>
    %cst_250 = arith.constant 1.000000e+00 : f32
    %379 = vector.broadcast %cst_250 : f32 to vector<1x64x128xf32>
    %380 = arith.subf %374, %379 : vector<1x64x128xf32>
    %381 = arith.select %376, %378, %380 : vector<1x64x128xi1>, vector<1x64x128xf32>
    %cst_251 = arith.constant 1.000000e+00 : f32
    %382 = vector.broadcast %cst_251 : f32 to vector<1x64x128xf32>
    %383 = arith.addf %382, %381 : vector<1x64x128xf32>
    %384 = arith.mulf %331, %383 : vector<1x64x128xf32>
    %385 = vector.shape_cast %384 : vector<1x64x128xf32> to vector<64x128xf32>
    %386 = vector.shape_cast %385 : vector<64x128xf32> to vector<8x8x128xf32>
    %c1_252 = arith.constant 1 : index
    %c8_253 = arith.constant 8 : index
    %c0_254 = arith.constant 0 : index
    %387 = vector.load %arg16[%c1_252, %c8_253, %c0_254] : memref<10x24x128xf32, #tpu.memory_space<vmem>>, vector<8x8x128xf32>
    tpu.vector_store %arg16[%c1_252, %c8_253, %c0_254], %386 {strides = array<i32>} : memref<10x24x128xf32, #tpu.memory_space<vmem>>, vector<8x8x128xf32>,
    %c0_255 = arith.constant 0 : index
    %c7_256 = arith.constant 7 : index
    %c0_257 = arith.constant 0 : index
    %388 = vector.load %arg16[%c0_255, %c7_256, %c0_257] : memref<10x24x128xf32, #tpu.memory_space<vmem>>, vector<8x8x128xf32>
    %389 = vector.shape_cast %388 : vector<8x8x128xf32> to vector<64x128xf32>
    %c0_258 = arith.constant 0 : index
    %c0_259 = arith.constant 0 : index
    %390 = vector.load %arg17[%c0_258, %c0_259] : memref<64x1152xf32, #tpu.memory_space<vmem>>, vector<64x128xf32>
    tpu.vector_store %arg17[%c0_258, %c0_259], %389 {strides = array<i32>} : memref<64x1152xf32, #tpu.memory_space<vmem>>, vector<64x128xf32>,
    %c0_260 = arith.constant 0 : index
    %c8_261 = arith.constant 8 : index
    %c0_262 = arith.constant 0 : index
    %391 = vector.load %arg16[%c0_260, %c8_261, %c0_262] : memref<10x24x128xf32, #tpu.memory_space<vmem>>, vector<8x8x128xf32>
    %392 = vector.shape_cast %391 : vector<8x8x128xf32> to vector<64x128xf32>
    %c0_263 = arith.constant 0 : index
    %c128_264 = arith.constant 128 : index
    %393 = vector.load %arg17[%c0_263, %c128_264] : memref<64x1152xf32, #tpu.memory_space<vmem>>, vector<64x128xf32>
    tpu.vector_store %arg17[%c0_263, %c128_264], %392 {strides = array<i32>} : memref<64x1152xf32, #tpu.memory_space<vmem>>, vector<64x128xf32>,
    %c0_265 = arith.constant 0 : index
    %c9_266 = arith.constant 9 : index
    %c0_267 = arith.constant 0 : index
    %394 = vector.load %arg16[%c0_265, %c9_266, %c0_267] : memref<10x24x128xf32, #tpu.memory_space<vmem>>, vector<8x8x128xf32>
    %395 = vector.shape_cast %394 : vector<8x8x128xf32> to vector<64x128xf32>
    %c0_268 = arith.constant 0 : index
    %c256_269 = arith.constant 256 : index
    %396 = vector.load %arg17[%c0_268, %c256_269] : memref<64x1152xf32, #tpu.memory_space<vmem>>, vector<64x128xf32>
    tpu.vector_store %arg17[%c0_268, %c256_269], %395 {strides = array<i32>} : memref<64x1152xf32, #tpu.memory_space<vmem>>, vector<64x128xf32>,
    %c1_270 = arith.constant 1 : index
    %c7_271 = arith.constant 7 : index
    %c0_272 = arith.constant 0 : index
    %397 = vector.load %arg16[%c1_270, %c7_271, %c0_272] : memref<10x24x128xf32, #tpu.memory_space<vmem>>, vector<8x8x128xf32>
    %398 = vector.shape_cast %397 : vector<8x8x128xf32> to vector<64x128xf32>
    %c0_273 = arith.constant 0 : index
    %c384_274 = arith.constant 384 : index
    %399 = vector.load %arg17[%c0_273, %c384_274] : memref<64x1152xf32, #tpu.memory_space<vmem>>, vector<64x128xf32>
    tpu.vector_store %arg17[%c0_273, %c384_274], %398 {strides = array<i32>} : memref<64x1152xf32, #tpu.memory_space<vmem>>, vector<64x128xf32>,
    %c1_275 = arith.constant 1 : index
    %c8_276 = arith.constant 8 : index
    %c0_277 = arith.constant 0 : index
    %400 = vector.load %arg16[%c1_275, %c8_276, %c0_277] : memref<10x24x128xf32, #tpu.memory_space<vmem>>, vector<8x8x128xf32>
    %401 = vector.shape_cast %400 : vector<8x8x128xf32> to vector<64x128xf32>
    %c0_278 = arith.constant 0 : index
    %c512_279 = arith.constant 512 : index
    %402 = vector.load %arg17[%c0_278, %c512_279] : memref<64x1152xf32, #tpu.memory_space<vmem>>, vector<64x128xf32>
    tpu.vector_store %arg17[%c0_278, %c512_279], %401 {strides = array<i32>} : memref<64x1152xf32, #tpu.memory_space<vmem>>, vector<64x128xf32>,
    %c1_280 = arith.constant 1 : index
    %c9_281 = arith.constant 9 : index
    %c0_282 = arith.constant 0 : index
    %403 = vector.load %arg16[%c1_280, %c9_281, %c0_282] : memref<10x24x128xf32, #tpu.memory_space<vmem>>, vector<8x8x128xf32>
    %404 = vector.shape_cast %403 : vector<8x8x128xf32> to vector<64x128xf32>
    %c0_283 = arith.constant 0 : index
    %c640_284 = arith.constant 640 : index
    %405 = vector.load %arg17[%c0_283, %c640_284] : memref<64x1152xf32, #tpu.memory_space<vmem>>, vector<64x128xf32>
    tpu.vector_store %arg17[%c0_283, %c640_284], %404 {strides = array<i32>} : memref<64x1152xf32, #tpu.memory_space<vmem>>, vector<64x128xf32>,
    %c2_285 = arith.constant 2 : index
    %c7_286 = arith.constant 7 : index
    %c0_287 = arith.constant 0 : index
    %406 = vector.load %arg16[%c2_285, %c7_286, %c0_287] : memref<10x24x128xf32, #tpu.memory_space<vmem>>, vector<8x8x128xf32>
    %407 = vector.shape_cast %406 : vector<8x8x128xf32> to vector<64x128xf32>
    %c0_288 = arith.constant 0 : index
    %c768_289 = arith.constant 768 : index
    %408 = vector.load %arg17[%c0_288, %c768_289] : memref<64x1152xf32, #tpu.memory_space<vmem>>, vector<64x128xf32>
    tpu.vector_store %arg17[%c0_288, %c768_289], %407 {strides = array<i32>} : memref<64x1152xf32, #tpu.memory_space<vmem>>, vector<64x128xf32>,
    %c2_290 = arith.constant 2 : index
    %c8_291 = arith.constant 8 : index
    %c0_292 = arith.constant 0 : index
    %409 = vector.load %arg16[%c2_290, %c8_291, %c0_292] : memref<10x24x128xf32, #tpu.memory_space<vmem>>, vector<8x8x128xf32>
    %410 = vector.shape_cast %409 : vector<8x8x128xf32> to vector<64x128xf32>
    %c0_293 = arith.constant 0 : index
    %c896_294 = arith.constant 896 : index
    %411 = vector.load %arg17[%c0_293, %c896_294] : memref<64x1152xf32, #tpu.memory_space<vmem>>, vector<64x128xf32>
    tpu.vector_store %arg17[%c0_293, %c896_294], %410 {strides = array<i32>} : memref<64x1152xf32, #tpu.memory_space<vmem>>, vector<64x128xf32>,
    %c2_295 = arith.constant 2 : index
    %c9_296 = arith.constant 9 : index
    %c0_297 = arith.constant 0 : index
    %412 = vector.load %arg16[%c2_295, %c9_296, %c0_297] : memref<10x24x128xf32, #tpu.memory_space<vmem>>, vector<8x8x128xf32>
    %413 = vector.shape_cast %412 : vector<8x8x128xf32> to vector<64x128xf32>
    %c0_298 = arith.constant 0 : index
    %c1024_299 = arith.constant 1024 : index
    %414 = vector.load %arg17[%c0_298, %c1024_299] : memref<64x1152xf32, #tpu.memory_space<vmem>>, vector<64x128xf32>
    tpu.vector_store %arg17[%c0_298, %c1024_299], %413 {strides = array<i32>} : memref<64x1152xf32, #tpu.memory_space<vmem>>, vector<64x128xf32>,
    %c0_300 = arith.constant 0 : index
    %c0_301 = arith.constant 0 : index
    %415 = vector.load %arg17[%c0_300, %c0_301] : memref<64x1152xf32, #tpu.memory_space<vmem>>, vector<64x1152xf32>
    %c0_302 = arith.constant 0 : index
    %c0_303 = arith.constant 0 : index
    %416 = vector.load %arg12[%c0_302, %c0_303] : memref<1152x128xf32, #tpu.memory_space<vmem>>, vector<1152x128xf32>
    %cst_304 = arith.constant dense<0.000000e+00> : vector<64x128xf32>
    %417 = tpu.matmul %415, %416, %cst_304 {dimension_numbers = #tpu.dot_dimension_numbers<[1], [0], [0], [1], [0, 0, 1, 1], [], []>} : vector<64x1152xf32>, vector<1152x128xf32>, vector<64x128xf32> -> vector<64x128xf32>
    %418 = vector.shape_cast %417 : vector<64x128xf32> to vector<1x64x128xf32>
    %cst_305 = arith.constant dense<0.000000e+00> : vector<1x64xf32>
    %419 = vector.multi_reduction <add>, %418, %cst_305 [2] : vector<1x64x128xf32> to vector<1x64xf32>
    %420 = vector.shape_cast %419 : vector<1x64xf32> to vector<1x64x1xf32>
    %cst_306 = arith.constant dense<0.000000e+00> : vector<1x1xf32>
    %421 = vector.multi_reduction <add>, %420, %cst_306 [1] : vector<1x64x1xf32> to vector<1x1xf32>
    %422 = vector.shape_cast %421 : vector<1x1xf32> to vector<1x1x1xf32>
    %cst_307 = arith.constant 0.001953125 : f32
    %423 = vector.broadcast %cst_307 : f32 to vector<1x1x1xf32>
    %424 = arith.mulf %422, %423 : vector<1x1x1xf32>
    %425 = vector.broadcast %424 : vector<1x1x1xf32> to vector<1x64x128xf32>
    %426 = arith.subf %418, %425 : vector<1x64x128xf32>
    %427 = arith.mulf %426, %426 : vector<1x64x128xf32>
    %cst_308 = arith.constant dense<0.000000e+00> : vector<1x64xf32>
    %428 = vector.multi_reduction <add>, %427, %cst_308 [2] : vector<1x64x128xf32> to vector<1x64xf32>
    %429 = vector.shape_cast %428 : vector<1x64xf32> to vector<1x64x1xf32>
    %cst_309 = arith.constant dense<0.000000e+00> : vector<1x1xf32>
    %430 = vector.multi_reduction <add>, %429, %cst_309 [1] : vector<1x64x1xf32> to vector<1x1xf32>
    %431 = vector.shape_cast %430 : vector<1x1xf32> to vector<1x1x1xf32>
    %cst_310 = arith.constant 7.680000e+03 : f32
    %432 = vector.broadcast %cst_310 : f32 to vector<1x1x1xf32>
    %433 = arith.mulf %432, %424 : vector<1x1x1xf32>
    %434 = arith.mulf %433, %424 : vector<1x1x1xf32>
    %435 = arith.subf %431, %434 : vector<1x1x1xf32>
    %cst_311 = arith.constant 0.001953125 : f32
    %436 = vector.broadcast %cst_311 : f32 to vector<1x1x1xf32>
    %437 = arith.mulf %435, %436 : vector<1x1x1xf32>
    %cst_312 = arith.constant 0.000000e+00 : f32
    %438 = vector.broadcast %cst_312 : f32 to vector<1x1x1xf32>
    %439 = arith.maximumf %437, %438 : vector<1x1x1xf32>
    %cst_313 = arith.constant 9.99999974E-6 : f32
    %440 = vector.broadcast %cst_313 : f32 to vector<1x1x1xf32>
    %441 = arith.addf %439, %440 : vector<1x1x1xf32>
    %442 = math.rsqrt %441 : vector<1x1x1xf32>
    %443 = vector.broadcast %442 : vector<1x1x1xf32> to vector<1x64x128xf32>
    %444 = arith.mulf %426, %443 : vector<1x64x128xf32>
    %c0_314 = arith.constant 0 : index
    %c0_315 = arith.constant 0 : index
    %445 = vector.load %arg13[%c0_314, %c0_315] : memref<1x128xf32, #tpu.memory_space<vmem>>, vector<1x128xf32>
    %446 = vector.shape_cast %445 : vector<1x128xf32> to vector<1x1x128xf32>
    %447 = vector.broadcast %446 : vector<1x1x128xf32> to vector<1x64x128xf32>
    %448 = arith.mulf %444, %447 : vector<1x64x128xf32>
    %c0_316 = arith.constant 0 : index
    %c0_317 = arith.constant 0 : index
    %449 = vector.load %arg14[%c0_316, %c0_317] : memref<1x128xf32, #tpu.memory_space<vmem>>, vector<1x128xf32>
    %450 = vector.shape_cast %449 : vector<1x128xf32> to vector<1x1x128xf32>
    %451 = vector.broadcast %450 : vector<1x1x128xf32> to vector<1x64x128xf32>
    %452 = arith.addf %448, %451 : vector<1x64x128xf32>
    %c0_318 = arith.constant 0 : index
    %c0_319 = arith.constant 0 : index
    %c0_320 = arith.constant 0 : index
    %453 = vector.load %arg2[%c0_318, %c0_319, %c0_320] : memref<1x1x128xf32, #tpu.memory_space<vmem>>, vector<1x1x128xf32>
    %454 = vector.shape_cast %453 : vector<1x1x128xf32> to vector<1x128xf32>
    %455 = vector.shape_cast %454 : vector<1x128xf32> to vector<1x1x128xf32>
    %456 = vector.broadcast %455 : vector<1x1x128xf32> to vector<1x64x128xf32>
    %457 = arith.addf %452, %456 : vector<1x64x128xf32>
    %c0_321 = arith.constant 0 : index
    %c0_322 = arith.constant 0 : index
    %c0_323 = arith.constant 0 : index
    %c0_324 = arith.constant 0 : index
    %458 = vector.load %arg15[%c0_321, %c0_322, %c0_323, %c0_324] : memref<1x1x64x128xf32, #tpu.memory_space<vmem>>, vector<1x1x64x128xf32>
    %459 = vector.shape_cast %458 : vector<1x1x64x128xf32> to vector<1x64x128xf32>
    %460 = vector.shape_cast %457 : vector<1x64x128xf32> to vector<1x1x64x128xf32>
    tpu.vector_store %arg15[%c0_321, %c0_322, %c0_323, %c0_324], %460 {strides = array<i32>} : memref<1x1x64x128xf32, #tpu.memory_space<vmem>>, vector<1x1x64x128xf32>,
    return
  }
  func.func @transform_0(%arg0: i32) -> (i32, i32, i32, i32, i32) {
    %c0_i32 = arith.constant 0 : i32
    %c0_i32_0 = arith.constant 0 : i32
    %c0_i32_1 = arith.constant 0 : i32
    %c0_i32_2 = arith.constant 0 : i32
    %c0_i32_3 = arith.constant 0 : i32
    return %arg0, %c0_i32, %c0_i32_0, %c0_i32_1, %c0_i32_2 : i32, i32, i32, i32, i32
  }
  func.func @transform_1(%arg0: i32) -> (i32, i32, i32) {
    %c0_i32 = arith.constant 0 : i32
    %c0_i32_0 = arith.constant 0 : i32
    %c0_i32_1 = arith.constant 0 : i32
    return %arg0, %c0_i32, %c0_i32_0 : i32, i32, i32
  }
  func.func @transform_2(%arg0: i32) -> (i32, i32) {
    %c0_i32 = arith.constant 0 : i32
    %c0_i32_0 = arith.constant 0 : i32
    %c0_i32_1 = arith.constant 0 : i32
    return %c0_i32, %c0_i32_0 : i32, i32
  }
  func.func @transform_3(%arg0: i32) -> (i32, i32) {
    %c0_i32 = arith.constant 0 : i32
    %c0_i32_0 = arith.constant 0 : i32
    %c0_i32_1 = arith.constant 0 : i32
    return %c0_i32, %c0_i32_0 : i32, i32
  }
  func.func @transform_4(%arg0: i32) -> (i32, i32) {
    %c0_i32 = arith.constant 0 : i32
    %c0_i32_0 = arith.constant 0 : i32
    %c0_i32_1 = arith.constant 0 : i32
    return %c0_i32, %c0_i32_0 : i32, i32
  }
  func.func @transform_5(%arg0: i32) -> (i32, i32) {
    %c0_i32 = arith.constant 0 : i32
    %c0_i32_0 = arith.constant 0 : i32
    %c0_i32_1 = arith.constant 0 : i32
    return %c0_i32, %c0_i32_0 : i32, i32
  }
  func.func @transform_6(%arg0: i32) -> (i32, i32) {
    %c0_i32 = arith.constant 0 : i32
    %c0_i32_0 = arith.constant 0 : i32
    %c0_i32_1 = arith.constant 0 : i32
    return %c0_i32, %c0_i32_0 : i32, i32
  }
  func.func @transform_7(%arg0: i32) -> (i32, i32) {
    %c0_i32 = arith.constant 0 : i32
    %c0_i32_0 = arith.constant 0 : i32
    %c0_i32_1 = arith.constant 0 : i32
    return %c0_i32, %c0_i32_0 : i32, i32
  }
  func.func @transform_8(%arg0: i32) -> (i32, i32) {
    %c0_i32 = arith.constant 0 : i32
    %c0_i32_0 = arith.constant 0 : i32
    %c0_i32_1 = arith.constant 0 : i32
    return %c0_i32, %c0_i32_0 : i32, i32
  }
  func.func @transform_9(%arg0: i32) -> (i32, i32) {
    %c0_i32 = arith.constant 0 : i32
    %c0_i32_0 = arith.constant 0 : i32
    %c0_i32_1 = arith.constant 0 : i32
    return %c0_i32, %c0_i32_0 : i32, i32
  }
  func.func @transform_10(%arg0: i32) -> (i32, i32) {
    %c0_i32 = arith.constant 0 : i32
    %c0_i32_0 = arith.constant 0 : i32
    %c0_i32_1 = arith.constant 0 : i32
    return %c0_i32, %c0_i32_0 : i32, i32
  }
  func.func @transform_11(%arg0: i32) -> (i32, i32) {
    %c0_i32 = arith.constant 0 : i32
    %c0_i32_0 = arith.constant 0 : i32
    %c0_i32_1 = arith.constant 0 : i32
    return %c0_i32, %c0_i32_0 : i32, i32
  }
  func.func @transform_12(%arg0: i32) -> (i32, i32) {
    %c0_i32 = arith.constant 0 : i32
    %c0_i32_0 = arith.constant 0 : i32
    %c0_i32_1 = arith.constant 0 : i32
    return %c0_i32, %c0_i32_0 : i32, i32
  }
  func.func @transform_13(%arg0: i32) -> (i32, i32) {
    %c0_i32 = arith.constant 0 : i32
    %c0_i32_0 = arith.constant 0 : i32
    %c0_i32_1 = arith.constant 0 : i32
    return %c0_i32, %c0_i32_0 : i32, i32
  }
  func.func @transform_14(%arg0: i32) -> (i32, i32, i32, i32) {
    %c0_i32 = arith.constant 0 : i32
    %c0_i32_0 = arith.constant 0 : i32
    %c0_i32_1 = arith.constant 0 : i32
    %c0_i32_2 = arith.constant 0 : i32
    return %arg0, %c0_i32, %c0_i32_0, %c0_i32_1 : i32, i32, i32, i32
  }
}

</mosaic_0001>

<bundles_post_ra>
// kernel: down_forward.1
= control target key start
LH: loop header
LB: loop body
LE: loop exit
PB: predicated region body
PF: predicated region fallthrough
CT: control target
= control target key end

     0   :  { %s7683_s29 = smov 0   ;;  %s10770_s0 = inlined_call_operand.vmem [shape: f32[2,1,4,64,128], index: 0, kind: input, shape index: {}]   ;;  %s10771_s1 = inlined_call_operand.vmem [shape: f32[2,1,128], index: 1, kind: input, shape index: {}]   ;;  %s10772_s2 = inlined_call_operand.vmem [shape: f32[1152,128], index: 2, kind: input, shape index: {}]   ;;  %s10773_s3 = inlined_call_operand.vmem [shape: f32[1,128], index: 3, kind: input, shape index: {}]   ;;  %s10774_s4 = inlined_call_operand.vmem [shape: f32[1,128], index: 4, kind: input, shape index: {}]   ;;  %s10775_s5 = inlined_call_operand.vmem [shape: f32[1152,128], index: 5, kind: input, shape index: {}]   ;;  %s10776_s6 = inlined_call_operand.vmem [shape: f32[1,128], index: 6, kind: input, shape index: {}]   ;;  %s10777_s7 = inlined_call_operand.vmem [shape: f32[1,128], index: 7, kind: input, shape index: {}]   ;;  %s10778_s8 = inlined_call_operand.vmem [shape: f32[1152,128], index: 8, kind: input, shape index: {}]   ;;  %s10779_s9 = inlined_call_operand.vmem [shape: f32[1,128], index: 9, kind: input, shape index: {}]   ;;  %s10780_s10 = inlined_call_operand.vmem [shape: f32[1,128], index: 10, kind: input, shape index: {}]   ;;  %s10781_s11 = inlined_call_operand.vmem [shape: f32[1152,128], index: 11, kind: input, shape index: {}]   ;;  %s10782_s12 = inlined_call_operand.vmem [shape: f32[1,128], index: 12, kind: input, shape index: {}]   ;;  %s10783_s13 = inlined_call_operand.vmem [shape: f32[1,128], index: 13, kind: input, shape index: {}]   ;;  %s10784_s14 = inlined_call_operand.vmem [shape: f32[2,1,64,128], index: 14, kind: output, shape index: {}]  }
   0x1 LB: > { %s5605_s30 = sadd.s32 4294967295, %s7605_s29   ;;  %p5609_p0 = scmp.ge.s32.totalorder %s7605_s29, 1  ;;  %s7605_s29 = sphi %s7683_s29, %s24_s29  }
   0x2   : > { %p420_p1 = scmp.lt.s32.totalorder %s7605_s29, 3 }
   0x4   : > { %p421_p2 = pnand %p5609_p0, %p420_p1 }
   0x5   : > { %v810_v0 = vld [vmem:[%s10772_s2 + $0x80] sm:$0xff] (!%p421_p2)  ;;  %v811_v1 = vld [vmem:[%s10772_s2 + $0x88] sm:$0xff] (!%p421_p2)  ;;  %v7607_v7 = vmov (!%p421_p2), 0.0   ;;  %v812_v12 = vld [vmem:[%s10772_s2 + $0x90] sm:$0xff] (!%p421_p2)  ;;  %p7788_p3 = scmp.lt.s32.totalorder (!%p421_p2), %s5605_s30, 1 }
   0x6   : > { %424 = sbr.rel (%p421_p2) target bundleno = 2911 (0xb5f), region = 76  ;;  %v842_v2 = vld [vmem:[%s10772_s2 + $0x180] sm:$0xff] (!%p421_p2)  ;;  %v6843_v3 = vpack.c.bf16 (!%p421_p2), %v811_v1, %v810_v0  ;;  %v843_v4 = vld [vmem:[%s10772_s2 + $0x188] sm:$0xff] (!%p421_p2)  ;;  %483 = vst [vmem:[#allocation2 + $0x8] sm:$0xff] (!%p421_p2), %v7607_v7  ;;  %1002 = vmatprep.mubr.f32.mxu0 (!%p421_p2), %v7607_v7  ;;  %482 = vst [vmem:[#allocation2] sm:$0xff] (!%p421_p2), %v7607_v7 }
   0x7   : > { %v794_v5 = vld [vmem:[%s10772_s2] sm:$0xff] (!%p421_p2)  ;;  %v795_v6 = vld [vmem:[%s10772_s2 + $0x8] sm:$0xff] (!%p421_p2)  ;;  %484 = vst [vmem:[#allocation2 + $0x10] sm:$0xff] (!%p421_p2), %v7607_v7  ;;  %485 = vst [vmem:[#allocation2 + $0x18] sm:$0xff] (!%p421_p2), %v7607_v7  ;;  %v6875_v8 = vpack.c.bf16 (!%p421_p2), %v843_v4, %v842_v2 }
   0x8   : > { %487 = vst [vmem:[#allocation2 + $0x28] sm:$0xff] (!%p421_p2), %v7607_v7  ;;  %488 = vst [vmem:[#allocation2 + $0x30] sm:$0xff] (!%p421_p2), %v7607_v7  ;;  %v6845_v9 = vpack.c.bf16 (!%p421_p2), %v795_v6, %v794_v5  ;;  %v826_v10 = vld [vmem:[%s10772_s2 + $0x100] sm:$0xff] (!%p421_p2)  ;;  %v827_v11 = vld [vmem:[%s10772_s2 + $0x108] sm:$0xff] (!%p421_p2)  ;;  %6844 = vmatprep.subr.bf16.mxu0 (!%p421_p2), %v6843_v3 }
   0x9   : > { %490 = vst [vmem:[#allocation2 + $0x40] sm:$0xff] (!%p421_p2), %v7607_v7  ;;  %491 = vst [vmem:[#allocation2 + $0x48] sm:$0xff] (!%p421_p2), %v7607_v7  ;;  %v6877_v13 = vpack.c.bf16 (!%p421_p2), %v827_v11, %v826_v10  ;;  %v813_v14 = vld [vmem:[%s10772_s2 + $0x98] sm:$0xff] (!%p421_p2)  ;;  %v844_v15 = vld [vmem:[%s10772_s2 + $0x190] sm:$0xff] (!%p421_p2)  ;;  %6876 = vmatprep.subr.bf16.mxu1 (!%p421_p2), %v6875_v8 }
   0xa   : > { %493 = vst [vmem:[#allocation2 + $0x58] sm:$0xff] (!%p421_p2), %v7607_v7  ;;  %494 = vst [vmem:[#allocation2 + $0x60] sm:$0xff] (!%p421_p2), %v7607_v7  ;;  %v845_v16 = vld [vmem:[%s10772_s2 + $0x198] sm:$0xff] (!%p421_p2)  ;;  %6846 = vmatpush3.bf16.msra.mxu0 (!%p421_p2), %v6845_v9  ;;  %v6847_v17 = vpack.c.bf16 (!%p421_p2), %v813_v14, %v812_v12  ;;  %v796_v19 = vld [vmem:[%s10772_s2 + $0x10] sm:$0xff] (!%p421_p2) }
   0xb   : > { %496 = vst [vmem:[#allocation2 + $0x70] sm:$0xff] (!%p421_p2), %v7607_v7  ;;  %497 = vst [vmem:[#allocation2 + $0x78] sm:$0xff] (!%p421_p2), %v7607_v7  ;;  %v6879_v18 = vpack.c.bf16 (!%p421_p2), %v845_v16, %v844_v15  ;;  %v797_v20 = vld [vmem:[%s10772_s2 + $0x18] sm:$0xff] (!%p421_p2)  ;;  %v828_v21 = vld [vmem:[%s10772_s2 + $0x110] sm:$0xff] (!%p421_p2)  ;;  %6878 = vmatpush3.bf16.msra.mxu1 (!%p421_p2), %v6877_v13 }
   0xc   : > { %499 = vst [vmem:[#allocation2 + $0x88] sm:$0xff] (!%p421_p2), %v7607_v7  ;;  %500 = vst [vmem:[#allocation2 + $0x90] sm:$0xff] (!%p421_p2), %v7607_v7  ;;  %v6849_v22 = vpack.c.bf16 (!%p421_p2), %v797_v20, %v796_v19  ;;  %v829_v23 = vld [vmem:[%s10772_s2 + $0x118] sm:$0xff] (!%p421_p2)  ;;  %v814_v24 = vld [vmem:[%s10772_s2 + $0xa0] sm:$0xff] (!%p421_p2)  ;;  %6848 = vmatprep.subr.bf16.mxu0 (!%p421_p2), %v6847_v17 }
   0xd   : > { %502 = vst [vmem:[#allocation2 + $0xa0] sm:$0xff] %v7607_v7  ;;  %503 = vst [vmem:[#allocation2 + $0xa8] sm:$0xff] %v7607_v7  ;;  %v815_v25 = vld [vmem:[%s10772_s2 + $0xa8] sm:$0xff]  ;;  %6880 = vmatprep.subr.bf16.mxu1 %v6879_v18  ;;  %v6881_v26 = vpack.c.bf16 %v829_v23, %v828_v21  ;;  %v846_v28 = vld [vmem:[%s10772_s2 + $0x1a0] sm:$0xff]  ;;  %s10787_s30 = smov (!%p7788_p3, %s5605_s30), 1 }
   0xe   : > { %505 = vst [vmem:[#allocation2 + $0xb8] sm:$0xff] %v7607_v7  ;;  %506 = vst [vmem:[#allocation2 + $0xc0] sm:$0xff] %v7607_v7  ;;  %v6851_v27 = vpack.c.bf16 %v815_v25, %v814_v24  ;;  %v847_v29 = vld [vmem:[%s10772_s2 + $0x1a8] sm:$0xff]  ;;  %v798_v30 = vld [vmem:[%s10772_s2 + $0x20] sm:$0xff]  ;;  %6850 = vmatpush3.bf16.msra.mxu0 %v6849_v22  ;;  %s5673_s22 = sshll.u32 %s10787_s30, 8  ;;  %s476_s25 = scalar_lea.vmem %s10771_s1, %s10787_s30 }
   0xf   : > { %508 = vst [vmem:[#allocation2 + $0xd0] sm:$0xff] %v7607_v7  ;;  %509 = vst [vmem:[#allocation2 + $0xd8] sm:$0xff] %v7607_v7  ;;  %v6883_v31 = vpack.c.bf16 %v847_v29, %v846_v28  ;;  %v799_v32 = vld [vmem:[%s10772_s2 + $0x28] sm:$0xff]  ;;  %v830_v33 = vld [vmem:[%s10772_s2 + $0x120] sm:$0xff]  ;;  %6882 = vmatpush3.bf16.msra.mxu1 %v6881_v26  ;;  %s7880_s24 = scalar_lea.vmem %s10770_s0, %s5673_s22  ;;  %s5674_s27 = sshll.u32 %s10787_s30, 6 }
  0x10   : > { %510 = vst [vmem:[#allocation2 + $0xe0] sm:$0xff] %v7607_v7  ;;  %511 = vst [vmem:[#allocation2 + $0xe8] sm:$0xff] %v7607_v7  ;;  %v831_v34 = vld [vmem:[%s10772_s2 + $0x128] sm:$0xff]  ;;  %v6853_v35 = vpack.c.bf16 %v799_v32, %v798_v30  ;;  %v816_v36 = vld [vmem:[%s10772_s2 + $0xb0] sm:$0xff]  ;;  %6852 = vmatprep.subr.bf16.mxu0 %v6851_v27  ;;  %s481_s22 = scalar_lea.vmem %s10784_s14, %s5674_s27 }
  0x11   : > { %v817_v37 = vld [vmem:[%s10772_s2 + $0xb8] sm:$0xff]  ;;  %v848_v38 = vld [vmem:[%s10772_s2 + $0x1b0] sm:$0xff]  ;;  %v6885_v39 = vpack.c.bf16 %v831_v34, %v830_v33  ;;  %6884 = vmatprep.subr.bf16.mxu1 %v6883_v31  ;;  %v818_v47 = vld [vmem:[%s10772_s2 + $0xc0] sm:$0xff] }
  0x12   : > { %v6855_v40 = vpack.c.bf16 %v817_v37, %v816_v36  ;;  %v849_v41 = vld [vmem:[%s10772_s2 + $0x1b8] sm:$0xff]  ;;  %v800_v42 = vld [vmem:[%s10772_s2 + $0x30] sm:$0xff]  ;;  %v819_v48 = vld [vmem:[%s10772_s2 + $0xc8] sm:$0xff]  ;;  %6854 = vmatpush3.bf16.msra.mxu0 %v6853_v35 }
  0x13   : > { %v801_v43 = vld [vmem:[%s10772_s2 + $0x38] sm:$0xff]  ;;  %v6887_v44 = vpack.c.bf16 %v849_v41, %v848_v38  ;;  %v832_v45 = vld [vmem:[%s10772_s2 + $0x130] sm:$0xff]  ;;  %v850_v49 = vld [vmem:[%s10772_s2 + $0x1c0] sm:$0xff]  ;;  %6886 = vmatpush3.bf16.msra.mxu1 %v6885_v39  ;;  %v6859_v53 = vpack.c.bf16 %v819_v48, %v818_v47 }
  0x14   : > { %v833_v46 = vld [vmem:[%s10772_s2 + $0x138] sm:$0xff]  ;;  %v851_v50 = vld [vmem:[%s10772_s2 + $0x1c8] sm:$0xff]  ;;  %v6857_v51 = vpack.c.bf16 %v801_v43, %v800_v42  ;;  %6856 = vmatprep.subr.bf16.mxu0 %v6855_v40  ;;  %v802_v54 = vld [vmem:[%s10772_s2 + $0x40] sm:$0xff] }
  0x15   : > { %v6889_v52 = vpack.c.bf16 %v833_v46, %v832_v45  ;;  %v803_v55 = vld [vmem:[%s10772_s2 + $0x48] sm:$0xff]  ;;  %v834_v56 = vld [vmem:[%s10772_s2 + $0x140] sm:$0xff]  ;;  %6888 = vmatprep.subr.bf16.mxu1 %v6887_v44  ;;  %v6891_v57 = vpack.c.bf16 %v851_v50, %v850_v49  ;;  %v820_v59 = vld [vmem:[%s10772_s2 + $0xd0] sm:$0xff] }
  0x16   : > { %v835_v58 = vld [vmem:[%s10772_s2 + $0x148] sm:$0xff]  ;;  %v821_v60 = vld [vmem:[%s10772_s2 + $0xd8] sm:$0xff]  ;;  %v852_v61 = vld [vmem:[%s10772_s2 + $0x1d0] sm:$0xff]  ;;  %6858 = vmatpush3.bf16.msra.mxu0 %v6857_v51  ;;  %v6861_v63 = vpack.c.bf16 %v803_v55, %v802_v54 }
  0x17   : > { %v853_v62 = vld [vmem:[%s10772_s2 + $0x1d8] sm:$0xff]  ;;  %6890 = vmatpush3.bf16.msra.mxu1 %v6889_v52  ;;  %6860 = vmatprep.subr.bf16.mxu0 %v6859_v53  ;;  %v6893_v0 = vpack.c.bf16 %v835_v58, %v834_v56  ;;  %v6863_v1 = vpack.c.bf16 %v821_v60, %v820_v59  ;;  %v804_v2 = vld [vmem:[%s10772_s2 + $0x50] sm:$0xff]  ;;  %v822_v8 = vld [vmem:[%s10772_s2 + $0xe0] sm:$0xff] }
  0x18   : > { %v805_v3 = vld [vmem:[%s10772_s2 + $0x58] sm:$0xff]  ;;  %v836_v4 = vld [vmem:[%s10772_s2 + $0x150] sm:$0xff]  ;;  %6892 = vmatprep.subr.bf16.mxu1 %v6891_v57  ;;  %v6895_v5 = vpack.c.bf16 %v853_v62, %v852_v61  ;;  %v823_v9 = vld [vmem:[%s10772_s2 + $0xe8] sm:$0xff] }
  0x19   : > { %v837_v6 = vld [vmem:[%s10772_s2 + $0x158] sm:$0xff]  ;;  %v854_v10 = vld [vmem:[%s10772_s2 + $0x1e0] sm:$0xff]  ;;  %v855_v11 = vld [vmem:[%s10772_s2 + $0x1e8] sm:$0xff]  ;;  %v6865_v13 = vpack.c.bf16 %v805_v3, %v804_v2  ;;  %v6867_v18 = vpack.c.bf16 %v823_v9, %v822_v8 }
  0x1a   : > { %v806_v12 = vld [vmem:[%s10772_s2 + $0x60] sm:$0xff]  ;;  %6862 = vmatpush3.bf16.msra.mxu0 %v6861_v63  ;;  %v807_v14 = vld [vmem:[%s10772_s2 + $0x68] sm:$0xff]  ;;  %v6897_v17 = vpack.c.bf16 %v837_v6, %v836_v4  ;;  %v824_v19 = vld [vmem:[%s10772_s2 + $0xf0] sm:$0xff]  ;;  %v6899_v22 = vpack.c.bf16 %v855_v11, %v854_v10 }
  0x1b   : > { %v838_v15 = vld [vmem:[%s10772_s2 + $0x160] sm:$0xff]  ;;  %v839_v16 = vld [vmem:[%s10772_s2 + $0x168] sm:$0xff]  ;;  %6894 = vmatpush3.bf16.msra.mxu1 %v6893_v0  ;;  %6864 = vmatprep.subr.bf16.mxu0 %v6863_v1  ;;  %v825_v23 = vld [vmem:[%s10772_s2 + $0xf8] sm:$0xff]  ;;  %v6869_v31 = vpack.c.bf16 %v807_v14, %v806_v12 }
  0x1c   : > { %v512_v20 = vld [vmem:[%s7880_s24] sm:$0xff]  ;;  %6896 = vmatprep.subr.bf16.mxu1 %v6895_v5  ;;  %v856_v27 = vld [vmem:[%s10772_s2 + $0x1f0] sm:$0xff]  ;;  %v857_v28 = vld [vmem:[%s10772_s2 + $0x1f8] sm:$0xff]  ;;  %v6901_v35 = vpack.c.bf16 %v839_v16, %v838_v15  ;;  %v6871_v36 = vpack.c.bf16 %v825_v23, %v824_v19 }
  0x1d   : > { %v520_v21 = vld [vmem:[%s7880_s24 + $0x40] sm:$0xff]  ;;  %v808_v29 = vld [vmem:[%s10772_s2 + $0x70] sm:$0xff]  ;;  %v809_v32 = vld [vmem:[%s10772_s2 + $0x78] sm:$0xff]  ;;  %v6903_v41 = vpack.c.bf16 %v857_v28, %v856_v27 }
  0x1e   : > { %v528_v24 = vld [vmem:[%s7880_s24 + $0x80] sm:$0xff]  ;;  %v544_v26 = vmax.f32 %v512_v20, %v520_v21  ;;  %6866 = vmatpush3.bf16.msra.mxu0 %v6865_v13  ;;  %v840_v33 = vld [vmem:[%s10772_s2 + $0x170] sm:$0xff]  ;;  %v841_v34 = vld [vmem:[%s10772_s2 + $0x178] sm:$0xff]  ;;  %v6873_v50 = vpack.c.bf16 %v809_v32, %v808_v29 }
  0x1f   : > { %v536_v25 = vld [vmem:[%s7880_s24 + $0xc0] sm:$0xff]  ;;  %6898 = vmatpush3.bf16.msra.mxu1 %v6897_v17  ;;  %6868 = vmatprep.subr.bf16.mxu0 %v6867_v18  ;;  %v513_v39 = vld [vmem:[%s7880_s24 + $0x8] sm:$0xff]  ;;  %v6905_v54 = vpack.c.bf16 %v841_v34, %v840_v33  ;;  %v876_v57 = vld [vmem:[%s10772_s2 + $0x290] sm:$0xff] }
  0x20   : > { %v552_v30 = vmax.f32 %v528_v24, %v536_v25  ;;  %v874_v38 = vld [vmem:[%s10772_s2 + $0x280] sm:$0xff]  ;;  %v521_v40 = vld [vmem:[%s7880_s24 + $0x48] sm:$0xff]  ;;  %6900 = vmatprep.subr.bf16.mxu1 %v6899_v22  ;;  %v514_v58 = vld [vmem:[%s7880_s24 + $0x10] sm:$0xff] }
  0x21   : > { %v875_v42 = vld [vmem:[%s10772_s2 + $0x288] sm:$0xff]  ;;  %v545_v45 = vmax.f32 %v513_v39, %v521_v40  ;;  %v858_v46 = vld [vmem:[%s10772_s2 + $0x200] sm:$0xff]  ;;  %v522_v59 = vld [vmem:[%s7880_s24 + $0x50] sm:$0xff] }
  0x22   : > { %v7928_v37 = vmax.f32 %v544_v26, %v552_v30  ;;  %v529_v43 = vld [vmem:[%s7880_s24 + $0x88] sm:$0xff]  ;;  %v906_v47 = vld [vmem:[%s10772_s2 + $0x380] sm:$0xff]  ;;  %6870 = vmatpush3.bf16.msra.mxu0 %v6869_v31  ;;  %v6907_v55 = vpack.c.bf16 %v875_v42, %v874_v38  ;;  %v877_v62 = vld [vmem:[%s10772_s2 + $0x298] sm:$0xff]  ;;  %v546_v1 = vmax.f32 %v514_v58, %v522_v59 }
  0x23   : > { %v537_v44 = vld [vmem:[%s7880_s24 + $0xc8] sm:$0xff]  ;;  %v890_v52 = vld [vmem:[%s10772_s2 + $0x300] sm:$0xff]  ;;  %6902 = vmatpush3.bf16.msra.mxu1 %v6901_v35  ;;  %6872 = vmatprep.subr.bf16.mxu0 %v6871_v36  ;;  %v530_v63 = vld [vmem:[%s7880_s24 + $0x90] sm:$0xff]  ;;  %v6911_v18 = vpack.c.bf16 %v877_v62, %v876_v57 }
  0x24   : > { %569 = vst [vmem:[#allocation2 + $0x20] sm:$0xff] %v7928_v37  ;;  %v907_v48 = vld [vmem:[%s10772_s2 + $0x388] sm:$0xff]  ;;  %v553_v49 = vmax.f32 %v529_v43, %v537_v44  ;;  %6904 = vmatprep.subr.bf16.mxu1 %v6903_v41  ;;  %v538_v0 = vld [vmem:[%s7880_s24 + $0xd0] sm:$0xff]  ;;  %v909_v5 = vld [vmem:[%s10772_s2 + $0x398] sm:$0xff] }
  0x25   : > { %v859_v51 = vld [vmem:[%s10772_s2 + $0x208] sm:$0xff]  ;;  %v6939_v61 = vpack.c.bf16 %v907_v48, %v906_v47  ;;  %v860_v3 = vld [vmem:[%s10772_s2 + $0x210] sm:$0xff]  ;;  %v554_v6 = vmax.f32 %v530_v63, %v538_v0  ;;  %v861_v9 = vld [vmem:[%s10772_s2 + $0x218] sm:$0xff] }
  0x26   : > { %v891_v53 = vld [vmem:[%s10772_s2 + $0x308] sm:$0xff]  ;;  %v7959_v56 = vmax.f32 %v545_v45, %v553_v49  ;;  %v908_v4 = vld [vmem:[%s10772_s2 + $0x390] sm:$0xff]  ;;  %6874 = vmatpush3.bf16.msra.mxu0 %v6873_v50  ;;  %v6909_v8 = vpack.c.bf16 %v859_v51, %v858_v46  ;;  %v893_v11 = vld [vmem:[%s10772_s2 + $0x318] sm:$0xff]  ;;  %v6913_v29 = vpack.c.bf16 %v861_v9, %v860_v3 }
  0x27   : > { %v577_v60 = vld [vmem:[#allocation2 + $0x7] sm:$0xff]  ;;  %v892_v10 = vld [vmem:[%s10772_s2 + $0x310] sm:$0xff]  ;;  %6906 = vmatpush3.bf16.msra.mxu1 %v6905_v54  ;;  %6908 = vmatprep.subr.bf16.mxu0 %v6907_v55  ;;  %v6941_v12 = vpack.c.bf16 %v891_v53, %v890_v52  ;;  %v7990_v13 = vmax.f32 %v546_v1, %v554_v6  ;;  %v515_v15 = vld [vmem:[%s7880_s24 + $0x18] sm:$0xff]  ;;  %v6943_v19 = vpack.c.bf16 %v909_v5, %v908_v4 }
  0x28   : > { %v609_v2 = vld [vmem:[#allocation2 + $0x9] sm:$0xff]  ;;  %570 = vst [vmem:[#allocation2 + $0x38] sm:$0xff] %v7959_v56  ;;  %v878_v14 = vld [vmem:[%s10772_s2 + $0x2a0] sm:$0xff]  ;;  %v523_v16 = vld [vmem:[%s7880_s24 + $0x58] sm:$0xff]  ;;  %6940 = vmatprep.subr.bf16.mxu1 %v6939_v61  ;;  %v6945_v33 = vpack.c.bf16 %v893_v11, %v892_v10 }
  0x29   : > { %v879_v20 = vld [vmem:[%s10772_s2 + $0x2a8] sm:$0xff]  ;;  %v531_v21 = vld [vmem:[%s7880_s24 + $0x98] sm:$0xff]  ;;  %v547_v22 = vmax.f32 %v515_v15, %v523_v16  ;;  %1003 = vmatmul.mubr.f32.vlgmr.msra.gmra.mrb[0].mxu0 %v577_v60  ;;  %571 = vst [vmem:[#allocation2 + $0x50] sm:$0xff] %v7990_v13  ;;  %v862_v23 = vld [vmem:[%s10772_s2 + $0x220] sm:$0xff] }
  0x2a   : > { %v863_v24 = vld [vmem:[%s10772_s2 + $0x228] sm:$0xff]  ;;  %v910_v25 = vld [vmem:[%s10772_s2 + $0x3a0] sm:$0xff]  ;;  %v539_v27 = vld [vmem:[%s7880_s24 + $0xd8] sm:$0xff]  ;;  %6910 = vmatpush3.bf16.msra.mxu0 %v6909_v8  ;;  %1007 = vmatprep.mubr.f32.mxu0 %v7928_v37  ;;  %v6915_v39 = vpack.c.bf16 %v879_v20, %v878_v14 }
  0x2b   : > { %v625_v17 = vld [vmem:[#allocation2 + $0x1f] sm:$0xff]  ;;  %v911_v26 = vld [vmem:[%s10772_s2 + $0x3a8] sm:$0xff]  ;;  %v555_v30 = vmax.f32 %v531_v21, %v539_v27  ;;  %v880_v34 = vld [vmem:[%s10772_s2 + $0x2b0] sm:$0xff]  ;;  %6912 = vmatprep.subr.bf16.mxu0 %v6911_v18  ;;  %v6917_v47 = vpack.c.bf16 %v863_v24, %v862_v23 }
  0x2c   : > { %1107 = vmatprep.mubr.f32.mxu1 %v625_v17  ;;  %v8015_v28 = vld [vmem:[#allocation2 + $0x21] sm:$0xff]  ;;  %v881_v35 = vld [vmem:[%s10772_s2 + $0x2b8] sm:$0xff]  ;;  %v912_v36 = vld [vmem:[%s10772_s2 + $0x3b0] sm:$0xff]  ;;  %v6947_v40 = vpack.c.bf16 %v911_v26, %v910_v25 }
  0x2d   : > { %1108 = vmatmul.mubr.f32.vlgmr.msra.gmra.mrb[0].mxu1 %v609_v2  ;;  %v894_v31 = vld [vmem:[%s10772_s2 + $0x320] sm:$0xff]  ;;  %v895_v32 = vld [vmem:[%s10772_s2 + $0x328] sm:$0xff]  ;;  %v8035_v41 = vmax.f32 %v547_v22, %v555_v30  ;;  %v913_v42 = vld [vmem:[%s10772_s2 + $0x3b8] sm:$0xff]  ;;  %1008 = vmatmul.mubr.f32.gmra.mrb[2].mxu0 %v625_v17  ;;  %v6919_v58 = vpack.c.bf16 %v881_v35, %v880_v34 }
  0x2e   : > { %6942 = vmatpush3.bf16.msra.mxu1 %v6941_v12  ;;  %v516_v43 = vld [vmem:[%s7880_s24 + $0x20] sm:$0xff]  ;;  %6914 = vmatpush3.bf16.msra.mxu0 %v6913_v29  ;;  %v864_v48 = vld [vmem:[%s10772_s2 + $0x230] sm:$0xff]  ;;  %v865_v49 = vld [vmem:[%s10772_s2 + $0x238] sm:$0xff]  ;;  %v6949_v53 = vpack.c.bf16 %v895_v32, %v894_v31  ;;  %v6951_v59 = vpack.c.bf16 %v913_v42, %v912_v36 }
  0x2f   : > { %v8033_v38 = vld [vmem:[#allocation2 + $0x37] sm:$0xff]  ;;  %6944 = vmatprep.subr.bf16.mxu1 %v6943_v19  ;;  %v524_v44 = vld [vmem:[%s7880_s24 + $0x60] sm:$0xff]  ;;  %572 = vst [vmem:[#allocation2 + $0x68] sm:$0xff] %v8035_v41  ;;  %1012 = vmatprep.mubr.f32.mxu0 %v7959_v56  ;;  %v883_v62 = vld [vmem:[%s10772_s2 + $0x2c8] sm:$0xff]  ;;  %v6921_v3 = vpack.c.bf16 %v865_v49, %v864_v48 }
  0x30   : > { %1112 = vmatprep.mubr.f32.mxu1 %v8033_v38  ;;  %v532_v45 = vld [vmem:[%s7880_s24 + $0xa0] sm:$0xff]  ;;  %v548_v50 = vmax.f32 %v516_v43, %v524_v44  ;;  %v896_v54 = vld [vmem:[%s10772_s2 + $0x330] sm:$0xff]  ;;  %v897_v55 = vld [vmem:[%s10772_s2 + $0x338] sm:$0xff]  ;;  %6916 = vmatprep.subr.bf16.mxu0 %v6915_v39 }
  0x31   : > { %v540_v46 = vld [vmem:[%s7880_s24 + $0xe0] sm:$0xff]  ;;  %1113 = vmatmul.mubr.f32.gmra.mrb[2].mxu1 %v8015_v28  ;;  %v8062_v57 = vld [vmem:[#allocation2 + $0x4f] sm:$0xff]  ;;  %1013 = vmatmul.mubr.f32.gmra.mrb[4].mxu0 %v8033_v38  ;;  %v6953_v14 = vpack.c.bf16 %v897_v55, %v896_v54  ;;  %v885_v18 = vld [vmem:[%s10772_s2 + $0x2d8] sm:$0xff] }
  0x32   : > { %v556_v51 = vmax.f32 %v532_v45, %v540_v46  ;;  %6946 = vmatpush3.bf16.msra.mxu1 %v6945_v33  ;;  %v8054_v52 = vld [vmem:[#allocation2 + $0x39] sm:$0xff]  ;;  %1117 = vmatprep.mubr.f32.mxu1 %v8062_v57  ;;  %v517_v1 = vld [vmem:[%s7880_s24 + $0x28] sm:$0xff]  ;;  %v8090_v9 = vld [vmem:[#allocation2 + $0x51] sm:$0xff] }
  0x33   : > { %6948 = vmatprep.subr.bf16.mxu1 %v6947_v40  ;;  %v882_v61 = vld [vmem:[%s10772_s2 + $0x2c0] sm:$0xff]  ;;  %v525_v2 = vld [vmem:[%s7880_s24 + $0x68] sm:$0xff]  ;;  %6918 = vmatpush3.bf16.msra.mxu0 %v6917_v47  ;;  %v884_v17 = vld [vmem:[%s10772_s2 + $0x2d0] sm:$0xff] }
  0x34   : > { %v8064_v60 = vmax.f32 %v548_v50, %v556_v51  ;;  %v866_v63 = vld [vmem:[%s10772_s2 + $0x240] sm:$0xff]  ;;  %v915_v4 = vld [vmem:[%s10772_s2 + $0x3c8] sm:$0xff]  ;;  %v549_v8 = vmax.f32 %v517_v1, %v525_v2  ;;  %1017 = vmatprep.mubr.f32.mxu0 %v7990_v13  ;;  %6920 = vmatprep.subr.bf16.mxu0 %v6919_v58  ;;  %v6923_v15 = vpack.c.bf16 %v883_v62, %v882_v61  ;;  %v868_v22 = vld [vmem:[%s10772_s2 + $0x250] sm:$0xff] }
  0x35   : > { %v914_v0 = vld [vmem:[%s10772_s2 + $0x3c0] sm:$0xff]  ;;  %1118 = vmatmul.mubr.f32.gmra.mrb[4].mxu1 %v8054_v52  ;;  %v533_v5 = vld [vmem:[%s7880_s24 + $0xa8] sm:$0xff]  ;;  %1018 = vmatmul.mubr.f32.gmra.mrb[6].mxu0 %v8062_v57  ;;  %v916_v23 = vld [vmem:[%s10772_s2 + $0x3d0] sm:$0xff]  ;;  %v6927_v35 = vpack.c.bf16 %v885_v18, %v884_v17 }
  0x36   : > { %573 = vst [vmem:[#allocation2 + $0x80] sm:$0xff] %v8064_v60  ;;  %v541_v6 = vld [vmem:[%s7880_s24 + $0xe8] sm:$0xff]  ;;  %6950 = vmatpush3.bf16.msra.mxu1 %v6949_v53  ;;  %v898_v12 = vld [vmem:[%s10772_s2 + $0x340] sm:$0xff]  ;;  %v6955_v20 = vpack.c.bf16 %v915_v4, %v914_v0  ;;  %v917_v24 = vld [vmem:[%s10772_s2 + $0x3d8] sm:$0xff]  ;;  %1022 = vmatprep.mubr.f32.mxu0 %v8035_v41 }
  0x37   : > { %v867_v10 = vld [vmem:[%s10772_s2 + $0x248] sm:$0xff]  ;;  %v557_v11 = vmax.f32 %v533_v5, %v541_v6  ;;  %6952 = vmatprep.subr.bf16.mxu1 %v6951_v59  ;;  %6922 = vmatpush3.bf16.msra.mxu0 %v6921_v3  ;;  %v518_v26 = vld [vmem:[%s7880_s24 + $0x30] sm:$0xff]  ;;  %v869_v31 = vld [vmem:[%s10772_s2 + $0x258] sm:$0xff]  ;;  %v6959_v45 = vpack.c.bf16 %v917_v24, %v916_v23 }
  0x38   : > { %v899_v16 = vld [vmem:[%s10772_s2 + $0x348] sm:$0xff]  ;;  %v6925_v25 = vpack.c.bf16 %v867_v10, %v866_v63  ;;  %v526_v27 = vld [vmem:[%s7880_s24 + $0x70] sm:$0xff]  ;;  %6924 = vmatprep.subr.bf16.mxu0 %v6923_v15  ;;  %v901_v40 = vld [vmem:[%s10772_s2 + $0x358] sm:$0xff]  ;;  %v6929_v48 = vpack.c.bf16 %v869_v31, %v868_v22 }
  0x39   : > { %v8107_v19 = vld [vmem:[#allocation2 + $0x67] sm:$0xff]  ;;  %v8110_v21 = vmax.f32 %v549_v8, %v557_v11  ;;  %v534_v29 = vld [vmem:[%s7880_s24 + $0xb0] sm:$0xff]  ;;  %v550_v33 = vmax.f32 %v518_v26, %v526_v27  ;;  %v6957_v34 = vpack.c.bf16 %v899_v16, %v898_v12  ;;  %v519_v53 = vld [vmem:[%s7880_s24 + $0x38] sm:$0xff] }
  0x3a   : > { %1122 = vmatprep.mubr.f32.mxu1 %v8107_v19  ;;  %v8127_v30 = vld [vmem:[#allocation2 + $0x69] sm:$0xff]  ;;  %6954 = vmatpush3.bf16.msra.mxu1 %v6953_v14  ;;  %v886_v42 = vld [vmem:[%s10772_s2 + $0x2e0] sm:$0xff]  ;;  %v527_v55 = vld [vmem:[%s7880_s24 + $0x78] sm:$0xff] }
  0x3b   : > { %1123 = vmatmul.mubr.f32.gmra.mrb[6].mxu1 %v8090_v9  ;;  %574 = vst [vmem:[#allocation2 + $0x98] sm:$0xff] %v8110_v21  ;;  %v542_v32 = vld [vmem:[%s7880_s24 + $0xf0] sm:$0xff]  ;;  %v887_v43 = vld [vmem:[%s10772_s2 + $0x2e8] sm:$0xff]  ;;  %1023 = vmatmul.mubr.f32.gmra.mrb[8].mxu0 %v8107_v19  ;;  %v870_v46 = vld [vmem:[%s10772_s2 + $0x260] sm:$0xff]  ;;  %v551_v61 = vmax.f32 %v519_v53, %v527_v55 }
  0x3c   : > { %v558_v36 = vmax.f32 %v534_v29, %v542_v32  ;;  %v900_v39 = vld [vmem:[%s10772_s2 + $0x350] sm:$0xff]  ;;  %6956 = vmatprep.subr.bf16.mxu1 %v6955_v20  ;;  %v871_v47 = vld [vmem:[%s10772_s2 + $0x268] sm:$0xff]  ;;  %6926 = vmatpush3.bf16.msra.mxu0 %v6925_v25  ;;  %v918_v50 = vld [vmem:[%s10772_s2 + $0x3e0] sm:$0xff]  ;;  %v6931_v54 = vpack.c.bf16 %v887_v43, %v886_v42 }
  0x3d   : > { %v8146_v44 = vld [vmem:[#allocation2 + $0x7f] sm:$0xff]  ;;  %v919_v51 = vld [vmem:[%s10772_s2 + $0x3e8] sm:$0xff]  ;;  %1027 = vmatprep.mubr.f32.mxu0 %v8064_v60  ;;  %6928 = vmatprep.subr.bf16.mxu0 %v6927_v35  ;;  %v888_v63 = vld [vmem:[%s10772_s2 + $0x2f0] sm:$0xff]  ;;  %v6961_v1 = vpack.c.bf16 %v901_v40, %v900_v39  ;;  %v6933_v4 = vpack.c.bf16 %v871_v47, %v870_v46 }
  0x3e   : > { %1127 = vmatprep.mubr.f32.mxu1 %v8146_v44  ;;  %v8156_v49 = vmax.f32 %v550_v33, %v558_v36  ;;  %v535_v58 = vld [vmem:[%s7880_s24 + $0xb8] sm:$0xff]  ;;  %6958 = vmatpush3.bf16.msra.mxu1 %v6957_v34  ;;  %v8175_v0 = vld [vmem:[#allocation2 + $0x81] sm:$0xff]  ;;  %v6963_v5 = vpack.c.bf16 %v919_v51, %v918_v50  ;;  %v872_v12 = vld [vmem:[%s10772_s2 + $0x270] sm:$0xff] }
  0x3f   : > { %1128 = vmatmul.mubr.f32.gmra.mrb[8].mxu1 %v8127_v30  ;;  %v543_v59 = vld [vmem:[%s7880_s24 + $0xf8] sm:$0xff]  ;;  %1028 = vmatmul.mubr.f32.gmra.mrb[10].mxu0 %v8146_v44  ;;  %v902_v8 = vld [vmem:[%s10772_s2 + $0x360] sm:$0xff]  ;;  %v903_v10 = vld [vmem:[%s10772_s2 + $0x368] sm:$0xff] }
  0x40   : > { %575 = vst [vmem:[#allocation2 + $0xb0] sm:$0xff] %v8156_v49  ;;  %v559_v62 = vmax.f32 %v535_v58, %v543_v59  ;;  %6960 = vmatprep.subr.bf16.mxu1 %v6959_v45  ;;  %v889_v2 = vld [vmem:[%s10772_s2 + $0x2f8] sm:$0xff]  ;;  %6930 = vmatpush3.bf16.msra.mxu0 %v6929_v48  ;;  %v920_v15 = vld [vmem:[%s10772_s2 + $0x3f0] sm:$0xff]  ;;  %v922_v17 = vld [vmem:[%s10772_s2 + $0x400] sm:$0xff]  ;;  %v6965_v22 = vpack.c.bf16 %v903_v10, %v902_v8 }
  0x41   : > { %1032 = vmatprep.mubr.f32.mxu0 %v8110_v21  ;;  %6932 = vmatprep.subr.bf16.mxu0 %v6931_v54  ;;  %v6935_v11 = vpack.c.bf16 %v889_v2, %v888_v63  ;;  %v873_v14 = vld [vmem:[%s10772_s2 + $0x278] sm:$0xff]  ;;  %v923_v18 = vld [vmem:[%s10772_s2 + $0x408] sm:$0xff]  ;;  %v904_v26 = vld [vmem:[%s10772_s2 + $0x370] sm:$0xff] }
  0x42   : > { %v8180_v3 = vld [vmem:[#allocation2 + $0x97] sm:$0xff]  ;;  %v8183_v6 = vmax.f32 %v551_v61, %v559_v62  ;;  %6962 = vmatpush3.bf16.msra.mxu1 %v6961_v1  ;;  %v6937_v23 = vpack.c.bf16 %v873_v14, %v872_v12  ;;  %v6971_v29 = vpack.c.bf16 %v923_v18, %v922_v17  ;;  %v926_v39 = vld [vmem:[%s10772_s2 + $0x420] sm:$0xff]  ;;  %v927_v40 = vld [vmem:[%s10772_s2 + $0x428] sm:$0xff] }
  0x43   : > { %1132 = vmatprep.mubr.f32.mxu1 %v8180_v3  ;;  %v921_v16 = vld [vmem:[%s10772_s2 + $0x3f8] sm:$0xff]  ;;  %1033 = vmatmul.mubr.f32.gmra.mrb[12].mxu0 %v8180_v3  ;;  %v924_v31 = vld [vmem:[%s10772_s2 + $0x410] sm:$0xff]  ;;  %v931_v46 = vld [vmem:[%s10772_s2 + $0x448] sm:$0xff] }
  0x44   : > { %1133 = vmatmul.mubr.f32.gmra.mrb[10].mxu1 %v8175_v0  ;;  %576 = vst [vmem:[#allocation2 + $0xc8] sm:$0xff] %v8183_v6  ;;  %v8213_v20 = vld [vmem:[#allocation2 + $0x99] sm:$0xff]  ;;  %6934 = vmatpush3.bf16.msra.mxu0 %v6933_v4  ;;  %v6967_v25 = vpack.c.bf16 %v921_v16, %v920_v15  ;;  %v928_v42 = vld [vmem:[%s10772_s2 + $0x430] sm:$0xff]  ;;  %v935_v51 = vld [vmem:[%s10772_s2 + $0x468] sm:$0xff] }
  0x45   : > { %6964 = vmatprep.subr.bf16.mxu1 %v6963_v5  ;;  %1037 = vmatprep.mubr.f32.mxu0 %v8156_v49  ;;  %v905_v27 = vld [vmem:[%s10772_s2 + $0x378] sm:$0xff]  ;;  %v713_v61 = vld [vmem:[#allocation2 + $0xe1] sm:$0xff] }
  0x46   : > { %6936 = vmatprep.subr.bf16.mxu0 %v6935_v11  ;;  %v925_v32 = vld [vmem:[%s10772_s2 + $0x418] sm:$0xff]  ;;  %6966 = vmatpush3.bf16.msra.mxu1 %v6965_v22  ;;  %v6969_v34 = vpack.c.bf16 %v905_v27, %v904_v26 }
  0x47   : > { %v8215_v24 = vld [vmem:[#allocation2 + $0xaf] sm:$0xff]  ;;  %6968 = vmatprep.subr.bf16.mxu1 %v6967_v25  ;;  %v6975_v36 = vpack.c.bf16 %v925_v32, %v924_v31  ;;  %v929_v43 = vld [vmem:[%s10772_s2 + $0x438] sm:$0xff] }
  0x48   : > { %1137 = vmatprep.mubr.f32.mxu1 %v8215_v24  ;;  %1038 = vmatmul.mubr.f32.gmra.mrb[14].mxu0 %v8215_v24  ;;  %v8233_v33 = vld [vmem:[#allocation2 + $0xb1] sm:$0xff]  ;;  %v6983_v45 = vpack.c.bf16 %v929_v43, %v928_v42  ;;  %v681_v59 = vld [vmem:[#allocation2 + $0xdf] sm:$0xff] }
  0x49   : > { %1138 = vmatmul.mubr.f32.gmra.mrb[12].mxu1 %v8213_v20  ;;  %6938 = vmatpush3.bf16.msra.mxu0 %v6937_v23  ;;  %v933_v48 = vld [vmem:[%s10772_s2 + $0x458] sm:$0xff] }
  0x4a   : > { %1212 = vmatprep.mubr.f32.mxu0 %v8015_v28  ;;  %6972 = vmatprep.subr.bf16.mxu0 %v6971_v29  ;;  %v6979_v28 = vpack.c.bf16 %v927_v40, %v926_v39  ;;  %v937_v54 = vld [vmem:[%s10772_s2 + $0x478] sm:$0xff] }
  0x4b   : > { %v8235_v35 = vld [vmem:[#allocation2 + $0xc7] sm:$0xff]  ;;  %6970 = vmatpush3.bf16.msra.mxu1 %v6969_v34 }
  0x4c   : > { %1142 = vmatprep.mubr.f32.mxu1 %v8235_v35  ;;  %1213 = vmatmul.mubr.f32.vlgmr.msra.gmra.mrb[16].mxu0 %v7928_v37  ;;  %v664_v55 = vld [vmem:[#allocation2 + $0xc9] sm:$0xff] }
  0x4d   : > { %1143 = vmatmul.mubr.f32.gmra.mrb[14].mxu1 %v8233_v33  ;;  %6974 = vmatpush3.bf16.msra.mxu0 %v6971_v29 }
  0x4e   : > { %1317 = vmatprep.mubr.f32.mxu1 %v7959_v56  ;;  %1217 = vmatprep.mubr.f32.mxu0 %v8054_v52 }
  0x4f   : > { %6976 = vmatprep.subr.bf16.mxu0 %v6975_v36 }
  0x50   : > { %1218 = vmatmul.mubr.f32.gmra.mrb[18].mxu0 %v7959_v56 }
  0x51   : > { %1318 = vmatmul.mubr.f32.vlgmr.msra.gmra.mrb[16].mxu1 %v8033_v38  ;;  %1222 = vmatprep.mubr.f32.mxu0 %v8090_v9  ;;  %v930_v38 = vld [vmem:[%s10772_s2 + $0x440] sm:$0xff] }
  0x52   : > { %1322 = vmatprep.mubr.f32.mxu1 %v7990_v13  ;;  %6978 = vmatpush3.bf16.msra.mxu0 %v6975_v36  ;;  %v6987_v47 = vpack.c.bf16 %v931_v46, %v930_v38 }
  0x53   : > { %6980 = vmatprep.subr.bf16.mxu0 %v6979_v28 }
  0x54   : > { %1223 = vmatmul.mubr.f32.gmra.mrb[20].mxu0 %v7990_v13 }
  0x55   : > { %1323 = vmatmul.mubr.f32.gmra.mrb[18].mxu1 %v8062_v57  ;;  %1227 = vmatprep.mubr.f32.mxu0 %v8127_v30  ;;  %v932_v57 = vld [vmem:[%s10772_s2 + $0x450] sm:$0xff] }
  0x56   : > { %1327 = vmatprep.mubr.f32.mxu1 %v8035_v41  ;;  %6982 = vmatpush3.bf16.msra.mxu0 %v6979_v28  ;;  %v6991_v50 = vpack.c.bf16 %v933_v48, %v932_v57 }
  0x57   : > { %6984 = vmatprep.subr.bf16.mxu0 %v6983_v45 }
  0x58   : > { %1228 = vmatmul.mubr.f32.gmra.mrb[22].mxu0 %v8035_v41 }
  0x59   : > { %1328 = vmatmul.mubr.f32.gmra.mrb[20].mxu1 %v8107_v19  ;;  %1232 = vmatprep.mubr.f32.mxu0 %v8175_v0  ;;  %v934_v19 = vld [vmem:[%s10772_s2 + $0x460] sm:$0xff] }
  0x5a   : > { %1332 = vmatprep.mubr.f32.mxu1 %v8064_v60  ;;  %6986 = vmatpush3.bf16.msra.mxu0 %v6983_v45  ;;  %v6995_v53 = vpack.c.bf16 %v935_v51, %v934_v19 }
  0x5b   : > { %6988 = vmatprep.subr.bf16.mxu0 %v6987_v47 }
  0x5c   : > { %1233 = vmatmul.mubr.f32.gmra.mrb[24].mxu0 %v8064_v60 }
  0x5d   : > { %1333 = vmatmul.mubr.f32.gmra.mrb[22].mxu1 %v8146_v44  ;;  %1237 = vmatprep.mubr.f32.mxu0 %v8213_v20  ;;  %v936_v44 = vld [vmem:[%s10772_s2 + $0x470] sm:$0xff] }
  0x5e   : > { %1337 = vmatprep.mubr.f32.mxu1 %v8110_v21  ;;  %6990 = vmatpush3.bf16.msra.mxu0 %v6987_v47  ;;  %v6999_v58 = vpack.c.bf16 %v937_v54, %v936_v44 }
  0x5f   : > { %6992 = vmatprep.subr.bf16.mxu0 %v6991_v50 }
  0x60   : > { %1238 = vmatmul.mubr.f32.gmra.mrb[26].mxu0 %v8110_v21 }
  0x61   : > { %1338 = vmatmul.mubr.f32.gmra.mrb[24].mxu1 %v8180_v3  ;;  %1242 = vmatprep.mubr.f32.mxu0 %v8233_v33 }
  0x62   : > { %1342 = vmatprep.mubr.f32.mxu1 %v8156_v49  ;;  %6994 = vmatpush3.bf16.msra.mxu0 %v6991_v50 }
  0x63   : > { %6996 = vmatprep.subr.bf16.mxu0 %v6995_v53 }
  0x64   : > { %1243 = vmatmul.mubr.f32.gmra.mrb[28].mxu0 %v8156_v49 }
  0x65   : > { %1343 = vmatmul.mubr.f32.gmra.mrb[26].mxu1 %v8215_v24  ;;  %1247 = vmatprep.mubr.f32.mxu0 %v664_v55 }
  0x66   : > { %1347 = vmatprep.mubr.f32.mxu1 %v8183_v6  ;;  %6998 = vmatpush3.bf16.msra.mxu0 %v6995_v53 }
  0x67   : > { %7000 = vmatprep.subr.bf16.mxu0 %v6999_v58 }
  0x68   : > { %1248 = vmatmul.mubr.f32.gmra.mrb[30].mxu0 %v8183_v6 }
  0x69   : > { %1348 = vmatmul.mubr.f32.gmra.mrb[28].mxu1 %v8235_v35  ;;  %6699 = vmatprep.mubr.f32.mxu0 %v8054_v52 }
  0x6a   : > { %1352 = vmatprep.mubr.f32.mxu1 %v7607_v7  ;;  %7002 = vmatpush3.bf16.msra.mxu0 %v6999_v58 }
  0x6d   : > { %1353 = vmatmul.mubr.f32.gmra.mrb[30].mxu1 %v681_v59  ;;  %6700 = vmatmul.mubr.f32.vlgmr.msra.gmra.mrb[32].mxu0 %v8090_v9 }
  0x6e   : > { %2311 = vmatprep.mubr.f32.mxu1 %v7607_v7  ;;  %6702 = vmatprep.mubr.f32.mxu0 %v8127_v30 }
  0x71   : > { %6703 = vmatmul.mubr.f32.gmra.mrb[34].mxu0 %v8175_v0 }
  0x72   : > { %6705 = vmatprep.mubr.f32.mxu0 %v8213_v20 }
  0x75   : > { %6706 = vmatmul.mubr.f32.gmra.mrb[36].mxu0 %v8233_v33 }
  0x76   : > { %6708 = vmatprep.mubr.f32.mxu0 %v664_v55 }
  0x79   : > { %6709 = vmatmul.mubr.f32.gmra.mrb[38].mxu0 %v713_v61 }
  0xfc   : > { %v5707_v62 = vpop.f32.mrb[0].mxu0 }
  0xfd   : > { %v5708_v52 = vpop.f32.mrb[1].mxu0 }
  0xfe   : > { %v5709_v1 = vadd.f32 %v5708_v52, %v5707_v62 }
 0x100   : > { %v5763_v63 = vpop.f32.mrb[0].mxu1  ;;  %v5710_v9 = vpop.f32.mrb[2].mxu0 }
 0x101   : > { %v5764_v2 = vpop.f32.mrb[1].mxu1  ;;  %v5711_v5 = vpop.f32.mrb[3].mxu0 }
 0x102   : > { %v5765_v3 = vadd.f32 %v5764_v2, %v5763_v63  ;;  %v5712_v30 = vadd.f32 %v5711_v5, %v5710_v9 }
 0x104   : > { %v1110_v4 = vadd.f32 %v5765_v3, %v5709_v1  ;;  %v5766_v7 = vpop.f32.mrb[2].mxu1  ;;  %v5713_v10 = vpop.f32.mrb[4].mxu0 }
 0x105   : > { %v5767_v8 = vpop.f32.mrb[3].mxu1  ;;  %v5714_v14 = vpop.f32.mrb[5].mxu0 }
 0x106   : > { %v5768_v0 = vadd.f32 %v5767_v8, %v5766_v7  ;;  %v5715_v15 = vadd.f32 %v5714_v14, %v5713_v10 }
 0x108   : > { %v1115_v11 = vadd.f32 %v5768_v0, %v5712_v30  ;;  %v5769_v12 = vpop.f32.mrb[4].mxu1  ;;  %v5716_v18 = vpop.f32.mrb[6].mxu0 }
 0x109   : > { %v5770_v16 = vpop.f32.mrb[5].mxu1  ;;  %v5717_v22 = vpop.f32.mrb[7].mxu0 }
 0x10a   : > { %v5771_v17 = vadd.f32 %v5770_v16, %v5769_v12  ;;  %v5718_v24 = vadd.f32 %v5717_v22, %v5716_v18 }
 0x10c   : > { %v1120_v20 = vadd.f32 %v5771_v17, %v5715_v15 }
 0x10e   : > { %v5772_v23 = vpop.f32.mrb[6].mxu1  ;;  %v5719_v27 = vpop.f32.mrb[8].mxu0 }
 0x10f   : > { %v5773_v25 = vpop.f32.mrb[7].mxu1  ;;  %v5720_v29 = vpop.f32.mrb[9].mxu0 }
 0x110   : > { %v5774_v26 = vadd.f32 %v5773_v25, %v5772_v23  ;;  %v5721_v33 = vadd.f32 %v5720_v29, %v5719_v27 }
 0x112   : > { %v1125_v31 = vadd.f32 %v5774_v26, %v5718_v24  ;;  %v5775_v32 = vpop.f32.mrb[8].mxu1  ;;  %v5722_v36 = vpop.f32.mrb[10].mxu0 }
 0x113   : > { %v5776_v34 = vpop.f32.mrb[9].mxu1  ;;  %v5723_v39 = vpop.f32.mrb[11].mxu0 }
 0x114   : > { %v5777_v35 = vadd.f32 %v5776_v34, %v5775_v32  ;;  %v5724_v28 = vadd.f32 %v5723_v39, %v5722_v36 }
 0x116   : > { %v1130_v40 = vadd.f32 %v5777_v35, %v5721_v33  ;;  %v5725_v45 = vpop.f32.mrb[12].mxu0 }
 0x117   : > { %v5778_v42 = vpop.f32.mrb[10].mxu1  ;;  %v5726_v46 = vpop.f32.mrb[13].mxu0 }
 0x118   : > { %v5779_v43 = vpop.f32.mrb[11].mxu1  ;;  %v5727_v47 = vadd.f32 %v5726_v46, %v5725_v45 }
 0x119   : > { %v5780_v38 = vadd.f32 %v5779_v43, %v5778_v42 }
 0x11b   : > { %v1135_v57 = vadd.f32 %v5780_v38, %v5724_v28  ;;  %v5728_v50 = vpop.f32.mrb[14].mxu0 }
 0x11c   : > { %v5781_v48 = vpop.f32.mrb[12].mxu1  ;;  %v5729_v51 = vpop.f32.mrb[15].mxu0 }
 0x11d   : > { %v5782_v19 = vpop.f32.mrb[13].mxu1  ;;  %v5730_v44 = vadd.f32 %v5729_v51, %v5728_v50 }
 0x11e   : > { %v5783_v53 = vadd.f32 %v5782_v19, %v5781_v48 }
 0x11f   : > { %v5819_v58 = vpop.f32.mrb[16].mxu0 }
 0x120   : > { %v1140_v54 = vadd.f32 %v5783_v53, %v5727_v47  ;;  %v5784_v55 = vpop.f32.mrb[14].mxu1  ;;  %v5820_v61 = vpop.f32.mrb[17].mxu0 }
 0x121   : > { %v5785_v59 = vpop.f32.mrb[15].mxu1  ;;  %v5821_v63 = vadd.f32 %v5820_v61, %v5819_v58 }
 0x122   : > { %v5786_v62 = vadd.f32 %v5785_v59, %v5784_v55 }
 0x123   : > { %v1215_v1 = vadd.f32 %v5821_v63, %v1110_v4  ;;  %v5822_v3 = vpop.f32.mrb[18].mxu0 }
 0x124   : > { %v1145_v52 = vadd.f32 %v5786_v62, %v5730_v44  ;;  %v5875_v2 = vpop.f32.mrb[16].mxu1  ;;  %v5823_v7 = vpop.f32.mrb[19].mxu0 }
 0x125   : > { %v5876_v9 = vpop.f32.mrb[17].mxu1  ;;  %v5824_v30 = vadd.f32 %v5823_v7, %v5822_v3 }
 0x126   : > { %v5877_v5 = vadd.f32 %v5876_v9, %v5875_v2 }
 0x127   : > { %v1220_v8 = vadd.f32 %v5824_v30, %v1115_v11  ;;  %v5825_v10 = vpop.f32.mrb[20].mxu0 }
 0x128   : > { %v5878_v0 = vpop.f32.mrb[18].mxu1  ;;  %v1320_v12 = vadd.f32 %v5877_v5, %v1215_v1  ;;  %v5826_v15 = vpop.f32.mrb[21].mxu0 }
 0x129   : > { %v5879_v14 = vpop.f32.mrb[19].mxu1  ;;  %v5827_v17 = vadd.f32 %v5826_v15, %v5825_v10 }
 0x12a   : > { %v5880_v16 = vadd.f32 %v5879_v14, %v5878_v0 }
 0x12b   : > { %v1225_v18 = vadd.f32 %v5827_v17, %v1120_v20  ;;  %v5828_v23 = vpop.f32.mrb[22].mxu0 }
 0x12c   : > { %v5881_v22 = vpop.f32.mrb[20].mxu1  ;;  %v1325_v24 = vadd.f32 %v5880_v16, %v1220_v8  ;;  %v5829_v4 = vpop.f32.mrb[23].mxu0 }
 0x12d   : > { %v5882_v25 = vpop.f32.mrb[21].mxu1  ;;  %v5830_v27 = vadd.f32 %v5829_v4, %v5828_v23 }
 0x12e   : > { %v5883_v26 = vadd.f32 %v5882_v25, %v5881_v22 }
 0x12f   : > { %v1230_v29 = vadd.f32 %v5830_v27, %v1125_v31  ;;  %v5831_v33 = vpop.f32.mrb[24].mxu0 }
 0x130   : > { %v5884_v32 = vpop.f32.mrb[22].mxu1  ;;  %v1330_v34 = vadd.f32 %v5883_v26, %v1225_v18  ;;  %v5832_v35 = vpop.f32.mrb[25].mxu0 }
 0x131   : > { %v5885_v11 = vpop.f32.mrb[23].mxu1  ;;  %v5833_v39 = vadd.f32 %v5832_v35, %v5831_v33 }
 0x132   : > { %v5886_v36 = vadd.f32 %v5885_v11, %v5884_v32 }
 0x133   : > { %v1235_v28 = vadd.f32 %v5833_v39, %v1130_v40  ;;  %v5834_v43 = vpop.f32.mrb[26].mxu0 }
 0x134   : > { %v5887_v42 = vpop.f32.mrb[24].mxu1  ;;  %v1335_v45 = vadd.f32 %v5886_v36, %v1230_v29  ;;  %v5835_v38 = vpop.f32.mrb[27].mxu0 }
 0x135   : > { %v5888_v20 = vpop.f32.mrb[25].mxu1  ;;  %v5836_v47 = vadd.f32 %v5835_v38, %v5834_v43 }
 0x136   : > { %v5889_v46 = vadd.f32 %v5888_v20, %v5887_v42 }
 0x137   : > { %v1240_v48 = vadd.f32 %v5836_v47, %v1135_v57  ;;  %v5837_v19 = vpop.f32.mrb[28].mxu0 }
 0x138   : > { %v5890_v50 = vpop.f32.mrb[26].mxu1  ;;  %v1340_v51 = vadd.f32 %v5889_v46, %v1235_v28  ;;  %v5838_v53 = vpop.f32.mrb[29].mxu0 }
 0x139   : > { %v5891_v31 = vpop.f32.mrb[27].mxu1  ;;  %v5839_v55 = vadd.f32 %v5838_v53, %v5837_v19 }
 0x13a   : > { %v5892_v44 = vadd.f32 %v5891_v31, %v5890_v50 }
 0x13b   : > { %v1245_v58 = vadd.f32 %v5839_v55, %v1140_v54  ;;  %v5840_v61 = vpop.f32.mrb[30].mxu0 }
 0x13c   : > { %v5893_v59 = vpop.f32.mrb[28].mxu1  ;;  %v1345_v62 = vadd.f32 %v5892_v44, %v1240_v48  ;;  %v5841_v63 = vpop.f32.mrb[31].mxu0 }
 0x13d   : > { %v5894_v40 = vpop.f32.mrb[29].mxu1  ;;  %v5842_v2 = vadd.f32 %v5841_v63, %v5840_v61 }
 0x13e   : > { %v5895_v1 = vadd.f32 %v5894_v40, %v5893_v59 }
 0x13f   : > { %v1250_v3 = vadd.f32 %v5842_v2, %v1145_v52 }
 0x140   : > { %v5896_v9 = vpop.f32.mrb[30].mxu1  ;;  %v1350_v7 = vadd.f32 %v5895_v1, %v1245_v58  ;;  %v6701_v57 = vpop.f32.mrb[32].mxu0 }
 0x141   : > { %v5897_v5 = vpop.f32.mrb[31].mxu1  ;;  %v1430_v8 = vadd.f32 %v6701_v57, %v1325_v24  ;;  %v1424_v0 = vpop.f32.mrb[33].mxu0  ;;  %v2119_v57 = vld [vmem:[%s10775_s5 + $0x80] sm:$0xff] }
 0x142   : > { %v5898_v30 = vadd.f32 %v5897_v5, %v5896_v9  ;;  %v1425_v10 = vadd.f32 %v1424_v0, %v1320_v12 }
 0x144   : > { %v1355_v14 = vadd.f32 %v5898_v30, %v1250_v3  ;;  %v6704_v15 = vpop.f32.mrb[34].mxu0  ;;  %1463 = vadd.xlane.f32.xlu0 %v1425_v10  ;;  %v2120_v30 = vld [vmem:[%s10775_s5 + $0x88] sm:$0xff] }
 0x145   : > { %v1440_v54 = vadd.f32 %v6704_v15, %v1335_v45  ;;  %v1434_v16 = vpop.f32.mrb[35].mxu0  ;;  %v7003_v0 = vpack.c.bf16 %v2120_v30, %v2119_v57  ;;  %v2122_v15 = vld [vmem:[%s10775_s5 + $0x98] sm:$0xff] }
 0x146   : > { %v1435_v17 = vadd.f32 %v1434_v16, %v1330_v34  ;;  %v2142_v57 = vld [vmem:[%s10775_s5 + $0x138] sm:$0xff] }
 0x147   : > { %7004 = vmatprep.subr.bf16.mxu1 %v7003_v0 }
 0x148   : > { %v6707_v18 = vpop.f32.mrb[36].mxu0  ;;  %1467 = vadd.xlane.f32.xlu1 %v1435_v17  ;;  %1465 = vadd.xlane.f32.xlu0 %v1430_v8 }
 0x149   : > { %v1450_v22 = vadd.f32 %v6707_v18, %v1345_v62  ;;  %v1444_v23 = vpop.f32.mrb[37].mxu0  ;;  %v2152_v18 = vld [vmem:[%s10775_s5 + $0x188] sm:$0xff] }
 0x14a   : > { %v1445_v52 = vadd.f32 %v1444_v23, %v1340_v51 }
 0x14c   : > { %v6710_v25 = vpop.f32.mrb[38].mxu0  ;;  %1469 = vadd.xlane.f32.xlu1 %v1440_v54  ;;  %1471 = vadd.xlane.f32.xlu0 %v1445_v52 }
 0x14d   : > { %v1460_v4 = vadd.f32 %v6710_v25, %v1355_v14  ;;  %v1454_v26 = vpop.f32.mrb[39].mxu0  ;;  %v2121_v14 = vld [vmem:[%s10775_s5 + $0x90] sm:$0xff]  ;;  %v2135_v25 = vld [vmem:[%s10775_s5 + $0x100] sm:$0xff] }
 0x14e   : > { %v1455_v24 = vadd.f32 %v1454_v26, %v1350_v7  ;;  %v7007_v16 = vpack.c.bf16 %v2122_v15, %v2121_v14  ;;  %v2112_v14 = vld [vmem:[%s10775_s5 + $0x48] sm:$0xff] }
 0x14f   : > { %v2160_v15 = vld [vmem:[%s10775_s5 + $0x1c8] sm:$0xff] }
 0x150   : > { %1473 = vadd.xlane.f32.xlu1 %v1450_v22  ;;  %1475 = vadd.xlane.f32.xlu0 %v1455_v24 }
 0x154   : > { %1477 = vadd.xlane.f32.xlu1 %v1460_v4 }
 0x1d1   : > { %v1464_v12 = vpop.xlane.xlu0 %1463 }
 0x1d5   : > { %v1468_v27 = vpop.xlane.xlu1 %1467  ;;  %v1466_v29 = vpop.xlane.xlu0 %1465 }
 0x1d6   : > { %v1479_v32 = vadd.f32 %v1466_v29, %v1464_v12  ;;  %v2123_v12 = vld [vmem:[%s10775_s5 + $0xa0] sm:$0xff]  ;;  %v2153_v29 = vld [vmem:[%s10775_s5 + $0x190] sm:$0xff] }
 0x1d8   : > { %v1480_v33 = vadd.f32 %v1479_v32, %v1468_v27  ;;  %v2124_v27 = vld [vmem:[%s10775_s5 + $0xa8] sm:$0xff] }
 0x1d9   : > { %v1470_v34 = vpop.xlane.xlu1 %1469  ;;  %v1472_v11 = vpop.xlane.xlu0 %1471  ;;  %v7011_v32 = vpack.c.bf16 %v2124_v27, %v2123_v12  ;;  %v2114_v12 = vld [vmem:[%s10775_s5 + $0x58] sm:$0xff] }
 0x1da   : > { %v1481_v35 = vadd.f32 %v1480_v33, %v1470_v34  ;;  %v2154_v33 = vld [vmem:[%s10775_s5 + $0x198] sm:$0xff]  ;;  %v2107_v34 = vld [vmem:[%s10775_s5 + $0x20] sm:$0xff] }
 0x1dc   : > { %v1482_v36 = vadd.f32 %v1481_v35, %v1472_v11  ;;  %v2108_v11 = vld [vmem:[%s10775_s5 + $0x28] sm:$0xff]  ;;  %v7039_v35 = vpack.c.bf16 %v2154_v33, %v2153_v29  ;;  %v2131_v29 = vld [vmem:[%s10775_s5 + $0xe0] sm:$0xff] }
 0x1dd   : > { %v1474_v39 = vpop.xlane.xlu1 %1473  ;;  %v1476_v42 = vpop.xlane.xlu0 %1475 }
 0x1de   : > { %v1483_v28 = vadd.f32 %v1482_v36, %v1474_v39  ;;  %v2137_v36 = vld [vmem:[%s10775_s5 + $0x110] sm:$0xff]  ;;  %v2138_v39 = vld [vmem:[%s10775_s5 + $0x118] sm:$0xff] }
 0x1e0   : > { %v1484_v43 = vadd.f32 %v1483_v28, %v1476_v42  ;;  %v2125_v28 = vld [vmem:[%s10775_s5 + $0xb0] sm:$0xff]  ;;  %v7041_v42 = vpack.c.bf16 %v2138_v39, %v2137_v36  ;;  %v2163_v36 = vld [vmem:[%s10775_s5 + $0x1e0] sm:$0xff]  ;;  %v2164_v39 = vld [vmem:[%s10775_s5 + $0x1e8] sm:$0xff] }
 0x1e1   : > { %v1478_v45 = vpop.xlane.xlu1 %1477 }
 0x1e2   : > { %v1485_v20 = vadd.f32 %v1484_v43, %v1478_v45  ;;  %v2126_v43 = vld [vmem:[%s10775_s5 + $0xb8] sm:$0xff]  ;;  %v2155_v45 = vld [vmem:[%s10775_s5 + $0x1a0] sm:$0xff] }
 0x1e4   : > { %v1486_v38 = vrot.slane %v1485_v20, 4 }
 0x1e6   : > { %v1487_v46 = vadd.f32 %v1486_v38, %v1485_v20  ;;  %v2156_v20 = vld [vmem:[%s10775_s5 + $0x1a8] sm:$0xff]  ;;  %v7013_v38 = vpack.c.bf16 %v2108_v11, %v2107_v34  ;;  %v2145_v34 = vld [vmem:[%s10775_s5 + $0x150] sm:$0xff]  ;;  %v2146_v11 = vld [vmem:[%s10775_s5 + $0x158] sm:$0xff] }
 0x1e8   : > { %v1488_v47 = vrot.slane %v1487_v46, 2 }
 0x1ea   : > { %v1489_v48 = vadd.f32 %v1488_v47, %v1487_v46  ;;  %v7043_v46 = vpack.c.bf16 %v2156_v20, %v2155_v45  ;;  %v2109_v47 = vld [vmem:[%s10775_s5 + $0x30] sm:$0xff]  ;;  %v7057_v45 = vpack.c.bf16 %v2146_v11, %v2145_v34  ;;  %v2215_v34 = vld [vmem:[%s10775_s5 + $0x380] sm:$0xff] }
 0x1eb   : > { %v2133_v20 = vld [vmem:[%s10775_s5 + $0xf0] sm:$0xff] }
 0x1ec   : > { %v1490_v50 = vrot.slane %v1489_v48, 1 }
 0x1ee   : > { %v1491_v19 = vadd.f32 %v1490_v50, %v1489_v48  ;;  %v2139_v48 = vld [vmem:[%s10775_s5 + $0x120] sm:$0xff]  ;;  %v7015_v50 = vpack.c.bf16 %v2126_v43, %v2125_v28  ;;  %v2116_v43 = vld [vmem:[%s10775_s5 + $0x68] sm:$0xff] }
 0x1f0   : > { %v8312_v51 = vmul.f32 0.00390625, %v1491_v19  ;;  %v2110_v19 = vld [vmem:[%s10775_s5 + $0x38] sm:$0xff] }
 0x1f1   : > { %v7017_v30 = vpack.c.bf16 %v2110_v19, %v2109_v47  ;;  %v2147_v47 = vld [vmem:[%s10775_s5 + $0x160] sm:$0xff]  ;;  %v2165_v19 = vld [vmem:[%s10775_s5 + $0x1f0] sm:$0xff] }
 0x1f2   : > { %v8315_v31 = vsub.f32 %v1430_v8, %v8312_v51  ;;  %v8318_v53 = vsub.f32 %v1425_v10, %v8312_v51  ;;  %v8325_v58 = vsub.f32 %v1440_v54, %v8312_v51  ;;  %v8328_v59 = vsub.f32 %v1435_v17, %v8312_v51  ;;  %v2103_v8 = vld [vmem:[%s10775_s5] sm:$0xff]  ;;  %v2104_v10 = vld [vmem:[%s10775_s5 + $0x8] sm:$0xff] }
 0x1f3   : > { %v8335_v40 = vsub.f32 %v1450_v22, %v8312_v51  ;;  %v8338_v63 = vsub.f32 %v1445_v52, %v8312_v51  ;;  %v8345_v3 = vsub.f32 %v1460_v4, %v8312_v51  ;;  %v8348_v9 = vsub.f32 %v1455_v24, %v8312_v51  ;;  %v2151_v17 = vld [vmem:[%s10775_s5 + $0x180] sm:$0xff]  ;;  %v2105_v22 = vld [vmem:[%s10775_s5 + $0x10] sm:$0xff]  ;;  %v2106_v52 = vld [vmem:[%s10775_s5 + $0x18] sm:$0xff] }
 0x1f4   : > { %v1502_v44 = vmul.f32 %v8315_v31, %v8315_v31  ;;  %v1501_v55 = vmul.f32 %v8318_v53, %v8318_v53  ;;  %v1504_v61 = vmul.f32 %v8325_v58, %v8325_v58  ;;  %v1503_v62 = vmul.f32 %v8328_v59, %v8328_v59  ;;  %v2136_v4 = vld [vmem:[%s10775_s5 + $0x108] sm:$0xff] }
 0x1f5   : > { %v1506_v1 = vmul.f32 %v8335_v40, %v8335_v40  ;;  %v1505_v2 = vmul.f32 %v8338_v63, %v8338_v63  ;;  %v1508_v7 = vmul.f32 %v8345_v3, %v8345_v3  ;;  %v1507_v5 = vmul.f32 %v8348_v9, %v8348_v9 }
 0x1f6   : > { %1511 = vadd.xlane.f32.xlu1 %v1502_v44  ;;  %1509 = vadd.xlane.f32.xlu0 %v1501_v55  ;;  %v7005_v54 = vpack.c.bf16 %v2104_v10, %v2103_v8  ;;  %v7035_v23 = vpack.c.bf16 %v2152_v18, %v2151_v17  ;;  %v7009_v26 = vpack.c.bf16 %v2106_v52, %v2105_v22  ;;  %v2140_v44 = vld [vmem:[%s10775_s5 + $0x128] sm:$0xff]  ;;  %v2127_v55 = vld [vmem:[%s10775_s5 + $0xc0] sm:$0xff]  ;;  %v2130_v17 = vld [vmem:[%s10775_s5 + $0xd8] sm:$0xff] }
 0x1f7   : > { %v7037_v24 = vpack.c.bf16 %v2136_v4, %v2135_v25  ;;  %v2159_v8 = vld [vmem:[%s10775_s5 + $0x1c0] sm:$0xff]  ;;  %v2161_v25 = vld [vmem:[%s10775_s5 + $0x1d0] sm:$0xff]  ;;  %v2162_v4 = vld [vmem:[%s10775_s5 + $0x1d8] sm:$0xff] }
 0x1f8   : > { %7006 = vmatpush3.bf16.msra.mxu1 %v7005_v54  ;;  %7036 = vmatprep.subr.bf16.mxu0 %v7035_v23  ;;  %v2111_v10 = vld [vmem:[%s10775_s5 + $0x40] sm:$0xff]  ;;  %v7051_v18 = vpack.c.bf16 %v2160_v15, %v2159_v8  ;;  %v2144_v23 = vld [vmem:[%s10775_s5 + $0x148] sm:$0xff]  ;;  %v7055_v33 = vpack.c.bf16 %v2162_v4, %v2161_v25 }
 0x1f9   : > { %7008 = vmatprep.subr.bf16.mxu1 %v7007_v16  ;;  %7038 = vmatpush3.bf16.msra.mxu0 %v7037_v24  ;;  %v2129_v16 = vld [vmem:[%s10775_s5 + $0xd0] sm:$0xff]  ;;  %v2143_v22 = vld [vmem:[%s10775_s5 + $0x140] sm:$0xff]  ;;  %v7021_v52 = vpack.c.bf16 %v2112_v14, %v2111_v10  ;;  %v2168_v14 = vld [vmem:[%s10775_s5 + $0x208] sm:$0xff] }
 0x1fa   : > { %1515 = vadd.xlane.f32.xlu1 %v1504_v61  ;;  %1513 = vadd.xlane.f32.xlu0 %v1503_v62  ;;  %v7045_v61 = vpack.c.bf16 %v2140_v44, %v2139_v48  ;;  %v2128_v62 = vld [vmem:[%s10775_s5 + $0xc8] sm:$0xff]  ;;  %v2113_v24 = vld [vmem:[%s10775_s5 + $0x50] sm:$0xff]  ;;  %v7053_v27 = vpack.c.bf16 %v2144_v23, %v2143_v22  ;;  %v2166_v44 = vld [vmem:[%s10775_s5 + $0x1f8] sm:$0xff] }
 0x1fb   : > { %7040 = vmatprep.subr.bf16.mxu0 %v7039_v35  ;;  %v7019_v0 = vpack.c.bf16 %v2128_v62, %v2127_v55  ;;  %v7025_v35 = vpack.c.bf16 %v2114_v12, %v2113_v24  ;;  %v2148_v48 = vld [vmem:[%s10775_s5 + $0x168] sm:$0xff]  ;;  %v2118_v62 = vld [vmem:[%s10775_s5 + $0x78] sm:$0xff]  ;;  %v2167_v10 = vld [vmem:[%s10775_s5 + $0x200] sm:$0xff] }
 0x1fc   : > { %7010 = vmatpush3.bf16.msra.mxu1 %v7009_v26  ;;  %v7023_v26 = vpack.c.bf16 %v2130_v17, %v2129_v16  ;;  %v7069_v16 = vpack.c.bf16 %v2168_v14, %v2167_v10  ;;  %v2192_v10 = vld [vmem:[%s10775_s5 + $0x2c8] sm:$0xff] }
 0x1fd   : > { %7012 = vmatprep.subr.bf16.mxu1 %v7011_v32  ;;  %7042 = vmatpush3.bf16.msra.mxu0 %v7041_v42  ;;  %v2132_v32 = vld [vmem:[%s10775_s5 + $0xe8] sm:$0xff]  ;;  %v2115_v42 = vld [vmem:[%s10775_s5 + $0x60] sm:$0xff] }
 0x1fe   : > { %1519 = vadd.xlane.f32.xlu1 %v1506_v1  ;;  %1517 = vadd.xlane.f32.xlu0 %v1505_v2  ;;  %v2157_v1 = vld [vmem:[%s10775_s5 + $0x1b0] sm:$0xff]  ;;  %v2158_v2 = vld [vmem:[%s10775_s5 + $0x1b8] sm:$0xff]  ;;  %v7027_v28 = vpack.c.bf16 %v2132_v32, %v2131_v29 }
 0x1ff   : > { %7044 = vmatprep.subr.bf16.mxu0 %v7043_v46  ;;  %v7059_v46 = vpack.c.bf16 %v2164_v39, %v2163_v36  ;;  %v2185_v32 = vld [vmem:[%s10775_s5 + $0x290] sm:$0xff]  ;;  %v2216_v36 = vld [vmem:[%s10775_s5 + $0x388] sm:$0xff] }
 0x200   : > { %7014 = vmatpush3.bf16.msra.mxu1 %v7013_v38  ;;  %v2134_v38 = vld [vmem:[%s10775_s5 + $0xf8] sm:$0xff]  ;;  %v2169_v39 = vld [vmem:[%s10775_s5 + $0x210] sm:$0xff] }
 0x201   : > { %7016 = vmatprep.subr.bf16.mxu1 %v7015_v50  ;;  %7046 = vmatpush3.bf16.msra.mxu0 %v7045_v61  ;;  %v7029_v50 = vpack.c.bf16 %v2116_v43, %v2115_v42  ;;  %v7031_v55 = vpack.c.bf16 %v2134_v38, %v2133_v20  ;;  %v2117_v61 = vld [vmem:[%s10775_s5 + $0x70] sm:$0xff]  ;;  %v7099_v43 = vpack.c.bf16 %v2216_v36, %v2215_v34  ;;  %v2187_v38 = vld [vmem:[%s10775_s5 + $0x2a0] sm:$0xff] }
 0x202   : > { %1523 = vadd.xlane.f32.xlu1 %v1508_v7  ;;  %1521 = vadd.xlane.f32.xlu0 %v1507_v5  ;;  %v7047_v7 = vpack.c.bf16 %v2158_v2, %v2157_v1  ;;  %v2141_v5 = vld [vmem:[%s10775_s5 + $0x130] sm:$0xff]  ;;  %v7061_v1 = vpack.c.bf16 %v2148_v48, %v2147_v47  ;;  %v2183_v2 = vld [vmem:[%s10775_s5 + $0x280] sm:$0xff]  ;;  %v7033_v8 = vpack.c.bf16 %v2118_v62, %v2117_v61  ;;  %v2190_v62 = vld [vmem:[%s10775_s5 + $0x2b8] sm:$0xff] }
 0x203   : > { %v7049_v54 = vpack.c.bf16 %v2142_v57, %v2141_v5  ;;  %v7063_v5 = vpack.c.bf16 %v2166_v44, %v2165_v19  ;;  %v2149_v57 = vld [vmem:[%s10775_s5 + $0x170] sm:$0xff]  ;;  %v2172_v19 = vld [vmem:[%s10775_s5 + $0x228] sm:$0xff]  ;;  %v2179_v34 = vld [vmem:[%s10775_s5 + $0x260] sm:$0xff] }
 0x204   : > { %7048 = vmatprep.subr.bf16.mxu0 %v7047_v7  ;;  %7018 = vmatpush3.bf16.msra.mxu1 %v7017_v30  ;;  %v2184_v7 = vld [vmem:[%s10775_s5 + $0x288] sm:$0xff]  ;;  %v2150_v30 = vld [vmem:[%s10775_s5 + $0x178] sm:$0xff]  ;;  %v2189_v61 = vld [vmem:[%s10775_s5 + $0x2b0] sm:$0xff] }
 0x205   : > { %7020 = vmatprep.subr.bf16.mxu1 %v7019_v0  ;;  %7050 = vmatpush3.bf16.msra.mxu0 %v7049_v54  ;;  %v7067_v0 = vpack.c.bf16 %v2184_v7, %v2183_v2  ;;  %v7065_v15 = vpack.c.bf16 %v2150_v30, %v2149_v57  ;;  %v1887_v54 = vld [vmem:[#allocation2 + $0x7] sm:$0xff]  ;;  %v7079_v2 = vpack.c.bf16 %v2190_v62, %v2189_v61  ;;  %v2173_v7 = vld [vmem:[%s10775_s5 + $0x230] sm:$0xff]  ;;  %v1538_v30 = vmul.f32 7936.0, %v8312_v51  ;;  %v5615_v62 = vld [vmem:[%s10774_s4] ss:$0 sm:$0xff] }
 0x206   : > { %7052 = vmatprep.subr.bf16.mxu0 %v7051_v18 }
 0x208   : > { %7022 = vmatpush3.bf16.msra.mxu1 %v7021_v52 }
 0x209   : > { %7024 = vmatprep.subr.bf16.mxu1 %v7023_v26  ;;  %7054 = vmatpush3.bf16.msra.mxu0 %v7053_v27 }
 0x20a   : > { %7056 = vmatprep.subr.bf16.mxu0 %v7055_v33  ;;  %v2186_v33 = vld [vmem:[%s10775_s5 + $0x298] sm:$0xff] }
 0x20c   : > { %7026 = vmatpush3.bf16.msra.mxu1 %v7025_v35  ;;  %v7071_v35 = vpack.c.bf16 %v2186_v33, %v2185_v32 }
 0x20d   : > { %7028 = vmatprep.subr.bf16.mxu1 %v7027_v28  ;;  %7058 = vmatpush3.bf16.msra.mxu0 %v7057_v45  ;;  %v2170_v28 = vld [vmem:[%s10775_s5 + $0x218] sm:$0xff] }
 0x20e   : > { %7060 = vmatprep.subr.bf16.mxu0 %v7059_v46  ;;  %v7073_v45 = vpack.c.bf16 %v2170_v28, %v2169_v39  ;;  %v2188_v46 = vld [vmem:[%s10775_s5 + $0x2a8] sm:$0xff]  ;;  %v2197_v39 = vld [vmem:[%s10775_s5 + $0x2f0] sm:$0xff]  ;;  %v2198_v28 = vld [vmem:[%s10775_s5 + $0x2f8] sm:$0xff] }
 0x20f   : > { %v7075_v48 = vpack.c.bf16 %v2188_v46, %v2187_v38  ;;  %v2231_v38 = vld [vmem:[%s10775_s5 + $0x400] sm:$0xff]  ;;  %v2232_v46 = vld [vmem:[%s10775_s5 + $0x408] sm:$0xff] }
 0x210   : > { %7030 = vmatpush3.bf16.msra.mxu1 %v7029_v50  ;;  %v2171_v50 = vld [vmem:[%s10775_s5 + $0x220] sm:$0xff] }
 0x211   : > { %7032 = vmatprep.subr.bf16.mxu1 %v7031_v55  ;;  %7062 = vmatpush3.bf16.msra.mxu0 %v7061_v1  ;;  %v7077_v44 = vpack.c.bf16 %v2172_v19, %v2171_v50  ;;  %v5614_v50 = vld [vmem:[%s10773_s3] ss:$0 sm:$0xff] }
 0x212   : > { %7064 = vmatprep.subr.bf16.mxu0 %v7063_v5  ;;  %v2174_v5 = vld [vmem:[%s10775_s5 + $0x238] sm:$0xff] }
 0x213   : > { %v7081_v57 = vpack.c.bf16 %v2174_v5, %v2173_v7 }
 0x214   : > { %7034 = vmatpush3.bf16.msra.mxu1 %v7033_v8 }
 0x215   : > { %7068 = vmatprep.subr.bf16.mxu1 %v7067_v0  ;;  %7066 = vmatpush3.bf16.msra.mxu0 %v7065_v15  ;;  %v2191_v0 = vld [vmem:[%s10775_s5 + $0x2c0] sm:$0xff] }
 0x216   : > { %7100 = vmatprep.subr.bf16.mxu0 %v7099_v43  ;;  %v7083_v15 = vpack.c.bf16 %v2192_v10, %v2191_v0  ;;  %v2181_v43 = vld [vmem:[%s10775_s5 + $0x270] sm:$0xff] }
 0x217   : > { %2312 = vmatmul.mubr.f32.vlgmr.msra.gmra.mrb[32].mxu1 %v1887_v54  ;;  %v2175_v54 = vld [vmem:[%s10775_s5 + $0x240] sm:$0xff] }
 0x218   : > { %7070 = vmatpush3.bf16.msra.mxu1 %v7069_v16  ;;  %v2176_v16 = vld [vmem:[%s10775_s5 + $0x248] sm:$0xff] }
 0x219   : > { %7072 = vmatprep.subr.bf16.mxu1 %v7071_v35 }
 0x21c   : > { %7074 = vmatpush3.bf16.msra.mxu1 %v7073_v45  ;;  %v2182_v45 = vld [vmem:[%s10775_s5 + $0x278] sm:$0xff] }
 0x21d   : > { %7076 = vmatprep.subr.bf16.mxu1 %v7075_v48 }
 0x220   : > { %7078 = vmatpush3.bf16.msra.mxu1 %v7077_v44 }
 0x221   : > { %7080 = vmatprep.subr.bf16.mxu1 %v7079_v2 }
 0x224   : > { %7082 = vmatpush3.bf16.msra.mxu1 %v7081_v57 }
 0x225   : > { %7084 = vmatprep.subr.bf16.mxu1 %v7083_v15 }
 0x283   : > { %v1512_v17 = vpop.xlane.xlu1 %1511  ;;  %v1510_v18 = vpop.xlane.xlu0 %1509 }
 0x284   : > { %v1525_v22 = vadd.f32 %v1512_v17, %v1510_v18  ;;  %v7085_v17 = vpack.c.bf16 %v2176_v16, %v2175_v54  ;;  %v1539_v18 = vmul.f32 %v1538_v30, %v8312_v51  ;;  %v2178_v51 = vld [vmem:[%s10775_s5 + $0x258] sm:$0xff] }
 0x286   : > { %7086 = vmatpush3.bf16.msra.mxu1 %v7085_v17 }
 0x287   : > { %v1516_v23 = vpop.xlane.xlu1 %1515  ;;  %v1514_v52 = vpop.xlane.xlu0 %1513 }
 0x288   : > { %v1526_v25 = vadd.f32 %v1525_v22, %v1514_v52  ;;  %v2194_v52 = vld [vmem:[%s10775_s5 + $0x2d8] sm:$0xff] }
 0x28a   : > { %v1527_v4 = vadd.f32 %v1526_v25, %v1516_v23  ;;  %v2193_v23 = vld [vmem:[%s10775_s5 + $0x2d0] sm:$0xff] }
 0x28b   : > { %v1520_v26 = vpop.xlane.xlu1 %1519  ;;  %v1518_v24 = vpop.xlane.xlu0 %1517 }
 0x28c   : > { %v1528_v12 = vadd.f32 %v1527_v4, %v1518_v24  ;;  %v7087_v4 = vpack.c.bf16 %v2194_v52, %v2193_v23 }
 0x28e   : > { %v1529_v27 = vadd.f32 %v1528_v12, %v1520_v26  ;;  %v2177_v26 = vld [vmem:[%s10775_s5 + $0x250] sm:$0xff]  ;;  %7088 = vmatprep.subr.bf16.mxu1 %v7087_v4 }
 0x28f   : > { %v1522_v29 = vpop.xlane.xlu0 %1521  ;;  %v1524_v42 = vpop.xlane.xlu1 %1523  ;;  %v7089_v24 = vpack.c.bf16 %v2178_v51, %v2177_v26 }
 0x290   : > { %v1530_v11 = vadd.f32 %v1529_v27, %v1522_v29  ;;  %v2195_v27 = vld [vmem:[%s10775_s5 + $0x2e0] sm:$0xff]  ;;  %v2196_v29 = vld [vmem:[%s10775_s5 + $0x2e8] sm:$0xff] }
 0x291   : > { %7090 = vmatpush3.bf16.msra.mxu1 %v7089_v24  ;;  %v7091_v33 = vpack.c.bf16 %v2196_v29, %v2195_v27 }
 0x292   : > { %v1531_v20 = vadd.f32 %v1530_v11, %v1524_v42  ;;  %v2180_v11 = vld [vmem:[%s10775_s5 + $0x268] sm:$0xff]  ;;  %v7095_v42 = vpack.c.bf16 %v2198_v28, %v2197_v39 }
 0x293   : > { %v7093_v35 = vpack.c.bf16 %v2180_v11, %v2179_v34  ;;  %7092 = vmatprep.subr.bf16.mxu1 %v7091_v33 }
 0x294   : > { %v1532_v47 = vrot.slane %v1531_v20, 4 }
 0x295   : > { %7094 = vmatpush3.bf16.msra.mxu1 %v7093_v35 }
 0x296   : > { %v1533_v55 = vadd.f32 %v1532_v47, %v1531_v20  ;;  %v7097_v20 = vpack.c.bf16 %v2182_v45, %v2181_v43  ;;  %7096 = vmatprep.subr.bf16.mxu1 %v7095_v42  ;;  %v8656_v47 = vpack.c.bf16 %v2232_v46, %v2231_v38 }
 0x298   : > { %v1534_v1 = vrot.slane %v1533_v55, 2 }
 0x299   : > { %7098 = vmatpush3.bf16.msra.mxu1 %v7097_v20 }
 0x29a   : > { %v1535_v8 = vadd.f32 %v1534_v1, %v1533_v55  ;;  %7132 = vmatprep.subr.bf16.mxu1 %v8656_v47 }
 0x29c   : > { %v1536_v14 = vrot.slane %v1535_v8, 1 }
 0x29e   : > { %v1537_v22 = vadd.f32 %v1536_v14, %v1535_v8 }
 0x2a0   : > { %v1540_v25 = vsub.f32 %v1537_v22, %v1539_v18 }
 0x2a2   : > { %v1541_v12 = vmul.f32 0.00390625, %v1540_v25 }
 0x2a4   : > { %v1542_v32 = vmax.f32 %v1541_v12, 0.0 }
 0x2a6   : > { %v1543_v36 = vadd.f32 1e-05, %v1542_v32 }
 0x2a8   : > { %7492 = vrsqrt.f32 %v1543_v36 }
 0x2b2   : > { %v7493_v48 = vpop.eup %7492 }
 0x2b3   : > { %v1545_v19 = vmul.f32 %v7493_v48, %v8318_v53  ;;  %v1546_v44 = vmul.f32 %v7493_v48, %v8315_v31  ;;  %v1547_v55 = vmul.f32 %v7493_v48, %v8328_v59  ;;  %v1548_v61 = vmul.f32 %v7493_v48, %v8325_v58 }
 0x2b4   : > { %v1549_v57 = vmul.f32 %v7493_v48, %v8338_v63  ;;  %v1550_v30 = vmul.f32 %v7493_v48, %v8335_v40  ;;  %v1551_v58 = vmul.f32 %v7493_v48, %v8348_v9  ;;  %v1552_v63 = vmul.f32 %v7493_v48, %v8345_v3 }
 0x2b5   : > { %v1560_v1 = vmul.f32 %v5614_v50, %v1545_v19  ;;  %v1561_v2 = vmul.f32 %v5614_v50, %v1546_v44  ;;  %v1562_v7 = vmul.f32 %v5614_v50, %v1547_v55  ;;  %v1563_v5 = vmul.f32 %v5614_v50, %v1548_v61 }
 0x2b6   : > { %v1564_v15 = vmul.f32 %v5614_v50, %v1549_v57  ;;  %v1565_v9 = vmul.f32 %v5614_v50, %v1550_v30  ;;  %v1566_v22 = vmul.f32 %v5614_v50, %v1551_v58  ;;  %v1567_v3 = vmul.f32 %v5614_v50, %v1552_v63 }
 0x2b7   : > { %v8671_v8 = vadd.f32 %v5615_v62, %v1560_v1  ;;  %v8673_v53 = vadd.f32 %v5615_v62, %v1561_v2  ;;  %v8675_v31 = vadd.f32 %v5615_v62, %v1562_v7  ;;  %v8677_v59 = vadd.f32 %v5615_v62, %v1563_v5 }
 0x2b8   : > { %v8697_v26 = vadd.f32 %v5615_v62, %v1564_v15  ;;  %v8699_v12 = vadd.f32 %v5615_v62, %v1565_v9  ;;  %v8701_v32 = vadd.f32 %v5615_v62, %v1566_v22  ;;  %v8703_v33 = vadd.f32 %v5615_v62, %v1567_v3 }
 0x2b9   : > { %v8681_v0 = vmul.f32 0.70710677, %v8671_v8  ;;  %v8684_v10 = vmul.f32 0.70710677, %v8673_v53  ;;  %v8688_v40 = vmul.f32 0.70710677, %v8675_v31 }
 0x2ba   : > { %v8691_v14 = vmul.f32 0.70710677, %v8677_v59  ;;  %v8706_v34 = vmul.f32 0.70710677, %v8697_v26  ;;  %v8709_v11 = vmul.f32 0.70710677, %v8699_v12 }
 0x2bb   : > { %v1599_v54 = vand.u32 2147483647, %v8681_v0  ;;  %v1600_v16 = vand.u32 2147483647, %v8684_v10  ;;  %v1601_v17 = vand.u32 2147483647, %v8688_v40 }
 0x2bc   : > { %v1602_v18 = vand.u32 2147483647, %v8691_v14  ;;  %v1603_v35 = vand.u32 2147483647, %v8706_v34  ;;  %v8713_v36 = vmul.f32 0.70710677, %v8701_v32 }
 0x2bd   : > { %v1607_v23 = vmul.f32 0.5, %v1599_v54  ;;  %v1608_v52 = vmul.f32 0.5, %v1600_v16  ;;  %v1609_v25 = vmul.f32 0.5, %v1601_v17  ;;  %v1604_v39 = vand.u32 2147483647, %v8709_v11 }
 0x2be   : > { %v1610_v4 = vmul.f32 0.5, %v1602_v18  ;;  %v8717_v28 = vmul.f32 0.70710677, %v8703_v33  ;;  %v1611_v42 = vmul.f32 0.5, %v1603_v35  ;;  %v1605_v43 = vand.u32 2147483647, %v8713_v36 }
 0x2bf   : > { %v1615_v51 = vadd.f32 1.0, %v1607_v23  ;;  %v1616_v24 = vadd.f32 1.0, %v1608_v52  ;;  %v1617_v27 = vadd.f32 1.0, %v1609_v25  ;;  %v1612_v45 = vmul.f32 0.5, %v1604_v39 }
 0x2c0   : > { %v1618_v29 = vadd.f32 1.0, %v1610_v4  ;;  %v8721_v20 = vand.u32 2147483647, %v8717_v28  ;;  %v1619_v38 = vadd.f32 1.0, %v1611_v42  ;;  %v1613_v46 = vmul.f32 0.5, %v1605_v43 }
 0x2c1   : > { %7494 = vrcp.f32 %v1615_v51  ;;  %v1639_v48 = vsub.f32 0.0, %v1599_v54  ;;  %v1620_v50 = vadd.f32 1.0, %v1612_v45  ;;  %v1640_v44 = vsub.f32 0.0, %v1600_v16 }
 0x2c2   : > { %7496 = vrcp.f32 %v1616_v24  ;;  %v1614_v19 = vmul.f32 0.5, %v8721_v20  ;;  %v1621_v55 = vadd.f32 1.0, %v1613_v46  ;;  %v1641_v62 = vsub.f32 0.0, %v1601_v17 }
 0x2c3   : > { %7498 = vrcp.f32 %v1617_v27  ;;  %v1642_v1 = vsub.f32 0.0, %v1602_v18  ;;  %v1647_v30 = vmul.f32 %v1639_v48, %v1599_v54  ;;  %v1648_v9 = vmul.f32 %v1640_v44, %v1600_v16 }
 0x2c4   : > { %7500 = vrcp.f32 %v1618_v29  ;;  %v1622_v2 = vadd.f32 1.0, %v1614_v19  ;;  %v1649_v52 = vmul.f32 %v1641_v62, %v1601_v17  ;;  %v1643_v24 = vsub.f32 0.0, %v1603_v35 }
 0x2c5   : > { %7502 = vrcp.f32 %v1619_v38  ;;  %v1650_v3 = vmul.f32 %v1642_v1, %v1602_v18  ;;  %v1644_v27 = vsub.f32 0.0, %v1604_v39  ;;  %v8737_v54 = vadd.f32 -1.2655122, %v1647_v30 }
 0x2c6   : > { %7504 = vrcp.f32 %v1620_v50  ;;  %v8740_v38 = vadd.f32 -1.2655122, %v1648_v9  ;;  %v1645_v46 = vsub.f32 0.0, %v1605_v43  ;;  %v8743_v18 = vadd.f32 -1.2655122, %v1649_v52 }
 0x2c7   : > { %7506 = vrcp.f32 %v1621_v55  ;;  %v8745_v48 = vadd.f32 -1.2655122, %v1650_v3  ;;  %v8751_v62 = vmul.f32 %v1643_v24, %v1603_v35  ;;  %v8753_v1 = vmul.f32 %v1644_v27, %v1604_v39 }
 0x2c8   : > { %7508 = vrcp.f32 %v1622_v2  ;;  %v8764_v35 = vmul.f32 %v1645_v46, %v1605_v43  ;;  %vm1831_vm0 = vcmp.ge.f32.partialorder %v8681_v0, 0.0  ;;  %vm1832_vm1 = vcmp.ge.f32.partialorder %v8684_v10, 0.0  ;;  %v8849_v10 = vld [vmem:[%s10775_s5 + $0x300] sm:$0xff] }
 0x2c9   : > { %vm1833_vm2 = vcmp.ge.f32.partialorder %v8688_v40, 0.0  ;;  %v1584_v0 = vmul.f32 0.5, %v8673_v53  ;;  %vm1834_vm3 = vcmp.ge.f32.partialorder %v8691_v14, 0.0  ;;  %v8862_v53 = vld [vmem:[%s10775_s5 + $0x390] sm:$0xff]  ;;  %v1586_v14 = vmul.f32 0.5, %v8677_v59 }
 0x2ca   : > { %vm1835_vm4 = vcmp.ge.f32.partialorder %v8706_v34, 0.0  ;;  %vm1836_vm5 = vcmp.ge.f32.partialorder %v8709_v11, 0.0  ;;  %vm1837_vm6 = vcmp.ge.f32.partialorder %v8713_v36, 0.0  ;;  %vm1838_vm7 = vcmp.ge.f32.partialorder %v8717_v28, 0.0  ;;  %v2202_v36 = vld [vmem:[%s10775_s5 + $0x318] sm:$0xff]  ;;  %v2220_v28 = vld [vmem:[%s10775_s5 + $0x3a8] sm:$0xff] }
 0x2cb   : > { %v8724_v61 = vpop.eup %7494 }
 0x2cc   : > { %v8726_v7 = vpop.eup %7496  ;;  %v1663_v5 = vmul.f32 0.17087276, %v8724_v61 }
 0x2cd   : > { %v8729_v57 = vpop.eup %7498  ;;  %v1664_v58 = vmul.f32 0.17087276, %v8726_v7 }
 0x2ce   : > { %v8732_v63 = vpop.eup %7500  ;;  %v1671_v15 = vadd.f32 -0.82215226, %v1663_v5  ;;  %v1665_v22 = vmul.f32 0.17087276, %v8729_v57 }
 0x2cf   : > { %v1672_v23 = vadd.f32 -0.82215226, %v1664_v58  ;;  %v1666_v25 = vmul.f32 0.17087276, %v8732_v63  ;;  %v8748_v19 = vpop.eup %7502 }
 0x2d0   : > { %v1679_v4 = vmul.f32 %v8724_v61, %v1671_v15  ;;  %v1673_v51 = vadd.f32 -0.82215226, %v1665_v22  ;;  %v8755_v2 = vpop.eup %7504  ;;  %v1667_v58 = vmul.f32 0.17087276, %v8748_v19  ;;  %v1646_v15 = vsub.f32 0.0, %v8721_v20 }
 0x2d1   : > { %v1680_v29 = vmul.f32 %v8726_v7, %v1672_v23  ;;  %v1674_v42 = vadd.f32 -0.82215226, %v1666_v25  ;;  %v8760_v9 = vpop.eup %7506  ;;  %v1668_v52 = vmul.f32 0.17087276, %v8755_v2 }
 0x2d2   : > { %v1687_v45 = vadd.f32 1.4885159, %v1679_v4  ;;  %v1681_v16 = vmul.f32 %v8729_v57, %v1673_v51  ;;  %v8766_v39 = vpop.eup %7508  ;;  %v1675_v4 = vadd.f32 -0.82215226, %v1667_v58  ;;  %v1669_v51 = vmul.f32 0.17087276, %v8760_v9 }
 0x2d3   : > { %v1688_v17 = vadd.f32 1.4885159, %v1680_v29  ;;  %v1682_v50 = vmul.f32 %v8732_v63, %v1674_v42  ;;  %v1676_v29 = vadd.f32 -0.82215226, %v1668_v52  ;;  %v1670_v42 = vmul.f32 0.17087276, %v8766_v39 }
 0x2d4   : > { %v1695_v44 = vmul.f32 %v8724_v61, %v1687_v45  ;;  %v1689_v55 = vadd.f32 1.4885159, %v1681_v16  ;;  %v1683_v43 = vmul.f32 %v8748_v19, %v1675_v4  ;;  %v1677_v46 = vadd.f32 -0.82215226, %v1669_v51 }
 0x2d5   : > { %v1696_v5 = vmul.f32 %v8726_v7, %v1688_v17  ;;  %v1690_v30 = vadd.f32 1.4885159, %v1682_v50 }
 0x2d6   : > { %v1703_v22 = vadd.f32 -1.135204, %v1695_v44  ;;  %v1697_v23 = vmul.f32 %v8729_v57, %v1689_v55  ;;  %v1684_v44 = vmul.f32 %v8755_v2, %v1676_v29  ;;  %v1678_v55 = vadd.f32 -0.82215226, %v1670_v42 }
 0x2d7   : > { %v1704_v3 = vadd.f32 -1.135204, %v1696_v5  ;;  %v1698_v25 = vmul.f32 %v8732_v63, %v1690_v30  ;;  %v1691_v58 = vadd.f32 1.4885159, %v1683_v43 }
 0x2d8   : > { %v1711_v24 = vmul.f32 %v8724_v61, %v1703_v22  ;;  %v1705_v27 = vadd.f32 -1.135204, %v1697_v23  ;;  %v1685_v22 = vmul.f32 %v8760_v9, %v1677_v46 }
 0x2d9   : > { %v1712_v45 = vmul.f32 %v8726_v7, %v1704_v3  ;;  %v1706_v16 = vadd.f32 -1.135204, %v1698_v25  ;;  %v1692_v3 = vadd.f32 1.4885159, %v1684_v44  ;;  %v1686_v25 = vmul.f32 %v8766_v39, %v1678_v55 }
 0x2da   : > { %v1719_v17 = vadd.f32 0.27886808, %v1711_v24  ;;  %v1713_v50 = vmul.f32 %v8729_v57, %v1705_v27  ;;  %v1699_v24 = vmul.f32 %v8748_v19, %v1691_v58  ;;  %v1693_v27 = vadd.f32 1.4885159, %v1685_v22 }
 0x2db   : > { %v1720_v5 = vadd.f32 0.27886808, %v1712_v45  ;;  %v1714_v30 = vmul.f32 %v8732_v63, %v1706_v16  ;;  %v1700_v45 = vmul.f32 %v8755_v2, %v1692_v3  ;;  %v1694_v16 = vadd.f32 1.4885159, %v1686_v25 }
 0x2dc   : > { %v1727_v23 = vmul.f32 %v8724_v61, %v1719_v17  ;;  %v1721_v52 = vadd.f32 0.27886808, %v1713_v50  ;;  %v1707_v17 = vadd.f32 -1.135204, %v1699_v24  ;;  %v1701_v50 = vmul.f32 %v8760_v9, %v1693_v27 }
 0x2dd   : > { %v1728_v4 = vmul.f32 %v8726_v7, %v1720_v5  ;;  %v1722_v51 = vadd.f32 0.27886808, %v1714_v30  ;;  %v1708_v5 = vadd.f32 -1.135204, %v1700_v45  ;;  %v1702_v30 = vmul.f32 %v8766_v39, %v1694_v16 }
 0x2de   : > { %v1735_v29 = vadd.f32 -0.18628806, %v1727_v23  ;;  %v1729_v42 = vmul.f32 %v8729_v57, %v1721_v52  ;;  %v1715_v23 = vmul.f32 %v8748_v19, %v1707_v17  ;;  %v1709_v52 = vadd.f32 -1.135204, %v1701_v50 }
 0x2df   : > { %v1736_v43 = vadd.f32 -0.18628806, %v1728_v4  ;;  %v1730_v46 = vmul.f32 %v8732_v63, %v1722_v51  ;;  %v1716_v4 = vmul.f32 %v8755_v2, %v1708_v5  ;;  %v1710_v51 = vadd.f32 -1.135204, %v1702_v30 }
 0x2e0   : > { %v1743_v44 = vmul.f32 %v8724_v61, %v1735_v29  ;;  %v1737_v55 = vadd.f32 -0.18628806, %v1729_v42  ;;  %v1723_v29 = vadd.f32 0.27886808, %v1715_v23  ;;  %v1717_v42 = vmul.f32 %v8760_v9, %v1709_v52 }
 0x2e1   : > { %v1744_v58 = vmul.f32 %v8726_v7, %v1736_v43  ;;  %v1738_v22 = vadd.f32 -0.18628806, %v1730_v46  ;;  %v1724_v43 = vadd.f32 0.27886808, %v1716_v4  ;;  %v1718_v46 = vmul.f32 %v8766_v39, %v1710_v51 }
 0x2e2   : > { %v1751_v3 = vadd.f32 0.09678418, %v1743_v44  ;;  %v1745_v25 = vmul.f32 %v8729_v57, %v1737_v55  ;;  %v1731_v44 = vmul.f32 %v8748_v19, %v1723_v29  ;;  %v1725_v55 = vadd.f32 0.27886808, %v1717_v42 }
 0x2e3   : > { %v1752_v24 = vadd.f32 0.09678418, %v1744_v58  ;;  %v1746_v27 = vmul.f32 %v8732_v63, %v1738_v22  ;;  %v1732_v58 = vmul.f32 %v8755_v2, %v1724_v43  ;;  %v1726_v22 = vadd.f32 0.27886808, %v1718_v46 }
 0x2e4   : > { %v1759_v45 = vmul.f32 %v8724_v61, %v1751_v3  ;;  %v1753_v16 = vadd.f32 0.09678418, %v1745_v25  ;;  %v1739_v3 = vadd.f32 -0.18628806, %v1731_v44  ;;  %v1733_v25 = vmul.f32 %v8760_v9, %v1725_v55 }
 0x2e5   : > { %v1760_v17 = vmul.f32 %v8726_v7, %v1752_v24  ;;  %v1754_v50 = vadd.f32 0.09678418, %v1746_v27  ;;  %v1740_v24 = vadd.f32 -0.18628806, %v1732_v58  ;;  %v1734_v27 = vmul.f32 %v8766_v39, %v1726_v22 }
 0x2e6   : > { %v1767_v5 = vadd.f32 0.37409195, %v1759_v45  ;;  %v1761_v30 = vmul.f32 %v8729_v57, %v1753_v16  ;;  %v1747_v45 = vmul.f32 %v8748_v19, %v1739_v3  ;;  %v1741_v16 = vadd.f32 -0.18628806, %v1733_v25 }
 0x2e7   : > { %v1768_v23 = vadd.f32 0.37409195, %v1760_v17  ;;  %v1762_v52 = vmul.f32 %v8732_v63, %v1754_v50  ;;  %v1748_v17 = vmul.f32 %v8755_v2, %v1740_v24  ;;  %v1742_v50 = vadd.f32 -0.18628806, %v1734_v27 }
 0x2e8   : > { %v1775_v4 = vmul.f32 %v8724_v61, %v1767_v5  ;;  %v1769_v51 = vadd.f32 0.37409195, %v1761_v30  ;;  %v1755_v5 = vadd.f32 0.09678418, %v1747_v45  ;;  %v1749_v30 = vmul.f32 %v8760_v9, %v1741_v16 }
 0x2e9   : > { %v1776_v29 = vmul.f32 %v8726_v7, %v1768_v23  ;;  %v1770_v42 = vadd.f32 0.37409195, %v1762_v52  ;;  %v1756_v23 = vadd.f32 0.09678418, %v1748_v17  ;;  %v1750_v52 = vmul.f32 %v8766_v39, %v1742_v50 }
 0x2ea   : > { %v1783_v43 = vadd.f32 1.0000237, %v1775_v4  ;;  %v1777_v46 = vmul.f32 %v8729_v57, %v1769_v51  ;;  %v1763_v4 = vmul.f32 %v8748_v19, %v1755_v5  ;;  %v1757_v51 = vadd.f32 0.09678418, %v1749_v30 }
 0x2eb   : > { %v1784_v44 = vadd.f32 1.0000237, %v1776_v29  ;;  %v1778_v55 = vmul.f32 %v8732_v63, %v1770_v42  ;;  %v1764_v29 = vmul.f32 %v8755_v2, %v1756_v23  ;;  %v1758_v42 = vadd.f32 0.09678418, %v1750_v52 }
 0x2ec   : > { %v1791_v58 = vmul.f32 %v8724_v61, %v1783_v43  ;;  %v1785_v22 = vadd.f32 1.0000237, %v1777_v46  ;;  %v1771_v43 = vadd.f32 0.37409195, %v1763_v4  ;;  %v1765_v46 = vmul.f32 %v8760_v9, %v1757_v51 }
 0x2ed   : > { %v1792_v3 = vmul.f32 %v8726_v7, %v1784_v44  ;;  %v1786_v25 = vadd.f32 1.0000237, %v1778_v55  ;;  %v1772_v44 = vadd.f32 0.37409195, %v1764_v29  ;;  %v1766_v55 = vmul.f32 %v8766_v39, %v1758_v42 }
 0x2ee   : > { %v1799_v24 = vadd.f32 %v8737_v54, %v1791_v58  ;;  %v1793_v27 = vmul.f32 %v8729_v57, %v1785_v22  ;;  %v1779_v30 = vmul.f32 %v8748_v19, %v1771_v43  ;;  %v1773_v58 = vadd.f32 0.37409195, %v1765_v46 }
 0x2ef   : > { %v1800_v45 = vadd.f32 %v8740_v38, %v1792_v3  ;;  %v1794_v16 = vmul.f32 %v8732_v63, %v1786_v25  ;;  %v1780_v38 = vmul.f32 %v8755_v2, %v1772_v44  ;;  %v1774_v23 = vadd.f32 0.37409195, %v1766_v55 }
 0x2f0   : > { %v1807_v17 = vmul.f32 1.442695, %v1799_v24  ;;  %v1801_v50 = vadd.f32 %v8743_v18, %v1793_v27  ;;  %v1787_v3 = vadd.f32 1.0000237, %v1779_v30  ;;  %v1781_v25 = vmul.f32 %v8760_v9, %v1773_v58 }
 0x2f1   : > { %v1809_v5 = vmul.f32 1.442695, %v1800_v45  ;;  %v1802_v54 = vadd.f32 %v8745_v48, %v1794_v16  ;;  %v1788_v18 = vadd.f32 1.0000237, %v1780_v38  ;;  %v1654_v4 = vmul.f32 %v1646_v15, %v8721_v20 }
 0x2f2   : > { %7510 = vpow2.f32 %v1807_v17  ;;  %v1811_v22 = vmul.f32 1.442695, %v1801_v50  ;;  %v1782_v48 = vmul.f32 %v8766_v39, %v1774_v23  ;;  %v5620_v51 = vadd.f32 -1.2655122, %v8751_v62 }
 0x2f3   : > { %7512 = vpow2.f32 %v1809_v5  ;;  %v1813_v52 = vmul.f32 1.442695, %v1802_v54  ;;  %v1795_v24 = vmul.f32 %v8748_v19, %v1787_v3  ;;  %v1789_v27 = vadd.f32 1.0000237, %v1781_v25 }
 0x2f4   : > { %7514 = vpow2.f32 %v1811_v22  ;;  %v5621_v29 = vadd.f32 -1.2655122, %v8753_v1  ;;  %v1796_v42 = vmul.f32 %v8755_v2, %v1788_v18  ;;  %v1790_v45 = vadd.f32 1.0000237, %v1782_v48 }
 0x2f5   : > { %7516 = vpow2.f32 %v1813_v52  ;;  %v1803_v16 = vadd.f32 %v5620_v51, %v1795_v24  ;;  %v5622_v43 = vadd.f32 -1.2655122, %v8764_v35  ;;  %v1797_v46 = vmul.f32 %v8760_v9, %v1789_v27 }
 0x2f6   : > { %v1804_v17 = vadd.f32 %v5621_v29, %v1796_v42  ;;  %v5623_v20 = vadd.f32 -1.2655122, %v1654_v4  ;;  %v1798_v15 = vmul.f32 %v8766_v39, %v1790_v45  ;;  %v1583_v22 = vmul.f32 0.5, %v8671_v8  ;;  %v8867_v45 = vld [vmem:[%s10775_s5 + $0x398] sm:$0xff] }
 0x2f7   : > { %v1815_v50 = vmul.f32 1.442695, %v1803_v16  ;;  %v1805_v44 = vadd.f32 %v5622_v43, %v1797_v46  ;;  %v1585_v16 = vmul.f32 0.5, %v8675_v31 }
 0x2f8   : > { %v1817_v62 = vmul.f32 1.442695, %v1804_v17  ;;  %v1806_v55 = vadd.f32 %v5623_v20, %v1798_v15 }
 0x2f9   : > { %7518 = vpow2.f32 %v1815_v50  ;;  %v1819_v5 = vmul.f32 1.442695, %v1805_v44 }
 0x2fa   : > { %7520 = vpow2.f32 %v1817_v62  ;;  %v1821_v1 = vmul.f32 1.442695, %v1806_v55 }
 0x2fb   : > { %7522 = vpow2.f32 %v1819_v5  ;;  %v7103_v5 = vpack.c.bf16 %v8867_v45, %v8862_v53  ;;  %v2204_v53 = vld [vmem:[%s10775_s5 + $0x328] sm:$0xff] }
 0x2fc   : > { %v7511_v54 = vpop.eup %7510  ;;  %7524 = vpow2.f32 %v1821_v1 }
 0x2fd   : > { %v7513_v30 = vpop.eup %7512  ;;  %v1823_v58 = vmul.f32 %v7511_v54, %v8724_v61  ;;  %v1587_v54 = vmul.f32 0.5, %v8697_v26 }
 0x2fe   : > { %v7515_v35 = vpop.eup %7514  ;;  %v1824_v38 = vmul.f32 %v7513_v30, %v8726_v7 }
 0x2ff   : > { %v7517_v23 = vpop.eup %7516  ;;  %v1839_v52 = vsub.f32 1.0, %v1823_v58  ;;  %v5624_v3 = vadd.f32 -1.0, %v1823_v58  ;;  %v1825_v25 = vmul.f32 %v7515_v35, %v8729_v57  ;;  %v8854_v57 = vld [vmem:[%s10775_s5 + $0x308] sm:$0xff] }
 0x300   : > { %v1840_v18 = vsub.f32 1.0, %v1824_v38  ;;  %v5625_v4 = vadd.f32 -1.0, %v1824_v38  ;;  %v1826_v61 = vmul.f32 %v7517_v23, %v8732_v63  ;;  %v7101_v44 = vpack.c.bf16 %v8854_v57, %v8849_v10 }
 0x301   : > { %v1855_v48 = vsel %vm1831_vm0, %v1839_v52, %v5624_v3  ;;  %v1841_v8 = vsub.f32 1.0, %v1825_v25  ;;  %v5626_v51 = vadd.f32 -1.0, %v1825_v25 }
 0x302   : > { %v1863_v7 = vadd.f32 1.0, %v1855_v48  ;;  %v1856_v24 = vsel %vm1832_vm1, %v1840_v18, %v5625_v4  ;;  %v1842_v27 = vsub.f32 1.0, %v1826_v61  ;;  %v5627_v29 = vadd.f32 -1.0, %v1826_v61  ;;  %v1919_v4 = vld [vmem:[#allocation2 + $0x9] sm:$0xff] }
 0x303   : > { %v1864_v42 = vadd.f32 1.0, %v1856_v24  ;;  %v1857_v40 = vsel %vm1833_vm2, %v1841_v8, %v5626_v51  ;;  %v7519_v17 = vpop.eup %7518  ;;  %v1589_v51 = vmul.f32 0.5, %v8701_v32 }
 0x304   : > { %v8857_v63 = vmul.f32 %v1863_v7, %v1583_v22  ;;  %v1865_v43 = vadd.f32 1.0, %v1857_v40  ;;  %v1858_v46 = vsel %vm1834_vm3, %v1842_v27, %v5627_v29  ;;  %v7521_v50 = vpop.eup %7520  ;;  %v1827_v31 = vmul.f32 %v7519_v17, %v8748_v19  ;;  %v2203_v40 = vld [vmem:[%s10775_s5 + $0x320] sm:$0xff] }
 0x305   : > { %v8870_v20 = vmul.f32 %v1864_v42, %v1584_v0  ;;  %v1866_v15 = vadd.f32 1.0, %v1858_v46  ;;  %v7523_v55 = vpop.eup %7522  ;;  %v1828_v1 = vmul.f32 %v7521_v50, %v8755_v2  ;;  %v1590_v29 = vmul.f32 0.5, %v8703_v33  ;;  %v2206_v50 = vld [vmem:[%s10775_s5 + $0x338] sm:$0xff] }
 0x306   : > { %1879 = vst [vmem:[#allocation2 + $0x20] sm:$0xff] %v8857_v63  ;;  %2316 = vmatprep.mubr.f32.mxu1 %v8857_v63  ;;  %v8877_v62 = vmul.f32 %v1865_v43, %v1585_v16  ;;  %v7525_v30 = vpop.eup %7524  ;;  %v1843_v58 = vsub.f32 1.0, %v1827_v31  ;;  %v5628_v35 = vadd.f32 -1.0, %v1827_v31  ;;  %v1829_v19 = vmul.f32 %v7523_v55, %v8760_v9  ;;  %v2221_v16 = vld [vmem:[%s10775_s5 + $0x3b0] sm:$0xff]  ;;  %v2222_v43 = vld [vmem:[%s10775_s5 + $0x3b8] sm:$0xff]  ;;  %v2223_v31 = vld [vmem:[%s10775_s5 + $0x3c0] sm:$0xff] }
 0x307   : > { %1880 = vst [vmem:[#allocation2 + $0x38] sm:$0xff] %v8870_v20  ;;  %v8883_v59 = vmul.f32 %v1866_v15, %v1586_v14  ;;  %v1844_v22 = vsub.f32 1.0, %v1828_v1  ;;  %v5629_v38 = vadd.f32 -1.0, %v1828_v1  ;;  %v1830_v23 = vmul.f32 %v7525_v30, %v8766_v39  ;;  %v2201_v39 = vld [vmem:[%s10775_s5 + $0x310] sm:$0xff]  ;;  %v2224_v55 = vld [vmem:[%s10775_s5 + $0x3c8] sm:$0xff]  ;;  %v2207_v30 = vld [vmem:[%s10775_s5 + $0x340] sm:$0xff] }
 0x308   : > { %1881 = vst [vmem:[#allocation2 + $0x50] sm:$0xff] %v8877_v62  ;;  %v1859_v26 = vsel %vm1835_vm4, %v1843_v58, %v5628_v35  ;;  %v1845_v2 = vsub.f32 1.0, %v1829_v19  ;;  %v5630_v52 = vadd.f32 -1.0, %v1829_v19  ;;  %v1588_v9 = vmul.f32 0.5, %v8699_v12  ;;  %v2219_v12 = vld [vmem:[%s10775_s5 + $0x3a0] sm:$0xff]  ;;  %v2205_v15 = vld [vmem:[%s10775_s5 + $0x330] sm:$0xff] }
 0x309   : > { %1882 = vst [vmem:[#allocation2 + $0x68] sm:$0xff] %v8883_v59  ;;  %v1867_v3 = vadd.f32 1.0, %v1859_v26  ;;  %v1860_v25 = vsel %vm1836_vm5, %v1844_v22, %v5629_v38  ;;  %v1846_v34 = vsub.f32 1.0, %v1830_v23  ;;  %v5631_v18 = vadd.f32 -1.0, %v1830_v23  ;;  %v2208_v58 = vld [vmem:[%s10775_s5 + $0x348] sm:$0xff]  ;;  %v2225_v19 = vld [vmem:[%s10775_s5 + $0x3d0] sm:$0xff] }
 0x30a   : > { %v1868_v61 = vadd.f32 1.0, %v1860_v25  ;;  %v1861_v48 = vsel %vm1837_vm6, %v1845_v2, %v5630_v52  ;;  %v7105_v10 = vpack.c.bf16 %v2202_v36, %v2201_v39  ;;  %v7107_v33 = vpack.c.bf16 %v2220_v28, %v2219_v12  ;;  %v2226_v22 = vld [vmem:[%s10775_s5 + $0x3d8] sm:$0xff]  ;;  %v2209_v2 = vld [vmem:[%s10775_s5 + $0x350] sm:$0xff]  ;;  %v2227_v25 = vld [vmem:[%s10775_s5 + $0x3e0] sm:$0xff] }
 0x30b   : > { %v8902_v8 = vmul.f32 %v1867_v3, %v1587_v54  ;;  %v1869_v7 = vadd.f32 1.0, %v1861_v48  ;;  %v1862_v24 = vsel %vm1838_vm7, %v1846_v34, %v5631_v18  ;;  %v7109_v17 = vpack.c.bf16 %v2204_v53, %v2203_v40  ;;  %v2210_v52 = vld [vmem:[%s10775_s5 + $0x358] sm:$0xff]  ;;  %v2228_v34 = vld [vmem:[%s10775_s5 + $0x3e8] sm:$0xff]  ;;  %v5955_v18 = vpop.f32.mrb[32].mxu1  ;;  %v2211_v39 = vld [vmem:[%s10775_s5 + $0x360] sm:$0xff] }
 0x30c   : > { %v8911_v27 = vmul.f32 %v1868_v61, %v1588_v9  ;;  %v1870_v0 = vadd.f32 1.0, %v1862_v24  ;;  %v7111_v14 = vpack.c.bf16 %v2222_v43, %v2221_v16  ;;  %v7113_v54 = vpack.c.bf16 %v2206_v50, %v2205_v15  ;;  %v5956_v9 = vpop.f32.mrb[33].mxu1  ;;  %v2212_v36 = vld [vmem:[%s10775_s5 + $0x368] sm:$0xff]  ;;  %v2230_v24 = vld [vmem:[%s10775_s5 + $0x3f8] sm:$0xff]  ;;  %v2233_v53 = vld [vmem:[%s10775_s5 + $0x410] sm:$0xff] }
 0x30d   : > { %v1935_v11 = vld [vmem:[#allocation2 + $0x1f] sm:$0xff]  ;;  %1883 = vst [vmem:[#allocation2 + $0x80] sm:$0xff] %v8902_v8  ;;  %v8918_v42 = vmul.f32 %v1869_v7, %v1589_v51  ;;  %v7115_v1 = vpack.c.bf16 %v2224_v55, %v2223_v31  ;;  %v7117_v23 = vpack.c.bf16 %v2208_v58, %v2207_v30  ;;  %v7119_v26 = vpack.c.bf16 %v2226_v22, %v2225_v19  ;;  %v2229_v7 = vld [vmem:[%s10775_s5 + $0x3f0] sm:$0xff]  ;;  %v2236_v15 = vld [vmem:[%s10775_s5 + $0x428] sm:$0xff] }
 0x30e   : > { %2416 = vmatprep.mubr.f32.mxu0 %v1935_v11  ;;  %2317 = vmatmul.mubr.f32.gmra.mrb[34].mxu1 %v1935_v11  ;;  %v8915_v32 = vld [vmem:[#allocation2 + $0x37] sm:$0xff]  ;;  %1884 = vst [vmem:[#allocation2 + $0x98] sm:$0xff] %v8911_v27  ;;  %v8922_v57 = vmul.f32 %v1870_v0, %v1590_v29  ;;  %v8932_v45 = vld [vmem:[#allocation2 + $0x21] sm:$0xff]  ;;  %v7121_v61 = vpack.c.bf16 %v2210_v52, %v2209_v2 }
 0x30f   : > { %2417 = vmatmul.mubr.f32.vlgmr.msra.gmra.mrb[40].mxu0 %v1919_v4  ;;  %2321 = vmatprep.mubr.f32.mxu1 %v8870_v20  ;;  %1885 = vst [vmem:[#allocation2 + $0xb0] sm:$0xff] %v8918_v42  ;;  %v8943_v46 = vld [vmem:[#allocation2 + $0x4f] sm:$0xff]  ;;  %v9006_v48 = vadd.f32 %v5956_v9, %v5955_v18  ;;  %v7123_v11 = vpack.c.bf16 %v2228_v34, %v2227_v25  ;;  %v2234_v16 = vld [vmem:[%s10775_s5 + $0x418] sm:$0xff] }
 0x310   : > { %2421 = vmatprep.mubr.f32.mxu0 %v8915_v32  ;;  %7102 = vmatpush3.bf16.msra.mxu0 %v7101_v44  ;;  %1886 = vst [vmem:[#allocation2 + $0xc8] sm:$0xff] %v8922_v57  ;;  %v8953_v44 = vld [vmem:[#allocation2 + $0x39] sm:$0xff]  ;;  %v8973_v35 = vld [vmem:[#allocation2 + $0x51] sm:$0xff]  ;;  %v8993_v3 = vld [vmem:[#allocation2 + $0x69] sm:$0xff]  ;;  %v7125_v28 = vpack.c.bf16 %v2212_v36, %v2211_v39  ;;  %v7127_v29 = vpack.c.bf16 %v2230_v24, %v2229_v7 }
 0x311   : > { %7104 = vmatprep.subr.bf16.mxu0 %v7103_v5  ;;  %v8963_v5 = vld [vmem:[#allocation2 + $0x67] sm:$0xff]  ;;  %v2213_v0 = vld [vmem:[%s10775_s5 + $0x370] sm:$0xff]  ;;  %v2238_v31 = vld [vmem:[%s10775_s5 + $0x438] sm:$0xff] }
 0x312   : > { %2322 = vmatmul.mubr.f32.gmra.mrb[36].mxu1 %v8915_v32  ;;  %v2237_v50 = vld [vmem:[%s10775_s5 + $0x430] sm:$0xff]  ;;  %v2242_v55 = vld [vmem:[%s10775_s5 + $0x458] sm:$0xff]  ;;  %v7596_v19 = vld [vmem:[#allocation2 + $0x8] sm:$0xff] }
 0x313   : > { %2422 = vmatmul.mubr.f32.gmra.mrb[42].mxu0 %v8932_v45  ;;  %2326 = vmatprep.mubr.f32.mxu1 %v8877_v62  ;;  %v2246_v30 = vld [vmem:[%s10775_s5 + $0x478] sm:$0xff] }
 0x314   : > { %2426 = vmatprep.mubr.f32.mxu0 %v8943_v46  ;;  %7106 = vmatpush3.bf16.msra.mxu0 %v7105_v10  ;;  %v8983_v38 = vld [vmem:[#allocation2 + $0x7f] sm:$0xff] }
 0x315   : > { %7108 = vmatprep.subr.bf16.mxu0 %v7107_v33  ;;  %v9003_v4 = vld [vmem:[#allocation2 + $0x97] sm:$0xff]  ;;  %v9015_v51 = vld [vmem:[#allocation2 + $0x81] sm:$0xff] }
 0x316   : > { %2327 = vmatmul.mubr.f32.gmra.mrb[38].mxu1 %v8943_v46  ;;  %v9025_v12 = vld [vmem:[#allocation2 + $0xaf] sm:$0xff]  ;;  %v2214_v10 = vld [vmem:[%s10775_s5 + $0x378] sm:$0xff] }
 0x317   : > { %2427 = vmatmul.mubr.f32.gmra.mrb[44].mxu0 %v8953_v44  ;;  %2331 = vmatprep.mubr.f32.mxu1 %v8883_v59  ;;  %v9035_v33 = vld [vmem:[#allocation2 + $0x99] sm:$0xff]  ;;  %v9038_v40 = vld [vmem:[#allocation2 + $0xc7] sm:$0xff]  ;;  %v7129_v43 = vpack.c.bf16 %v2214_v10, %v2213_v0 }
 0x318   : > { %2431 = vmatprep.mubr.f32.mxu0 %v8963_v5  ;;  %7110 = vmatpush3.bf16.msra.mxu0 %v7109_v17  ;;  %v9048_v17 = vld [vmem:[#allocation2 + $0xb1] sm:$0xff]  ;;  %v1990_v22 = vld [vmem:[#allocation2 + $0xdf] sm:$0xff] }
 0x319   : > { %7112 = vmatprep.subr.bf16.mxu0 %v7111_v14  ;;  %v7135_v14 = vpack.c.bf16 %v2234_v16, %v2233_v53 }
 0x31a   : > { %2332 = vmatmul.mubr.f32.gmra.mrb[40].mxu1 %v8963_v5 }
 0x31b   : > { %2432 = vmatmul.mubr.f32.gmra.mrb[46].mxu0 %v8973_v35  ;;  %2336 = vmatprep.mubr.f32.mxu1 %v8902_v8 }
 0x31c   : > { %2436 = vmatprep.mubr.f32.mxu0 %v8983_v38  ;;  %7114 = vmatpush3.bf16.msra.mxu0 %v7113_v54  ;;  %v2244_v54 = vld [vmem:[%s10775_s5 + $0x468] sm:$0xff] }
 0x31d   : > { %7116 = vmatprep.subr.bf16.mxu0 %v7115_v1  ;;  %v2245_v1 = vld [vmem:[%s10775_s5 + $0x470] sm:$0xff] }
 0x31e   : > { %2337 = vmatmul.mubr.f32.gmra.mrb[42].mxu1 %v8983_v38  ;;  %v7159_v58 = vpack.c.bf16 %v2246_v30, %v2245_v1 }
 0x31f   : > { %2437 = vmatmul.mubr.f32.gmra.mrb[48].mxu0 %v8993_v3  ;;  %2341 = vmatprep.mubr.f32.mxu1 %v8911_v27 }
 0x320   : > { %2441 = vmatprep.mubr.f32.mxu0 %v9003_v4  ;;  %7118 = vmatpush3.bf16.msra.mxu0 %v7117_v23 }
 0x321   : > { %7120 = vmatprep.subr.bf16.mxu0 %v7119_v26 }
 0x322   : > { %2342 = vmatmul.mubr.f32.gmra.mrb[44].mxu1 %v9003_v4 }
 0x323   : > { %2442 = vmatmul.mubr.f32.gmra.mrb[50].mxu0 %v9015_v51  ;;  %2346 = vmatprep.mubr.f32.mxu1 %v8918_v42 }
 0x324   : > { %2446 = vmatprep.mubr.f32.mxu0 %v9025_v12  ;;  %7122 = vmatpush3.bf16.msra.mxu0 %v7121_v61 }
 0x325   : > { %7124 = vmatprep.subr.bf16.mxu0 %v7123_v11 }
 0x326   : > { %2347 = vmatmul.mubr.f32.gmra.mrb[46].mxu1 %v9025_v12 }
 0x327   : > { %2447 = vmatmul.mubr.f32.gmra.mrb[52].mxu0 %v9035_v33  ;;  %2521 = vmatprep.mubr.f32.mxu1 %v8932_v45  ;;  %v2235_v45 = vld [vmem:[%s10775_s5 + $0x420] sm:$0xff] }
 0x328   : > { %2451 = vmatprep.mubr.f32.mxu0 %v9038_v40  ;;  %7126 = vmatpush3.bf16.msra.mxu0 %v7125_v28 }
 0x329   : > { %7128 = vmatprep.subr.bf16.mxu0 %v7127_v29 }
 0x32a   : > { %2522 = vmatmul.mubr.f32.vlgmr.msra.gmra.mrb[48].mxu1 %v8857_v63  ;;  %v7139_v63 = vpack.c.bf16 %v2236_v15, %v2235_v45 }
 0x32b   : > { %2452 = vmatmul.mubr.f32.gmra.mrb[54].mxu0 %v9048_v17  ;;  %2526 = vmatprep.mubr.f32.mxu1 %v8953_v44 }
 0x32c   : > { %7130 = vmatpush3.bf16.msra.mxu0 %v7129_v43  ;;  %2626 = vmatprep.mubr.f32.mxu0 %v8870_v20 }
 0x32d   : > { %7134 = vmatpush3.bf16.msra.mxu1 %v8656_v47  ;;  %v7143_v47 = vpack.c.bf16 %v2238_v31, %v2237_v50 }
 0x32e   : > { %2527 = vmatmul.mubr.f32.gmra.mrb[50].mxu1 %v8870_v20  ;;  %7136 = vmatprep.subr.bf16.mxu1 %v7135_v14  ;;  %v2239_v20 = vld [vmem:[%s10775_s5 + $0x440] sm:$0xff] }
 0x32f   : > { %2627 = vmatmul.mubr.f32.vlgmr.msra.gmra.mrb[56].mxu0 %v8915_v32  ;;  %2531 = vmatprep.mubr.f32.mxu1 %v8973_v35  ;;  %v2240_v32 = vld [vmem:[%s10775_s5 + $0x448] sm:$0xff] }
 0x330   : > { %2631 = vmatprep.mubr.f32.mxu0 %v8877_v62 }
 0x331   : > { %7138 = vmatpush3.bf16.msra.mxu1 %v7135_v14 }
 0x332   : > { %2532 = vmatmul.mubr.f32.gmra.mrb[52].mxu1 %v8877_v62  ;;  %7140 = vmatprep.subr.bf16.mxu1 %v7139_v63  ;;  %v7147_v62 = vpack.c.bf16 %v2240_v32, %v2239_v20 }
 0x333   : > { %2632 = vmatmul.mubr.f32.gmra.mrb[58].mxu0 %v8943_v46  ;;  %2536 = vmatprep.mubr.f32.mxu1 %v8993_v3  ;;  %v2241_v46 = vld [vmem:[%s10775_s5 + $0x450] sm:$0xff] }
 0x334   : > { %2636 = vmatprep.mubr.f32.mxu0 %v8883_v59 }
 0x335   : > { %7142 = vmatpush3.bf16.msra.mxu1 %v7139_v63 }
 0x336   : > { %2537 = vmatmul.mubr.f32.gmra.mrb[54].mxu1 %v8883_v59  ;;  %7144 = vmatprep.subr.bf16.mxu1 %v7143_v47  ;;  %v7151_v59 = vpack.c.bf16 %v2242_v55, %v2241_v46 }
 0x337   : > { %2637 = vmatmul.mubr.f32.gmra.mrb[60].mxu0 %v8963_v5  ;;  %2541 = vmatprep.mubr.f32.mxu1 %v9015_v51  ;;  %v2243_v5 = vld [vmem:[%s10775_s5 + $0x460] sm:$0xff] }
 0x338   : > { %2641 = vmatprep.mubr.f32.mxu0 %v8902_v8 }
 0x339   : > { %7146 = vmatpush3.bf16.msra.mxu1 %v7143_v47 }
 0x33a   : > { %2542 = vmatmul.mubr.f32.gmra.mrb[56].mxu1 %v8902_v8  ;;  %7148 = vmatprep.subr.bf16.mxu1 %v7147_v62  ;;  %v7155_v8 = vpack.c.bf16 %v2244_v54, %v2243_v5 }
 0x33b   : > { %2642 = vmatmul.mubr.f32.gmra.mrb[62].mxu0 %v8983_v38  ;;  %2546 = vmatprep.mubr.f32.mxu1 %v9035_v33 }
 0x33c   : > { %2646 = vmatprep.mubr.f32.mxu0 %v8911_v27 }
 0x33d   : > { %7150 = vmatpush3.bf16.msra.mxu1 %v7147_v62 }
 0x33e   : > { %2547 = vmatmul.mubr.f32.gmra.mrb[58].mxu1 %v8911_v27  ;;  %7152 = vmatprep.subr.bf16.mxu1 %v7151_v59  ;;  %v1974_v27 = vld [vmem:[#allocation2 + $0xc9] sm:$0xff] }
 0x33f   : > { %2647 = vmatmul.mubr.f32.gmra.mrb[64].mxu0 %v9003_v4  ;;  %2551 = vmatprep.mubr.f32.mxu1 %v9048_v17 }
 0x340   : > { %2651 = vmatprep.mubr.f32.mxu0 %v8918_v42 }
 0x341   : > { %7154 = vmatpush3.bf16.msra.mxu1 %v7151_v59 }
 0x342   : > { %2552 = vmatmul.mubr.f32.gmra.mrb[60].mxu1 %v8918_v42  ;;  %7156 = vmatprep.subr.bf16.mxu1 %v7155_v8  ;;  %v2022_v42 = vld [vmem:[#allocation2 + $0xe1] sm:$0xff] }
 0x343   : > { %2652 = vmatmul.mubr.f32.gmra.mrb[66].mxu0 %v9025_v12  ;;  %2556 = vmatprep.mubr.f32.mxu1 %v1974_v27 }
 0x344   : > { %2656 = vmatprep.mubr.f32.mxu0 %v8922_v57 }
 0x345   : > { %7158 = vmatpush3.bf16.msra.mxu1 %v7155_v8 }
 0x346   : > { %2557 = vmatmul.mubr.f32.gmra.mrb[62].mxu1 %v8922_v57  ;;  %7160 = vmatprep.subr.bf16.mxu1 %v7159_v58 }
 0x347   : > { %2657 = vmatmul.mubr.f32.gmra.mrb[68].mxu0 %v9038_v40  ;;  %6743 = vmatprep.mubr.f32.mxu1 %v8953_v44 }
 0x348   : > { %2661 = vmatprep.mubr.f32.mxu0 %v7596_v19 }
 0x349   : > { %7162 = vmatpush3.bf16.msra.mxu1 %v7159_v58 }
 0x34b   : > { %2662 = vmatmul.mubr.f32.gmra.mrb[70].mxu0 %v1990_v22 }
 0x34c   : > { %6744 = vmatmul.mubr.f32.vlgmr.msra.gmra.mrb[64].mxu1 %v8973_v35  ;;  %3628 = vmatprep.mubr.f32.mxu0 %v7596_v19 }
 0x34d   : > { %6746 = vmatprep.mubr.f32.mxu1 %v8993_v3 }
 0x350   : > { %6747 = vmatmul.mubr.f32.gmra.mrb[66].mxu1 %v9015_v51 }
 0x351   : > { %6749 = vmatprep.mubr.f32.mxu1 %v9035_v33 }
 0x354   : > { %6750 = vmatmul.mubr.f32.gmra.mrb[68].mxu1 %v9048_v17 }
 0x355   : > { %6752 = vmatprep.mubr.f32.mxu1 %v1974_v27 }
 0x358   : > { %6753 = vmatmul.mubr.f32.gmra.mrb[70].mxu1 %v2022_v42 }
 0x3e1   : > { %v5958_v57 = vpop.f32.mrb[34].mxu1 }
 0x3e2   : > { %v6011_v44 = vpop.f32.mrb[40].mxu0  ;;  %v5959_v38 = vpop.f32.mrb[35].mxu1 }
 0x3e3   : > { %v5960_v23 = vadd.f32 %v5959_v38, %v5958_v57  ;;  %v6012_v26 = vpop.f32.mrb[41].mxu0 }
 0x3e4   : > { %v6013_v2 = vadd.f32 %v6012_v26, %v6011_v44 }
 0x3e5   : > { %v5961_v52 = vpop.f32.mrb[36].mxu1 }
 0x3e6   : > { %v2419_v35 = vadd.f32 %v6013_v2, %v9006_v48  ;;  %v6014_v25 = vpop.f32.mrb[42].mxu0  ;;  %v5962_v3 = vpop.f32.mrb[37].mxu1 }
 0x3e7   : > { %v5963_v34 = vadd.f32 %v5962_v3, %v5961_v52  ;;  %v6015_v18 = vpop.f32.mrb[43].mxu0 }
 0x3e8   : > { %v6016_v4 = vadd.f32 %v6015_v18, %v6014_v25 }
 0x3e9   : > { %v5964_v9 = vpop.f32.mrb[38].mxu1 }
 0x3ea   : > { %v2424_v61 = vadd.f32 %v6016_v4, %v5960_v23  ;;  %v6017_v11 = vpop.f32.mrb[44].mxu0  ;;  %v5965_v39 = vpop.f32.mrb[39].mxu1 }
 0x3eb   : > { %v5966_v36 = vadd.f32 %v5965_v39, %v5964_v9  ;;  %v6018_v51 = vpop.f32.mrb[45].mxu0 }
 0x3ec   : > { %v6019_v7 = vadd.f32 %v6018_v51, %v6017_v11 }
 0x3ed   : > { %v5967_v24 = vpop.f32.mrb[40].mxu1 }
 0x3ee   : > { %v2429_v12 = vadd.f32 %v6019_v7, %v5963_v34  ;;  %v6020_v28 = vpop.f32.mrb[46].mxu0  ;;  %v5968_v29 = vpop.f32.mrb[41].mxu1 }
 0x3ef   : > { %v5969_v0 = vadd.f32 %v5968_v29, %v5967_v24  ;;  %v6021_v10 = vpop.f32.mrb[47].mxu0 }
 0x3f0   : > { %v6022_v33 = vadd.f32 %v6021_v10, %v6020_v28 }
 0x3f1   : > { %v5970_v48 = vpop.f32.mrb[42].mxu1 }
 0x3f2   : > { %v2434_v40 = vadd.f32 %v6022_v33, %v5966_v36  ;;  %v6023_v53 = vpop.f32.mrb[48].mxu0  ;;  %v5971_v16 = vpop.f32.mrb[43].mxu1 }
 0x3f3   : > { %v5972_v43 = vadd.f32 %v5971_v16, %v5970_v48  ;;  %v6024_v17 = vpop.f32.mrb[49].mxu0 }
 0x3f4   : > { %v6025_v14 = vadd.f32 %v6024_v17, %v6023_v53 }
 0x3f5   : > { %v5973_v45 = vpop.f32.mrb[44].mxu1 }
 0x3f6   : > { %v2439_v15 = vadd.f32 %v6025_v14, %v5969_v0  ;;  %v6026_v63 = vpop.f32.mrb[50].mxu0  ;;  %v5974_v50 = vpop.f32.mrb[45].mxu1 }
 0x3f7   : > { %v5975_v31 = vadd.f32 %v5974_v50, %v5973_v45  ;;  %v6027_v47 = vpop.f32.mrb[51].mxu0 }
 0x3f8   : > { %v6028_v20 = vadd.f32 %v6027_v47, %v6026_v63 }
 0x3f9   : > { %v5976_v32 = vpop.f32.mrb[46].mxu1 }
 0x3fa   : > { %v2444_v62 = vadd.f32 %v6028_v20, %v5972_v43  ;;  %v6029_v46 = vpop.f32.mrb[52].mxu0  ;;  %v5977_v55 = vpop.f32.mrb[47].mxu1 }
 0x3fb   : > { %v5978_v59 = vadd.f32 %v5977_v55, %v5976_v32  ;;  %v6030_v5 = vpop.f32.mrb[53].mxu0 }
 0x3fc   : > { %v6031_v54 = vadd.f32 %v6030_v5, %v6029_v46 }
 0x3fd   : > { %v6067_v8 = vpop.f32.mrb[48].mxu1 }
 0x3fe   : > { %v2449_v1 = vadd.f32 %v6031_v54, %v5975_v31  ;;  %v6032_v30 = vpop.f32.mrb[54].mxu0  ;;  %v6068_v27 = vpop.f32.mrb[49].mxu1 }
 0x3ff   : > { %v6033_v58 = vpop.f32.mrb[55].mxu0  ;;  %v6069_v19 = vadd.f32 %v6068_v27, %v6067_v8 }
 0x400   : > { %v6034_v22 = vadd.f32 %v6033_v58, %v6032_v30 }
 0x401   : > { %v2524_v42 = vadd.f32 %v6069_v19, %v2419_v35  ;;  %v6070_v57 = vpop.f32.mrb[50].mxu1 }
 0x402   : > { %v2454_v44 = vadd.f32 %v6034_v22, %v5978_v59  ;;  %v6123_v38 = vpop.f32.mrb[56].mxu0  ;;  %v6071_v23 = vpop.f32.mrb[51].mxu1 }
 0x403   : > { %v6072_v26 = vadd.f32 %v6071_v23, %v6070_v57  ;;  %v6124_v2 = vpop.f32.mrb[57].mxu0 }
 0x404   : > { %v6125_v52 = vadd.f32 %v6124_v2, %v6123_v38 }
 0x405   : > { %v2529_v25 = vadd.f32 %v6072_v26, %v2424_v61  ;;  %v6073_v3 = vpop.f32.mrb[52].mxu1 }
 0x406   : > { %v6126_v34 = vpop.f32.mrb[58].mxu0  ;;  %v6074_v18 = vpop.f32.mrb[53].mxu1  ;;  %v2629_v4 = vadd.f32 %v6125_v52, %v2524_v42 }
 0x407   : > { %v6075_v9 = vadd.f32 %v6074_v18, %v6073_v3  ;;  %v6127_v11 = vpop.f32.mrb[59].mxu0 }
 0x408   : > { %v6128_v39 = vadd.f32 %v6127_v11, %v6126_v34 }
 0x409   : > { %v2534_v36 = vadd.f32 %v6075_v9, %v2429_v12  ;;  %v6076_v51 = vpop.f32.mrb[54].mxu1 }
 0x40a   : > { %v6129_v7 = vpop.f32.mrb[60].mxu0  ;;  %v6077_v24 = vpop.f32.mrb[55].mxu1  ;;  %v2634_v35 = vadd.f32 %v6128_v39, %v2529_v25 }
 0x40b   : > { %v6078_v28 = vadd.f32 %v6077_v24, %v6076_v51  ;;  %v6130_v29 = vpop.f32.mrb[61].mxu0 }
 0x40c   : > { %v6131_v0 = vadd.f32 %v6130_v29, %v6129_v7 }
 0x40d   : > { %v2539_v10 = vadd.f32 %v6078_v28, %v2434_v40  ;;  %v6079_v33 = vpop.f32.mrb[56].mxu1 }
 0x40e   : > { %v6132_v48 = vpop.f32.mrb[62].mxu0  ;;  %v6080_v53 = vpop.f32.mrb[57].mxu1  ;;  %v2639_v61 = vadd.f32 %v6131_v0, %v2534_v36 }
 0x40f   : > { %v6081_v16 = vadd.f32 %v6080_v53, %v6079_v33  ;;  %v6133_v43 = vpop.f32.mrb[63].mxu0 }
 0x410   : > { %v6134_v17 = vadd.f32 %v6133_v43, %v6132_v48 }
 0x411   : > { %v2544_v14 = vadd.f32 %v6081_v16, %v2439_v15  ;;  %v6082_v45 = vpop.f32.mrb[58].mxu1 }
 0x412   : > { %v6135_v63 = vpop.f32.mrb[64].mxu0  ;;  %v6083_v50 = vpop.f32.mrb[59].mxu1  ;;  %v2644_v12 = vadd.f32 %v6134_v17, %v2539_v10 }
 0x413   : > { %v6084_v31 = vadd.f32 %v6083_v50, %v6082_v45  ;;  %v6136_v47 = vpop.f32.mrb[65].mxu0 }
 0x414   : > { %v6137_v20 = vadd.f32 %v6136_v47, %v6135_v63 }
 0x415   : > { %v2549_v32 = vadd.f32 %v6084_v31, %v2444_v62  ;;  %v6085_v46 = vpop.f32.mrb[60].mxu1 }
 0x416   : > { %v6138_v55 = vpop.f32.mrb[66].mxu0  ;;  %v6086_v59 = vpop.f32.mrb[61].mxu1  ;;  %v2649_v40 = vadd.f32 %v6137_v20, %v2544_v14 }
 0x417   : > { %v6087_v5 = vadd.f32 %v6086_v59, %v6085_v46  ;;  %v6139_v54 = vpop.f32.mrb[67].mxu0 }
 0x418   : > { %v6140_v8 = vadd.f32 %v6139_v54, %v6138_v55 }
 0x419   : > { %v2554_v30 = vadd.f32 %v6087_v5, %v2449_v1  ;;  %v6088_v27 = vpop.f32.mrb[62].mxu1 }
 0x41a   : > { %v6141_v58 = vpop.f32.mrb[68].mxu0  ;;  %v6089_v19 = vpop.f32.mrb[63].mxu1  ;;  %v2654_v15 = vadd.f32 %v6140_v8, %v2549_v32 }
 0x41b   : > { %v6090_v22 = vadd.f32 %v6089_v19, %v6088_v27  ;;  %v6142_v42 = vpop.f32.mrb[69].mxu0 }
 0x41c   : > { %v6143_v57 = vadd.f32 %v6142_v42, %v6141_v58 }
 0x41d   : > { %v2559_v38 = vadd.f32 %v6090_v22, %v2454_v44 }
 0x41e   : > { %v6144_v23 = vpop.f32.mrb[70].mxu0  ;;  %v2659_v26 = vadd.f32 %v6143_v57, %v2554_v30 }
 0x41f   : > { %v6745_v2 = vpop.f32.mrb[64].mxu1  ;;  %v6145_v62 = vpop.f32.mrb[71].mxu0 }
 0x420   : > { %v2739_v52 = vadd.f32 %v6745_v2, %v2634_v35  ;;  %v6146_v25 = vadd.f32 %v6145_v62, %v6144_v23  ;;  %v2733_v3 = vpop.f32.mrb[65].mxu1  ;;  %v3436_v62 = vld [vmem:[%s10778_s8 + $0x80] sm:$0xff] }
 0x421   : > { %v2734_v34 = vadd.f32 %v2733_v3, %v2629_v4 }
 0x422   : > { %2774 = vadd.xlane.f32.xlu1 %v2739_v52  ;;  %v2664_v18 = vadd.f32 %v6146_v25, %v2559_v38  ;;  %v3420_v25 = vld [vmem:[%s10778_s8] sm:$0xff] }
 0x423   : > { %v6748_v9 = vpop.f32.mrb[66].mxu1  ;;  %2772 = vadd.xlane.f32.xlu0 %v2734_v34 }
 0x424   : > { %v2749_v1 = vadd.f32 %v6748_v9, %v2644_v12  ;;  %v2743_v11 = vpop.f32.mrb[67].mxu1  ;;  %v3439_v9 = vld [vmem:[%s10778_s8 + $0x98] sm:$0xff] }
 0x425   : > { %v2744_v39 = vadd.f32 %v2743_v11, %v2639_v61 }
 0x426   : > { %2778 = vadd.xlane.f32.xlu1 %v2749_v1 }
 0x427   : > { %v6751_v36 = vpop.f32.mrb[68].mxu1  ;;  %2776 = vadd.xlane.f32.xlu0 %v2744_v39 }
 0x428   : > { %v2759_v51 = vadd.f32 %v6751_v36, %v2654_v15  ;;  %v2753_v44 = vpop.f32.mrb[69].mxu1  ;;  %v3469_v36 = vld [vmem:[%s10778_s8 + $0x188] sm:$0xff] }
 0x429   : > { %v2754_v7 = vadd.f32 %v2753_v44, %v2649_v40 }
 0x42a   : > { %2782 = vadd.xlane.f32.xlu1 %v2759_v51 }
 0x42b   : > { %v6754_v24 = vpop.f32.mrb[70].mxu1  ;;  %2780 = vadd.xlane.f32.xlu0 %v2754_v7 }
 0x42c   : > { %v2769_v35 = vadd.f32 %v6754_v24, %v2664_v18  ;;  %v2763_v28 = vpop.f32.mrb[71].mxu1  ;;  %v3438_v18 = vld [vmem:[%s10778_s8 + $0x90] sm:$0xff]  ;;  %v3452_v24 = vld [vmem:[%s10778_s8 + $0x100] sm:$0xff] }
 0x42d   : > { %v2764_v29 = vadd.f32 %v2763_v28, %v2659_v26  ;;  %v7167_v11 = vpack.c.bf16 %v3439_v9, %v3438_v18  ;;  %v3429_v18 = vld [vmem:[%s10778_s8 + $0x48] sm:$0xff] }
 0x42e   : > { %2786 = vadd.xlane.f32.xlu1 %v2769_v35  ;;  %v3477_v9 = vld [vmem:[%s10778_s8 + $0x1c8] sm:$0xff] }
 0x42f   : > { %2784 = vadd.xlane.f32.xlu0 %v2764_v29 }
 0x4af   : > { %v2775_v4 = vpop.xlane.xlu1 %2774 }
 0x4b0   : > { %v2773_v0 = vpop.xlane.xlu0 %2772 }
 0x4b1   : > { %v2788_v10 = vadd.f32 %v2775_v4, %v2773_v0  ;;  %v3440_v4 = vld [vmem:[%s10778_s8 + $0xa0] sm:$0xff]  ;;  %v3441_v0 = vld [vmem:[%s10778_s8 + $0xa8] sm:$0xff] }
 0x4b3   : > { %v2779_v33 = vpop.xlane.xlu1 %2778 }
 0x4b4   : > { %v2777_v48 = vpop.xlane.xlu0 %2776 }
 0x4b5   : > { %v2789_v53 = vadd.f32 %v2788_v10, %v2777_v48  ;;  %v3470_v10 = vld [vmem:[%s10778_s8 + $0x190] sm:$0xff]  ;;  %v3471_v48 = vld [vmem:[%s10778_s8 + $0x198] sm:$0xff] }
 0x4b7   : > { %v2790_v61 = vadd.f32 %v2789_v53, %v2779_v33  ;;  %v2783_v16 = vpop.xlane.xlu1 %2782  ;;  %v7171_v33 = vpack.c.bf16 %v3441_v0, %v3440_v4  ;;  %v3424_v53 = vld [vmem:[%s10778_s8 + $0x20] sm:$0xff]  ;;  %v3431_v4 = vld [vmem:[%s10778_s8 + $0x58] sm:$0xff] }
 0x4b8   : > { %v2781_v43 = vpop.xlane.xlu0 %2780 }
 0x4b9   : > { %v2791_v17 = vadd.f32 %v2790_v61, %v2781_v43  ;;  %v3425_v61 = vld [vmem:[%s10778_s8 + $0x28] sm:$0xff]  ;;  %v3454_v43 = vld [vmem:[%s10778_s8 + $0x110] sm:$0xff] }
 0x4bb   : > { %v2792_v14 = vadd.f32 %v2791_v17, %v2783_v16  ;;  %v2787_v50 = vpop.xlane.xlu1 %2786  ;;  %v7199_v16 = vpack.c.bf16 %v3471_v48, %v3470_v10  ;;  %v3455_v17 = vld [vmem:[%s10778_s8 + $0x118] sm:$0xff]  ;;  %v3448_v10 = vld [vmem:[%s10778_s8 + $0xe0] sm:$0xff] }
 0x4bc   : > { %v2785_v45 = vpop.xlane.xlu0 %2784 }
 0x4bd   : > { %v2793_v63 = vadd.f32 %v2792_v14, %v2785_v45  ;;  %v3442_v14 = vld [vmem:[%s10778_s8 + $0xb0] sm:$0xff]  ;;  %v7201_v45 = vpack.c.bf16 %v3455_v17, %v3454_v43  ;;  %v3480_v43 = vld [vmem:[%s10778_s8 + $0x1e0] sm:$0xff]  ;;  %v3481_v17 = vld [vmem:[%s10778_s8 + $0x1e8] sm:$0xff] }
 0x4bf   : > { %v2794_v12 = vadd.f32 %v2793_v63, %v2787_v50  ;;  %v3443_v63 = vld [vmem:[%s10778_s8 + $0xb8] sm:$0xff]  ;;  %v3472_v50 = vld [vmem:[%s10778_s8 + $0x1a0] sm:$0xff] }
 0x4c1   : > { %v2795_v31 = vrot.slane %v2794_v12, 4 }
 0x4c3   : > { %v2796_v47 = vadd.f32 %v2795_v31, %v2794_v12  ;;  %v3473_v12 = vld [vmem:[%s10778_s8 + $0x1a8] sm:$0xff]  ;;  %v7173_v31 = vpack.c.bf16 %v3425_v61, %v3424_v53  ;;  %v3462_v53 = vld [vmem:[%s10778_s8 + $0x150] sm:$0xff]  ;;  %v3463_v61 = vld [vmem:[%s10778_s8 + $0x158] sm:$0xff] }
 0x4c5   : > { %v2797_v20 = vrot.slane %v2796_v47, 2 }
 0x4c7   : > { %v2798_v32 = vadd.f32 %v2797_v20, %v2796_v47  ;;  %v7203_v47 = vpack.c.bf16 %v3473_v12, %v3472_v50  ;;  %v3426_v20 = vld [vmem:[%s10778_s8 + $0x30] sm:$0xff]  ;;  %v7217_v50 = vpack.c.bf16 %v3463_v61, %v3462_v53 }
 0x4c8   : > { %v3450_v12 = vld [vmem:[%s10778_s8 + $0xf0] sm:$0xff] }
 0x4c9   : > { %v2799_v46 = vrot.slane %v2798_v32, 1 }
 0x4cb   : > { %v2800_v55 = vadd.f32 %v2799_v46, %v2798_v32  ;;  %v3456_v32 = vld [vmem:[%s10778_s8 + $0x120] sm:$0xff]  ;;  %v7175_v46 = vpack.c.bf16 %v3443_v63, %v3442_v14  ;;  %v3433_v63 = vld [vmem:[%s10778_s8 + $0x68] sm:$0xff] }
 0x4cd   : > { %v9123_v59 = vmul.f32 0.00390625, %v2800_v55  ;;  %v3427_v55 = vld [vmem:[%s10778_s8 + $0x38] sm:$0xff] }
 0x4cf   : > { %v9126_v40 = vsub.f32 %v2739_v52, %v9123_v59  ;;  %v9129_v5 = vsub.f32 %v2734_v34, %v9123_v59  ;;  %v9136_v30 = vsub.f32 %v2749_v1, %v9123_v59  ;;  %v9139_v27 = vsub.f32 %v2744_v39, %v9123_v59  ;;  %v3437_v52 = vld [vmem:[%s10778_s8 + $0x88] sm:$0xff]  ;;  %v3468_v39 = vld [vmem:[%s10778_s8 + $0x180] sm:$0xff] }
 0x4d0   : > { %v9146_v15 = vsub.f32 %v2759_v51, %v9123_v59  ;;  %v9149_v22 = vsub.f32 %v2754_v7, %v9123_v59  ;;  %v9156_v38 = vsub.f32 %v2769_v35, %v9123_v59  ;;  %v9159_v23 = vsub.f32 %v2764_v29, %v9123_v59  ;;  %v3421_v34 = vld [vmem:[%s10778_s8 + $0x8] sm:$0xff]  ;;  %v3422_v51 = vld [vmem:[%s10778_s8 + $0x10] sm:$0xff]  ;;  %v3423_v7 = vld [vmem:[%s10778_s8 + $0x18] sm:$0xff] }
 0x4d1   : > { %v2811_v54 = vmul.f32 %v9126_v40, %v9126_v40  ;;  %v2810_v8 = vmul.f32 %v9129_v5, %v9129_v5  ;;  %v2813_v58 = vmul.f32 %v9136_v30, %v9136_v30  ;;  %v2812_v19 = vmul.f32 %v9139_v27, %v9139_v27  ;;  %v3453_v35 = vld [vmem:[%s10778_s8 + $0x108] sm:$0xff] }
 0x4d2   : > { %v2815_v42 = vmul.f32 %v9146_v15, %v9146_v15  ;;  %v2814_v57 = vmul.f32 %v9149_v22, %v9149_v22  ;;  %v2817_v26 = vmul.f32 %v9156_v38, %v9156_v38  ;;  %v2816_v2 = vmul.f32 %v9159_v23, %v9159_v23 }
 0x4d3   : > { %2820 = vadd.xlane.f32.xlu1 %v2811_v54  ;;  %2818 = vadd.xlane.f32.xlu0 %v2810_v8  ;;  %v7163_v3 = vpack.c.bf16 %v3437_v52, %v3436_v62  ;;  %v7165_v1 = vpack.c.bf16 %v3421_v34, %v3420_v25  ;;  %v7195_v44 = vpack.c.bf16 %v3469_v36, %v3468_v39  ;;  %v3457_v54 = vld [vmem:[%s10778_s8 + $0x128] sm:$0xff]  ;;  %v3444_v8 = vld [vmem:[%s10778_s8 + $0xc0] sm:$0xff]  ;;  %v3459_v62 = vld [vmem:[%s10778_s8 + $0x138] sm:$0xff] }
 0x4d4   : > { %v7169_v28 = vpack.c.bf16 %v3423_v7, %v3422_v51  ;;  %v7197_v29 = vpack.c.bf16 %v3453_v35, %v3452_v24  ;;  %v7177_v52 = vpack.c.bf16 %v3427_v55, %v3426_v20  ;;  %v3476_v25 = vld [vmem:[%s10778_s8 + $0x1c0] sm:$0xff]  ;;  %v3447_v39 = vld [vmem:[%s10778_s8 + $0xd8] sm:$0xff]  ;;  %v3478_v24 = vld [vmem:[%s10778_s8 + $0x1d0] sm:$0xff] }
 0x4d5   : > { %7164 = vmatprep.subr.bf16.mxu0 %v7163_v3  ;;  %7196 = vmatprep.subr.bf16.mxu1 %v7195_v44  ;;  %v3428_v34 = vld [vmem:[%s10778_s8 + $0x40] sm:$0xff]  ;;  %v7211_v36 = vpack.c.bf16 %v3477_v9, %v3476_v25  ;;  %v3461_v44 = vld [vmem:[%s10778_s8 + $0x148] sm:$0xff]  ;;  %v3479_v35 = vld [vmem:[%s10778_s8 + $0x1d8] sm:$0xff] }
 0x4d6   : > { %7166 = vmatpush3.bf16.msra.mxu0 %v7165_v1  ;;  %7198 = vmatpush3.bf16.msra.mxu1 %v7197_v29  ;;  %v3460_v51 = vld [vmem:[%s10778_s8 + $0x140] sm:$0xff]  ;;  %v7181_v7 = vpack.c.bf16 %v3429_v18, %v3428_v34  ;;  %v3430_v29 = vld [vmem:[%s10778_s8 + $0x50] sm:$0xff]  ;;  %v7215_v48 = vpack.c.bf16 %v3479_v35, %v3478_v24  ;;  %v3485_v18 = vld [vmem:[%s10778_s8 + $0x208] sm:$0xff] }
 0x4d7   : > { %2824 = vadd.xlane.f32.xlu1 %v2813_v58  ;;  %2822 = vadd.xlane.f32.xlu0 %v2812_v19  ;;  %v7205_v58 = vpack.c.bf16 %v3457_v54, %v3456_v32  ;;  %v3445_v19 = vld [vmem:[%s10778_s8 + $0xc8] sm:$0xff]  ;;  %v7213_v0 = vpack.c.bf16 %v3461_v44, %v3460_v51  ;;  %v3464_v20 = vld [vmem:[%s10778_s8 + $0x160] sm:$0xff]  ;;  %v3482_v55 = vld [vmem:[%s10778_s8 + $0x1f0] sm:$0xff] }
 0x4d8   : > { %7168 = vmatprep.subr.bf16.mxu0 %v7167_v11  ;;  %7200 = vmatprep.subr.bf16.mxu1 %v7199_v16  ;;  %v7179_v3 = vpack.c.bf16 %v3445_v19, %v3444_v8  ;;  %v3446_v11 = vld [vmem:[%s10778_s8 + $0xd0] sm:$0xff]  ;;  %v7185_v16 = vpack.c.bf16 %v3431_v4, %v3430_v29  ;;  %v3465_v32 = vld [vmem:[%s10778_s8 + $0x168] sm:$0xff]  ;;  %v3483_v54 = vld [vmem:[%s10778_s8 + $0x1f8] sm:$0xff] }
 0x4d9   : > { %v3435_v19 = vld [vmem:[%s10778_s8 + $0x78] sm:$0xff]  ;;  %v3484_v34 = vld [vmem:[%s10778_s8 + $0x200] sm:$0xff] }
 0x4da   : > { %7170 = vmatpush3.bf16.msra.mxu0 %v7169_v28  ;;  %7202 = vmatpush3.bf16.msra.mxu1 %v7201_v45  ;;  %v7183_v28 = vpack.c.bf16 %v3447_v39, %v3446_v11  ;;  %v3432_v45 = vld [vmem:[%s10778_s8 + $0x60] sm:$0xff]  ;;  %v7229_v11 = vpack.c.bf16 %v3485_v18, %v3484_v34  ;;  %v3491_v34 = vld [vmem:[%s10778_s8 + $0x238] sm:$0xff] }
 0x4db   : > { %2828 = vadd.xlane.f32.xlu1 %v2815_v42  ;;  %2826 = vadd.xlane.f32.xlu0 %v2814_v57  ;;  %v3474_v42 = vld [vmem:[%s10778_s8 + $0x1b0] sm:$0xff]  ;;  %v3475_v57 = vld [vmem:[%s10778_s8 + $0x1b8] sm:$0xff] }
 0x4dc   : > { %7172 = vmatprep.subr.bf16.mxu0 %v7171_v33  ;;  %7204 = vmatprep.subr.bf16.mxu1 %v7203_v47  ;;  %v3449_v33 = vld [vmem:[%s10778_s8 + $0xe8] sm:$0xff]  ;;  %v7219_v47 = vpack.c.bf16 %v3481_v17, %v3480_v43  ;;  %v3502_v43 = vld [vmem:[%s10778_s8 + $0x290] sm:$0xff]  ;;  %v3503_v17 = vld [vmem:[%s10778_s8 + $0x298] sm:$0xff] }
 0x4dd   : > { %v7187_v14 = vpack.c.bf16 %v3449_v33, %v3448_v10 }
 0x4de   : > { %7174 = vmatpush3.bf16.msra.mxu0 %v7173_v31  ;;  %7206 = vmatpush3.bf16.msra.mxu1 %v7205_v58  ;;  %v3451_v31 = vld [vmem:[%s10778_s8 + $0xf8] sm:$0xff]  ;;  %v3434_v58 = vld [vmem:[%s10778_s8 + $0x70] sm:$0xff] }
 0x4df   : > { %2832 = vadd.xlane.f32.xlu1 %v2817_v26  ;;  %2830 = vadd.xlane.f32.xlu0 %v2816_v2  ;;  %v7207_v26 = vpack.c.bf16 %v3475_v57, %v3474_v42  ;;  %v3458_v2 = vld [vmem:[%s10778_s8 + $0x130] sm:$0xff]  ;;  %v7191_v8 = vpack.c.bf16 %v3451_v31, %v3450_v12  ;;  %v7221_v42 = vpack.c.bf16 %v3465_v32, %v3464_v20  ;;  %v3500_v57 = vld [vmem:[%s10778_s8 + $0x280] sm:$0xff]  ;;  %v3487_v12 = vld [vmem:[%s10778_s8 + $0x218] sm:$0xff]  ;;  %v2847_v32 = vmul.f32 7936.0, %v9123_v59 }
 0x4e0   : > { %7176 = vmatprep.subr.bf16.mxu0 %v7175_v46  ;;  %v7209_v1 = vpack.c.bf16 %v3459_v62, %v3458_v2  ;;  %v7189_v46 = vpack.c.bf16 %v3433_v63, %v3432_v45  ;;  %v7223_v2 = vpack.c.bf16 %v3483_v54, %v3482_v55  ;;  %v3466_v62 = vld [vmem:[%s10778_s8 + $0x170] sm:$0xff]  ;;  %v7193_v25 = vpack.c.bf16 %v3435_v19, %v3434_v58  ;;  %v3533_v63 = vld [vmem:[%s10778_s8 + $0x388] sm:$0xff]  ;;  %v3504_v55 = vld [vmem:[%s10778_s8 + $0x2a0] sm:$0xff] }
 0x4e1   : > { %7208 = vmatprep.subr.bf16.mxu1 %v7207_v26  ;;  %v3501_v26 = vld [vmem:[%s10778_s8 + $0x288] sm:$0xff]  ;;  %v7231_v45 = vpack.c.bf16 %v3503_v17, %v3502_v43  ;;  %v3488_v58 = vld [vmem:[%s10778_s8 + $0x220] sm:$0xff]  ;;  %v3514_v17 = vld [vmem:[%s10778_s8 + $0x2f0] sm:$0xff] }
 0x4e2   : > { %7178 = vmatpush3.bf16.msra.mxu0 %v7177_v52  ;;  %7210 = vmatpush3.bf16.msra.mxu1 %v7209_v1  ;;  %v3467_v52 = vld [vmem:[%s10778_s8 + $0x178] sm:$0xff]  ;;  %v3204_v1 = vld [vmem:[#allocation2 + $0x7] sm:$0xff] }
 0x4e3   : > { %7180 = vmatprep.subr.bf16.mxu0 %v7179_v3  ;;  %7212 = vmatprep.subr.bf16.mxu1 %v7211_v36  ;;  %v7227_v3 = vpack.c.bf16 %v3501_v26, %v3500_v57  ;;  %v7225_v9 = vpack.c.bf16 %v3467_v52, %v3466_v62  ;;  %v3505_v54 = vld [vmem:[%s10778_s8 + $0x2a8] sm:$0xff]  ;;  %v2848_v26 = vmul.f32 %v2847_v32, %v9123_v59  ;;  %v3506_v62 = vld [vmem:[%s10778_s8 + $0x2b0] sm:$0xff]  ;;  %v3507_v52 = vld [vmem:[%s10778_s8 + $0x2b8] sm:$0xff] }
 0x4e4   : > { %v3489_v19 = vld [vmem:[%s10778_s8 + $0x228] sm:$0xff] }
 0x4e5   : > { %v7237_v57 = vpack.c.bf16 %v3489_v19, %v3488_v58  ;;  %v5633_v19 = vld [vmem:[%s10777_s7] ss:$0 sm:$0xff] }
 0x4e6   : > { %7182 = vmatpush3.bf16.msra.mxu0 %v7181_v7  ;;  %7214 = vmatpush3.bf16.msra.mxu1 %v7213_v0 }
 0x4e7   : > { %7184 = vmatprep.subr.bf16.mxu0 %v7183_v28  ;;  %7216 = vmatprep.subr.bf16.mxu1 %v7215_v48 }
 0x4ea   : > { %7186 = vmatpush3.bf16.msra.mxu0 %v7185_v16  ;;  %7218 = vmatpush3.bf16.msra.mxu1 %v7217_v50  ;;  %v3486_v50 = vld [vmem:[%s10778_s8 + $0x210] sm:$0xff] }
 0x4eb   : > { %7188 = vmatprep.subr.bf16.mxu0 %v7187_v14  ;;  %7220 = vmatprep.subr.bf16.mxu1 %v7219_v47  ;;  %v3532_v14 = vld [vmem:[%s10778_s8 + $0x380] sm:$0xff]  ;;  %v7233_v20 = vpack.c.bf16 %v3487_v12, %v3486_v50  ;;  %v3499_v50 = vld [vmem:[%s10778_s8 + $0x278] sm:$0xff] }
 0x4ec   : > { %v7259_v47 = vpack.c.bf16 %v3533_v63, %v3532_v14  ;;  %v3515_v14 = vld [vmem:[%s10778_s8 + $0x2f8] sm:$0xff]  ;;  %v3498_v63 = vld [vmem:[%s10778_s8 + $0x270] sm:$0xff] }
 0x4ed   : > { %v7257_v12 = vpack.c.bf16 %v3499_v50, %v3498_v63 }
 0x4ee   : > { %7190 = vmatpush3.bf16.msra.mxu0 %v7189_v46  ;;  %7222 = vmatpush3.bf16.msra.mxu1 %v7221_v42 }
 0x4ef   : > { %7192 = vmatprep.subr.bf16.mxu0 %v7191_v8  ;;  %7224 = vmatprep.subr.bf16.mxu1 %v7223_v2  ;;  %v7235_v8 = vpack.c.bf16 %v3505_v54, %v3504_v55 }
 0x4f2   : > { %7194 = vmatpush3.bf16.msra.mxu0 %v7193_v25  ;;  %7226 = vmatpush3.bf16.msra.mxu1 %v7225_v9  ;;  %v7239_v25 = vpack.c.bf16 %v3507_v52, %v3506_v62 }
 0x4f3   : > { %7228 = vmatprep.subr.bf16.mxu0 %v7227_v3  ;;  %7260 = vmatprep.subr.bf16.mxu1 %v7259_v47  ;;  %v3490_v3 = vld [vmem:[%s10778_s8 + $0x230] sm:$0xff]  ;;  %v5632_v47 = vld [vmem:[%s10776_s6] ss:$0 sm:$0xff] }
 0x4f4   : > { %v7241_v18 = vpack.c.bf16 %v3491_v34, %v3490_v3 }
 0x4f5   : > { %3629 = vmatmul.mubr.f32.vlgmr.msra.gmra.mrb[72].mxu0 %v3204_v1  ;;  %v3508_v1 = vld [vmem:[%s10778_s8 + $0x2c0] sm:$0xff] }
 0x4f6   : > { %7230 = vmatpush3.bf16.msra.mxu0 %v7229_v11  ;;  %v3509_v11 = vld [vmem:[%s10778_s8 + $0x2c8] sm:$0xff] }
 0x4f7   : > { %7232 = vmatprep.subr.bf16.mxu0 %v7231_v45  ;;  %v7255_v45 = vpack.c.bf16 %v3515_v14, %v3514_v17 }
 0x4fa   : > { %7234 = vmatpush3.bf16.msra.mxu0 %v7233_v20 }
 0x4fb   : > { %7236 = vmatprep.subr.bf16.mxu0 %v7235_v8 }
 0x4fe   : > { %7238 = vmatpush3.bf16.msra.mxu0 %v7237_v57 }
 0x4ff   : > { %7240 = vmatprep.subr.bf16.mxu0 %v7239_v25 }
 0x502   : > { %7242 = vmatpush3.bf16.msra.mxu0 %v7241_v18 }
 0x560   : > { %v2821_v39 = vpop.xlane.xlu1 %2820  ;;  %v2819_v36 = vpop.xlane.xlu0 %2818 }
 0x561   : > { %v2834_v51 = vadd.f32 %v2821_v39, %v2819_v36  ;;  %v7243_v39 = vpack.c.bf16 %v3509_v11, %v3508_v1  ;;  %v3492_v36 = vld [vmem:[%s10778_s8 + $0x240] sm:$0xff] }
 0x563   : > { %7244 = vmatprep.subr.bf16.mxu0 %v7243_v39 }
 0x564   : > { %v2825_v44 = vpop.xlane.xlu1 %2824  ;;  %v2823_v7 = vpop.xlane.xlu0 %2822 }
 0x565   : > { %v2835_v24 = vadd.f32 %v2834_v51, %v2823_v7  ;;  %v3493_v51 = vld [vmem:[%s10778_s8 + $0x248] sm:$0xff] }
 0x566   : > { %v7245_v7 = vpack.c.bf16 %v3493_v51, %v3492_v36 }
 0x567   : > { %v2836_v35 = vadd.f32 %v2835_v24, %v2825_v44 }
 0x568   : > { %v2829_v28 = vpop.xlane.xlu1 %2828  ;;  %v2827_v29 = vpop.xlane.xlu0 %2826  ;;  %7246 = vmatpush3.bf16.msra.mxu0 %v7245_v7 }
 0x569   : > { %v2837_v4 = vadd.f32 %v2836_v35, %v2827_v29  ;;  %v3510_v35 = vld [vmem:[%s10778_s8 + $0x2d0] sm:$0xff] }
 0x56b   : > { %v2838_v0 = vadd.f32 %v2837_v4, %v2829_v28  ;;  %v3511_v28 = vld [vmem:[%s10778_s8 + $0x2d8] sm:$0xff]  ;;  %v3494_v4 = vld [vmem:[%s10778_s8 + $0x250] sm:$0xff] }
 0x56c   : > { %v2831_v10 = vpop.xlane.xlu0 %2830  ;;  %v2833_v48 = vpop.xlane.xlu1 %2832  ;;  %v7247_v29 = vpack.c.bf16 %v3511_v28, %v3510_v35 }
 0x56d   : > { %v2839_v33 = vadd.f32 %v2838_v0, %v2831_v10  ;;  %v3495_v0 = vld [vmem:[%s10778_s8 + $0x258] sm:$0xff] }
 0x56e   : > { %v7249_v10 = vpack.c.bf16 %v3495_v0, %v3494_v4  ;;  %7248 = vmatprep.subr.bf16.mxu0 %v7247_v29 }
 0x56f   : > { %v2840_v53 = vadd.f32 %v2839_v33, %v2833_v48  ;;  %v3512_v33 = vld [vmem:[%s10778_s8 + $0x2e0] sm:$0xff]  ;;  %v3513_v48 = vld [vmem:[%s10778_s8 + $0x2e8] sm:$0xff] }
 0x570   : > { %7250 = vmatpush3.bf16.msra.mxu0 %v7249_v10 }
 0x571   : > { %v2841_v61 = vrot.slane %v2840_v53, 4 }
 0x573   : > { %v2842_v16 = vadd.f32 %v2841_v61, %v2840_v53  ;;  %v7251_v53 = vpack.c.bf16 %v3513_v48, %v3512_v33  ;;  %v3496_v61 = vld [vmem:[%s10778_s8 + $0x260] sm:$0xff] }
 0x575   : > { %v2843_v31 = vrot.slane %v2842_v16, 2  ;;  %7252 = vmatprep.subr.bf16.mxu0 %v7251_v53 }
 0x577   : > { %v2844_v46 = vadd.f32 %v2843_v31, %v2842_v16  ;;  %v3497_v16 = vld [vmem:[%s10778_s8 + $0x268] sm:$0xff] }
 0x578   : > { %v7253_v43 = vpack.c.bf16 %v3497_v16, %v3496_v61 }
 0x579   : > { %v2845_v42 = vrot.slane %v2844_v46, 1 }
 0x57a   : > { %7254 = vmatpush3.bf16.msra.mxu0 %v7253_v43 }
 0x57b   : > { %v2846_v2 = vadd.f32 %v2845_v42, %v2844_v46  ;;  %7256 = vmatprep.subr.bf16.mxu0 %v7255_v45 }
 0x57d   : > { %v2849_v59 = vsub.f32 %v2846_v2, %v2848_v26 }
 0x57e   : > { %7258 = vmatpush3.bf16.msra.mxu0 %v7257_v12 }
 0x57f   : > { %v2850_v9 = vmul.f32 0.00390625, %v2849_v59 }
 0x581   : > { %v2851_v44 = vmax.f32 %v2850_v9, 0.0 }
 0x583   : > { %v2852_v24 = vadd.f32 1e-05, %v2851_v44 }
 0x585   : > { %7526 = vrsqrt.f32 %v2852_v24 }
 0x58f   : > { %v7527_v31 = vpop.eup %7526 }
 0x590   : > { %v2854_v20 = vmul.f32 %v7527_v31, %v9129_v5  ;;  %v2855_v32 = vmul.f32 %v7527_v31, %v9126_v40  ;;  %v2856_v46 = vmul.f32 %v7527_v31, %v9139_v27  ;;  %v2857_v55 = vmul.f32 %v7527_v31, %v9136_v30 }
 0x591   : > { %v2858_v54 = vmul.f32 %v7527_v31, %v9149_v22  ;;  %v2859_v8 = vmul.f32 %v7527_v31, %v9146_v15  ;;  %v2860_v58 = vmul.f32 %v7527_v31, %v9159_v23 }
 0x592   : > { %v2869_v42 = vmul.f32 %v5632_v47, %v2854_v20  ;;  %v2870_v57 = vmul.f32 %v5632_v47, %v2855_v32  ;;  %v2871_v26 = vmul.f32 %v5632_v47, %v2856_v46  ;;  %v2872_v5 = vmul.f32 %v5632_v47, %v2857_v55 }
 0x593   : > { %v2873_v2 = vmul.f32 %v5632_v47, %v2858_v54  ;;  %v2874_v40 = vmul.f32 %v5632_v47, %v2859_v8  ;;  %v2875_v62 = vmul.f32 %v5632_v47, %v2860_v58 }
 0x594   : > { %v2884_v27 = vadd.f32 %v5633_v19, %v2869_v42  ;;  %v2885_v52 = vadd.f32 %v5633_v19, %v2870_v57  ;;  %v2886_v30 = vadd.f32 %v5633_v19, %v2871_v26  ;;  %v2887_v25 = vadd.f32 %v5633_v19, %v2872_v5 }
 0x595   : > { %v2888_v22 = vadd.f32 %v5633_v19, %v2873_v2  ;;  %v2889_v3 = vadd.f32 %v5633_v19, %v2874_v40  ;;  %v2890_v15 = vadd.f32 %v5633_v19, %v2875_v62 }
 0x596   : > { %v9475_v23 = vadd.f32 %v2884_v27, %v7928_v37  ;;  %v9478_v34 = vadd.f32 %v2885_v52, %v7959_v56  ;;  %v9481_v59 = vadd.f32 %v2886_v30, %v7990_v13  ;;  %v9484_v18 = vadd.f32 %v2887_v25, %v8035_v41  ;;  %v3548_v37 = vld [vmem:[%s10778_s8 + $0x400] sm:$0xff]  ;;  %v3549_v56 = vld [vmem:[%s10778_s8 + $0x408] sm:$0xff] }
 0x597   : > { %v9487_v9 = vadd.f32 %v2888_v22, %v8064_v60  ;;  %v9490_v1 = vadd.f32 %v2889_v3, %v8110_v21  ;;  %v9493_v11 = vadd.f32 %v2890_v15, %v8156_v49  ;;  %v2861_v41 = vmul.f32 %v7527_v31, %v9156_v38 }
 0x598   : > { %v9502_v13 = vmul.f32 0.70710677, %v9475_v23  ;;  %v9506_v60 = vmul.f32 0.70710677, %v9478_v34  ;;  %v9509_v21 = vmul.f32 0.70710677, %v9481_v59  ;;  %v9523_v44 = vpack.c.bf16 %v3549_v56, %v3548_v37 }
 0x599   : > { %v9512_v49 = vmul.f32 0.70710677, %v9484_v18  ;;  %v9515_v39 = vmul.f32 0.70710677, %v9487_v9  ;;  %v9518_v36 = vmul.f32 0.70710677, %v9490_v1  ;;  %v2876_v4 = vmul.f32 %v5632_v47, %v2861_v41 }
 0x59a   : > { %v9521_v51 = vmul.f32 0.70710677, %v9493_v11  ;;  %v2916_v38 = vand.u32 2147483647, %v9502_v13  ;;  %v2917_v7 = vand.u32 2147483647, %v9506_v60  ;;  %7292 = vmatprep.subr.bf16.mxu0 %v9523_v44 }
 0x59b   : > { %v2918_v24 = vand.u32 2147483647, %v9509_v21  ;;  %v2919_v35 = vand.u32 2147483647, %v9512_v49  ;;  %v2920_v28 = vand.u32 2147483647, %v9515_v39  ;;  %v2891_v12 = vadd.f32 %v5633_v19, %v2876_v4 }
 0x59c   : > { %v2921_v29 = vand.u32 2147483647, %v9518_v36  ;;  %v2922_v0 = vand.u32 2147483647, %v9521_v51  ;;  %v2924_v10 = vmul.f32 0.5, %v2916_v38  ;;  %v2925_v33 = vmul.f32 0.5, %v2917_v7 }
 0x59d   : > { %v2926_v48 = vmul.f32 0.5, %v2918_v24  ;;  %v2927_v53 = vmul.f32 0.5, %v2919_v35  ;;  %v2928_v61 = vmul.f32 0.5, %v2920_v28  ;;  %v9534_v20 = vadd.f32 %v2891_v12, %v8183_v6 }
 0x59e   : > { %v2929_v16 = vmul.f32 0.5, %v2921_v29  ;;  %v2930_v43 = vmul.f32 0.5, %v2922_v0  ;;  %v2932_v17 = vadd.f32 1.0, %v2924_v10  ;;  %v2933_v14 = vadd.f32 1.0, %v2925_v33 }
 0x59f   : > { %v2934_v45 = vadd.f32 1.0, %v2926_v48  ;;  %v2935_v63 = vadd.f32 1.0, %v2927_v53  ;;  %v2936_v50 = vadd.f32 1.0, %v2928_v61  ;;  %v2956_v32 = vsub.f32 0.0, %v2916_v38 }
 0x5a0   : > { %7528 = vrcp.f32 %v2932_v17  ;;  %v2937_v31 = vadd.f32 1.0, %v2929_v16  ;;  %v2938_v47 = vadd.f32 1.0, %v2930_v43  ;;  %v2957_v46 = vsub.f32 0.0, %v2917_v7 }
 0x5a1   : > { %7530 = vrcp.f32 %v2933_v14  ;;  %v2958_v55 = vsub.f32 0.0, %v2918_v24  ;;  %v2959_v54 = vsub.f32 0.0, %v2919_v35  ;;  %v2960_v8 = vsub.f32 0.0, %v2920_v28 }
 0x5a2   : > { %7532 = vrcp.f32 %v2934_v45  ;;  %v9537_v58 = vmul.f32 0.70710677, %v9534_v20  ;;  %v2961_v19 = vsub.f32 0.0, %v2921_v29  ;;  %v2964_v42 = vmul.f32 %v2956_v32, %v2916_v38 }
 0x5a3   : > { %7534 = vrcp.f32 %v2935_v63  ;;  %v2962_v26 = vsub.f32 0.0, %v2922_v0  ;;  %v2965_v2 = vmul.f32 %v2957_v46, %v2917_v7  ;;  %v2966_v40 = vmul.f32 %v2958_v55, %v2918_v24 }
 0x5a4   : > { %7536 = vrcp.f32 %v2936_v50  ;;  %v9542_v5 = vand.u32 2147483647, %v9537_v58  ;;  %v2967_v52 = vmul.f32 %v2959_v54, %v2919_v35  ;;  %v2968_v30 = vmul.f32 %v2960_v8, %v2920_v28 }
 0x5a5   : > { %7538 = vrcp.f32 %v2937_v31  ;;  %v2969_v15 = vmul.f32 %v2961_v19, %v2921_v29  ;;  %v9553_v37 = vadd.f32 -1.2655122, %v2964_v42  ;;  %v2970_v7 = vmul.f32 %v2962_v26, %v2922_v0 }
 0x5a6   : > { %7540 = vrcp.f32 %v2938_v47  ;;  %v2931_v22 = vmul.f32 0.5, %v9542_v5  ;;  %v9561_v10 = vadd.f32 -1.2655122, %v2965_v2  ;;  %v9571_v63 = vadd.f32 -1.2655122, %v2966_v40 }
 0x5a7   : > { %v9576_v54 = vadd.f32 -1.2655122, %v2967_v52  ;;  %vm3148_vm8 = vcmp.ge.f32.partialorder %v9502_v13, 0.0  ;;  %vm3149_vm9 = vcmp.ge.f32.partialorder %v9506_v60, 0.0  ;;  %vm3150_vm10 = vcmp.ge.f32.partialorder %v9509_v21, 0.0 }
 0x5a8   : > { %v2939_v35 = vadd.f32 1.0, %v2931_v22  ;;  %vm3151_vm11 = vcmp.ge.f32.partialorder %v9512_v49, 0.0  ;;  %vm3152_vm12 = vcmp.ge.f32.partialorder %v9515_v39, 0.0  ;;  %vm3153_vm13 = vcmp.ge.f32.partialorder %v9518_v36, 0.0 }
 0x5a9   : > { %vm3154_vm14 = vcmp.ge.f32.partialorder %v9521_v51, 0.0  ;;  %vm3155_vm15 = vcmp.ge.f32.partialorder %v9537_v58, 0.0  ;;  %v3524_v58 = vld [vmem:[%s10778_s8 + $0x340] sm:$0xff] }
 0x5aa   : > { %v9539_v57 = vpop.eup %7528  ;;  %7542 = vrcp.f32 %v2939_v35 }
 0x5ab   : > { %v9544_v6 = vpop.eup %7530  ;;  %v2980_v62 = vmul.f32 0.17087276, %v9539_v57 }
 0x5ac   : > { %v9547_v27 = vpop.eup %7532  ;;  %v2981_v25 = vmul.f32 0.17087276, %v9544_v6 }
 0x5ad   : > { %v9551_v3 = vpop.eup %7534  ;;  %v2982_v56 = vmul.f32 0.17087276, %v9547_v27  ;;  %v2988_v41 = vadd.f32 -0.82215226, %v2980_v62 }
 0x5ae   : > { %v9556_v38 = vpop.eup %7536  ;;  %v2983_v24 = vmul.f32 0.17087276, %v9551_v3  ;;  %v2989_v4 = vadd.f32 -0.82215226, %v2981_v25  ;;  %v9582_v25 = vadd.f32 -1.2655122, %v2968_v30 }
 0x5af   : > { %v9559_v28 = vpop.eup %7538  ;;  %v2984_v33 = vmul.f32 0.17087276, %v9556_v38  ;;  %v2990_v48 = vadd.f32 -0.82215226, %v2982_v56  ;;  %v2996_v29 = vmul.f32 %v9539_v57, %v2988_v41 }
 0x5b0   : > { %v9565_v53 = vpop.eup %7540  ;;  %v2985_v61 = vmul.f32 0.17087276, %v9559_v28  ;;  %v2991_v16 = vadd.f32 -0.82215226, %v2983_v24  ;;  %v2997_v0 = vmul.f32 %v9544_v6, %v2989_v4 }
 0x5b1   : > { %v2986_v43 = vmul.f32 0.17087276, %v9565_v53  ;;  %v2992_v17 = vadd.f32 -0.82215226, %v2984_v33  ;;  %v2998_v14 = vmul.f32 %v9547_v27, %v2990_v48  ;;  %v3004_v45 = vadd.f32 1.4885159, %v2996_v29 }
 0x5b2   : > { %v2993_v50 = vadd.f32 -0.82215226, %v2985_v61  ;;  %v2999_v12 = vmul.f32 %v9551_v3, %v2991_v16  ;;  %v3005_v31 = vadd.f32 1.4885159, %v2997_v0  ;;  %v9587_v33 = vadd.f32 -1.2655122, %v2969_v15 }
 0x5b3   : > { %v2994_v47 = vadd.f32 -0.82215226, %v2986_v43  ;;  %v3000_v32 = vmul.f32 %v9556_v38, %v2992_v17  ;;  %v3006_v46 = vadd.f32 1.4885159, %v2998_v14  ;;  %v3012_v55 = vmul.f32 %v9539_v57, %v3004_v45 }
 0x5b4   : > { %v3001_v8 = vmul.f32 %v9559_v28, %v2993_v50  ;;  %v3007_v19 = vadd.f32 1.4885159, %v2999_v12  ;;  %v3013_v42 = vmul.f32 %v9544_v6, %v3005_v31  ;;  %v9593_v17 = vpop.eup %7542  ;;  %v9595_v14 = vadd.f32 -1.2655122, %v2970_v7 }
 0x5b5   : > { %v3002_v26 = vmul.f32 %v9565_v53, %v2994_v47  ;;  %v3008_v2 = vadd.f32 1.4885159, %v3000_v32  ;;  %v3014_v40 = vmul.f32 %v9547_v27, %v3006_v46  ;;  %v3020_v62 = vadd.f32 -1.135204, %v3012_v55 }
 0x5b6   : > { %v3009_v22 = vadd.f32 1.4885159, %v3001_v8  ;;  %v3015_v56 = vmul.f32 %v9551_v3, %v3007_v19  ;;  %v3021_v41 = vadd.f32 -1.135204, %v3013_v42  ;;  %v2987_v19 = vmul.f32 0.17087276, %v9593_v17 }
 0x5b7   : > { %v3010_v24 = vadd.f32 1.4885159, %v3002_v26  ;;  %v3016_v52 = vmul.f32 %v9556_v38, %v3008_v2  ;;  %v3022_v4 = vadd.f32 -1.135204, %v3014_v40  ;;  %v3028_v35 = vmul.f32 %v9539_v57, %v3020_v62 }
 0x5b8   : > { %v3017_v48 = vmul.f32 %v9559_v28, %v3009_v22  ;;  %v3023_v29 = vadd.f32 -1.135204, %v3015_v56  ;;  %v3029_v61 = vmul.f32 %v9544_v6, %v3021_v41  ;;  %v2995_v56 = vadd.f32 -0.82215226, %v2987_v19 }
 0x5b9   : > { %v3018_v30 = vmul.f32 %v9565_v53, %v3010_v24  ;;  %v3024_v16 = vadd.f32 -1.135204, %v3016_v52  ;;  %v3030_v0 = vmul.f32 %v9547_v27, %v3022_v4  ;;  %v3036_v43 = vadd.f32 0.27886808, %v3028_v35 }
 0x5ba   : > { %v3025_v45 = vadd.f32 -1.135204, %v3017_v48  ;;  %v3031_v50 = vmul.f32 %v9551_v3, %v3023_v29  ;;  %v3037_v15 = vadd.f32 0.27886808, %v3029_v61  ;;  %v3003_v61 = vmul.f32 %v9593_v17, %v2995_v56 }
 0x5bb   : > { %v3026_v12 = vadd.f32 -1.135204, %v3018_v30  ;;  %v3032_v31 = vmul.f32 %v9556_v38, %v3024_v16  ;;  %v3038_v47 = vadd.f32 0.27886808, %v3030_v0  ;;  %v3044_v32 = vmul.f32 %v9539_v57, %v3036_v43 }
 0x5bc   : > { %v3033_v46 = vmul.f32 %v9559_v28, %v3025_v45  ;;  %v3039_v55 = vadd.f32 0.27886808, %v3031_v50  ;;  %v3045_v8 = vmul.f32 %v9544_v6, %v3037_v15 }
 0x5bd   : > { %v3034_v7 = vmul.f32 %v9565_v53, %v3026_v12  ;;  %v3040_v42 = vadd.f32 0.27886808, %v3032_v31  ;;  %v3046_v26 = vmul.f32 %v9547_v27, %v3038_v47  ;;  %v3052_v2 = vadd.f32 -0.18628806, %v3044_v32 }
 0x5be   : > { %v3041_v40 = vadd.f32 0.27886808, %v3033_v46  ;;  %v3047_v62 = vmul.f32 %v9551_v3, %v3039_v55  ;;  %v3053_v22 = vadd.f32 -0.18628806, %v3045_v8  ;;  %v3011_v12 = vadd.f32 1.4885159, %v3003_v61 }
 0x5bf   : > { %v3042_v41 = vadd.f32 0.27886808, %v3034_v7  ;;  %v3048_v24 = vmul.f32 %v9556_v38, %v3040_v42  ;;  %v3054_v52 = vadd.f32 -0.18628806, %v3046_v26  ;;  %v3060_v4 = vmul.f32 %v9539_v57, %v3052_v2 }
 0x5c0   : > { %v3049_v35 = vmul.f32 %v9559_v28, %v3041_v40  ;;  %v3055_v48 = vadd.f32 -0.18628806, %v3047_v62  ;;  %v3061_v29 = vmul.f32 %v9544_v6, %v3053_v22  ;;  %v3019_v7 = vmul.f32 %v9593_v17, %v3011_v12 }
 0x5c1   : > { %v3050_v30 = vmul.f32 %v9565_v53, %v3042_v41  ;;  %v3056_v16 = vadd.f32 -0.18628806, %v3048_v24  ;;  %v3062_v0 = vmul.f32 %v9547_v27, %v3054_v52  ;;  %v3068_v43 = vadd.f32 0.09678418, %v3060_v4 }
 0x5c2   : > { %v3057_v45 = vadd.f32 -0.18628806, %v3049_v35  ;;  %v3063_v50 = vmul.f32 %v9551_v3, %v3055_v48  ;;  %v3069_v15 = vadd.f32 0.09678418, %v3061_v29  ;;  %v3027_v41 = vadd.f32 -1.135204, %v3019_v7 }
 0x5c3   : > { %v3058_v31 = vadd.f32 -0.18628806, %v3050_v30  ;;  %v3064_v47 = vmul.f32 %v9556_v38, %v3056_v16  ;;  %v3070_v32 = vadd.f32 0.09678418, %v3062_v0  ;;  %v3076_v46 = vmul.f32 %v9539_v57, %v3068_v43 }
 0x5c4   : > { %v3065_v55 = vmul.f32 %v9559_v28, %v3057_v45  ;;  %v3071_v8 = vadd.f32 0.09678418, %v3063_v50  ;;  %v3077_v19 = vmul.f32 %v9544_v6, %v3069_v15  ;;  %v3035_v30 = vmul.f32 %v9593_v17, %v3027_v41 }
 0x5c5   : > { %v3066_v42 = vmul.f32 %v9565_v53, %v3058_v31  ;;  %v3072_v26 = vadd.f32 0.09678418, %v3064_v47  ;;  %v3078_v2 = vmul.f32 %v9547_v27, %v3070_v32  ;;  %v3084_v40 = vadd.f32 0.37409195, %v3076_v46 }
 0x5c6   : > { %v3073_v62 = vadd.f32 0.09678418, %v3065_v55  ;;  %v3079_v22 = vmul.f32 %v9551_v3, %v3071_v8  ;;  %v3085_v56 = vadd.f32 0.37409195, %v3077_v19  ;;  %v3043_v31 = vadd.f32 0.27886808, %v3035_v30 }
 0x5c7   : > { %v3074_v24 = vadd.f32 0.09678418, %v3066_v42  ;;  %v3080_v52 = vmul.f32 %v9556_v38, %v3072_v26  ;;  %v3086_v4 = vadd.f32 0.37409195, %v3078_v2  ;;  %v3092_v35 = vmul.f32 %v9539_v57, %v3084_v40 }
 0x5c8   : > { %v3081_v48 = vmul.f32 %v9559_v28, %v3073_v62  ;;  %v3087_v29 = vadd.f32 0.37409195, %v3079_v22  ;;  %v3093_v61 = vmul.f32 %v9544_v6, %v3085_v56  ;;  %v3051_v42 = vmul.f32 %v9593_v17, %v3043_v31 }
 0x5c9   : > { %v3082_v16 = vmul.f32 %v9565_v53, %v3074_v24  ;;  %v3088_v0 = vadd.f32 0.37409195, %v3080_v52  ;;  %v3094_v43 = vmul.f32 %v9547_v27, %v3086_v4  ;;  %v3100_v45 = vadd.f32 1.0000237, %v3092_v35 }
 0x5ca   : > { %v3089_v50 = vadd.f32 0.37409195, %v3081_v48  ;;  %v3095_v15 = vmul.f32 %v9551_v3, %v3087_v29  ;;  %v3101_v12 = vadd.f32 1.0000237, %v3093_v61  ;;  %v3059_v24 = vadd.f32 -0.18628806, %v3051_v42 }
 0x5cb   : > { %v3090_v47 = vadd.f32 0.37409195, %v3082_v16  ;;  %v3096_v32 = vmul.f32 %v9556_v38, %v3088_v0  ;;  %v3102_v46 = vadd.f32 1.0000237, %v3094_v43  ;;  %v3108_v55 = vmul.f32 %v9539_v57, %v3100_v45 }
 0x5cc   : > { %v3097_v8 = vmul.f32 %v9559_v28, %v3089_v50  ;;  %v3103_v19 = vadd.f32 1.0000237, %v3095_v15  ;;  %v3109_v7 = vmul.f32 %v9544_v6, %v3101_v12  ;;  %v3067_v16 = vmul.f32 %v9593_v17, %v3059_v24 }
 0x5cd   : > { %v3098_v26 = vmul.f32 %v9565_v53, %v3090_v47  ;;  %v3104_v2 = vadd.f32 1.0000237, %v3096_v32  ;;  %v3110_v40 = vmul.f32 %v9547_v27, %v3102_v46  ;;  %v3116_v62 = vadd.f32 %v9553_v37, %v3108_v55 }
 0x5ce   : > { %v3105_v22 = vadd.f32 1.0000237, %v3097_v8  ;;  %v3111_v56 = vmul.f32 %v9551_v3, %v3103_v19  ;;  %v3117_v41 = vadd.f32 %v9561_v10, %v3109_v7  ;;  %v3075_v50 = vadd.f32 0.09678418, %v3067_v16 }
 0x5cf   : > { %v3106_v52 = vadd.f32 1.0000237, %v3098_v26  ;;  %v3112_v4 = vmul.f32 %v9556_v38, %v3104_v2  ;;  %v3118_v35 = vadd.f32 %v9571_v63, %v3110_v40  ;;  %v3124_v48 = vmul.f32 1.442695, %v3116_v62 }
 0x5d0   : > { %v3113_v29 = vmul.f32 %v9559_v28, %v3105_v22  ;;  %v3119_v61 = vadd.f32 %v9576_v54, %v3111_v56  ;;  %v3126_v30 = vmul.f32 1.442695, %v3117_v41  ;;  %v3083_v12 = vmul.f32 %v9593_v17, %v3075_v50 }
 0x5d1   : > { %v3114_v37 = vmul.f32 %v9565_v53, %v3106_v52  ;;  %v3120_v0 = vadd.f32 %v9582_v25, %v3112_v4  ;;  %7544 = vpow2.f32 %v3124_v48  ;;  %v3128_v10 = vmul.f32 1.442695, %v3118_v35 }
 0x5d2   : > { %v3121_v43 = vadd.f32 %v9587_v33, %v3113_v29  ;;  %7546 = vpow2.f32 %v3126_v30  ;;  %v3130_v45 = vmul.f32 1.442695, %v3119_v61  ;;  %v2963_v47 = vsub.f32 0.0, %v9542_v5 }
 0x5d3   : > { %v3122_v63 = vadd.f32 %v9595_v14, %v3114_v37  ;;  %7548 = vpow2.f32 %v3128_v10  ;;  %v3132_v15 = vmul.f32 1.442695, %v3120_v0  ;;  %v3091_v25 = vadd.f32 0.37409195, %v3083_v12 }
 0x5d4   : > { %7550 = vpow2.f32 %v3130_v45  ;;  %v3134_v54 = vmul.f32 1.442695, %v3121_v43  ;;  %v2900_v32 = vmul.f32 0.5, %v9475_v23  ;;  %v2901_v46 = vmul.f32 0.5, %v9478_v34 }
 0x5d5   : > { %7552 = vpow2.f32 %v3132_v15  ;;  %v3136_v31 = vmul.f32 1.442695, %v3122_v63  ;;  %v3099_v33 = vmul.f32 %v9593_v17, %v3091_v25  ;;  %v2971_v14 = vmul.f32 %v2963_v47, %v9542_v5 }
 0x5d6   : > { %7554 = vpow2.f32 %v3134_v54  ;;  %v2902_v55 = vmul.f32 0.5, %v9481_v59  ;;  %v2903_v8 = vmul.f32 0.5, %v9484_v18  ;;  %v2904_v19 = vmul.f32 0.5, %v9487_v9 }
 0x5d7   : > { %7556 = vpow2.f32 %v3136_v31  ;;  %v3107_v7 = vadd.f32 1.0000237, %v3099_v33  ;;  %v2905_v26 = vmul.f32 0.5, %v9490_v1  ;;  %v2906_v2 = vmul.f32 0.5, %v9493_v11 }
 0x5d8   : > { %v5641_v1 = vadd.f32 -1.2655122, %v2971_v14 }
 0x5d9   : > { %v3115_v59 = vmul.f32 %v9593_v17, %v3107_v7  ;;  %v3236_v7 = vld [vmem:[#allocation2 + $0x9] sm:$0xff] }
 0x5db   : > { %v7545_v42 = vpop.eup %7544  ;;  %v3123_v24 = vadd.f32 %v5641_v1, %v3115_v59  ;;  %v3536_v59 = vld [vmem:[%s10778_s8 + $0x3a0] sm:$0xff] }
 0x5dc   : > { %v7547_v23 = vpop.eup %7546  ;;  %v3140_v34 = vmul.f32 %v7545_v42, %v9539_v57 }
 0x5dd   : > { %v7549_v18 = vpop.eup %7548  ;;  %v3141_v9 = vmul.f32 %v7547_v23, %v9544_v6  ;;  %v3138_v51 = vmul.f32 1.442695, %v3123_v24  ;;  %v3518_v23 = vld [vmem:[%s10778_s8 + $0x310] sm:$0xff] }
 0x5de   : > { %v7551_v11 = vpop.eup %7550  ;;  %v3142_v5 = vmul.f32 %v7549_v18, %v9547_v27  ;;  %v3156_v57 = vsub.f32 1.0, %v3140_v34  ;;  %v5642_v40 = vadd.f32 -1.0, %v3140_v34  ;;  %v3519_v34 = vld [vmem:[%s10778_s8 + $0x318] sm:$0xff]  ;;  %v3537_v18 = vld [vmem:[%s10778_s8 + $0x3a8] sm:$0xff] }
 0x5df   : > { %v7553_v62 = vpop.eup %7552  ;;  %v3143_v22 = vmul.f32 %v7551_v11, %v9551_v3  ;;  %v3157_v56 = vsub.f32 1.0, %v3141_v9  ;;  %v5643_v41 = vadd.f32 -1.0, %v3141_v9  ;;  %7558 = vpow2.f32 %v3138_v51 }
 0x5e0   : > { %v7555_v52 = vpop.eup %7554  ;;  %v3144_v6 = vmul.f32 %v7553_v62, %v9556_v38  ;;  %v3158_v4 = vsub.f32 1.0, %v3142_v5  ;;  %v5644_v35 = vadd.f32 -1.0, %v3142_v5  ;;  %v3172_v48 = vsel %vm3148_vm8, %v3156_v57, %v5642_v40  ;;  %v3520_v5 = vld [vmem:[%s10778_s8 + $0x320] sm:$0xff]  ;;  %v3521_v57 = vld [vmem:[%s10778_s8 + $0x328] sm:$0xff] }
 0x5e1   : > { %v7557_v29 = vpop.eup %7556  ;;  %v3145_v27 = vmul.f32 %v7555_v52, %v9559_v28  ;;  %v3159_v61 = vsub.f32 1.0, %v3143_v22  ;;  %v5645_v30 = vadd.f32 -1.0, %v3143_v22  ;;  %v3173_v16 = vsel %vm3149_vm9, %v3157_v56, %v5643_v41  ;;  %v3538_v22 = vld [vmem:[%s10778_s8 + $0x3b0] sm:$0xff]  ;;  %v3539_v56 = vld [vmem:[%s10778_s8 + $0x3b8] sm:$0xff] }
 0x5e2   : > { %v3146_v3 = vmul.f32 %v7557_v29, %v9565_v53  ;;  %v3160_v37 = vsub.f32 1.0, %v3144_v6  ;;  %v5646_v0 = vadd.f32 -1.0, %v3144_v6  ;;  %v3174_v38 = vsel %vm3150_vm10, %v3158_v4, %v5644_v35  ;;  %v3522_v4 = vld [vmem:[%s10778_s8 + $0x330] sm:$0xff]  ;;  %v3523_v35 = vld [vmem:[%s10778_s8 + $0x338] sm:$0xff] }
 0x5e3   : > { %v3161_v10 = vsub.f32 1.0, %v3145_v27  ;;  %v5647_v43 = vadd.f32 -1.0, %v3145_v27  ;;  %v3175_v13 = vsel %vm3151_vm11, %v3159_v61, %v5645_v30  ;;  %v3180_v45 = vadd.f32 1.0, %v3172_v48  ;;  %v3541_v61 = vld [vmem:[%s10778_s8 + $0x3c8] sm:$0xff] }
 0x5e4   : > { %v3162_v50 = vsub.f32 1.0, %v3146_v3  ;;  %v5648_v28 = vadd.f32 -1.0, %v3146_v3  ;;  %v3176_v63 = vsel %vm3152_vm12, %v3160_v37, %v5646_v0  ;;  %v3181_v60 = vadd.f32 1.0, %v3173_v16  ;;  %v6203_v3 = vpop.f32.mrb[72].mxu0 }
 0x5e5   : > { %v3177_v53 = vsel %vm3153_vm13, %v3161_v10, %v5647_v43  ;;  %v3182_v15 = vadd.f32 1.0, %v3174_v38  ;;  %v3183_v54 = vadd.f32 1.0, %v3175_v13  ;;  %v3184_v12 = vadd.f32 1.0, %v3176_v63  ;;  %v6204_v10 = vpop.f32.mrb[73].mxu0  ;;  %v3525_v13 = vld [vmem:[%s10778_s8 + $0x348] sm:$0xff] }
 0x5e6   : > { %v3178_v21 = vsel %vm3154_vm14, %v3162_v50, %v5648_v28  ;;  %v3185_v31 = vadd.f32 1.0, %v3177_v53  ;;  %v9689_v47 = vmul.f32 %v3180_v45, %v2900_v32  ;;  %v9691_v49 = vmul.f32 %v3181_v60, %v2901_v46  ;;  %v3516_v46 = vld [vmem:[%s10778_s8 + $0x300] sm:$0xff]  ;;  %v3543_v28 = vld [vmem:[%s10778_s8 + $0x3d8] sm:$0xff] }
 0x5e7   : > { %v3186_v25 = vadd.f32 1.0, %v3178_v21  ;;  %v9693_v33 = vmul.f32 %v3182_v15, %v2902_v55  ;;  %v9695_v39 = vmul.f32 %v3183_v54, %v2903_v8  ;;  %v9697_v14 = vmul.f32 %v3184_v12, %v2904_v19  ;;  %v3517_v55 = vld [vmem:[%s10778_s8 + $0x308] sm:$0xff]  ;;  %v3534_v8 = vld [vmem:[%s10778_s8 + $0x390] sm:$0xff]  ;;  %v3535_v19 = vld [vmem:[%s10778_s8 + $0x398] sm:$0xff] }
 0x5e8   : > { %v9699_v36 = vmul.f32 %v3185_v31, %v2905_v26  ;;  %3196 = vst [vmem:[#allocation2 + $0x20] sm:$0xff] %v9689_v47  ;;  %3633 = vmatprep.mubr.f32.mxu0 %v9689_v47  ;;  %3197 = vst [vmem:[#allocation2 + $0x38] sm:$0xff] %v9691_v49  ;;  %v7261_v42 = vpack.c.bf16 %v3517_v55, %v3516_v46  ;;  %v7265_v1 = vpack.c.bf16 %v3519_v34, %v3518_v23  ;;  %v3526_v54 = vld [vmem:[%s10778_s8 + $0x350] sm:$0xff]  ;;  %v3527_v12 = vld [vmem:[%s10778_s8 + $0x358] sm:$0xff] }
 0x5e9   : > { %v9704_v32 = vmul.f32 %v3186_v25, %v2906_v2  ;;  %3198 = vst [vmem:[#allocation2 + $0x50] sm:$0xff] %v9693_v33  ;;  %3199 = vst [vmem:[#allocation2 + $0x68] sm:$0xff] %v9695_v39  ;;  %v7263_v2 = vpack.c.bf16 %v3535_v19, %v3534_v8  ;;  %v7267_v11 = vpack.c.bf16 %v3537_v18, %v3536_v59  ;;  %v7559_v40 = vpop.eup %7558  ;;  %v2907_v0 = vmul.f32 0.5, %v9534_v20  ;;  %v3542_v20 = vld [vmem:[%s10778_s8 + $0x3d0] sm:$0xff]  ;;  %v3544_v31 = vld [vmem:[%s10778_s8 + $0x3e0] sm:$0xff] }
 0x5ea   : > { %3200 = vst [vmem:[#allocation2 + $0x80] sm:$0xff] %v9697_v14  ;;  %3201 = vst [vmem:[#allocation2 + $0x98] sm:$0xff] %v9699_v36  ;;  %v3147_v24 = vmul.f32 %v7559_v40, %v9593_v17  ;;  %v7269_v52 = vpack.c.bf16 %v3521_v57, %v3520_v5  ;;  %v7271_v6 = vpack.c.bf16 %v3539_v56, %v3538_v22  ;;  %v3540_v17 = vld [vmem:[%s10778_s8 + $0x3c0] sm:$0xff]  ;;  %v3545_v25 = vld [vmem:[%s10778_s8 + $0x3e8] sm:$0xff] }
 0x5eb   : > { %3202 = vst [vmem:[#allocation2 + $0xb0] sm:$0xff] %v9704_v32  ;;  %v7273_v37 = vpack.c.bf16 %v3523_v35, %v3522_v4  ;;  %v7275_v43 = vpack.c.bf16 %v3541_v61, %v3540_v17  ;;  %v9788_v45 = vadd.f32 %v6204_v10, %v6203_v3  ;;  %v7277_v53 = vpack.c.bf16 %v3525_v13, %v3524_v58  ;;  %v3528_v8 = vld [vmem:[%s10778_s8 + $0x360] sm:$0xff]  ;;  %v3529_v19 = vld [vmem:[%s10778_s8 + $0x368] sm:$0xff]  ;;  %v3530_v59 = vld [vmem:[%s10778_s8 + $0x370] sm:$0xff] }
 0x5ec   : > { %v3163_v48 = vsub.f32 1.0, %v3147_v24  ;;  %v5649_v29 = vadd.f32 -1.0, %v3147_v24  ;;  %v7279_v15 = vpack.c.bf16 %v3543_v28, %v3542_v20  ;;  %v7281_v46 = vpack.c.bf16 %v3527_v12, %v3526_v54  ;;  %v3531_v18 = vld [vmem:[%s10778_s8 + $0x378] sm:$0xff]  ;;  %v3550_v5 = vld [vmem:[%s10778_s8 + $0x410] sm:$0xff]  ;;  %v3553_v24 = vld [vmem:[%s10778_s8 + $0x428] sm:$0xff] }
 0x5ed   : > { %v7283_v55 = vpack.c.bf16 %v3545_v25, %v3544_v31  ;;  %v7285_v23 = vpack.c.bf16 %v3529_v19, %v3528_v8  ;;  %v3551_v57 = vld [vmem:[%s10778_s8 + $0x418] sm:$0xff]  ;;  %v7289_v40 = vpack.c.bf16 %v3531_v18, %v3530_v59  ;;  %v3560_v35 = vld [vmem:[%s10778_s8 + $0x460] sm:$0xff] }
 0x5ee   : > { %v3179_v16 = vsel %vm3155_vm15, %v3163_v48, %v5649_v29  ;;  %v7295_v56 = vpack.c.bf16 %v3551_v57, %v3550_v5  ;;  %v3559_v4 = vld [vmem:[%s10778_s8 + $0x458] sm:$0xff]  ;;  %v3561_v48 = vld [vmem:[%s10778_s8 + $0x468] sm:$0xff]  ;;  %v3562_v29 = vld [vmem:[%s10778_s8 + $0x470] sm:$0xff] }
 0x5ef   : > { %v3252_v26 = vld [vmem:[#allocation2 + $0x1f] sm:$0xff]  ;;  %v9736_v9 = vld [vmem:[#allocation2 + $0x37] sm:$0xff]  ;;  %v3187_v38 = vadd.f32 1.0, %v3179_v16 }
 0x5f0   : > { %3733 = vmatprep.mubr.f32.mxu1 %v3252_v26  ;;  %3634 = vmatmul.mubr.f32.gmra.mrb[74].mxu0 %v3252_v26  ;;  %v9746_v62 = vld [vmem:[#allocation2 + $0x21] sm:$0xff]  ;;  %v9756_v41 = vld [vmem:[#allocation2 + $0x4f] sm:$0xff]  ;;  %v9767_v27 = vld [vmem:[#allocation2 + $0x39] sm:$0xff] }
 0x5f1   : > { %3734 = vmatmul.mubr.f32.vlgmr.msra.gmra.mrb[72].mxu1 %v3236_v7  ;;  %3638 = vmatprep.mubr.f32.mxu0 %v9691_v49  ;;  %v9778_v30 = vld [vmem:[#allocation2 + $0x67] sm:$0xff]  ;;  %v9791_v50 = vld [vmem:[#allocation2 + $0x51] sm:$0xff]  ;;  %v9799_v63 = vmul.f32 %v3187_v38, %v2907_v0  ;;  %v9803_v60 = vld [vmem:[#allocation2 + $0x7f] sm:$0xff] }
 0x5f2   : > { %3738 = vmatprep.mubr.f32.mxu1 %v9736_v9  ;;  %7262 = vmatpush3.bf16.msra.mxu1 %v7261_v42  ;;  %v9814_v21 = vld [vmem:[#allocation2 + $0x69] sm:$0xff]  ;;  %v9824_v51 = vld [vmem:[#allocation2 + $0x97] sm:$0xff]  ;;  %v9834_v7 = vld [vmem:[#allocation2 + $0x81] sm:$0xff] }
 0x5f3   : > { %7264 = vmatprep.subr.bf16.mxu1 %v7263_v2  ;;  %3203 = vst [vmem:[#allocation2 + $0xc8] sm:$0xff] %v9799_v63  ;;  %v3546_v42 = vld [vmem:[%s10778_s8 + $0x3f0] sm:$0xff]  ;;  %v3547_v26 = vld [vmem:[%s10778_s8 + $0x3f8] sm:$0xff] }
 0x5f4   : > { %3639 = vmatmul.mubr.f32.gmra.mrb[76].mxu0 %v9736_v9  ;;  %v9844_v2 = vld [vmem:[#allocation2 + $0xaf] sm:$0xff]  ;;  %v7287_v34 = vpack.c.bf16 %v3547_v26, %v3546_v42  ;;  %v3563_v17 = vld [vmem:[%s10778_s8 + $0x478] sm:$0xff] }
 0x5f5   : > { %3739 = vmatmul.mubr.f32.gmra.mrb[74].mxu1 %v9746_v62  ;;  %3643 = vmatprep.mubr.f32.mxu0 %v9693_v33  ;;  %v9867_v22 = vld [vmem:[#allocation2 + $0xb1] sm:$0xff]  ;;  %v7319_v61 = vpack.c.bf16 %v3563_v17, %v3562_v29  ;;  %v3307_v16 = vld [vmem:[#allocation2 + $0xdf] sm:$0xff] }
 0x5f6   : > { %3743 = vmatprep.mubr.f32.mxu1 %v9756_v41  ;;  %7266 = vmatpush3.bf16.msra.mxu1 %v7265_v1  ;;  %v9854_v1 = vld [vmem:[#allocation2 + $0x99] sm:$0xff] }
 0x5f7   : > { %7268 = vmatprep.subr.bf16.mxu1 %v7267_v11 }
 0x5f8   : > { %3644 = vmatmul.mubr.f32.gmra.mrb[78].mxu0 %v9756_v41 }
 0x5f9   : > { %3744 = vmatmul.mubr.f32.gmra.mrb[76].mxu1 %v9767_v27  ;;  %3648 = vmatprep.mubr.f32.mxu0 %v9695_v39 }
 0x5fa   : > { %3748 = vmatprep.mubr.f32.mxu1 %v9778_v30  ;;  %7270 = vmatpush3.bf16.msra.mxu1 %v7269_v52  ;;  %v9857_v11 = vld [vmem:[#allocation2 + $0xc7] sm:$0xff]  ;;  %v3554_v52 = vld [vmem:[%s10778_s8 + $0x430] sm:$0xff] }
 0x5fb   : > { %7272 = vmatprep.subr.bf16.mxu1 %v7271_v6  ;;  %v3555_v6 = vld [vmem:[%s10778_s8 + $0x438] sm:$0xff] }
 0x5fc   : > { %3649 = vmatmul.mubr.f32.gmra.mrb[80].mxu0 %v9778_v30 }
 0x5fd   : > { %3749 = vmatmul.mubr.f32.gmra.mrb[78].mxu1 %v9791_v50  ;;  %3653 = vmatprep.mubr.f32.mxu0 %v9697_v14 }
 0x5fe   : > { %3753 = vmatprep.mubr.f32.mxu1 %v9803_v60  ;;  %7274 = vmatpush3.bf16.msra.mxu1 %v7273_v37 }
 0x5ff   : > { %7276 = vmatprep.subr.bf16.mxu1 %v7275_v43 }
 0x600   : > { %3654 = vmatmul.mubr.f32.gmra.mrb[82].mxu0 %v9803_v60 }
 0x601   : > { %3754 = vmatmul.mubr.f32.gmra.mrb[80].mxu1 %v9814_v21  ;;  %3658 = vmatprep.mubr.f32.mxu0 %v9699_v36 }
 0x602   : > { %3758 = vmatprep.mubr.f32.mxu1 %v9824_v51  ;;  %7278 = vmatpush3.bf16.msra.mxu1 %v7277_v53 }
 0x603   : > { %7280 = vmatprep.subr.bf16.mxu1 %v7279_v15 }
 0x604   : > { %3659 = vmatmul.mubr.f32.gmra.mrb[84].mxu0 %v9824_v51 }
 0x605   : > { %3759 = vmatmul.mubr.f32.gmra.mrb[82].mxu1 %v9834_v7  ;;  %3663 = vmatprep.mubr.f32.mxu0 %v9704_v32 }
 0x606   : > { %3763 = vmatprep.mubr.f32.mxu1 %v9844_v2  ;;  %7282 = vmatpush3.bf16.msra.mxu1 %v7281_v46 }
 0x607   : > { %7284 = vmatprep.subr.bf16.mxu1 %v7283_v55 }
 0x608   : > { %3664 = vmatmul.mubr.f32.gmra.mrb[86].mxu0 %v9844_v2 }
 0x609   : > { %3764 = vmatmul.mubr.f32.gmra.mrb[84].mxu1 %v9854_v1  ;;  %3838 = vmatprep.mubr.f32.mxu0 %v9746_v62  ;;  %v3552_v62 = vld [vmem:[%s10778_s8 + $0x420] sm:$0xff] }
 0x60a   : > { %3768 = vmatprep.mubr.f32.mxu1 %v9857_v11  ;;  %7286 = vmatpush3.bf16.msra.mxu1 %v7285_v23 }
 0x60b   : > { %7288 = vmatprep.subr.bf16.mxu1 %v7287_v34 }
 0x60c   : > { %3839 = vmatmul.mubr.f32.vlgmr.msra.gmra.mrb[88].mxu0 %v9689_v47  ;;  %v7299_v47 = vpack.c.bf16 %v3553_v24, %v3552_v62 }
 0x60d   : > { %3769 = vmatmul.mubr.f32.gmra.mrb[86].mxu1 %v9867_v22  ;;  %3843 = vmatprep.mubr.f32.mxu0 %v9767_v27 }
 0x60e   : > { %7290 = vmatpush3.bf16.msra.mxu1 %v7289_v40  ;;  %3943 = vmatprep.mubr.f32.mxu1 %v9691_v49 }
 0x60f   : > { %7294 = vmatpush3.bf16.msra.mxu0 %v9523_v44  ;;  %v7303_v44 = vpack.c.bf16 %v3555_v6, %v3554_v52 }
 0x610   : > { %3844 = vmatmul.mubr.f32.gmra.mrb[90].mxu0 %v9691_v49  ;;  %7296 = vmatprep.subr.bf16.mxu0 %v7295_v56  ;;  %v3556_v49 = vld [vmem:[%s10778_s8 + $0x440] sm:$0xff] }
 0x611   : > { %3944 = vmatmul.mubr.f32.vlgmr.msra.gmra.mrb[88].mxu1 %v9736_v9  ;;  %3848 = vmatprep.mubr.f32.mxu0 %v9791_v50  ;;  %v3557_v9 = vld [vmem:[%s10778_s8 + $0x448] sm:$0xff] }
 0x612   : > { %3948 = vmatprep.mubr.f32.mxu1 %v9693_v33 }
 0x613   : > { %7298 = vmatpush3.bf16.msra.mxu0 %v7295_v56 }
 0x614   : > { %3849 = vmatmul.mubr.f32.gmra.mrb[92].mxu0 %v9693_v33  ;;  %7300 = vmatprep.subr.bf16.mxu0 %v7299_v47  ;;  %v7307_v33 = vpack.c.bf16 %v3557_v9, %v3556_v49 }
 0x615   : > { %3949 = vmatmul.mubr.f32.gmra.mrb[90].mxu1 %v9756_v41  ;;  %3853 = vmatprep.mubr.f32.mxu0 %v9814_v21  ;;  %v3558_v41 = vld [vmem:[%s10778_s8 + $0x450] sm:$0xff] }
 0x616   : > { %3953 = vmatprep.mubr.f32.mxu1 %v9695_v39 }
 0x617   : > { %7302 = vmatpush3.bf16.msra.mxu0 %v7299_v47 }
 0x618   : > { %3854 = vmatmul.mubr.f32.gmra.mrb[94].mxu0 %v9695_v39  ;;  %7304 = vmatprep.subr.bf16.mxu0 %v7303_v44  ;;  %v7311_v39 = vpack.c.bf16 %v3559_v4, %v3558_v41 }
 0x619   : > { %3954 = vmatmul.mubr.f32.gmra.mrb[92].mxu1 %v9778_v30  ;;  %3858 = vmatprep.mubr.f32.mxu0 %v9834_v7  ;;  %v7597_v30 = vld [vmem:[#allocation2 + $0x8] sm:$0xff] }
 0x61a   : > { %3958 = vmatprep.mubr.f32.mxu1 %v9697_v14 }
 0x61b   : > { %7306 = vmatpush3.bf16.msra.mxu0 %v7303_v44 }
 0x61c   : > { %3859 = vmatmul.mubr.f32.gmra.mrb[96].mxu0 %v9697_v14  ;;  %7308 = vmatprep.subr.bf16.mxu0 %v7307_v33  ;;  %v7315_v14 = vpack.c.bf16 %v3561_v48, %v3560_v35 }
 0x61d   : > { %3959 = vmatmul.mubr.f32.gmra.mrb[94].mxu1 %v9803_v60  ;;  %3863 = vmatprep.mubr.f32.mxu0 %v9854_v1 }
 0x61e   : > { %3963 = vmatprep.mubr.f32.mxu1 %v9699_v36 }
 0x61f   : > { %7310 = vmatpush3.bf16.msra.mxu0 %v7307_v33 }
 0x620   : > { %3864 = vmatmul.mubr.f32.gmra.mrb[98].mxu0 %v9699_v36  ;;  %7312 = vmatprep.subr.bf16.mxu0 %v7311_v39  ;;  %v3291_v36 = vld [vmem:[#allocation2 + $0xc9] sm:$0xff] }
 0x621   : > { %3964 = vmatmul.mubr.f32.gmra.mrb[96].mxu1 %v9824_v51  ;;  %3868 = vmatprep.mubr.f32.mxu0 %v9867_v22 }
 0x622   : > { %3968 = vmatprep.mubr.f32.mxu1 %v9704_v32 }
 0x623   : > { %7314 = vmatpush3.bf16.msra.mxu0 %v7311_v39 }
 0x624   : > { %3869 = vmatmul.mubr.f32.gmra.mrb[100].mxu0 %v9704_v32  ;;  %7316 = vmatprep.subr.bf16.mxu0 %v7315_v14  ;;  %v3339_v32 = vld [vmem:[#allocation2 + $0xe1] sm:$0xff] }
 0x625   : > { %3969 = vmatmul.mubr.f32.gmra.mrb[98].mxu1 %v9844_v2  ;;  %3873 = vmatprep.mubr.f32.mxu0 %v3291_v36 }
 0x626   : > { %3973 = vmatprep.mubr.f32.mxu1 %v9799_v63 }
 0x627   : > { %7318 = vmatpush3.bf16.msra.mxu0 %v7315_v14 }
 0x628   : > { %3874 = vmatmul.mubr.f32.gmra.mrb[102].mxu0 %v9799_v63  ;;  %7320 = vmatprep.subr.bf16.mxu0 %v7319_v61 }
 0x629   : > { %3974 = vmatmul.mubr.f32.gmra.mrb[100].mxu1 %v9857_v11  ;;  %6787 = vmatprep.mubr.f32.mxu0 %v9767_v27 }
 0x62a   : > { %3978 = vmatprep.mubr.f32.mxu1 %v7597_v30 }
 0x62b   : > { %7322 = vmatpush3.bf16.msra.mxu0 %v7319_v61 }
 0x62d   : > { %3979 = vmatmul.mubr.f32.gmra.mrb[102].mxu1 %v3307_v16 }
 0x62e   : > { %6788 = vmatmul.mubr.f32.vlgmr.msra.gmra.mrb[104].mxu0 %v9791_v50  ;;  %4937 = vmatprep.mubr.f32.mxu1 %v7597_v30 }
 0x62f   : > { %6790 = vmatprep.mubr.f32.mxu0 %v9814_v21 }
 0x632   : > { %6791 = vmatmul.mubr.f32.gmra.mrb[106].mxu0 %v9834_v7 }
 0x633   : > { %6793 = vmatprep.mubr.f32.mxu0 %v9854_v1 }
 0x636   : > { %6794 = vmatmul.mubr.f32.gmra.mrb[108].mxu0 %v9867_v22 }
 0x637   : > { %6796 = vmatprep.mubr.f32.mxu0 %v3291_v36 }
 0x63a   : > { %6797 = vmatmul.mubr.f32.gmra.mrb[110].mxu0 %v3339_v32 }
 0x6c3   : > { %v6206_v27 = vpop.f32.mrb[74].mxu0 }
 0x6c4   : > { %v6259_v3 = vpop.f32.mrb[72].mxu1  ;;  %v6207_v37 = vpop.f32.mrb[75].mxu0 }
 0x6c5   : > { %v6208_v0 = vadd.f32 %v6207_v37, %v6206_v27  ;;  %v6260_v38 = vpop.f32.mrb[73].mxu1 }
 0x6c6   : > { %v6261_v10 = vadd.f32 %v6260_v38, %v6259_v3 }
 0x6c7   : > { %v6209_v43 = vpop.f32.mrb[76].mxu0 }
 0x6c8   : > { %v3736_v58 = vadd.f32 %v6261_v10, %v9788_v45  ;;  %v6262_v13 = vpop.f32.mrb[74].mxu1  ;;  %v6210_v50 = vpop.f32.mrb[77].mxu0 }
 0x6c9   : > { %v6211_v20 = vadd.f32 %v6210_v50, %v6209_v43  ;;  %v6263_v28 = vpop.f32.mrb[75].mxu1 }
 0x6ca   : > { %v6264_v63 = vadd.f32 %v6263_v28, %v6262_v13 }
 0x6cb   : > { %v6212_v60 = vpop.f32.mrb[78].mxu0 }
 0x6cc   : > { %v3741_v53 = vadd.f32 %v6264_v63, %v6208_v0  ;;  %v6265_v15 = vpop.f32.mrb[76].mxu1  ;;  %v6213_v54 = vpop.f32.mrb[79].mxu0 }
 0x6cd   : > { %v6214_v12 = vadd.f32 %v6213_v54, %v6212_v60  ;;  %v6266_v21 = vpop.f32.mrb[77].mxu1 }
 0x6ce   : > { %v6267_v31 = vadd.f32 %v6266_v21, %v6265_v15 }
 0x6cf   : > { %v6215_v25 = vpop.f32.mrb[80].mxu0 }
 0x6d0   : > { %v3746_v51 = vadd.f32 %v6267_v31, %v6211_v20  ;;  %v6268_v46 = vpop.f32.mrb[78].mxu1  ;;  %v6216_v55 = vpop.f32.mrb[81].mxu0 }
 0x6d1   : > { %v6217_v8 = vadd.f32 %v6216_v55, %v6215_v25  ;;  %v6269_v19 = vpop.f32.mrb[79].mxu1 }
 0x6d2   : > { %v6270_v7 = vadd.f32 %v6269_v19, %v6268_v46 }
 0x6d3   : > { %v6218_v45 = vpop.f32.mrb[82].mxu0 }
 0x6d4   : > { %v3751_v42 = vadd.f32 %v6270_v7, %v6214_v12  ;;  %v6271_v26 = vpop.f32.mrb[80].mxu1  ;;  %v6219_v2 = vpop.f32.mrb[83].mxu0 }
 0x6d5   : > { %v6220_v23 = vadd.f32 %v6219_v2, %v6218_v45  ;;  %v6272_v34 = vpop.f32.mrb[81].mxu1 }
 0x6d6   : > { %v6273_v59 = vadd.f32 %v6272_v34, %v6271_v26 }
 0x6d7   : > { %v6221_v18 = vpop.f32.mrb[84].mxu0 }
 0x6d8   : > { %v3756_v1 = vadd.f32 %v6273_v59, %v6217_v8  ;;  %v6274_v11 = vpop.f32.mrb[82].mxu1  ;;  %v6222_v5 = vpop.f32.mrb[85].mxu0 }
 0x6d9   : > { %v6223_v57 = vadd.f32 %v6222_v5, %v6221_v18  ;;  %v6275_v40 = vpop.f32.mrb[83].mxu1 }
 0x6da   : > { %v6276_v22 = vadd.f32 %v6275_v40, %v6274_v11 }
 0x6db   : > { %v6224_v56 = vpop.f32.mrb[86].mxu0 }
 0x6dc   : > { %v3761_v62 = vadd.f32 %v6276_v22, %v6220_v23  ;;  %v6277_v24 = vpop.f32.mrb[84].mxu1  ;;  %v6225_v47 = vpop.f32.mrb[87].mxu0 }
 0x6dd   : > { %v6226_v52 = vadd.f32 %v6225_v47, %v6224_v56  ;;  %v6278_v6 = vpop.f32.mrb[85].mxu1 }
 0x6de   : > { %v6279_v44 = vadd.f32 %v6278_v6, %v6277_v24 }
 0x6df   : > { %v6315_v49 = vpop.f32.mrb[88].mxu0 }
 0x6e0   : > { %v3766_v9 = vadd.f32 %v6279_v44, %v6223_v57  ;;  %v6280_v33 = vpop.f32.mrb[86].mxu1  ;;  %v6316_v41 = vpop.f32.mrb[89].mxu0 }
 0x6e1   : > { %v6281_v4 = vpop.f32.mrb[87].mxu1  ;;  %v6317_v39 = vadd.f32 %v6316_v41, %v6315_v49 }
 0x6e2   : > { %v6282_v35 = vadd.f32 %v6281_v4, %v6280_v33 }
 0x6e3   : > { %v3841_v48 = vadd.f32 %v6317_v39, %v3736_v58  ;;  %v6318_v14 = vpop.f32.mrb[90].mxu0 }
 0x6e4   : > { %v3771_v29 = vadd.f32 %v6282_v35, %v6226_v52  ;;  %v6371_v17 = vpop.f32.mrb[88].mxu1  ;;  %v6319_v36 = vpop.f32.mrb[91].mxu0 }
 0x6e5   : > { %v6320_v61 = vadd.f32 %v6319_v36, %v6318_v14  ;;  %v6372_v30 = vpop.f32.mrb[89].mxu1 }
 0x6e6   : > { %v6373_v16 = vadd.f32 %v6372_v30, %v6371_v17 }
 0x6e7   : > { %v3846_v32 = vadd.f32 %v6320_v61, %v3741_v53  ;;  %v6321_v27 = vpop.f32.mrb[92].mxu0 }
 0x6e8   : > { %v6374_v3 = vpop.f32.mrb[90].mxu1  ;;  %v6322_v37 = vpop.f32.mrb[93].mxu0  ;;  %v3946_v0 = vadd.f32 %v6373_v16, %v3841_v48 }
 0x6e9   : > { %v6323_v38 = vadd.f32 %v6322_v37, %v6321_v27  ;;  %v6375_v10 = vpop.f32.mrb[91].mxu1 }
 0x6ea   : > { %v6376_v43 = vadd.f32 %v6375_v10, %v6374_v3 }
 0x6eb   : > { %v3851_v13 = vadd.f32 %v6323_v38, %v3746_v51  ;;  %v6324_v50 = vpop.f32.mrb[94].mxu0 }
 0x6ec   : > { %v6377_v20 = vpop.f32.mrb[92].mxu1  ;;  %v6325_v28 = vpop.f32.mrb[95].mxu0  ;;  %v3951_v58 = vadd.f32 %v6376_v43, %v3846_v32 }
 0x6ed   : > { %v6326_v63 = vadd.f32 %v6325_v28, %v6324_v50  ;;  %v6378_v60 = vpop.f32.mrb[93].mxu1 }
 0x6ee   : > { %v6379_v15 = vadd.f32 %v6378_v60, %v6377_v20 }
 0x6ef   : > { %v3856_v54 = vadd.f32 %v6326_v63, %v3751_v42  ;;  %v6327_v12 = vpop.f32.mrb[96].mxu0 }
 0x6f0   : > { %v6380_v21 = vpop.f32.mrb[94].mxu1  ;;  %v6328_v31 = vpop.f32.mrb[97].mxu0  ;;  %v3956_v53 = vadd.f32 %v6379_v15, %v3851_v13 }
 0x6f1   : > { %v6329_v25 = vadd.f32 %v6328_v31, %v6327_v12  ;;  %v6381_v46 = vpop.f32.mrb[95].mxu1 }
 0x6f2   : > { %v6382_v55 = vadd.f32 %v6381_v46, %v6380_v21 }
 0x6f3   : > { %v3861_v8 = vadd.f32 %v6329_v25, %v3756_v1  ;;  %v6330_v19 = vpop.f32.mrb[98].mxu0 }
 0x6f4   : > { %v6383_v7 = vpop.f32.mrb[96].mxu1  ;;  %v6331_v45 = vpop.f32.mrb[99].mxu0  ;;  %v3961_v51 = vadd.f32 %v6382_v55, %v3856_v54 }
 0x6f5   : > { %v6332_v26 = vadd.f32 %v6331_v45, %v6330_v19  ;;  %v6384_v2 = vpop.f32.mrb[97].mxu1 }
 0x6f6   : > { %v6385_v23 = vadd.f32 %v6384_v2, %v6383_v7 }
 0x6f7   : > { %v3866_v34 = vadd.f32 %v6332_v26, %v3761_v62  ;;  %v6333_v59 = vpop.f32.mrb[100].mxu0 }
 0x6f8   : > { %v6386_v18 = vpop.f32.mrb[98].mxu1  ;;  %v6334_v11 = vpop.f32.mrb[101].mxu0  ;;  %v3966_v42 = vadd.f32 %v6385_v23, %v3861_v8 }
 0x6f9   : > { %v6335_v5 = vadd.f32 %v6334_v11, %v6333_v59  ;;  %v6387_v57 = vpop.f32.mrb[99].mxu1 }
 0x6fa   : > { %v6388_v40 = vadd.f32 %v6387_v57, %v6386_v18 }
 0x6fb   : > { %v3871_v22 = vadd.f32 %v6335_v5, %v3766_v9  ;;  %v6336_v56 = vpop.f32.mrb[102].mxu0 }
 0x6fc   : > { %v6389_v24 = vpop.f32.mrb[100].mxu1  ;;  %v6337_v47 = vpop.f32.mrb[103].mxu0  ;;  %v3971_v1 = vadd.f32 %v6388_v40, %v3866_v34 }
 0x6fd   : > { %v6338_v52 = vadd.f32 %v6337_v47, %v6336_v56  ;;  %v6390_v6 = vpop.f32.mrb[101].mxu1 }
 0x6fe   : > { %v6391_v44 = vadd.f32 %v6390_v6, %v6389_v24  ;;  %v4729_v6 = vld [vmem:[%s10781_s11] sm:$0xff] }
 0x6ff   : > { %v3876_v49 = vadd.f32 %v6338_v52, %v3771_v29  ;;  %v4746_v52 = vld [vmem:[%s10781_s11 + $0x88] sm:$0xff] }
 0x700   : > { %v6392_v33 = vpop.f32.mrb[102].mxu1  ;;  %v3976_v41 = vadd.f32 %v6391_v44, %v3871_v22 }
 0x701   : > { %v6789_v4 = vpop.f32.mrb[104].mxu0  ;;  %v6393_v62 = vpop.f32.mrb[103].mxu1 }
 0x702   : > { %v4056_v39 = vadd.f32 %v6789_v4, %v3951_v58  ;;  %v6394_v35 = vadd.f32 %v6393_v62, %v6392_v33  ;;  %v4050_v48 = vpop.f32.mrb[105].mxu0  ;;  %v4747_v33 = vld [vmem:[%s10781_s11 + $0x90] sm:$0xff] }
 0x703   : > { %v4051_v14 = vadd.f32 %v4050_v48, %v3946_v0  ;;  %v4731_v48 = vld [vmem:[%s10781_s11 + $0x10] sm:$0xff] }
 0x704   : > { %4091 = vadd.xlane.f32.xlu1 %v4056_v39  ;;  %v3981_v17 = vadd.f32 %v6394_v35, %v3876_v49  ;;  %v4730_v49 = vld [vmem:[%s10781_s11 + $0x8] sm:$0xff] }
 0x705   : > { %v6792_v36 = vpop.f32.mrb[106].mxu0  ;;  %4089 = vadd.xlane.f32.xlu0 %v4051_v14  ;;  %v7325_v4 = vpack.c.bf16 %v4730_v49, %v4729_v6  ;;  %v4778_v35 = vld [vmem:[%s10781_s11 + $0x188] sm:$0xff] }
 0x706   : > { %v4066_v9 = vadd.f32 %v6792_v36, %v3961_v51  ;;  %v4060_v61 = vpop.f32.mrb[107].mxu0  ;;  %v4761_v36 = vld [vmem:[%s10781_s11 + $0x100] sm:$0xff]  ;;  %v4770_v49 = vld [vmem:[%s10781_s11 + $0x148] sm:$0xff] }
 0x707   : > { %v4061_v30 = vadd.f32 %v4060_v61, %v3956_v53 }
 0x708   : > { %4095 = vadd.xlane.f32.xlu1 %v4066_v9 }
 0x709   : > { %v6795_v16 = vpop.f32.mrb[108].mxu0  ;;  %4093 = vadd.xlane.f32.xlu0 %v4061_v30 }
 0x70a   : > { %v4076_v32 = vadd.f32 %v6795_v16, %v3971_v1  ;;  %v4070_v29 = vpop.f32.mrb[109].mxu0  ;;  %v4745_v1 = vld [vmem:[%s10781_s11 + $0x80] sm:$0xff] }
 0x70b   : > { %v4071_v27 = vadd.f32 %v4070_v29, %v3966_v42  ;;  %v7323_v44 = vpack.c.bf16 %v4746_v52, %v4745_v1  ;;  %v4749_v16 = vld [vmem:[%s10781_s11 + $0xa0] sm:$0xff]  ;;  %v4779_v29 = vld [vmem:[%s10781_s11 + $0x190] sm:$0xff]  ;;  %v4756_v52 = vld [vmem:[%s10781_s11 + $0xd8] sm:$0xff] }
 0x70c   : > { %4099 = vadd.xlane.f32.xlu1 %v4076_v32  ;;  %v4755_v1 = vld [vmem:[%s10781_s11 + $0xd0] sm:$0xff] }
 0x70d   : > { %v6798_v3 = vpop.f32.mrb[110].mxu0  ;;  %4097 = vadd.xlane.f32.xlu0 %v4071_v27  ;;  %7324 = vmatprep.subr.bf16.mxu1 %v7323_v44  ;;  %v4769_v44 = vld [vmem:[%s10781_s11 + $0x140] sm:$0xff] }
 0x70e   : > { %v4086_v37 = vadd.f32 %v6798_v3, %v3981_v17  ;;  %v4080_v38 = vpop.f32.mrb[111].mxu0  ;;  %v4732_v17 = vld [vmem:[%s10781_s11 + $0x18] sm:$0xff]  ;;  %7326 = vmatpush3.bf16.msra.mxu1 %v7325_v4 }
 0x70f   : > { %v4081_v10 = vadd.f32 %v4080_v38, %v3976_v41  ;;  %v4748_v41 = vld [vmem:[%s10781_s11 + $0x98] sm:$0xff]  ;;  %v7329_v61 = vpack.c.bf16 %v4732_v17, %v4731_v48  ;;  %v4734_v38 = vld [vmem:[%s10781_s11 + $0x28] sm:$0xff]  ;;  %v7373_v48 = vpack.c.bf16 %v4770_v49, %v4769_v44 }
 0x710   : > { %4103 = vadd.xlane.f32.xlu1 %v4086_v37  ;;  %v7327_v62 = vpack.c.bf16 %v4748_v41, %v4747_v33  ;;  %v4780_v3 = vld [vmem:[%s10781_s11 + $0x198] sm:$0xff]  ;;  %v4787_v41 = vld [vmem:[%s10781_s11 + $0x1d0] sm:$0xff]  ;;  %v4758_v17 = vld [vmem:[%s10781_s11 + $0xe8] sm:$0xff] }
 0x711   : > { %4101 = vadd.xlane.f32.xlu0 %v4081_v10  ;;  %v4788_v4 = vld [vmem:[%s10781_s11 + $0x1d8] sm:$0xff] }
 0x712   : > { %7328 = vmatprep.subr.bf16.mxu1 %v7327_v62  ;;  %v7343_v62 = vpack.c.bf16 %v4756_v52, %v4755_v1 }
 0x713   : > { %7330 = vmatpush3.bf16.msra.mxu1 %v7329_v61  ;;  %v4772_v61 = vld [vmem:[%s10781_s11 + $0x158] sm:$0xff] }
 0x791   : > { %v4092_v0 = vpop.xlane.xlu1 %4091 }
 0x792   : > { %v4090_v43 = vpop.xlane.xlu0 %4089 }
 0x793   : > { %v4105_v13 = vadd.f32 %v4092_v0, %v4090_v43  ;;  %v4763_v0 = vld [vmem:[%s10781_s11 + $0x110] sm:$0xff]  ;;  %v4764_v43 = vld [vmem:[%s10781_s11 + $0x118] sm:$0xff] }
 0x795   : > { %v4096_v50 = vpop.xlane.xlu1 %4095 }
 0x796   : > { %v4094_v20 = vpop.xlane.xlu0 %4093 }
 0x797   : > { %v4106_v28 = vadd.f32 %v4105_v13, %v4094_v20  ;;  %v4751_v13 = vld [vmem:[%s10781_s11 + $0xb0] sm:$0xff]  ;;  %v4752_v20 = vld [vmem:[%s10781_s11 + $0xb8] sm:$0xff] }
 0x799   : > { %v4107_v58 = vadd.f32 %v4106_v28, %v4096_v50  ;;  %v4100_v63 = vpop.xlane.xlu1 %4099  ;;  %v7361_v50 = vpack.c.bf16 %v4764_v43, %v4763_v0  ;;  %v4781_v28 = vld [vmem:[%s10781_s11 + $0x1a0] sm:$0xff] }
 0x79a   : > { %v4098_v60 = vpop.xlane.xlu0 %4097  ;;  %v4773_v43 = vld [vmem:[%s10781_s11 + $0x160] sm:$0xff] }
 0x79b   : > { %v4108_v15 = vadd.f32 %v4107_v58, %v4098_v60  ;;  %v4782_v58 = vld [vmem:[%s10781_s11 + $0x1a8] sm:$0xff] }
 0x79c   : > { %v7363_v60 = vpack.c.bf16 %v4782_v58, %v4781_v28  ;;  %v4792_v28 = vld [vmem:[%s10781_s11 + $0x1f8] sm:$0xff] }
 0x79d   : > { %v4109_v54 = vadd.f32 %v4108_v15, %v4100_v63  ;;  %v4104_v31 = vpop.xlane.xlu1 %4103  ;;  %v4735_v15 = vld [vmem:[%s10781_s11 + $0x30] sm:$0xff] }
 0x79e   : > { %v4102_v12 = vpop.xlane.xlu0 %4101 }
 0x79f   : > { %v4110_v21 = vadd.f32 %v4109_v54, %v4102_v12  ;;  %v4765_v54 = vld [vmem:[%s10781_s11 + $0x120] sm:$0xff]  ;;  %v7335_v12 = vpack.c.bf16 %v4752_v20, %v4751_v13  ;;  %v4774_v13 = vld [vmem:[%s10781_s11 + $0x168] sm:$0xff]  ;;  %v4791_v20 = vld [vmem:[%s10781_s11 + $0x1f0] sm:$0xff] }
 0x7a1   : > { %v4111_v53 = vadd.f32 %v4110_v21, %v4104_v31  ;;  %v4736_v21 = vld [vmem:[%s10781_s11 + $0x38] sm:$0xff]  ;;  %v4766_v31 = vld [vmem:[%s10781_s11 + $0x128] sm:$0xff] }
 0x7a3   : > { %v4112_v25 = vrot.slane %v4111_v53, 4 }
 0x7a5   : > { %v4113_v46 = vadd.f32 %v4112_v25, %v4111_v53  ;;  %v4753_v53 = vld [vmem:[%s10781_s11 + $0xc0] sm:$0xff]  ;;  %v7365_v25 = vpack.c.bf16 %v4766_v31, %v4765_v54  ;;  %v4775_v31 = vld [vmem:[%s10781_s11 + $0x170] sm:$0xff] }
 0x7a6   : > { %v4809_v54 = vld [vmem:[%s10781_s11 + $0x280] sm:$0xff] }
 0x7a7   : > { %v4114_v55 = vrot.slane %v4113_v46, 2 }
 0x7a9   : > { %v4115_v8 = vadd.f32 %v4114_v55, %v4113_v46  ;;  %v4754_v46 = vld [vmem:[%s10781_s11 + $0xc8] sm:$0xff]  ;;  %v4783_v55 = vld [vmem:[%s10781_s11 + $0x1b0] sm:$0xff] }
 0x7ab   : > { %v4116_v19 = vrot.slane %v4115_v8, 1 }
 0x7ad   : > { %v4117_v7 = vadd.f32 %v4116_v19, %v4115_v8  ;;  %v4784_v8 = vld [vmem:[%s10781_s11 + $0x1b8] sm:$0xff] }
 0x7ae   : > { %v7367_v19 = vpack.c.bf16 %v4784_v8, %v4783_v55  ;;  %v4793_v55 = vld [vmem:[%s10781_s11 + $0x200] sm:$0xff]  ;;  %v4794_v8 = vld [vmem:[%s10781_s11 + $0x208] sm:$0xff] }
 0x7af   : > { %v9942_v45 = vmul.f32 0.001953125, %v4117_v7  ;;  %v4767_v7 = vld [vmem:[%s10781_s11 + $0x130] sm:$0xff] }
 0x7b1   : > { %v9945_v51 = vsub.f32 %v4056_v39, %v9942_v45  ;;  %v9948_v26 = vsub.f32 %v4051_v14, %v9942_v45  ;;  %v9955_v34 = vsub.f32 %v4066_v9, %v9942_v45  ;;  %v9958_v59 = vsub.f32 %v4061_v30, %v9942_v45  ;;  %v4777_v39 = vld [vmem:[%s10781_s11 + $0x180] sm:$0xff]  ;;  %v4762_v9 = vld [vmem:[%s10781_s11 + $0x108] sm:$0xff] }
 0x7b2   : > { %v9965_v42 = vsub.f32 %v4076_v32, %v9942_v45  ;;  %v9968_v5 = vsub.f32 %v4071_v27, %v9942_v45  ;;  %v9975_v22 = vsub.f32 %v4086_v37, %v9942_v45  ;;  %v9978_v56 = vsub.f32 %v4081_v10, %v9942_v45  ;;  %v4750_v32 = vld [vmem:[%s10781_s11 + $0xa8] sm:$0xff]  ;;  %v4733_v37 = vld [vmem:[%s10781_s11 + $0x20] sm:$0xff] }
 0x7b3   : > { %v4128_v2 = vmul.f32 %v9945_v51, %v9945_v51  ;;  %v4127_v23 = vmul.f32 %v9948_v26, %v9948_v26  ;;  %v4130_v18 = vmul.f32 %v9955_v34, %v9955_v34  ;;  %v4129_v11 = vmul.f32 %v9958_v59, %v9958_v59 }
 0x7b4   : > { %v4132_v57 = vmul.f32 %v9965_v42, %v9965_v42  ;;  %v4131_v40 = vmul.f32 %v9968_v5, %v9968_v5  ;;  %v4134_v24 = vmul.f32 %v9975_v22, %v9975_v22  ;;  %v4133_v47 = vmul.f32 %v9978_v56, %v9978_v56 }
 0x7b5   : > { %4137 = vadd.xlane.f32.xlu1 %v4128_v2  ;;  %4135 = vadd.xlane.f32.xlu0 %v4127_v23  ;;  %v7355_v14 = vpack.c.bf16 %v4778_v35, %v4777_v39  ;;  %v7357_v30 = vpack.c.bf16 %v4762_v9, %v4761_v36  ;;  %v7331_v27 = vpack.c.bf16 %v4750_v32, %v4749_v16  ;;  %v4768_v2 = vld [vmem:[%s10781_s11 + $0x138] sm:$0xff]  ;;  %v4739_v39 = vld [vmem:[%s10781_s11 + $0x50] sm:$0xff]  ;;  %v4789_v16 = vld [vmem:[%s10781_s11 + $0x1e0] sm:$0xff] }
 0x7b6   : > { %v7359_v10 = vpack.c.bf16 %v4780_v3, %v4779_v29  ;;  %v7333_v63 = vpack.c.bf16 %v4734_v38, %v4733_v37  ;;  %v7337_v23 = vpack.c.bf16 %v4736_v21, %v4735_v15  ;;  %v4740_v35 = vld [vmem:[%s10781_s11 + $0x58] sm:$0xff]  ;;  %v7375_v36 = vpack.c.bf16 %v4788_v4, %v4787_v41  ;;  %v4771_v9 = vld [vmem:[%s10781_s11 + $0x150] sm:$0xff]  ;;  %v4790_v32 = vld [vmem:[%s10781_s11 + $0x1e8] sm:$0xff] }
 0x7b7   : > { %7356 = vmatprep.subr.bf16.mxu0 %v7355_v14  ;;  %7332 = vmatprep.subr.bf16.mxu1 %v7331_v27  ;;  %v4757_v14 = vld [vmem:[%s10781_s11 + $0xe0] sm:$0xff]  ;;  %v4742_v3 = vld [vmem:[%s10781_s11 + $0x68] sm:$0xff]  ;;  %v7377_v37 = vpack.c.bf16 %v4772_v61, %v4771_v9  ;;  %v4759_v38 = vld [vmem:[%s10781_s11 + $0xf0] sm:$0xff]  ;;  %v7379_v0 = vpack.c.bf16 %v4790_v32, %v4789_v16  ;;  %v7381_v15 = vpack.c.bf16 %v4774_v13, %v4773_v43 }
 0x7b8   : > { %7358 = vmatpush3.bf16.msra.mxu0 %v7357_v30  ;;  %7334 = vmatpush3.bf16.msra.mxu1 %v7333_v63  ;;  %v7345_v30 = vpack.c.bf16 %v4740_v35, %v4739_v39  ;;  %v7347_v29 = vpack.c.bf16 %v4758_v17, %v4757_v14  ;;  %v4741_v27 = vld [vmem:[%s10781_s11 + $0x60] sm:$0xff]  ;;  %v4743_v63 = vld [vmem:[%s10781_s11 + $0x70] sm:$0xff]  ;;  %v7383_v21 = vpack.c.bf16 %v4792_v28, %v4791_v20  ;;  %v4812_v35 = vld [vmem:[%s10781_s11 + $0x298] sm:$0xff] }
 0x7b9   : > { %4141 = vadd.xlane.f32.xlu1 %v4130_v18  ;;  %4139 = vadd.xlane.f32.xlu0 %v4129_v11  ;;  %v4785_v18 = vld [vmem:[%s10781_s11 + $0x1c0] sm:$0xff]  ;;  %v7339_v11 = vpack.c.bf16 %v4754_v46, %v4753_v53  ;;  %v4776_v53 = vld [vmem:[%s10781_s11 + $0x178] sm:$0xff]  ;;  %v4811_v39 = vld [vmem:[%s10781_s11 + $0x290] sm:$0xff] }
 0x7ba   : > { %7360 = vmatprep.subr.bf16.mxu0 %v7359_v10  ;;  %7336 = vmatprep.subr.bf16.mxu1 %v7335_v12  ;;  %v4760_v10 = vld [vmem:[%s10781_s11 + $0xf8] sm:$0xff]  ;;  %v4810_v12 = vld [vmem:[%s10781_s11 + $0x288] sm:$0xff]  ;;  %v7391_v14 = vpack.c.bf16 %v4812_v35, %v4811_v39  ;;  %v4857_v39 = vld [vmem:[%s10781_s11 + $0x400] sm:$0xff] }
 0x7bb   : > { %v7351_v58 = vpack.c.bf16 %v4760_v10, %v4759_v38  ;;  %v7387_v46 = vpack.c.bf16 %v4810_v12, %v4809_v54  ;;  %v4842_v17 = vld [vmem:[%s10781_s11 + $0x388] sm:$0xff]  ;;  %v4796_v9 = vld [vmem:[%s10781_s11 + $0x218] sm:$0xff]  ;;  %v4164_v10 = vmul.f32 7680.0, %v9942_v45 }
 0x7bc   : > { %7362 = vmatpush3.bf16.msra.mxu0 %v7361_v50  ;;  %7338 = vmatpush3.bf16.msra.mxu1 %v7337_v23  ;;  %v7349_v50 = vpack.c.bf16 %v4742_v3, %v4741_v27  ;;  %v4814_v27 = vld [vmem:[%s10781_s11 + $0x2a8] sm:$0xff]  ;;  %v4816_v20 = vld [vmem:[%s10781_s11 + $0x2b8] sm:$0xff] }
 0x7bd   : > { %4145 = vadd.xlane.f32.xlu1 %v4132_v57  ;;  %4143 = vadd.xlane.f32.xlu0 %v4131_v40  ;;  %v4737_v57 = vld [vmem:[%s10781_s11 + $0x40] sm:$0xff]  ;;  %v4738_v40 = vld [vmem:[%s10781_s11 + $0x48] sm:$0xff] }
 0x7be   : > { %7364 = vmatprep.subr.bf16.mxu0 %v7363_v60  ;;  %v7341_v33 = vpack.c.bf16 %v4738_v40, %v4737_v57  ;;  %7340 = vmatprep.subr.bf16.mxu1 %v7339_v11  ;;  %v4744_v60 = vld [vmem:[%s10781_s11 + $0x78] sm:$0xff]  ;;  %v4798_v38 = vld [vmem:[%s10781_s11 + $0x228] sm:$0xff] }
 0x7bf   : > { %v4858_v35 = vld [vmem:[%s10781_s11 + $0x408] sm:$0xff] }
 0x7c0   : > { %7366 = vmatpush3.bf16.msra.mxu0 %v7365_v25  ;;  %7342 = vmatpush3.bf16.msra.mxu1 %v7341_v33  ;;  %v7353_v25 = vpack.c.bf16 %v4744_v60, %v4743_v63  ;;  %v4800_v63 = vld [vmem:[%s10781_s11 + $0x238] sm:$0xff]  ;;  %v4165_v60 = vmul.f32 %v4164_v10, %v9942_v45  ;;  %v4802_v45 = vld [vmem:[%s10781_s11 + $0x248] sm:$0xff] }
 0x7c1   : > { %4149 = vadd.xlane.f32.xlu1 %v4134_v24  ;;  %4147 = vadd.xlane.f32.xlu0 %v4133_v47  ;;  %v4786_v24 = vld [vmem:[%s10781_s11 + $0x1c8] sm:$0xff]  ;;  %v7369_v47 = vpack.c.bf16 %v4768_v2, %v4767_v7  ;;  %v7389_v2 = vpack.c.bf16 %v4794_v8, %v4793_v55 }
 0x7c2   : > { %7368 = vmatprep.subr.bf16.mxu0 %v7367_v19  ;;  %v7371_v6 = vpack.c.bf16 %v4786_v24, %v4785_v18  ;;  %7344 = vmatprep.subr.bf16.mxu1 %v7343_v62  ;;  %v7385_v19 = vpack.c.bf16 %v4776_v53, %v4775_v31  ;;  %v4513_v7 = vld [vmem:[#allocation2 + $0x7] sm:$0xff] }
 0x7c3   : > { %v4818_v31 = vld [vmem:[%s10781_s11 + $0x2c8] sm:$0xff] }
 0x7c4   : > { %7370 = vmatpush3.bf16.msra.mxu0 %v7369_v47  ;;  %7346 = vmatpush3.bf16.msra.mxu1 %v7345_v30 }
 0x7c5   : > { %7372 = vmatprep.subr.bf16.mxu0 %v7371_v6  ;;  %7348 = vmatprep.subr.bf16.mxu1 %v7347_v29  ;;  %v4813_v29 = vld [vmem:[%s10781_s11 + $0x2a0] sm:$0xff] }
 0x7c6   : > { %v7395_v3 = vpack.c.bf16 %v4814_v27, %v4813_v29  ;;  %v5651_v27 = vld [vmem:[%s10780_s10] ss:$0 sm:$0xff] }
 0x7c8   : > { %7374 = vmatpush3.bf16.msra.mxu0 %v7373_v48  ;;  %7350 = vmatpush3.bf16.msra.mxu1 %v7349_v50  ;;  %v4841_v48 = vld [vmem:[%s10781_s11 + $0x380] sm:$0xff]  ;;  %v4815_v50 = vld [vmem:[%s10781_s11 + $0x2b0] sm:$0xff] }
 0x7c9   : > { %7376 = vmatprep.subr.bf16.mxu0 %v7375_v36  ;;  %7352 = vmatprep.subr.bf16.mxu1 %v7351_v58  ;;  %v4795_v36 = vld [vmem:[%s10781_s11 + $0x210] sm:$0xff]  ;;  %v7419_v30 = vpack.c.bf16 %v4842_v17, %v4841_v48  ;;  %v7399_v28 = vpack.c.bf16 %v4816_v20, %v4815_v50  ;;  %v10289_v17 = vpack.c.bf16 %v4858_v35, %v4857_v39 }
 0x7ca   : > { %v7393_v16 = vpack.c.bf16 %v4796_v9, %v4795_v36  ;;  %v4799_v58 = vld [vmem:[%s10781_s11 + $0x230] sm:$0xff] }
 0x7cb   : > { %v7401_v54 = vpack.c.bf16 %v4800_v63, %v4799_v58 }
 0x7cc   : > { %7378 = vmatpush3.bf16.msra.mxu0 %v7377_v37  ;;  %7354 = vmatpush3.bf16.msra.mxu1 %v7353_v25  ;;  %v4797_v37 = vld [vmem:[%s10781_s11 + $0x220] sm:$0xff] }
 0x7cd   : > { %7380 = vmatprep.subr.bf16.mxu0 %v7379_v0  ;;  %7388 = vmatprep.subr.bf16.mxu1 %v7387_v46  ;;  %v7397_v43 = vpack.c.bf16 %v4798_v38, %v4797_v37  ;;  %v4801_v25 = vld [vmem:[%s10781_s11 + $0x240] sm:$0xff] }
 0x7ce   : > { %v7405_v55 = vpack.c.bf16 %v4802_v45, %v4801_v25 }
 0x7cf   : > { %4938 = vmatmul.mubr.f32.vlgmr.msra.gmra.mrb[104].mxu1 %v4513_v7  ;;  %v4820_v7 = vld [vmem:[%s10781_s11 + $0x2d8] sm:$0xff] }
 0x7d0   : > { %7382 = vmatpush3.bf16.msra.mxu0 %v7381_v15  ;;  %7390 = vmatpush3.bf16.msra.mxu1 %v7389_v2 }
 0x7d1   : > { %7384 = vmatprep.subr.bf16.mxu0 %v7383_v21  ;;  %7392 = vmatprep.subr.bf16.mxu1 %v7391_v14  ;;  %v4817_v21 = vld [vmem:[%s10781_s11 + $0x2c0] sm:$0xff] }
 0x7d2   : > { %v7403_v53 = vpack.c.bf16 %v4818_v31, %v4817_v21  ;;  %v5650_v14 = vld [vmem:[%s10779_s9] ss:$0 sm:$0xff] }
 0x7d4   : > { %7386 = vmatpush3.bf16.msra.mxu0 %v7385_v19  ;;  %7394 = vmatpush3.bf16.msra.mxu1 %v7393_v16  ;;  %v4819_v19 = vld [vmem:[%s10781_s11 + $0x2d0] sm:$0xff] }
 0x7d5   : > { %7420 = vmatprep.subr.bf16.mxu0 %v7419_v30  ;;  %7396 = vmatprep.subr.bf16.mxu1 %v7395_v3  ;;  %v7407_v2 = vpack.c.bf16 %v4820_v7, %v4819_v19 }
 0x7d8   : > { %7398 = vmatpush3.bf16.msra.mxu1 %v7397_v43 }
 0x7d9   : > { %7400 = vmatprep.subr.bf16.mxu1 %v7399_v28 }
 0x7dc   : > { %7402 = vmatpush3.bf16.msra.mxu1 %v7401_v54 }
 0x7dd   : > { %7404 = vmatprep.subr.bf16.mxu1 %v7403_v53 }
 0x7e0   : > { %7406 = vmatpush3.bf16.msra.mxu1 %v7405_v55 }
 0x7e1   : > { %7408 = vmatprep.subr.bf16.mxu1 %v7407_v2 }
 0x842   : > { %v4138_v23 = vpop.xlane.xlu1 %4137  ;;  %v4136_v18 = vpop.xlane.xlu0 %4135 }
 0x843   : > { %v4151_v11 = vadd.f32 %v4138_v23, %v4136_v18  ;;  %v4803_v23 = vld [vmem:[%s10781_s11 + $0x250] sm:$0xff]  ;;  %v4804_v18 = vld [vmem:[%s10781_s11 + $0x258] sm:$0xff] }
 0x846   : > { %v4142_v57 = vpop.xlane.xlu1 %4141  ;;  %v4140_v40 = vpop.xlane.xlu0 %4139 }
 0x847   : > { %v4152_v24 = vadd.f32 %v4151_v11, %v4140_v40  ;;  %v4821_v40 = vld [vmem:[%s10781_s11 + $0x2e0] sm:$0xff] }
 0x849   : > { %v4153_v47 = vadd.f32 %v4152_v24, %v4142_v57  ;;  %v7409_v57 = vpack.c.bf16 %v4804_v18, %v4803_v23  ;;  %v4822_v24 = vld [vmem:[%s10781_s11 + $0x2e8] sm:$0xff] }
 0x84a   : > { %v4146_v1 = vpop.xlane.xlu1 %4145  ;;  %v4144_v52 = vpop.xlane.xlu0 %4143 }
 0x84b   : > { %v4154_v6 = vadd.f32 %v4153_v47, %v4144_v52  ;;  %7410 = vmatpush3.bf16.msra.mxu1 %v7409_v57  ;;  %v7411_v47 = vpack.c.bf16 %v4822_v24, %v4821_v40  ;;  %v4806_v52 = vld [vmem:[%s10781_s11 + $0x268] sm:$0xff] }
 0x84d   : > { %v4155_v44 = vadd.f32 %v4154_v6, %v4146_v1  ;;  %v4805_v1 = vld [vmem:[%s10781_s11 + $0x260] sm:$0xff]  ;;  %7412 = vmatprep.subr.bf16.mxu1 %v7411_v47 }
 0x84e   : > { %v4148_v49 = vpop.xlane.xlu0 %4147  ;;  %v4150_v41 = vpop.xlane.xlu1 %4149  ;;  %v7413_v6 = vpack.c.bf16 %v4806_v52, %v4805_v1 }
 0x84f   : > { %v4156_v33 = vadd.f32 %v4155_v44, %v4148_v49  ;;  %v4823_v44 = vld [vmem:[%s10781_s11 + $0x2f0] sm:$0xff]  ;;  %v4824_v49 = vld [vmem:[%s10781_s11 + $0x2f8] sm:$0xff] }
 0x850   : > { %7414 = vmatpush3.bf16.msra.mxu1 %v7413_v6 }
 0x851   : > { %v4157_v4 = vadd.f32 %v4156_v33, %v4150_v41  ;;  %v7415_v33 = vpack.c.bf16 %v4824_v49, %v4823_v44  ;;  %v4807_v41 = vld [vmem:[%s10781_s11 + $0x270] sm:$0xff] }
 0x853   : > { %v4158_v62 = vrot.slane %v4157_v4, 4  ;;  %7416 = vmatprep.subr.bf16.mxu1 %v7415_v33 }
 0x855   : > { %v4159_v61 = vadd.f32 %v4158_v62, %v4157_v4  ;;  %v4808_v4 = vld [vmem:[%s10781_s11 + $0x278] sm:$0xff] }
 0x856   : > { %v7417_v62 = vpack.c.bf16 %v4808_v4, %v4807_v41 }
 0x857   : > { %v4160_v32 = vrot.slane %v4159_v61, 2 }
 0x858   : > { %7418 = vmatpush3.bf16.msra.mxu1 %v7417_v62 }
 0x859   : > { %v4161_v0 = vadd.f32 %v4160_v32, %v4159_v61  ;;  %7452 = vmatprep.subr.bf16.mxu1 %v10289_v17 }
 0x85b   : > { %v4162_v13 = vrot.slane %v4161_v0, 1 }
 0x85d   : > { %v4163_v15 = vadd.f32 %v4162_v13, %v4161_v0 }
 0x85f   : > { %v4166_v12 = vsub.f32 %v4163_v15, %v4165_v60 }
 0x861   : > { %v4167_v46 = vmul.f32 0.001953125, %v4166_v12 }
 0x863   : > { %v4168_v8 = vmax.f32 %v4167_v46, 0.0 }
 0x865   : > { %v4169_v11 = vadd.f32 1e-05, %v4168_v8 }
 0x867   : > { %7560 = vrsqrt.f32 %v4169_v11 }
 0x871   : > { %v7561_v48 = vpop.eup %7560 }
 0x872   : > { %v4172_v36 = vmul.f32 %v7561_v48, %v9945_v51  ;;  %v4173_v9 = vmul.f32 %v7561_v48, %v9958_v59  ;;  %v4174_v61 = vmul.f32 %v7561_v48, %v9955_v34  ;;  %v4175_v30 = vmul.f32 %v7561_v48, %v9968_v5 }
 0x873   : > { %v4176_v16 = vmul.f32 %v7561_v48, %v9965_v42  ;;  %v4177_v32 = vmul.f32 %v7561_v48, %v9978_v56  ;;  %v4171_v29 = vmul.f32 %v7561_v48, %v9948_v26  ;;  %v4178_v45 = vmul.f32 %v7561_v48, %v9975_v22 }
 0x874   : > { %v4187_v3 = vmul.f32 %v5650_v14, %v4172_v36  ;;  %v4188_v51 = vmul.f32 %v5650_v14, %v4173_v9  ;;  %v4189_v37 = vmul.f32 %v5650_v14, %v4174_v61  ;;  %v4190_v59 = vmul.f32 %v5650_v14, %v4175_v30 }
 0x875   : > { %v4186_v38 = vmul.f32 %v5650_v14, %v4171_v29  ;;  %v4191_v34 = vmul.f32 %v5650_v14, %v4176_v16  ;;  %v4192_v10 = vmul.f32 %v5650_v14, %v4177_v32  ;;  %v4193_v1 = vmul.f32 %v5650_v14, %v4178_v45 }
 0x876   : > { %v10302_v5 = vadd.f32 %v5651_v27, %v4187_v3  ;;  %v10304_v42 = vadd.f32 %v5651_v27, %v4188_v51  ;;  %v10306_v56 = vadd.f32 %v5651_v27, %v4189_v37  ;;  %v10310_v0 = vadd.f32 %v5651_v27, %v4190_v59 }
 0x877   : > { %v10308_v26 = vadd.f32 %v5651_v27, %v4186_v38  ;;  %v10312_v43 = vadd.f32 %v5651_v27, %v4191_v34  ;;  %v10314_v13 = vadd.f32 %v5651_v27, %v4192_v10  ;;  %v10345_v22 = vadd.f32 %v5651_v27, %v4193_v1 }
 0x878   : > { %v10320_v20 = vmul.f32 0.70710677, %v10302_v5  ;;  %v10323_v28 = vmul.f32 0.70710677, %v10304_v42  ;;  %v10326_v58 = vmul.f32 0.70710677, %v10306_v56 }
 0x879   : > { %v10317_v50 = vmul.f32 0.70710677, %v10308_v26  ;;  %v10329_v63 = vmul.f32 0.70710677, %v10310_v0  ;;  %v10332_v60 = vmul.f32 0.70710677, %v10312_v43 }
 0x87a   : > { %v10335_v15 = vmul.f32 0.70710677, %v10314_v13  ;;  %v4226_v12 = vand.u32 2147483647, %v10320_v20  ;;  %v4227_v21 = vand.u32 2147483647, %v10323_v28 }
 0x87b   : > { %v4225_v54 = vand.u32 2147483647, %v10317_v50  ;;  %v4228_v31 = vand.u32 2147483647, %v10326_v58  ;;  %v4229_v53 = vand.u32 2147483647, %v10329_v63 }
 0x87c   : > { %v4230_v25 = vand.u32 2147483647, %v10332_v60  ;;  %v4231_v46 = vand.u32 2147483647, %v10335_v15  ;;  %v4234_v8 = vmul.f32 0.5, %v4226_v12  ;;  %v4235_v19 = vmul.f32 0.5, %v4227_v21 }
 0x87d   : > { %v4233_v55 = vmul.f32 0.5, %v4225_v54  ;;  %v4236_v7 = vmul.f32 0.5, %v4228_v31  ;;  %v4237_v2 = vmul.f32 0.5, %v4229_v53  ;;  %v4265_v44 = vsub.f32 0.0, %v4225_v54 }
 0x87e   : > { %v4238_v23 = vmul.f32 0.5, %v4230_v25  ;;  %v4239_v18 = vmul.f32 0.5, %v4231_v46  ;;  %v4242_v57 = vadd.f32 1.0, %v4234_v8  ;;  %v4243_v40 = vadd.f32 1.0, %v4235_v19 }
 0x87f   : > { %v4241_v11 = vadd.f32 1.0, %v4233_v55  ;;  %v4244_v24 = vadd.f32 1.0, %v4236_v7  ;;  %v4245_v47 = vadd.f32 1.0, %v4237_v2  ;;  %v4266_v49 = vsub.f32 0.0, %v4226_v12 }
 0x880   : > { %v4246_v52 = vadd.f32 1.0, %v4238_v23  ;;  %v4247_v6 = vadd.f32 1.0, %v4239_v18  ;;  %v4267_v33 = vsub.f32 0.0, %v4227_v21  ;;  %v4268_v41 = vsub.f32 0.0, %v4228_v31 }
 0x881   : > { %7562 = vrcp.f32 %v4241_v11  ;;  %v4269_v4 = vsub.f32 0.0, %v4229_v53  ;;  %v10348_v62 = vmul.f32 0.70710677, %v10345_v22  ;;  %v4270_v39 = vsub.f32 0.0, %v4230_v25 }
 0x882   : > { %7564 = vrcp.f32 %v4242_v57  ;;  %v4273_v35 = vmul.f32 %v4265_v44, %v4225_v54  ;;  %v4271_v14 = vsub.f32 0.0, %v4231_v46  ;;  %v4274_v61 = vmul.f32 %v4266_v49, %v4226_v12 }
 0x883   : > { %7566 = vrcp.f32 %v4243_v40  ;;  %v10353_v36 = vand.u32 2147483647, %v10348_v62  ;;  %v4275_v30 = vmul.f32 %v4267_v33, %v4227_v21  ;;  %v4276_v29 = vmul.f32 %v4268_v41, %v4228_v31 }
 0x884   : > { %7568 = vrcp.f32 %v4244_v24  ;;  %v4277_v27 = vmul.f32 %v4269_v4, %v4229_v53  ;;  %v4278_v59 = vmul.f32 %v4270_v39, %v4230_v25  ;;  %v10364_v38 = vadd.f32 -1.2655122, %v4273_v35 }
 0x885   : > { %7570 = vrcp.f32 %v4245_v47  ;;  %v4240_v51 = vmul.f32 0.5, %v10353_v36  ;;  %v4279_v12 = vmul.f32 %v4271_v14, %v4231_v46  ;;  %v10372_v55 = vadd.f32 -1.2655122, %v4274_v61 }
 0x886   : > { %7572 = vrcp.f32 %v4246_v52  ;;  %v10382_v24 = vadd.f32 -1.2655122, %v4275_v30  ;;  %v10387_v41 = vadd.f32 -1.2655122, %v4276_v29  ;;  %vm4457_vm0 = vcmp.ge.f32.partialorder %v10317_v50, 0.0 }
 0x887   : > { %7574 = vrcp.f32 %v4247_v6  ;;  %v4248_v31 = vadd.f32 1.0, %v4240_v51  ;;  %vm4458_vm1 = vcmp.ge.f32.partialorder %v10320_v20, 0.0  ;;  %vm4459_vm2 = vcmp.ge.f32.partialorder %v10323_v28, 0.0 }
 0x888   : > { %vm4460_vm3 = vcmp.ge.f32.partialorder %v10326_v58, 0.0  ;;  %vm4461_vm4 = vcmp.ge.f32.partialorder %v10329_v63, 0.0  ;;  %vm4462_vm5 = vcmp.ge.f32.partialorder %v10332_v60, 0.0  ;;  %vm4463_vm6 = vcmp.ge.f32.partialorder %v10335_v15, 0.0 }
 0x889   : > { %7576 = vrcp.f32 %v4248_v31  ;;  %vm4464_vm7 = vcmp.ge.f32.partialorder %v10348_v62, 0.0  ;;  %v4833_v62 = vld [vmem:[%s10781_s11 + $0x340] sm:$0xff] }
 0x88b   : > { %v10350_v48 = vpop.eup %7562 }
 0x88c   : > { %v10355_v9 = vpop.eup %7564  ;;  %v4289_v16 = vmul.f32 0.17087276, %v10350_v48 }
 0x88d   : > { %v10358_v32 = vpop.eup %7566  ;;  %v4290_v3 = vmul.f32 0.17087276, %v10355_v9 }
 0x88e   : > { %v10362_v37 = vpop.eup %7568  ;;  %v4291_v34 = vmul.f32 0.17087276, %v10358_v32  ;;  %v4297_v10 = vadd.f32 -0.82215226, %v4289_v16 }
 0x88f   : > { %v10367_v54 = vpop.eup %7570  ;;  %v4292_v21 = vmul.f32 0.17087276, %v10362_v37  ;;  %v4298_v45 = vadd.f32 -0.82215226, %v4290_v3  ;;  %v10393_v3 = vadd.f32 -1.2655122, %v4277_v27 }
 0x890   : > { %v10370_v53 = vpop.eup %7572  ;;  %v4293_v8 = vmul.f32 0.17087276, %v10367_v54  ;;  %v4299_v19 = vadd.f32 -0.82215226, %v4291_v34  ;;  %v4305_v25 = vmul.f32 %v10350_v48, %v4297_v10 }
 0x891   : > { %v10376_v7 = vpop.eup %7574  ;;  %v4294_v2 = vmul.f32 0.17087276, %v10370_v53  ;;  %v4300_v23 = vadd.f32 -0.82215226, %v4292_v21  ;;  %v4306_v46 = vmul.f32 %v10355_v9, %v4298_v45 }
 0x892   : > { %v4295_v18 = vmul.f32 0.17087276, %v10376_v7  ;;  %v4301_v11 = vadd.f32 -0.82215226, %v4293_v8  ;;  %v4307_v57 = vmul.f32 %v10358_v32, %v4299_v19  ;;  %v4313_v40 = vadd.f32 1.4885159, %v4305_v25 }
 0x893   : > { %v4302_v47 = vadd.f32 -0.82215226, %v4294_v2  ;;  %v4308_v1 = vmul.f32 %v10362_v37, %v4300_v23  ;;  %v4314_v52 = vadd.f32 1.4885159, %v4306_v46  ;;  %v10398_v8 = vadd.f32 -1.2655122, %v4278_v59 }
 0x894   : > { %v4303_v6 = vadd.f32 -0.82215226, %v4295_v18  ;;  %v4309_v44 = vmul.f32 %v10367_v54, %v4301_v11  ;;  %v4315_v49 = vadd.f32 1.4885159, %v4307_v57  ;;  %v4321_v33 = vmul.f32 %v10350_v48, %v4313_v40  ;;  %v10404_v11 = vpop.eup %7576 }
 0x895   : > { %v4310_v4 = vmul.f32 %v10370_v53, %v4302_v47  ;;  %v4316_v39 = vadd.f32 1.4885159, %v4308_v1  ;;  %v4322_v35 = vmul.f32 %v10355_v9, %v4314_v52  ;;  %v10406_v57 = vadd.f32 -1.2655122, %v4279_v12 }
 0x896   : > { %v4311_v14 = vmul.f32 %v10376_v7, %v4303_v6  ;;  %v4317_v61 = vadd.f32 1.4885159, %v4309_v44  ;;  %v4323_v30 = vmul.f32 %v10358_v32, %v4315_v49  ;;  %v4329_v16 = vadd.f32 -1.135204, %v4321_v33 }
 0x897   : > { %v4318_v51 = vadd.f32 1.4885159, %v4310_v4  ;;  %v4324_v34 = vmul.f32 %v10362_v37, %v4316_v39  ;;  %v4330_v10 = vadd.f32 -1.135204, %v4322_v35  ;;  %v4296_v39 = vmul.f32 0.17087276, %v10404_v11 }
 0x898   : > { %v4319_v21 = vadd.f32 1.4885159, %v4311_v14  ;;  %v4325_v29 = vmul.f32 %v10367_v54, %v4317_v61  ;;  %v4331_v45 = vadd.f32 -1.135204, %v4323_v30  ;;  %v4337_v31 = vmul.f32 %v10350_v48, %v4329_v16 }
 0x899   : > { %v4326_v19 = vmul.f32 %v10370_v53, %v4318_v51  ;;  %v4332_v25 = vadd.f32 -1.135204, %v4324_v34  ;;  %v4338_v2 = vmul.f32 %v10355_v9, %v4330_v10  ;;  %v4304_v34 = vadd.f32 -0.82215226, %v4296_v39 }
 0x89a   : > { %v4327_v27 = vmul.f32 %v10376_v7, %v4319_v21  ;;  %v4333_v23 = vadd.f32 -1.135204, %v4325_v29  ;;  %v4339_v46 = vmul.f32 %v10358_v32, %v4331_v45  ;;  %v4345_v18 = vadd.f32 0.27886808, %v4337_v31 }
 0x89b   : > { %v4334_v40 = vadd.f32 -1.135204, %v4326_v19  ;;  %v4340_v47 = vmul.f32 %v10362_v37, %v4332_v25  ;;  %v4346_v59 = vadd.f32 0.27886808, %v4338_v2  ;;  %v4312_v2 = vmul.f32 %v10404_v11, %v4304_v34 }
 0x89c   : > { %v4335_v1 = vadd.f32 -1.135204, %v4327_v27  ;;  %v4341_v52 = vmul.f32 %v10367_v54, %v4333_v23  ;;  %v4347_v6 = vadd.f32 0.27886808, %v4339_v46  ;;  %v4353_v44 = vmul.f32 %v10350_v48, %v4345_v18 }
 0x89d   : > { %v4342_v49 = vmul.f32 %v10370_v53, %v4334_v40  ;;  %v4348_v33 = vadd.f32 0.27886808, %v4340_v47  ;;  %v4354_v4 = vmul.f32 %v10355_v9, %v4346_v59 }
 0x89e   : > { %v4343_v12 = vmul.f32 %v10376_v7, %v4335_v1  ;;  %v4349_v35 = vadd.f32 0.27886808, %v4341_v52  ;;  %v4355_v14 = vmul.f32 %v10358_v32, %v4347_v6  ;;  %v4361_v61 = vadd.f32 -0.18628806, %v4353_v44 }
 0x89f   : > { %v4350_v30 = vadd.f32 0.27886808, %v4342_v49  ;;  %v4356_v16 = vmul.f32 %v10362_v37, %v4348_v33  ;;  %v4362_v51 = vadd.f32 -0.18628806, %v4354_v4  ;;  %v4320_v1 = vadd.f32 1.4885159, %v4312_v2 }
 0x8a0   : > { %v4351_v10 = vadd.f32 0.27886808, %v4343_v12  ;;  %v4357_v21 = vmul.f32 %v10367_v54, %v4349_v35  ;;  %v4363_v29 = vadd.f32 -0.18628806, %v4355_v14  ;;  %v4369_v45 = vmul.f32 %v10350_v48, %v4361_v61 }
 0x8a1   : > { %v4358_v31 = vmul.f32 %v10370_v53, %v4350_v30  ;;  %v4364_v19 = vadd.f32 -0.18628806, %v4356_v16  ;;  %v4370_v25 = vmul.f32 %v10355_v9, %v4362_v51  ;;  %v4328_v12 = vmul.f32 %v10404_v11, %v4320_v1 }
 0x8a2   : > { %v4359_v27 = vmul.f32 %v10376_v7, %v4351_v10  ;;  %v4365_v23 = vadd.f32 -0.18628806, %v4357_v21  ;;  %v4371_v46 = vmul.f32 %v10358_v32, %v4363_v29  ;;  %v4377_v18 = vadd.f32 0.09678418, %v4369_v45 }
 0x8a3   : > { %v4366_v40 = vadd.f32 -0.18628806, %v4358_v31  ;;  %v4372_v47 = vmul.f32 %v10362_v37, %v4364_v19  ;;  %v4378_v59 = vadd.f32 0.09678418, %v4370_v25  ;;  %v4336_v10 = vadd.f32 -1.135204, %v4328_v12 }
 0x8a4   : > { %v4367_v52 = vadd.f32 -0.18628806, %v4359_v27  ;;  %v4373_v6 = vmul.f32 %v10367_v54, %v4365_v23  ;;  %v4379_v44 = vadd.f32 0.09678418, %v4371_v46  ;;  %v4385_v49 = vmul.f32 %v10350_v48, %v4377_v18 }
 0x8a5   : > { %v4374_v33 = vmul.f32 %v10370_v53, %v4366_v40  ;;  %v4380_v4 = vadd.f32 0.09678418, %v4372_v47  ;;  %v4386_v39 = vmul.f32 %v10355_v9, %v4378_v59  ;;  %v4344_v27 = vmul.f32 %v10404_v11, %v4336_v10 }
 0x8a6   : > { %v4375_v35 = vmul.f32 %v10376_v7, %v4367_v52  ;;  %v4381_v14 = vadd.f32 0.09678418, %v4373_v6  ;;  %v4387_v61 = vmul.f32 %v10358_v32, %v4379_v44  ;;  %v4393_v30 = vadd.f32 0.37409195, %v4385_v49 }
 0x8a7   : > { %v4382_v16 = vadd.f32 0.09678418, %v4374_v33  ;;  %v4388_v51 = vmul.f32 %v10362_v37, %v4380_v4  ;;  %v4394_v34 = vadd.f32 0.37409195, %v4386_v39  ;;  %v4352_v52 = vadd.f32 0.27886808, %v4344_v27 }
 0x8a8   : > { %v4383_v21 = vadd.f32 0.09678418, %v4375_v35  ;;  %v4389_v29 = vmul.f32 %v10367_v54, %v4381_v14  ;;  %v4395_v45 = vadd.f32 0.37409195, %v4387_v61  ;;  %v4401_v31 = vmul.f32 %v10350_v48, %v4393_v30 }
 0x8a9   : > { %v4390_v19 = vmul.f32 %v10370_v53, %v4382_v16  ;;  %v4396_v25 = vadd.f32 0.37409195, %v4388_v51  ;;  %v4402_v2 = vmul.f32 %v10355_v9, %v4394_v34  ;;  %v4360_v35 = vmul.f32 %v10404_v11, %v4352_v52 }
 0x8aa   : > { %v4391_v23 = vmul.f32 %v10376_v7, %v4383_v21  ;;  %v4397_v46 = vadd.f32 0.37409195, %v4389_v29  ;;  %v4403_v18 = vmul.f32 %v10358_v32, %v4395_v45  ;;  %v4409_v40 = vadd.f32 1.0000237, %v4401_v31 }
 0x8ab   : > { %v4398_v47 = vadd.f32 0.37409195, %v4390_v19  ;;  %v4404_v59 = vmul.f32 %v10362_v37, %v4396_v25  ;;  %v4410_v1 = vadd.f32 1.0000237, %v4402_v2  ;;  %v4368_v21 = vadd.f32 -0.18628806, %v4360_v35 }
 0x8ac   : > { %v4399_v6 = vadd.f32 0.37409195, %v4391_v23  ;;  %v4405_v44 = vmul.f32 %v10367_v54, %v4397_v46  ;;  %v4411_v49 = vadd.f32 1.0000237, %v4403_v18  ;;  %v4417_v33 = vmul.f32 %v10350_v48, %v4409_v40 }
 0x8ad   : > { %v4406_v4 = vmul.f32 %v10370_v53, %v4398_v47  ;;  %v4412_v39 = vadd.f32 1.0000237, %v4404_v59  ;;  %v4418_v12 = vmul.f32 %v10355_v9, %v4410_v1  ;;  %v4376_v23 = vmul.f32 %v10404_v11, %v4368_v21 }
 0x8ae   : > { %v4407_v14 = vmul.f32 %v10376_v7, %v4399_v6  ;;  %v4413_v61 = vadd.f32 1.0000237, %v4405_v44  ;;  %v4419_v30 = vmul.f32 %v10358_v32, %v4411_v49  ;;  %v4425_v16 = vadd.f32 %v10364_v38, %v4417_v33 }
 0x8af   : > { %v4414_v51 = vadd.f32 1.0000237, %v4406_v4  ;;  %v4420_v34 = vmul.f32 %v10362_v37, %v4412_v39  ;;  %v4426_v10 = vadd.f32 %v10372_v55, %v4418_v12  ;;  %v4384_v47 = vadd.f32 0.09678418, %v4376_v23 }
 0x8b0   : > { %v4415_v29 = vadd.f32 1.0000237, %v4407_v14  ;;  %v4421_v45 = vmul.f32 %v10367_v54, %v4413_v61  ;;  %v4427_v31 = vadd.f32 %v10382_v24, %v4419_v30  ;;  %v4433_v19 = vmul.f32 1.442695, %v4425_v16 }
 0x8b1   : > { %v4422_v25 = vmul.f32 %v10370_v53, %v4414_v51  ;;  %v4428_v2 = vadd.f32 %v10387_v41, %v4420_v34  ;;  %v4435_v27 = vmul.f32 1.442695, %v4426_v10  ;;  %v4392_v1 = vmul.f32 %v10404_v11, %v4384_v47 }
 0x8b2   : > { %v4423_v38 = vmul.f32 %v10376_v7, %v4415_v29  ;;  %v4429_v46 = vadd.f32 %v10393_v3, %v4421_v45  ;;  %7578 = vpow2.f32 %v4433_v19  ;;  %v4437_v55 = vmul.f32 1.442695, %v4427_v31 }
 0x8b3   : > { %v4430_v18 = vadd.f32 %v10398_v8, %v4422_v25  ;;  %7580 = vpow2.f32 %v4435_v27  ;;  %v4439_v40 = vmul.f32 1.442695, %v4428_v2  ;;  %v4272_v6 = vsub.f32 0.0, %v10353_v36 }
 0x8b4   : > { %v4431_v24 = vadd.f32 %v10406_v57, %v4423_v38  ;;  %7582 = vpow2.f32 %v4437_v55  ;;  %v4441_v59 = vmul.f32 1.442695, %v4429_v46  ;;  %v4400_v3 = vadd.f32 0.37409195, %v4392_v1 }
 0x8b5   : > { %7584 = vpow2.f32 %v4439_v40  ;;  %v4443_v41 = vmul.f32 1.442695, %v4430_v18  ;;  %v4210_v44 = vmul.f32 0.5, %v10302_v5  ;;  %v4211_v49 = vmul.f32 0.5, %v10304_v42 }
 0x8b6   : > { %7586 = vpow2.f32 %v4441_v59  ;;  %v4445_v52 = vmul.f32 1.442695, %v4431_v24  ;;  %v4408_v8 = vmul.f32 %v10404_v11, %v4400_v3  ;;  %v4280_v57 = vmul.f32 %v4272_v6, %v10353_v36 }
 0x8b7   : > { %7588 = vpow2.f32 %v4443_v41  ;;  %v4209_v33 = vmul.f32 0.5, %v10308_v26  ;;  %v4212_v4 = vmul.f32 0.5, %v10306_v56  ;;  %v4213_v39 = vmul.f32 0.5, %v10310_v0 }
 0x8b8   : > { %7590 = vpow2.f32 %v4445_v52  ;;  %v4416_v12 = vadd.f32 1.0000237, %v4408_v8  ;;  %v4214_v14 = vmul.f32 0.5, %v10312_v43  ;;  %v4215_v61 = vmul.f32 0.5, %v10314_v13 }
 0x8b9   : > { %v5659_v43 = vadd.f32 -1.2655122, %v4280_v57 }
 0x8ba   : > { %v4424_v56 = vmul.f32 %v10404_v11, %v4416_v12  ;;  %v4545_v12 = vld [vmem:[#allocation2 + $0x9] sm:$0xff] }
 0x8bc   : > { %v7579_v35 = vpop.eup %7578  ;;  %v4432_v21 = vadd.f32 %v5659_v43, %v4424_v56  ;;  %v4845_v56 = vld [vmem:[%s10781_s11 + $0x3a0] sm:$0xff] }
 0x8bd   : > { %v7581_v5 = vpop.eup %7580  ;;  %v4449_v42 = vmul.f32 %v7579_v35, %v10350_v48 }
 0x8be   : > { %v7583_v26 = vpop.eup %7582  ;;  %v4450_v0 = vmul.f32 %v7581_v5, %v10355_v9  ;;  %v4447_v15 = vmul.f32 1.442695, %v4432_v21  ;;  %v4827_v5 = vld [vmem:[%s10781_s11 + $0x310] sm:$0xff] }
 0x8bf   : > { %v7585_v13 = vpop.eup %7584  ;;  %v4451_v36 = vmul.f32 %v7583_v26, %v10358_v32  ;;  %v4465_v48 = vsub.f32 1.0, %v4449_v42  ;;  %v5660_v30 = vadd.f32 -1.0, %v4449_v42  ;;  %v4828_v42 = vld [vmem:[%s10781_s11 + $0x318] sm:$0xff]  ;;  %v4846_v26 = vld [vmem:[%s10781_s11 + $0x3a8] sm:$0xff] }
 0x8c0   : > { %v7587_v16 = vpop.eup %7586  ;;  %v4452_v51 = vmul.f32 %v7585_v13, %v10362_v37  ;;  %v4466_v34 = vsub.f32 1.0, %v4450_v0  ;;  %v5661_v10 = vadd.f32 -1.0, %v4450_v0  ;;  %7592 = vpow2.f32 %v4447_v15  ;;  %v4837_v15 = vld [vmem:[%s10781_s11 + $0x360] sm:$0xff] }
 0x8c1   : > { %v7589_v29 = vpop.eup %7588  ;;  %v4453_v9 = vmul.f32 %v7587_v16, %v10367_v54  ;;  %v4467_v45 = vsub.f32 1.0, %v4451_v36  ;;  %v5662_v31 = vadd.f32 -1.0, %v4451_v36  ;;  %v4481_v19 = vsel %vm4457_vm0, %v4465_v48, %v5660_v30  ;;  %v4829_v36 = vld [vmem:[%s10781_s11 + $0x320] sm:$0xff]  ;;  %v4830_v48 = vld [vmem:[%s10781_s11 + $0x328] sm:$0xff] }
 0x8c2   : > { %v7591_v25 = vpop.eup %7590  ;;  %v4454_v32 = vmul.f32 %v7589_v29, %v10370_v53  ;;  %v4468_v2 = vsub.f32 1.0, %v4452_v51  ;;  %v5663_v27 = vadd.f32 -1.0, %v4452_v51  ;;  %v4482_v23 = vsel %vm4458_vm1, %v4466_v34, %v5661_v10  ;;  %v4847_v51 = vld [vmem:[%s10781_s11 + $0x3b0] sm:$0xff]  ;;  %v4848_v34 = vld [vmem:[%s10781_s11 + $0x3b8] sm:$0xff] }
 0x8c3   : > { %v4455_v37 = vmul.f32 %v7591_v25, %v10376_v7  ;;  %v4469_v38 = vsub.f32 1.0, %v4453_v9  ;;  %v5664_v46 = vadd.f32 -1.0, %v4453_v9  ;;  %v4483_v54 = vsel %vm4459_vm2, %v4467_v45, %v5662_v31  ;;  %v4831_v45 = vld [vmem:[%s10781_s11 + $0x330] sm:$0xff]  ;;  %v4832_v31 = vld [vmem:[%s10781_s11 + $0x338] sm:$0xff] }
 0x8c4   : > { %v4470_v55 = vsub.f32 1.0, %v4454_v32  ;;  %v5665_v18 = vadd.f32 -1.0, %v4454_v32  ;;  %v4484_v50 = vsel %vm4460_vm3, %v4468_v2, %v5663_v27  ;;  %v4489_v40 = vadd.f32 1.0, %v4481_v19  ;;  %v4850_v2 = vld [vmem:[%s10781_s11 + $0x3c8] sm:$0xff] }
 0x8c5   : > { %v4471_v47 = vsub.f32 1.0, %v4455_v37  ;;  %v5666_v53 = vadd.f32 -1.0, %v4455_v37  ;;  %v4485_v24 = vsel %vm4461_vm4, %v4469_v38, %v5664_v46  ;;  %v4490_v20 = vadd.f32 1.0, %v4482_v23 }
 0x8c6   : > { %v4486_v7 = vsel %vm4462_vm5, %v4470_v55, %v5665_v18  ;;  %v4491_v59 = vadd.f32 1.0, %v4483_v54  ;;  %v4492_v41 = vadd.f32 1.0, %v4484_v50  ;;  %v4493_v1 = vadd.f32 1.0, %v4485_v24  ;;  %v4834_v55 = vld [vmem:[%s10781_s11 + $0x348] sm:$0xff]  ;;  %v4851_v50 = vld [vmem:[%s10781_s11 + $0x3d0] sm:$0xff] }
 0x8c7   : > { %v4487_v28 = vsel %vm4463_vm6, %v4471_v47, %v5666_v53  ;;  %v4494_v52 = vadd.f32 1.0, %v4486_v7  ;;  %v10500_v6 = vmul.f32 %v4489_v40, %v4209_v33  ;;  %v10502_v58 = vmul.f32 %v4490_v20, %v4210_v44  ;;  %v4825_v44 = vld [vmem:[%s10781_s11 + $0x300] sm:$0xff]  ;;  %v4835_v20 = vld [vmem:[%s10781_s11 + $0x350] sm:$0xff]  ;;  %v4836_v7 = vld [vmem:[%s10781_s11 + $0x358] sm:$0xff] }
 0x8c8   : > { %v4495_v3 = vadd.f32 1.0, %v4487_v28  ;;  %v10504_v8 = vmul.f32 %v4491_v59, %v4211_v49  ;;  %v10506_v63 = vmul.f32 %v4492_v41, %v4212_v4  ;;  %v10508_v57 = vmul.f32 %v4493_v1, %v4213_v39  ;;  %v4826_v49 = vld [vmem:[%s10781_s11 + $0x308] sm:$0xff]  ;;  %v4843_v4 = vld [vmem:[%s10781_s11 + $0x390] sm:$0xff]  ;;  %v4844_v39 = vld [vmem:[%s10781_s11 + $0x398] sm:$0xff] }
 0x8c9   : > { %v10510_v60 = vmul.f32 %v4494_v52, %v4214_v14  ;;  %4505 = vst [vmem:[#allocation2 + $0x20] sm:$0xff] %v10500_v6  ;;  %4942 = vmatprep.mubr.f32.mxu1 %v10500_v6  ;;  %4506 = vst [vmem:[#allocation2 + $0x38] sm:$0xff] %v10502_v58  ;;  %v7421_v35 = vpack.c.bf16 %v4826_v49, %v4825_v44  ;;  %v7425_v43 = vpack.c.bf16 %v4828_v42, %v4827_v5  ;;  %v4853_v41 = vld [vmem:[%s10781_s11 + $0x3e0] sm:$0xff]  ;;  %v4854_v1 = vld [vmem:[%s10781_s11 + $0x3e8] sm:$0xff]  ;;  %v6451_v42 = vpop.f32.mrb[104].mxu1 }
 0x8ca   : > { %v10515_v33 = vmul.f32 %v4495_v3, %v4215_v61  ;;  %4507 = vst [vmem:[#allocation2 + $0x50] sm:$0xff] %v10504_v8  ;;  %4508 = vst [vmem:[#allocation2 + $0x68] sm:$0xff] %v10506_v63  ;;  %v7423_v61 = vpack.c.bf16 %v4844_v39, %v4843_v4  ;;  %v7427_v13 = vpack.c.bf16 %v4846_v26, %v4845_v56  ;;  %v7593_v30 = vpop.eup %7592  ;;  %v4216_v38 = vmul.f32 0.5, %v10345_v22  ;;  %v4852_v22 = vld [vmem:[%s10781_s11 + $0x3d8] sm:$0xff]  ;;  %v4838_v44 = vld [vmem:[%s10781_s11 + $0x368] sm:$0xff]  ;;  %v6452_v26 = vpop.f32.mrb[105].mxu1 }
 0x8cb   : > { %4509 = vst [vmem:[#allocation2 + $0x80] sm:$0xff] %v10508_v57  ;;  %4510 = vst [vmem:[#allocation2 + $0x98] sm:$0xff] %v10510_v60  ;;  %v4456_v21 = vmul.f32 %v7593_v30, %v10404_v11  ;;  %v7429_v29 = vpack.c.bf16 %v4830_v48, %v4829_v36  ;;  %v7431_v9 = vpack.c.bf16 %v4848_v34, %v4847_v51  ;;  %v4849_v11 = vld [vmem:[%s10781_s11 + $0x3c0] sm:$0xff]  ;;  %v4855_v4 = vld [vmem:[%s10781_s11 + $0x3f0] sm:$0xff] }
 0x8cc   : > { %4511 = vst [vmem:[#allocation2 + $0xb0] sm:$0xff] %v10515_v33  ;;  %v7433_v37 = vpack.c.bf16 %v4832_v31, %v4831_v45  ;;  %v7435_v54 = vpack.c.bf16 %v4850_v2, %v4849_v11  ;;  %v7437_v53 = vpack.c.bf16 %v4834_v55, %v4833_v62  ;;  %v7439_v24 = vpack.c.bf16 %v4852_v22, %v4851_v50  ;;  %v4856_v39 = vld [vmem:[%s10781_s11 + $0x3f8] sm:$0xff]  ;;  %v4861_v34 = vld [vmem:[%s10781_s11 + $0x420] sm:$0xff] }
 0x8cd   : > { %v4472_v19 = vsub.f32 1.0, %v4456_v21  ;;  %v5667_v25 = vadd.f32 -1.0, %v4456_v21  ;;  %v7441_v52 = vpack.c.bf16 %v4836_v7, %v4835_v20  ;;  %v7443_v3 = vpack.c.bf16 %v4854_v1, %v4853_v41  ;;  %v4840_v5 = vld [vmem:[%s10781_s11 + $0x378] sm:$0xff]  ;;  %v4862_v21 = vld [vmem:[%s10781_s11 + $0x428] sm:$0xff]  ;;  %v4869_v31 = vld [vmem:[%s10781_s11 + $0x460] sm:$0xff] }
 0x8ce   : > { %v4860_v36 = vld [vmem:[%s10781_s11 + $0x418] sm:$0xff]  ;;  %v10675_v48 = vadd.f32 %v6452_v26, %v6451_v42 }
 0x8cf   : > { %v4488_v23 = vsel %vm4464_vm7, %v4472_v19, %v5667_v25  ;;  %v4868_v45 = vld [vmem:[%s10781_s11 + $0x458] sm:$0xff]  ;;  %v4870_v19 = vld [vmem:[%s10781_s11 + $0x468] sm:$0xff]  ;;  %v4871_v25 = vld [vmem:[%s10781_s11 + $0x470] sm:$0xff] }
 0x8d0   : > { %v4561_v14 = vld [vmem:[#allocation2 + $0x1f] sm:$0xff]  ;;  %v10547_v0 = vld [vmem:[#allocation2 + $0x37] sm:$0xff]  ;;  %v4496_v46 = vadd.f32 1.0, %v4488_v23 }
 0x8d1   : > { %5042 = vmatprep.mubr.f32.mxu0 %v4561_v14  ;;  %4943 = vmatmul.mubr.f32.gmra.mrb[106].mxu1 %v4561_v14  ;;  %v10557_v16 = vld [vmem:[#allocation2 + $0x21] sm:$0xff]  ;;  %v10567_v10 = vld [vmem:[#allocation2 + $0x4f] sm:$0xff]  ;;  %v10578_v32 = vld [vmem:[#allocation2 + $0x39] sm:$0xff]  ;;  %v7447_v14 = vpack.c.bf16 %v4856_v39, %v4855_v4 }
 0x8d2   : > { %5043 = vmatmul.mubr.f32.vlgmr.msra.gmra.mrb[112].mxu0 %v4545_v12  ;;  %4947 = vmatprep.mubr.f32.mxu1 %v10502_v58  ;;  %v10589_v27 = vld [vmem:[#allocation2 + $0x67] sm:$0xff]  ;;  %v10600_v18 = vld [vmem:[#allocation2 + $0x51] sm:$0xff]  ;;  %v10608_v40 = vmul.f32 %v4496_v46, %v4216_v38  ;;  %v10612_v47 = vld [vmem:[#allocation2 + $0x7f] sm:$0xff] }
 0x8d3   : > { %5047 = vmatprep.mubr.f32.mxu0 %v10547_v0  ;;  %7422 = vmatpush3.bf16.msra.mxu0 %v7421_v35  ;;  %v10623_v59 = vld [vmem:[#allocation2 + $0x69] sm:$0xff]  ;;  %v10633_v28 = vld [vmem:[#allocation2 + $0x97] sm:$0xff]  ;;  %v10643_v49 = vld [vmem:[#allocation2 + $0x81] sm:$0xff]  ;;  %v7445_v35 = vpack.c.bf16 %v4838_v44, %v4837_v15 }
 0x8d4   : > { %7424 = vmatprep.subr.bf16.mxu0 %v7423_v61  ;;  %4512 = vst [vmem:[#allocation2 + $0xc8] sm:$0xff] %v10608_v40  ;;  %v10653_v12 = vld [vmem:[#allocation2 + $0xaf] sm:$0xff]  ;;  %v10663_v56 = vld [vmem:[#allocation2 + $0x99] sm:$0xff] }
 0x8d5   : > { %4948 = vmatmul.mubr.f32.gmra.mrb[108].mxu1 %v10547_v0  ;;  %v4839_v61 = vld [vmem:[%s10781_s11 + $0x370] sm:$0xff]  ;;  %v4872_v11 = vld [vmem:[%s10781_s11 + $0x478] sm:$0xff] }
 0x8d6   : > { %5048 = vmatmul.mubr.f32.gmra.mrb[114].mxu0 %v10557_v16  ;;  %4952 = vmatprep.mubr.f32.mxu1 %v10504_v8  ;;  %v7449_v30 = vpack.c.bf16 %v4840_v5, %v4839_v61  ;;  %v10678_v51 = vld [vmem:[#allocation2 + $0xb1] sm:$0xff]  ;;  %v7479_v2 = vpack.c.bf16 %v4872_v11, %v4871_v25  ;;  %v4616_v23 = vld [vmem:[#allocation2 + $0xdf] sm:$0xff] }
 0x8d7   : > { %5052 = vmatprep.mubr.f32.mxu0 %v10567_v10  ;;  %7426 = vmatpush3.bf16.msra.mxu0 %v7425_v43 }
 0x8d8   : > { %7428 = vmatprep.subr.bf16.mxu0 %v7427_v13  ;;  %v4859_v13 = vld [vmem:[%s10781_s11 + $0x410] sm:$0xff] }
 0x8d9   : > { %4953 = vmatmul.mubr.f32.gmra.mrb[110].mxu1 %v10567_v10 }
 0x8da   : > { %5053 = vmatmul.mubr.f32.gmra.mrb[116].mxu0 %v10578_v32  ;;  %4957 = vmatprep.mubr.f32.mxu1 %v10506_v63 }
 0x8db   : > { %5057 = vmatprep.mubr.f32.mxu0 %v10589_v27  ;;  %7430 = vmatpush3.bf16.msra.mxu0 %v7429_v29  ;;  %v10666_v43 = vld [vmem:[#allocation2 + $0xc7] sm:$0xff]  ;;  %v4863_v29 = vld [vmem:[%s10781_s11 + $0x430] sm:$0xff] }
 0x8dc   : > { %7432 = vmatprep.subr.bf16.mxu0 %v7431_v9  ;;  %v4864_v9 = vld [vmem:[%s10781_s11 + $0x438] sm:$0xff] }
 0x8dd   : > { %4958 = vmatmul.mubr.f32.gmra.mrb[112].mxu1 %v10589_v27 }
 0x8de   : > { %5058 = vmatmul.mubr.f32.gmra.mrb[118].mxu0 %v10600_v18  ;;  %4962 = vmatprep.mubr.f32.mxu1 %v10508_v57 }
 0x8df   : > { %5062 = vmatprep.mubr.f32.mxu0 %v10612_v47  ;;  %7434 = vmatpush3.bf16.msra.mxu0 %v7433_v37 }
 0x8e0   : > { %7436 = vmatprep.subr.bf16.mxu0 %v7435_v54 }
 0x8e1   : > { %4963 = vmatmul.mubr.f32.gmra.mrb[114].mxu1 %v10612_v47 }
 0x8e2   : > { %5063 = vmatmul.mubr.f32.gmra.mrb[120].mxu0 %v10623_v59  ;;  %4967 = vmatprep.mubr.f32.mxu1 %v10510_v60 }
 0x8e3   : > { %5067 = vmatprep.mubr.f32.mxu0 %v10633_v28  ;;  %7438 = vmatpush3.bf16.msra.mxu0 %v7437_v53 }
 0x8e4   : > { %7440 = vmatprep.subr.bf16.mxu0 %v7439_v24 }
 0x8e5   : > { %4968 = vmatmul.mubr.f32.gmra.mrb[116].mxu1 %v10633_v28 }
 0x8e6   : > { %5068 = vmatmul.mubr.f32.gmra.mrb[122].mxu0 %v10643_v49  ;;  %4972 = vmatprep.mubr.f32.mxu1 %v10515_v33 }
 0x8e7   : > { %5072 = vmatprep.mubr.f32.mxu0 %v10653_v12  ;;  %7442 = vmatpush3.bf16.msra.mxu0 %v7441_v52 }
 0x8e8   : > { %7444 = vmatprep.subr.bf16.mxu0 %v7443_v3 }
 0x8e9   : > { %4973 = vmatmul.mubr.f32.gmra.mrb[118].mxu1 %v10653_v12 }
 0x8ea   : > { %5073 = vmatmul.mubr.f32.gmra.mrb[124].mxu0 %v10663_v56  ;;  %5147 = vmatprep.mubr.f32.mxu1 %v10557_v16  ;;  %v7455_v16 = vpack.c.bf16 %v4860_v36, %v4859_v13 }
 0x8eb   : > { %5077 = vmatprep.mubr.f32.mxu0 %v10666_v43  ;;  %7446 = vmatpush3.bf16.msra.mxu0 %v7445_v35 }
 0x8ec   : > { %7448 = vmatprep.subr.bf16.mxu0 %v7447_v14 }
 0x8ed   : > { %5148 = vmatmul.mubr.f32.vlgmr.msra.gmra.mrb[120].mxu1 %v10500_v6  ;;  %v7459_v6 = vpack.c.bf16 %v4862_v21, %v4861_v34 }
 0x8ee   : > { %5078 = vmatmul.mubr.f32.gmra.mrb[126].mxu0 %v10678_v51  ;;  %5152 = vmatprep.mubr.f32.mxu1 %v10578_v32 }
 0x8ef   : > { %7450 = vmatpush3.bf16.msra.mxu0 %v7449_v30  ;;  %5252 = vmatprep.mubr.f32.mxu0 %v10502_v58 }
 0x8f0   : > { %7454 = vmatpush3.bf16.msra.mxu1 %v10289_v17  ;;  %v7463_v17 = vpack.c.bf16 %v4864_v9, %v4863_v29 }
 0x8f1   : > { %5153 = vmatmul.mubr.f32.gmra.mrb[122].mxu1 %v10502_v58  ;;  %7456 = vmatprep.subr.bf16.mxu1 %v7455_v16  ;;  %v4865_v58 = vld [vmem:[%s10781_s11 + $0x440] sm:$0xff] }
 0x8f2   : > { %5253 = vmatmul.mubr.f32.vlgmr.msra.gmra.mrb[128].mxu0 %v10547_v0  ;;  %5157 = vmatprep.mubr.f32.mxu1 %v10600_v18  ;;  %v4866_v0 = vld [vmem:[%s10781_s11 + $0x448] sm:$0xff] }
 0x8f3   : > { %5257 = vmatprep.mubr.f32.mxu0 %v10504_v8 }
 0x8f4   : > { %7458 = vmatpush3.bf16.msra.mxu1 %v7455_v16 }
 0x8f5   : > { %5158 = vmatmul.mubr.f32.gmra.mrb[124].mxu1 %v10504_v8  ;;  %7460 = vmatprep.subr.bf16.mxu1 %v7459_v6  ;;  %v7467_v8 = vpack.c.bf16 %v4866_v0, %v4865_v58 }
 0x8f6   : > { %5258 = vmatmul.mubr.f32.gmra.mrb[130].mxu0 %v10567_v10  ;;  %5162 = vmatprep.mubr.f32.mxu1 %v10623_v59  ;;  %v4867_v10 = vld [vmem:[%s10781_s11 + $0x450] sm:$0xff] }
 0x8f7   : > { %5262 = vmatprep.mubr.f32.mxu0 %v10506_v63 }
 0x8f8   : > { %7462 = vmatpush3.bf16.msra.mxu1 %v7459_v6 }
 0x8f9   : > { %5163 = vmatmul.mubr.f32.gmra.mrb[126].mxu1 %v10506_v63  ;;  %7464 = vmatprep.subr.bf16.mxu1 %v7463_v17  ;;  %v7471_v63 = vpack.c.bf16 %v4868_v45, %v4867_v10 }
 0x8fa   : > { %5263 = vmatmul.mubr.f32.gmra.mrb[132].mxu0 %v10589_v27  ;;  %5167 = vmatprep.mubr.f32.mxu1 %v10643_v49  ;;  %v7598_v27 = vld [vmem:[#allocation2 + $0x8] sm:$0xff] }
 0x8fb   : > { %5267 = vmatprep.mubr.f32.mxu0 %v10508_v57 }
 0x8fc   : > { %7466 = vmatpush3.bf16.msra.mxu1 %v7463_v17 }
 0x8fd   : > { %5168 = vmatmul.mubr.f32.gmra.mrb[128].mxu1 %v10508_v57  ;;  %7468 = vmatprep.subr.bf16.mxu1 %v7467_v8  ;;  %v7475_v57 = vpack.c.bf16 %v4870_v19, %v4869_v31 }
 0x8fe   : > { %5268 = vmatmul.mubr.f32.gmra.mrb[134].mxu0 %v10612_v47  ;;  %5172 = vmatprep.mubr.f32.mxu1 %v10663_v56 }
 0x8ff   : > { %5272 = vmatprep.mubr.f32.mxu0 %v10510_v60 }
 0x900   : > { %7470 = vmatpush3.bf16.msra.mxu1 %v7467_v8 }
 0x901   : > { %5173 = vmatmul.mubr.f32.gmra.mrb[130].mxu1 %v10510_v60  ;;  %7472 = vmatprep.subr.bf16.mxu1 %v7471_v63  ;;  %v4600_v60 = vld [vmem:[#allocation2 + $0xc9] sm:$0xff] }
 0x902   : > { %5273 = vmatmul.mubr.f32.gmra.mrb[136].mxu0 %v10633_v28  ;;  %5177 = vmatprep.mubr.f32.mxu1 %v10678_v51 }
 0x903   : > { %5277 = vmatprep.mubr.f32.mxu0 %v10515_v33 }
 0x904   : > { %7474 = vmatpush3.bf16.msra.mxu1 %v7471_v63 }
 0x905   : > { %5178 = vmatmul.mubr.f32.gmra.mrb[132].mxu1 %v10515_v33  ;;  %7476 = vmatprep.subr.bf16.mxu1 %v7475_v57  ;;  %v4648_v33 = vld [vmem:[#allocation2 + $0xe1] sm:$0xff] }
 0x906   : > { %5278 = vmatmul.mubr.f32.gmra.mrb[138].mxu0 %v10653_v12  ;;  %5182 = vmatprep.mubr.f32.mxu1 %v4600_v60 }
 0x907   : > { %5282 = vmatprep.mubr.f32.mxu0 %v10608_v40 }
 0x908   : > { %7478 = vmatpush3.bf16.msra.mxu1 %v7475_v57 }
 0x909   : > { %5183 = vmatmul.mubr.f32.gmra.mrb[134].mxu1 %v10608_v40  ;;  %7480 = vmatprep.subr.bf16.mxu1 %v7479_v2 }
 0x90a   : > { %5283 = vmatmul.mubr.f32.gmra.mrb[140].mxu0 %v10666_v43  ;;  %6831 = vmatprep.mubr.f32.mxu1 %v10578_v32 }
 0x90b   : > { %5287 = vmatprep.mubr.f32.mxu0 %v7598_v27 }
 0x90c   : > { %7482 = vmatpush3.bf16.msra.mxu1 %v7479_v2 }
 0x90e   : > { %5288 = vmatmul.mubr.f32.gmra.mrb[142].mxu0 %v4616_v23 }
 0x90f   : > { %6832 = vmatmul.mubr.f32.vlgmr.msra.gmra.mrb[136].mxu1 %v10600_v18 }
 0x910   : > { %6834 = vmatprep.mubr.f32.mxu1 %v10623_v59 }
 0x913   : > { %6835 = vmatmul.mubr.f32.gmra.mrb[138].mxu1 %v10643_v49 }
 0x914   : > { %6837 = vmatprep.mubr.f32.mxu1 %v10663_v56 }
 0x917   : > { %6838 = vmatmul.mubr.f32.gmra.mrb[140].mxu1 %v10678_v51 }
 0x918   : > { %6840 = vmatprep.mubr.f32.mxu1 %v4600_v60 }
 0x91b   : > { %6841 = vmatmul.mubr.f32.gmra.mrb[142].mxu1 %v4648_v33 }
 0x9a4   : > { %v6454_v37 = vpop.f32.mrb[106].mxu1 }
 0x9a5   : > { %v6507_v32 = vpop.f32.mrb[112].mxu0  ;;  %v6455_v38 = vpop.f32.mrb[107].mxu1 }
 0x9a6   : > { %v6456_v46 = vadd.f32 %v6455_v38, %v6454_v37  ;;  %v6508_v54 = vpop.f32.mrb[113].mxu0 }
 0x9a7   : > { %v6509_v62 = vadd.f32 %v6508_v54, %v6507_v32 }
 0x9a8   : > { %v6457_v55 = vpop.f32.mrb[108].mxu1 }
 0x9a9   : > { %v5045_v18 = vadd.f32 %v6509_v62, %v10675_v48  ;;  %v6510_v50 = vpop.f32.mrb[114].mxu0  ;;  %v6458_v22 = vpop.f32.mrb[109].mxu1 }
 0x9aa   : > { %v6459_v40 = vadd.f32 %v6458_v22, %v6457_v55  ;;  %v6511_v47 = vpop.f32.mrb[115].mxu0 }
 0x9ab   : > { %v6512_v53 = vadd.f32 %v6511_v47, %v6510_v50 }
 0x9ac   : > { %v6460_v24 = vpop.f32.mrb[110].mxu1 }
 0x9ad   : > { %v5050_v20 = vadd.f32 %v6512_v53, %v6456_v46  ;;  %v6513_v7 = vpop.f32.mrb[116].mxu0  ;;  %v6461_v59 = vpop.f32.mrb[111].mxu1 }
 0x9ae   : > { %v6462_v41 = vadd.f32 %v6461_v59, %v6460_v24  ;;  %v6514_v1 = vpop.f32.mrb[117].mxu0 }
 0x9af   : > { %v6515_v28 = vadd.f32 %v6514_v1, %v6513_v7 }
 0x9b0   : > { %v6463_v52 = vpop.f32.mrb[112].mxu1 }
 0x9b1   : > { %v5055_v3 = vadd.f32 %v6515_v28, %v6459_v40  ;;  %v6516_v15 = vpop.f32.mrb[118].mxu0  ;;  %v6464_v44 = vpop.f32.mrb[113].mxu1 }
 0x9b2   : > { %v6465_v49 = vadd.f32 %v6464_v44, %v6463_v52  ;;  %v6517_v4 = vpop.f32.mrb[119].mxu0 }
 0x9b3   : > { %v6518_v39 = vadd.f32 %v6517_v4, %v6516_v15 }
 0x9b4   : > { %v6466_v12 = vpop.f32.mrb[114].mxu1 }
 0x9b5   : > { %v5060_v35 = vadd.f32 %v6518_v39, %v6462_v41  ;;  %v6519_v14 = vpop.f32.mrb[120].mxu0  ;;  %v6467_v61 = vpop.f32.mrb[115].mxu1 }
 0x9b6   : > { %v6468_v5 = vadd.f32 %v6467_v61, %v6466_v12  ;;  %v6520_v42 = vpop.f32.mrb[121].mxu0 }
 0x9b7   : > { %v6521_v56 = vadd.f32 %v6520_v42, %v6519_v14 }
 0x9b8   : > { %v6469_v26 = vpop.f32.mrb[116].mxu1 }
 0x9b9   : > { %v5065_v43 = vadd.f32 %v6521_v56, %v6465_v49  ;;  %v6522_v13 = vpop.f32.mrb[122].mxu0  ;;  %v6470_v36 = vpop.f32.mrb[117].mxu1 }
 0x9ba   : > { %v6471_v48 = vadd.f32 %v6470_v36, %v6469_v26  ;;  %v6523_v30 = vpop.f32.mrb[123].mxu0 }
 0x9bb   : > { %v6524_v51 = vadd.f32 %v6523_v30, %v6522_v13 }
 0x9bc   : > { %v6472_v16 = vpop.f32.mrb[118].mxu1 }
 0x9bd   : > { %v5070_v34 = vadd.f32 %v6524_v51, %v6468_v5  ;;  %v6525_v21 = vpop.f32.mrb[124].mxu0  ;;  %v6473_v6 = vpop.f32.mrb[119].mxu1 }
 0x9be   : > { %v6474_v29 = vadd.f32 %v6473_v6, %v6472_v16  ;;  %v6526_v9 = vpop.f32.mrb[125].mxu0 }
 0x9bf   : > { %v6527_v17 = vadd.f32 %v6526_v9, %v6525_v21 }
 0x9c0   : > { %v6563_v58 = vpop.f32.mrb[120].mxu1 }
 0x9c1   : > { %v5075_v0 = vadd.f32 %v6527_v17, %v6471_v48  ;;  %v6528_v8 = vpop.f32.mrb[126].mxu0  ;;  %v6564_v10 = vpop.f32.mrb[121].mxu1 }
 0x9c2   : > { %v6529_v45 = vpop.f32.mrb[127].mxu0  ;;  %v6565_v63 = vadd.f32 %v6564_v10, %v6563_v58 }
 0x9c3   : > { %v6530_v31 = vadd.f32 %v6529_v45, %v6528_v8 }
 0x9c4   : > { %v5150_v19 = vadd.f32 %v6565_v63, %v5045_v18  ;;  %v6566_v57 = vpop.f32.mrb[122].mxu1 }
 0x9c5   : > { %v5080_v25 = vadd.f32 %v6530_v31, %v6474_v29  ;;  %v6619_v11 = vpop.f32.mrb[128].mxu0  ;;  %v6567_v60 = vpop.f32.mrb[123].mxu1 }
 0x9c6   : > { %v6568_v2 = vadd.f32 %v6567_v60, %v6566_v57  ;;  %v6620_v27 = vpop.f32.mrb[129].mxu0 }
 0x9c7   : > { %v6621_v23 = vadd.f32 %v6620_v27, %v6619_v11 }
 0x9c8   : > { %v5155_v33 = vadd.f32 %v6568_v2, %v5050_v20  ;;  %v6569_v37 = vpop.f32.mrb[124].mxu1 }
 0x9c9   : > { %v6622_v32 = vpop.f32.mrb[130].mxu0  ;;  %v6570_v38 = vpop.f32.mrb[125].mxu1  ;;  %v5255_v46 = vadd.f32 %v6621_v23, %v5150_v19 }
 0x9ca   : > { %v6571_v54 = vadd.f32 %v6570_v38, %v6569_v37  ;;  %v6623_v62 = vpop.f32.mrb[131].mxu0 }
 0x9cb   : > { %v6624_v55 = vadd.f32 %v6623_v62, %v6622_v32 }
 0x9cc   : > { %v5160_v50 = vadd.f32 %v6571_v54, %v5055_v3  ;;  %v6572_v22 = vpop.f32.mrb[126].mxu1 }
 0x9cd   : > { %v6625_v40 = vpop.f32.mrb[132].mxu0  ;;  %v6573_v47 = vpop.f32.mrb[127].mxu1  ;;  %v5260_v18 = vadd.f32 %v6624_v55, %v5155_v33 }
 0x9ce   : > { %v6574_v53 = vadd.f32 %v6573_v47, %v6572_v22  ;;  %v6626_v24 = vpop.f32.mrb[133].mxu0 }
 0x9cf   : > { %v6627_v7 = vadd.f32 %v6626_v24, %v6625_v40 }
 0x9d0   : > { %v5165_v59 = vadd.f32 %v6574_v53, %v5060_v35  ;;  %v6575_v41 = vpop.f32.mrb[128].mxu1 }
 0x9d1   : > { %v6628_v1 = vpop.f32.mrb[134].mxu0  ;;  %v6576_v28 = vpop.f32.mrb[129].mxu1  ;;  %v5265_v20 = vadd.f32 %v6627_v7, %v5160_v50 }
 0x9d2   : > { %v6577_v52 = vadd.f32 %v6576_v28, %v6575_v41  ;;  %v6629_v15 = vpop.f32.mrb[135].mxu0 }
 0x9d3   : > { %v6630_v44 = vadd.f32 %v6629_v15, %v6628_v1 }
 0x9d4   : > { %v5170_v49 = vadd.f32 %v6577_v52, %v5065_v43  ;;  %v6578_v4 = vpop.f32.mrb[130].mxu1 }
 0x9d5   : > { %v6631_v39 = vpop.f32.mrb[136].mxu0  ;;  %v6579_v12 = vpop.f32.mrb[131].mxu1  ;;  %v5270_v3 = vadd.f32 %v6630_v44, %v5165_v59 }
 0x9d6   : > { %v6580_v14 = vadd.f32 %v6579_v12, %v6578_v4  ;;  %v6632_v61 = vpop.f32.mrb[137].mxu0 }
 0x9d7   : > { %v6633_v5 = vadd.f32 %v6632_v61, %v6631_v39 }
 0x9d8   : > { %v5175_v42 = vadd.f32 %v6580_v14, %v5070_v34  ;;  %v6581_v56 = vpop.f32.mrb[132].mxu1 }
 0x9d9   : > { %v6634_v26 = vpop.f32.mrb[138].mxu0  ;;  %v6582_v13 = vpop.f32.mrb[133].mxu1  ;;  %v5275_v35 = vadd.f32 %v6633_v5, %v5170_v49 }
 0x9da   : > { %v6583_v36 = vadd.f32 %v6582_v13, %v6581_v56  ;;  %v6635_v48 = vpop.f32.mrb[139].mxu0 }
 0x9db   : > { %v6636_v30 = vadd.f32 %v6635_v48, %v6634_v26 }
 0x9dc   : > { %v5180_v51 = vadd.f32 %v6583_v36, %v5075_v0  ;;  %v6584_v16 = vpop.f32.mrb[134].mxu1 }
 0x9dd   : > { %v6637_v21 = vpop.f32.mrb[140].mxu0  ;;  %v6585_v6 = vpop.f32.mrb[135].mxu1  ;;  %v5280_v43 = vadd.f32 %v6636_v30, %v5175_v42 }
 0x9de   : > { %v6586_v29 = vadd.f32 %v6585_v6, %v6584_v16  ;;  %v6638_v9 = vpop.f32.mrb[141].mxu0 }
 0x9df   : > { %v6639_v17 = vadd.f32 %v6638_v9, %v6637_v21 }
 0x9e0   : > { %v5185_v58 = vadd.f32 %v6586_v29, %v5080_v25 }
 0x9e1   : > { %v6640_v8 = vpop.f32.mrb[142].mxu0  ;;  %v5285_v10 = vadd.f32 %v6639_v17, %v5180_v51 }
 0x9e2   : > { %v6833_v45 = vpop.f32.mrb[136].mxu1  ;;  %v6641_v34 = vpop.f32.mrb[143].mxu0 }
 0x9e3   : > { %v5365_v63 = vadd.f32 %v6833_v45, %v5260_v18  ;;  %v6642_v31 = vadd.f32 %v6641_v34, %v6640_v8  ;;  %v5359_v19 = vpop.f32.mrb[137].mxu1 }
 0x9e4   : > { %v5360_v57 = vadd.f32 %v5359_v19, %v5255_v46 }
 0x9e5   : > { %5400 = vadd.xlane.f32.xlu1 %v5365_v63  ;;  %v5290_v11 = vadd.f32 %v6642_v31, %v5185_v58 }
 0x9e6   : > { %v6836_v60 = vpop.f32.mrb[138].mxu1  ;;  %5398 = vadd.xlane.f32.xlu0 %v5360_v57 }
 0x9e7   : > { %v5375_v0 = vadd.f32 %v6836_v60, %v5270_v3  ;;  %v5369_v2 = vpop.f32.mrb[139].mxu1 }
 0x9e8   : > { %v5370_v27 = vadd.f32 %v5369_v2, %v5265_v20 }
 0x9e9   : > { %5404 = vadd.xlane.f32.xlu1 %v5375_v0 }
 0x9ea   : > { %v6839_v23 = vpop.f32.mrb[140].mxu1  ;;  %5402 = vadd.xlane.f32.xlu0 %v5370_v27 }
 0x9eb   : > { %v5385_v33 = vadd.f32 %v6839_v23, %v5280_v43  ;;  %v5379_v25 = vpop.f32.mrb[141].mxu1 }
 0x9ec   : > { %v5380_v37 = vadd.f32 %v5379_v25, %v5275_v35 }
 0x9ed   : > { %5408 = vadd.xlane.f32.xlu1 %v5385_v33 }
 0x9ee   : > { %v6842_v32 = vpop.f32.mrb[142].mxu1  ;;  %5406 = vadd.xlane.f32.xlu0 %v5380_v37 }
 0x9ef   : > { %v5395_v38 = vadd.f32 %v6842_v32, %v5290_v11  ;;  %v5389_v54 = vpop.f32.mrb[143].mxu1 }
 0x9f0   : > { %v5390_v62 = vadd.f32 %v5389_v54, %v5285_v10 }
 0x9f1   : > { %5412 = vadd.xlane.f32.xlu1 %v5395_v38 }
 0x9f2   : > { %5410 = vadd.xlane.f32.xlu0 %v5390_v62 }
 0xa72   : > { %v5401_v46 = vpop.xlane.xlu1 %5400 }
 0xa73   : > { %v5399_v55 = vpop.xlane.xlu0 %5398 }
 0xa74   : > { %v5414_v50 = vadd.f32 %v5401_v46, %v5399_v55 }
 0xa76   : > { %v5405_v22 = vpop.xlane.xlu1 %5404 }
 0xa77   : > { %v5403_v40 = vpop.xlane.xlu0 %5402 }
 0xa78   : > { %v5415_v47 = vadd.f32 %v5414_v50, %v5403_v40  ;;  %v5668_v50 = vld [vmem:[%s10782_s12] ss:$0 sm:$0xff] }
 0xa7a   : > { %v5416_v18 = vadd.f32 %v5415_v47, %v5405_v22  ;;  %v5409_v53 = vpop.xlane.xlu1 %5408 }
 0xa7b   : > { %v5407_v24 = vpop.xlane.xlu0 %5406 }
 0xa7c   : > { %v5417_v7 = vadd.f32 %v5416_v18, %v5407_v24 }
 0xa7e   : > { %v5418_v59 = vadd.f32 %v5417_v7, %v5409_v53  ;;  %v5413_v28 = vpop.xlane.xlu1 %5412  ;;  %v5669_v53 = vld [vmem:[%s10783_s13] ss:$0 sm:$0xff] }
 0xa7f   : > { %v5411_v41 = vpop.xlane.xlu0 %5410 }
 0xa80   : > { %v5419_v1 = vadd.f32 %v5418_v59, %v5411_v41 }
 0xa82   : > { %v5420_v20 = vadd.f32 %v5419_v1, %v5413_v28 }
 0xa84   : > { %v5421_v52 = vrot.slane %v5420_v20, 4 }
 0xa86   : > { %v5422_v15 = vadd.f32 %v5421_v52, %v5420_v20 }
 0xa88   : > { %v5423_v44 = vrot.slane %v5422_v15, 2 }
 0xa8a   : > { %v5424_v49 = vadd.f32 %v5423_v44, %v5422_v15  ;;  %v5670_v15 = vld [vmem:[%s476_s25] ss:$0 sm:$0xff] }
 0xa8c   : > { %v5425_v4 = vrot.slane %v5424_v49, 1 }
 0xa8e   : > { %v5426_v39 = vadd.f32 %v5425_v4, %v5424_v49 }
 0xa90   : > { %v5427_v12 = vmul.f32 0.001953125, %v5426_v39 }
 0xa92   : > { %v5429_v3 = vsub.f32 %v5365_v63, %v5427_v12  ;;  %v5428_v14 = vsub.f32 %v5360_v57, %v5427_v12  ;;  %v5431_v42 = vsub.f32 %v5375_v0, %v5427_v12  ;;  %v5430_v56 = vsub.f32 %v5370_v27, %v5427_v12 }
 0xa93   : > { %v5433_v35 = vsub.f32 %v5385_v33, %v5427_v12  ;;  %v5432_v36 = vsub.f32 %v5380_v37, %v5427_v12  ;;  %v5435_v51 = vsub.f32 %v5395_v38, %v5427_v12  ;;  %v5434_v16 = vsub.f32 %v5390_v62, %v5427_v12 }
 0xa94   : > { %v5437_v61 = vmul.f32 %v5429_v3, %v5429_v3  ;;  %v5436_v5 = vmul.f32 %v5428_v14, %v5428_v14  ;;  %v5439_v26 = vmul.f32 %v5431_v42, %v5431_v42  ;;  %v5438_v13 = vmul.f32 %v5430_v56, %v5430_v56 }
 0xa95   : > { %v5441_v48 = vmul.f32 %v5433_v35, %v5433_v35  ;;  %v5440_v30 = vmul.f32 %v5432_v36, %v5432_v36  ;;  %v5443_v21 = vmul.f32 %v5435_v51, %v5435_v51  ;;  %v5442_v6 = vmul.f32 %v5434_v16, %v5434_v16 }
 0xa96   : > { %5446 = vadd.xlane.f32.xlu1 %v5437_v61  ;;  %5444 = vadd.xlane.f32.xlu0 %v5436_v5  ;;  %v5473_v23 = vmul.f32 7680.0, %v5427_v12 }
 0xa98   : > { %v5474_v37 = vmul.f32 %v5473_v23, %v5427_v12 }
 0xa9a   : > { %5450 = vadd.xlane.f32.xlu1 %v5439_v26  ;;  %5448 = vadd.xlane.f32.xlu0 %v5438_v13 }
 0xa9e   : > { %5454 = vadd.xlane.f32.xlu1 %v5441_v48  ;;  %5452 = vadd.xlane.f32.xlu0 %v5440_v30 }
 0xaa2   : > { %5458 = vadd.xlane.f32.xlu1 %v5443_v21  ;;  %5456 = vadd.xlane.f32.xlu0 %v5442_v6 }
 0xb23   : > { %v5447_v43 = vpop.xlane.xlu1 %5446  ;;  %v5445_v29 = vpop.xlane.xlu0 %5444 }
 0xb24   : > { %v5460_v9 = vadd.f32 %v5447_v43, %v5445_v29 }
 0xb27   : > { %v5451_v17 = vpop.xlane.xlu1 %5450  ;;  %v5449_v58 = vpop.xlane.xlu0 %5448 }
 0xb28   : > { %v5461_v8 = vadd.f32 %v5460_v9, %v5449_v58 }
 0xb2a   : > { %v5462_v10 = vadd.f32 %v5461_v8, %v5451_v17 }
 0xb2b   : > { %v5455_v45 = vpop.xlane.xlu1 %5454  ;;  %v5453_v34 = vpop.xlane.xlu0 %5452 }
 0xb2c   : > { %v5463_v63 = vadd.f32 %v5462_v10, %v5453_v34 }
 0xb2e   : > { %v5464_v31 = vadd.f32 %v5463_v63, %v5455_v45 }
 0xb2f   : > { %v5457_v19 = vpop.xlane.xlu0 %5456  ;;  %v5459_v11 = vpop.xlane.xlu1 %5458 }
 0xb30   : > { %v5465_v57 = vadd.f32 %v5464_v31, %v5457_v19 }
 0xb32   : > { %v5466_v60 = vadd.f32 %v5465_v57, %v5459_v11 }
 0xb34   : > { %v5467_v0 = vrot.slane %v5466_v60, 4 }
 0xb36   : > { %v5468_v2 = vadd.f32 %v5467_v0, %v5466_v60 }
 0xb38   : > { %v5469_v27 = vrot.slane %v5468_v2, 2 }
 0xb3a   : > { %v5470_v33 = vadd.f32 %v5469_v27, %v5468_v2 }
 0xb3c   : > { %v5471_v25 = vrot.slane %v5470_v33, 1 }
 0xb3e   : > { %v5472_v32 = vadd.f32 %v5471_v25, %v5470_v33 }
 0xb40   : > { %v5475_v38 = vsub.f32 %v5472_v32, %v5474_v37 }
 0xb42   : > { %v5476_v54 = vmul.f32 0.001953125, %v5475_v38 }
 0xb44   : > { %v5477_v62 = vmax.f32 %v5476_v54, 0.0 }
 0xb46   : > { %v5478_v46 = vadd.f32 1e-05, %v5477_v62 }
 0xb48   : > { %7594 = vrsqrt.f32 %v5478_v46 }
 0xb52   : > { %v7595_v55 = vpop.eup %7594 }
 0xb53   : > { %v5480_v22 = vmul.f32 %v7595_v55, %v5428_v14  ;;  %v5481_v40 = vmul.f32 %v7595_v55, %v5429_v3  ;;  %v5482_v47 = vmul.f32 %v7595_v55, %v5430_v56  ;;  %v5483_v18 = vmul.f32 %v7595_v55, %v5431_v42 }
 0xb54   : > { %v5484_v24 = vmul.f32 %v7595_v55, %v5432_v36  ;;  %v5485_v7 = vmul.f32 %v7595_v55, %v5433_v35  ;;  %v5486_v59 = vmul.f32 %v7595_v55, %v5434_v16  ;;  %v5487_v41 = vmul.f32 %v7595_v55, %v5435_v51 }
 0xb55   : > { %v5495_v1 = vmul.f32 %v5668_v50, %v5480_v22  ;;  %v5496_v28 = vmul.f32 %v5668_v50, %v5481_v40  ;;  %v5497_v20 = vmul.f32 %v5668_v50, %v5482_v47  ;;  %v5498_v52 = vmul.f32 %v5668_v50, %v5483_v18 }
 0xb56   : > { %v5499_v44 = vmul.f32 %v5668_v50, %v5484_v24  ;;  %v5500_v49 = vmul.f32 %v5668_v50, %v5485_v7  ;;  %v5501_v4 = vmul.f32 %v5668_v50, %v5486_v59  ;;  %v5502_v39 = vmul.f32 %v5668_v50, %v5487_v41 }
 0xb57   : > { %v5510_v12 = vadd.f32 %v5669_v53, %v5495_v1  ;;  %v5511_v3 = vadd.f32 %v5669_v53, %v5496_v28  ;;  %v5512_v14 = vadd.f32 %v5669_v53, %v5497_v20  ;;  %v5513_v61 = vadd.f32 %v5669_v53, %v5498_v52 }
 0xb58   : > { %v5514_v5 = vadd.f32 %v5669_v53, %v5499_v44  ;;  %v5515_v42 = vadd.f32 %v5669_v53, %v5500_v49  ;;  %v5516_v56 = vadd.f32 %v5669_v53, %v5501_v4  ;;  %v5517_v26 = vadd.f32 %v5669_v53, %v5502_v39 }
 0xb59   : > { %v5525_v13 = vadd.f32 %v5670_v15, %v5510_v12  ;;  %v5526_v35 = vadd.f32 %v5670_v15, %v5511_v3  ;;  %v5527_v36 = vadd.f32 %v5670_v15, %v5512_v14  ;;  %v5528_v48 = vadd.f32 %v5670_v15, %v5513_v61 }
 0xb5a   : > { %v5529_v30 = vadd.f32 %v5670_v15, %v5514_v5  ;;  %v5530_v51 = vadd.f32 %v5670_v15, %v5515_v42  ;;  %v5531_v16 = vadd.f32 %v5670_v15, %v5516_v56  ;;  %v5532_v21 = vadd.f32 %v5670_v15, %v5517_v26 }
 0xb5b   : > { %5533 = vst [vmem:[%s481_s22] sm:$0xff] %v5525_v13  ;;  %5534 = vst [vmem:[%s481_s22 + $0x8] sm:$0xff] %v5526_v35 }
 0xb5c   : > { %5535 = vst [vmem:[%s481_s22 + $0x10] sm:$0xff] %v5527_v36  ;;  %5536 = vst [vmem:[%s481_s22 + $0x18] sm:$0xff] %v5528_v48 }
 0xb5d   : > { %5537 = vst [vmem:[%s481_s22 + $0x20] sm:$0xff] %v5529_v30  ;;  %5538 = vst [vmem:[%s481_s22 + $0x28] sm:$0xff] %v5530_v51 }
 0xb5e   : > { %5539 = vst [vmem:[%s481_s22 + $0x30] sm:$0xff] %v5531_v16  ;;  %5540 = vst [vmem:[%s481_s22 + $0x38] sm:$0xff] %v5532_v21 }
 0xb5f PF: > { %s24_s29 = sadd.s32 1, %s7605_s29  }
 0xb60   : > { %p21_p4 = scmp.ge.s32.totalorder %s24_s29, 4  }
 0xb62   :  { %23 = sbr.rel (!%p21_p4) target bundleno = 1 (0x1), region = 111 }

</bundles_post_ra>
